<compile_context>
chip_gen: v7x
topology: tpu7x:2x2x1
jax: 0.10.0
libtpu: 0.0.40
codegen_flags: <defaults>
</compile_context>

<pallas_src>
import math
import functools

import jax
import jax.numpy as jnp
from jax.experimental import pallas as pl
from jax.experimental.pallas import tpu as pltpu

TIME_LEN = 8
JOINT_NUM = 22
SEQ = TIME_LEN * JOINT_NUM  # 176 (hard-coded in the PyTorch mask builder)


# ----------------------------------------------------------------------------
# Parameter / buffer construction (glue, plain JAX)
# ----------------------------------------------------------------------------
def build_masks():
    """Reproduces MultiHeadedAttention.get_att_type_mask(). Values are exactly {0, 1}."""
    t_idx = jnp.arange(SEQ) // JOINT_NUM
    same_block = (t_idx[:, None] == t_idx[None, :]).astype(jnp.float32)
    eye = jnp.eye(SEQ, dtype=jnp.float32)
    temporal_mask = (1.0 - same_block) + eye   # tempoal_mask (blocks zeroed) + I
    spatial_mask = same_block                  # 1 - tempoal_mask (before +I)
    return temporal_mask, spatial_mask


def build_pe(ft_size, att_type):
    """Reproduces PEFunction.__init__ buffer PE (shape (SEQ, ft_size))."""
    if att_type == "spatial":
        pos = jnp.tile(jnp.arange(JOINT_NUM), TIME_LEN).astype(jnp.float32)
    else:  # 'temporal'
        pos = jnp.arange(SEQ, dtype=jnp.float32)
    div = jnp.exp(
        jnp.arange(0, ft_size, 2, dtype=jnp.float32) * (-math.log(10000.0) / ft_size)
    )
    ang = pos[:, None] * div[None, :]
    pe = jnp.zeros((SEQ, ft_size), dtype=jnp.float32)
    pe = pe.at[:, 0::2].set(jnp.sin(ang))
    pe = pe.at[:, 1::2].set(jnp.cos(ang))
    return pe


def xavier_uniform(key, shape):
    fan_in, fan_out = shape
    lim = math.sqrt(6.0 / (fan_in + fan_out))
    return jax.random.uniform(key, shape, jnp.float32, -lim, lim)


def _default_num_steps(batch):
    """1 grid step on single-TensorCore chips (v5e/v6e), 2 on 2-TC chips (v7x)."""
    try:
        kind = jax.devices()[0].device_kind.lower()
    except Exception:  # pragma: no cover - defensive
        kind = ""
    if ("v7" in kind) and batch >= 2 and batch % 2 == 0:
        return 2
    return 1


# ----------------------------------------------------------------------------
# Pallas kernel: one grid step handles `batch_per_step` batch elements end-to-end.
# ----------------------------------------------------------------------------
def att_layer_kernel(
    x_ref, pe_ref, bias_ref,
    wqkv_ref, bqkv_ref,
    wo_ref, bo_ref, a2_ref, b2_ref,
    out_ref,
    *, h_num, h_dim, eps, batch_per_step,
):
    bps = batch_per_step
    S = bias_ref.shape[0]
    Din = x_ref.shape[-1]
    Dh = h_num * h_dim
    Dout = wo_ref.shape[1]

    # Fuse the whole batch chunk into one tall (bps*S, Din) activation slab.
    x = x_ref[...].reshape(bps * S, Din)
    xp = x + pe_ref[...]                                # PE is pre-tiled in the wrapper

    # Fused QKV projection: (bps*S, Din) @ (Din, 3*Dh). ReLU on V only (value_map);
    # 1/sqrt(d_k) is already folded into Wq/bq on the host. Dropout = identity (eval).
    qkv = jnp.dot(xp, wqkv_ref[...], preferred_element_type=jnp.float32) + bqkv_ref[...]
    q = qkv[:, 0:Dh]
    k = qkv[:, Dh:2 * Dh]
    v = jnp.maximum(qkv[:, 2 * Dh:3 * Dh], 0.0)

    bias = bias_ref[...]                                # additive mask bias: 0 or -9e15

    # ---- scores for every (batch, head) pair, stacked along sublanes -> one softmax ----
    s_blocks = []
    for b in range(bps):                                # tiny static loops (unrolled)
        rows = slice(b * S, (b + 1) * S)
        for h in range(h_num):
            cs = slice(h * h_dim, (h + 1) * h_dim)
            s_blocks.append(
                jax.lax.dot_general(
                    q[rows, cs], k[rows, cs],
                    (((1,), (1,)), ((), ())),           # q @ k.T, no explicit transpose
                    preferred_element_type=jnp.float32,
                ) + bias
            )
    s_all = jnp.concatenate(s_blocks, axis=0) if len(s_blocks) > 1 else s_blocks[0]
    s_all = s_all - jnp.max(s_all, axis=-1, keepdims=True)
    e_all = jnp.exp(s_all)
    p_all = e_all * pl.reciprocal(jnp.sum(e_all, axis=-1, keepdims=True), approx=True)
    p_all = p_all.astype(jnp.bfloat16)                  # post-softmax: bf16 MXU operands

    # ---- attention-weighted values; concat(head outputs) @ Wo == sum_h o_h @ Wo[h] ----
    y = jnp.zeros((bps * S, Dout), jnp.float32)
    for h in range(h_num):
        cs = slice(h * h_dim, (h + 1) * h_dim)
        o_rows = []
        for b in range(bps):
            rows = slice(b * S, (b + 1) * S)
            blk = b * h_num + h                         # matches stacking order above
            o_rows.append(
                jnp.dot(p_all[blk * S:(blk + 1) * S, :],
                        v[rows, cs].astype(jnp.bfloat16),
                        preferred_element_type=jnp.float32)
            )
        o_h = jnp.concatenate(o_rows, axis=0) if bps > 1 else o_rows[0]   # (bps*S, h_dim)
        y = y + jnp.dot(o_h, wo_ref[cs, :], preferred_element_type=jnp.float32)

    # ---- single epilogue over the whole slab: bias + ReLU + NormLayer (+ Dropout id) ----
    y = jnp.maximum(y + bo_ref[...], 0.0)
    mean = jnp.mean(y, axis=-1, keepdims=True)
    diff = y - mean
    var = jnp.sum(diff * diff, axis=-1, keepdims=True) * (1.0 / (Dout - 1))  # torch.std: unbiased
    inv = 1.0 / (jnp.sqrt(var) + eps)                   # exact divide for parity
    out = a2_ref[...] * diff * inv + b2_ref[...]
    out_ref[...] = out.reshape(bps, S, Dout)            # one store per grid step


def att_layer_forward(x, params, mask, pe, *, h_num, h_dim, eps=1e-6, num_steps=None):
    B, S, Din = x.shape
    Dh = h_num * h_dim
    Dout = params["wo"].shape[1]

    if num_steps is None:
        num_steps = _default_num_steps(B)
    assert B % num_steps == 0, "batch must divide evenly across grid steps"
    bps = B // num_steps

    # Host-side precompute (free): additive mask bias (exact because mask in {0,1}),
    # chunk-tiled PE, fused QKV params with 1/sqrt(d_k) folded into the Q projection.
    scale = 1.0 / math.sqrt(h_dim)
    att_bias = (mask - 1.0) * 9.0e15                    # 0 (keep) or -9e15 (masked)
    pe_tiled = jnp.tile(pe, (bps, 1))                   # (bps*S, Din), consistent with bps
    wqkv = jnp.concatenate([params["wq"] * scale, params["wk"], params["wv"]], axis=1)
    bqkv = jnp.concatenate([params["bq"] * scale, params["bk"], params["bv"]], axis=1)

    def full(shape):
        return pl.BlockSpec(shape, lambda b, _n=len(shape): (0,) * _n)

    kernel = functools.partial(
        att_layer_kernel, h_num=h_num, h_dim=h_dim, eps=eps, batch_per_step=bps
    )

    return pl.pallas_call(
        kernel,
        out_shape=jax.ShapeDtypeStruct((B, S, Dout), jnp.float32),
        grid=(num_steps,),
        in_specs=[
            pl.BlockSpec((bps, S, Din), lambda b: (b, 0, 0)),   # x chunk
            full((bps * S, Din)),                               # tiled PE
            full((S, S)),                                       # additive attention bias
            full((Din, 3 * Dh)), full((1, 3 * Dh)),             # fused Wqkv, bqkv
            full((Dh, Dout)), full((1, Dout)),                  # Wo, bo
            full((1, Dout)), full((1, Dout)),                   # a_2, b_2
        ],
        out_specs=pl.BlockSpec((bps, S, Dout), lambda b: (b, 0, 0)),
        compiler_params=pltpu.CompilerParams(dimension_semantics=("parallel",)),
    )(
        x, pe_tiled, att_bias, wqkv, bqkv,
        params["wo"], params["bo"], params["a2"], params["b2"],
    )


# ----------------------------------------------------------------------------
# Pure-JAX reference (mirrors the PyTorch graph) for a correctness check
# ----------------------------------------------------------------------------
def reference(x, params, mask, pe, *, h_num, h_dim, eps=1e-6):
    B, S, _ = x.shape
    xp = x + pe[None]
    q = xp @ params["wq"] + params["bq"]
    k = xp @ params["wk"] + params["bk"]
    v = jax.nn.relu(xp @ params["wv"] + params["bv"])

    def heads(t):
        return t.reshape(B, S, h_num, h_dim).transpose(0, 2, 1, 3)

    qh, kh, vh = heads(q), heads(k), heads(v)
    s = jnp.einsum("bhqd,bhkd->bhqk", qh, kh) / math.sqrt(h_dim)
    s = s * mask + (1.0 - mask) * (-9.0e15)
    p = jax.nn.softmax(s, axis=-1)
    o = jnp.einsum("bhqk,bhkd->bhqd", p, vh)
    o = o.transpose(0, 2, 1, 3).reshape(B, S, h_num * h_dim)
    y = jax.nn.relu(o @ params["wo"] + params["bo"])
    mean = y.mean(-1, keepdims=True)
    std = jnp.sqrt(((y - mean) ** 2).sum(-1, keepdims=True) / (y.shape[-1] - 1))
    return params["a2"] * (y - mean) / (std + eps) + params["b2"]


# ----------------------------------------------------------------------------
if __name__ == "__main__":
    # Module config (small, but SEQ = 176 is fixed by the hard-coded masks)
    B = 2
    INPUT_SIZE = 32
    OUTPUT_SIZE = 32
    H_NUM = 2
    H_DIM = 16
    DH = H_NUM * H_DIM

    key = jax.random.PRNGKey(0)
    ks = jax.random.split(key, 12)

    params = dict(
        wq=xavier_uniform(ks[0], (INPUT_SIZE, DH)),
        bq=jax.random.uniform(ks[1], (1, DH), jnp.float32, -0.1, 0.1),
        wk=xavier_uniform(ks[2], (INPUT_SIZE, DH)),
        bk=jax.random.uniform(ks[3], (1, DH), jnp.float32, -0.1, 0.1),
        wv=xavier_uniform(ks[4], (INPUT_SIZE, DH)),
        bv=jax.random.uniform(ks[5], (1, DH), jnp.float32, -0.1, 0.1),
        wo=xavier_uniform(ks[6], (DH, OUTPUT_SIZE)),
        bo=jax.random.uniform(ks[7], (1, OUTPUT_SIZE), jnp.float32, -0.1, 0.1),
        a2=jnp.ones((1, OUTPUT_SIZE), jnp.float32),    # NormLayer a_2
        b2=jnp.zeros((1, OUTPUT_SIZE), jnp.float32),   # NormLayer b_2
    )

    temporal_mask, spatial_mask = build_masks()
    x = jax.random.normal(ks[11], (B, SEQ, INPUT_SIZE), jnp.float32)

    for att_type in ("temporal", "spatial"):
        mask = temporal_mask if att_type == "temporal" else spatial_mask
        pe = build_pe(INPUT_SIZE, att_type)

        out = att_layer_forward(x, params, mask, pe, h_num=H_NUM, h_dim=H_DIM)
        out = jax.block_until_ready(out)

        ref = reference(x, params, mask, pe, h_num=H_NUM, h_dim=H_DIM)
        assert out.shape == (B, SEQ, OUTPUT_SIZE)
        assert jnp.allclose(out, ref, atol=1e-2, rtol=1e-2), f"mismatch ({att_type})"

    print("KERNEL_OK")
</pallas_src>

<mosaic_0001>
module attributes {stable_mosaic.version = 11 : i64} {
  func.func @att_layer_kernel(%arg0: i32, %arg1: memref<2x176x32xf32, #tpu.memory_space<vmem>>, %arg2: memref<352x32xf32, #tpu.memory_space<vmem>>, %arg3: memref<176x176xf32, #tpu.memory_space<vmem>>, %arg4: memref<32x96xf32, #tpu.memory_space<vmem>>, %arg5: memref<1x96xf32, #tpu.memory_space<vmem>>, %arg6: memref<32x32xf32, #tpu.memory_space<vmem>>, %arg7: memref<1x32xf32, #tpu.memory_space<vmem>>, %arg8: memref<1x32xf32, #tpu.memory_space<vmem>>, %arg9: memref<1x32xf32, #tpu.memory_space<vmem>>, %arg10: memref<2x176x32xf32, #tpu.memory_space<vmem>>) attributes {dimension_semantics = [#tpu.dimension_semantics<parallel>], iteration_bounds = array<i64: 1>, scalar_prefetch = 0 : i64, scratch_operands = 0 : i64, tpu.core_type = #tpu.core_type<tc>, window_params = [{transform_indices = @transform_0, window_bounds = array<i64: 2, 176, 32>}, {pipeline_mode = #tpu.pipeline_mode<synchronous>, transform_indices = @transform_1, window_bounds = array<i64: 352, 32>}, {pipeline_mode = #tpu.pipeline_mode<synchronous>, transform_indices = @transform_2, window_bounds = array<i64: 176, 176>}, {pipeline_mode = #tpu.pipeline_mode<synchronous>, transform_indices = @transform_3, window_bounds = array<i64: 32, 96>}, {pipeline_mode = #tpu.pipeline_mode<synchronous>, transform_indices = @transform_4, window_bounds = array<i64: 1, 96>}, {pipeline_mode = #tpu.pipeline_mode<synchronous>, transform_indices = @transform_5, window_bounds = array<i64: 32, 32>}, {pipeline_mode = #tpu.pipeline_mode<synchronous>, transform_indices = @transform_6, window_bounds = array<i64: 1, 32>}, {pipeline_mode = #tpu.pipeline_mode<synchronous>, transform_indices = @transform_7, window_bounds = array<i64: 1, 32>}, {pipeline_mode = #tpu.pipeline_mode<synchronous>, transform_indices = @transform_8, window_bounds = array<i64: 1, 32>}, {transform_indices = @transform_9, window_bounds = array<i64: 2, 176, 32>}]} {
    %c0 = arith.constant 0 : index
    %c0_0 = arith.constant 0 : index
    %c0_1 = arith.constant 0 : index
    %0 = vector.load %arg1[%c0, %c0_0, %c0_1] : memref<2x176x32xf32, #tpu.memory_space<vmem>>, vector<2x176x32xf32>
    %1 = vector.shape_cast %0 : vector<2x176x32xf32> to vector<352x32xf32>
    %c0_2 = arith.constant 0 : index
    %c0_3 = arith.constant 0 : index
    %2 = vector.load %arg2[%c0_2, %c0_3] : memref<352x32xf32, #tpu.memory_space<vmem>>, vector<352x32xf32>
    %3 = arith.addf %1, %2 : vector<352x32xf32>
    %c0_4 = arith.constant 0 : index
    %c0_5 = arith.constant 0 : index
    %4 = vector.load %arg4[%c0_4, %c0_5] : memref<32x96xf32, #tpu.memory_space<vmem>>, vector<32x96xf32>
    %cst = arith.constant dense<0.000000e+00> : vector<352x96xf32>
    %5 = tpu.matmul %3, %4, %cst {dimension_numbers = #tpu.dot_dimension_numbers<[1], [0], [0], [1], [0, 0, 1, 1], [], []>} : vector<352x32xf32>, vector<32x96xf32>, vector<352x96xf32> -> vector<352x96xf32>
    %c0_6 = arith.constant 0 : index
    %c0_7 = arith.constant 0 : index
    %6 = vector.load %arg5[%c0_6, %c0_7] : memref<1x96xf32, #tpu.memory_space<vmem>>, vector<1x96xf32>
    %7 = vector.broadcast %6 : vector<1x96xf32> to vector<352x96xf32>
    %8 = arith.addf %5, %7 : vector<352x96xf32>
    %9 = vector.extract_strided_slice %8 {offsets = [0, 0], sizes = [352, 32], strides = [1, 1]} : vector<352x96xf32> to vector<352x32xf32>
    %10 = vector.extract_strided_slice %8 {offsets = [0, 32], sizes = [352, 32], strides = [1, 1]} : vector<352x96xf32> to vector<352x32xf32>
    %11 = vector.extract_strided_slice %8 {offsets = [0, 64], sizes = [352, 32], strides = [1, 1]} : vector<352x96xf32> to vector<352x32xf32>
    %cst_8 = arith.constant 0.000000e+00 : f32
    %12 = vector.broadcast %cst_8 : f32 to vector<352x32xf32>
    %13 = arith.maximumf %11, %12 : vector<352x32xf32>
    %c0_9 = arith.constant 0 : index
    %c0_10 = arith.constant 0 : index
    %14 = vector.load %arg3[%c0_9, %c0_10] : memref<176x176xf32, #tpu.memory_space<vmem>>, vector<176x176xf32>
    %15 = vector.extract_strided_slice %9 {offsets = [0, 0], sizes = [176, 16], strides = [1, 1]} : vector<352x32xf32> to vector<176x16xf32>
    %16 = vector.extract_strided_slice %10 {offsets = [0, 0], sizes = [176, 16], strides = [1, 1]} : vector<352x32xf32> to vector<176x16xf32>
    %cst_11 = arith.constant dense<0.000000e+00> : vector<176x176xf32>
    %17 = tpu.matmul %15, %16, %cst_11 {dimension_numbers = #tpu.dot_dimension_numbers<[1], [1], [0], [0], [0, 0, 1, 0], [], []>} : vector<176x16xf32>, vector<176x16xf32>, vector<176x176xf32> -> vector<176x176xf32>
    %18 = arith.addf %17, %14 : vector<176x176xf32>
    %19 = vector.extract_strided_slice %9 {offsets = [0, 16], sizes = [176, 16], strides = [1, 1]} : vector<352x32xf32> to vector<176x16xf32>
    %20 = vector.extract_strided_slice %10 {offsets = [0, 16], sizes = [176, 16], strides = [1, 1]} : vector<352x32xf32> to vector<176x16xf32>
    %cst_12 = arith.constant dense<0.000000e+00> : vector<176x176xf32>
    %21 = tpu.matmul %19, %20, %cst_12 {dimension_numbers = #tpu.dot_dimension_numbers<[1], [1], [0], [0], [0, 0, 1, 0], [], []>} : vector<176x16xf32>, vector<176x16xf32>, vector<176x176xf32> -> vector<176x176xf32>
    %22 = arith.addf %21, %14 : vector<176x176xf32>
    %23 = vector.extract_strided_slice %9 {offsets = [176, 0], sizes = [176, 16], strides = [1, 1]} : vector<352x32xf32> to vector<176x16xf32>
    %24 = vector.extract_strided_slice %10 {offsets = [176, 0], sizes = [176, 16], strides = [1, 1]} : vector<352x32xf32> to vector<176x16xf32>
    %cst_13 = arith.constant dense<0.000000e+00> : vector<176x176xf32>
    %25 = tpu.matmul %23, %24, %cst_13 {dimension_numbers = #tpu.dot_dimension_numbers<[1], [1], [0], [0], [0, 0, 1, 0], [], []>} : vector<176x16xf32>, vector<176x16xf32>, vector<176x176xf32> -> vector<176x176xf32>
    %26 = arith.addf %25, %14 : vector<176x176xf32>
    %27 = vector.extract_strided_slice %9 {offsets = [176, 16], sizes = [176, 16], strides = [1, 1]} : vector<352x32xf32> to vector<176x16xf32>
    %28 = vector.extract_strided_slice %10 {offsets = [176, 16], sizes = [176, 16], strides = [1, 1]} : vector<352x32xf32> to vector<176x16xf32>
    %cst_14 = arith.constant dense<0.000000e+00> : vector<176x176xf32>
    %29 = tpu.matmul %27, %28, %cst_14 {dimension_numbers = #tpu.dot_dimension_numbers<[1], [1], [0], [0], [0, 0, 1, 0], [], []>} : vector<176x16xf32>, vector<176x16xf32>, vector<176x176xf32> -> vector<176x176xf32>
    %30 = arith.addf %29, %14 : vector<176x176xf32>
    %31 = tpu.concatenate %18, %22, %26, %30 in 0 : vector<176x176xf32>, vector<176x176xf32>, vector<176x176xf32>, vector<176x176xf32> -> vector<704x176xf32>
    %cst_15 = arith.constant dense<0xFF800000> : vector<704xf32>
    %32 = vector.multi_reduction <maximumf>, %31, %cst_15 [1] : vector<704x176xf32> to vector<704xf32>
    %33 = vector.shape_cast %32 : vector<704xf32> to vector<704x1xf32>
    %34 = vector.broadcast %33 : vector<704x1xf32> to vector<704x176xf32>
    %35 = arith.subf %31, %34 : vector<704x176xf32>
    %36 = math.exp %35 : vector<704x176xf32>
    %cst_16 = arith.constant dense<0.000000e+00> : vector<704xf32>
    %37 = vector.multi_reduction <add>, %36, %cst_16 [1] : vector<704x176xf32> to vector<704xf32>
    %38 = vector.shape_cast %37 : vector<704xf32> to vector<704x1xf32>
    %39 = tpu.reciprocal %38 {approx = true} : vector<704x1xf32> -> vector<704x1xf32>
    %40 = vector.broadcast %39 : vector<704x1xf32> to vector<704x176xf32>
    %41 = arith.mulf %36, %40 : vector<704x176xf32>
    %42 = arith.truncf %41 : vector<704x176xf32> to vector<704x176xbf16>
    %cst_17 = arith.constant 0.000000e+00 : f32
    %43 = vector.broadcast %cst_17 : f32 to vector<352x32xf32>
    %44 = vector.extract_strided_slice %42 {offsets = [0, 0], sizes = [176, 176], strides = [1, 1]} : vector<704x176xbf16> to vector<176x176xbf16>
    %45 = vector.extract_strided_slice %13 {offsets = [0, 0], sizes = [176, 16], strides = [1, 1]} : vector<352x32xf32> to vector<176x16xf32>
    %46 = arith.truncf %45 : vector<176x16xf32> to vector<176x16xbf16>
    %cst_18 = arith.constant dense<0.000000e+00> : vector<176x16xf32>
    %47 = tpu.matmul %44, %46, %cst_18 {dimension_numbers = #tpu.dot_dimension_numbers<[1], [0], [0], [1], [0, 0, 1, 1], [], []>} : vector<176x176xbf16>, vector<176x16xbf16>, vector<176x16xf32> -> vector<176x16xf32>
    %48 = vector.extract_strided_slice %42 {offsets = [352, 0], sizes = [176, 176], strides = [1, 1]} : vector<704x176xbf16> to vector<176x176xbf16>
    %49 = vector.extract_strided_slice %13 {offsets = [176, 0], sizes = [176, 16], strides = [1, 1]} : vector<352x32xf32> to vector<176x16xf32>
    %50 = arith.truncf %49 : vector<176x16xf32> to vector<176x16xbf16>
    %cst_19 = arith.constant dense<0.000000e+00> : vector<176x16xf32>
    %51 = tpu.matmul %48, %50, %cst_19 {dimension_numbers = #tpu.dot_dimension_numbers<[1], [0], [0], [1], [0, 0, 1, 1], [], []>} : vector<176x176xbf16>, vector<176x16xbf16>, vector<176x16xf32> -> vector<176x16xf32>
    %52 = tpu.concatenate %47, %51 in 0 : vector<176x16xf32>, vector<176x16xf32> -> vector<352x16xf32>
    %c0_20 = arith.constant 0 : index
    %c0_21 = arith.constant 0 : index
    %53 = vector.load %arg6[%c0_20, %c0_21] : memref<32x32xf32, #tpu.memory_space<vmem>>, vector<16x32xf32>
    %cst_22 = arith.constant dense<0.000000e+00> : vector<352x32xf32>
    %54 = tpu.matmul %52, %53, %cst_22 {dimension_numbers = #tpu.dot_dimension_numbers<[1], [0], [0], [1], [0, 0, 1, 1], [], []>} : vector<352x16xf32>, vector<16x32xf32>, vector<352x32xf32> -> vector<352x32xf32>
    %55 = arith.addf %43, %54 : vector<352x32xf32>
    %56 = vector.extract_strided_slice %42 {offsets = [176, 0], sizes = [176, 176], strides = [1, 1]} : vector<704x176xbf16> to vector<176x176xbf16>
    %57 = vector.extract_strided_slice %13 {offsets = [0, 16], sizes = [176, 16], strides = [1, 1]} : vector<352x32xf32> to vector<176x16xf32>
    %58 = arith.truncf %57 : vector<176x16xf32> to vector<176x16xbf16>
    %cst_23 = arith.constant dense<0.000000e+00> : vector<176x16xf32>
    %59 = tpu.matmul %56, %58, %cst_23 {dimension_numbers = #tpu.dot_dimension_numbers<[1], [0], [0], [1], [0, 0, 1, 1], [], []>} : vector<176x176xbf16>, vector<176x16xbf16>, vector<176x16xf32> -> vector<176x16xf32>
    %60 = vector.extract_strided_slice %42 {offsets = [528, 0], sizes = [176, 176], strides = [1, 1]} : vector<704x176xbf16> to vector<176x176xbf16>
    %61 = vector.extract_strided_slice %13 {offsets = [176, 16], sizes = [176, 16], strides = [1, 1]} : vector<352x32xf32> to vector<176x16xf32>
    %62 = arith.truncf %61 : vector<176x16xf32> to vector<176x16xbf16>
    %cst_24 = arith.constant dense<0.000000e+00> : vector<176x16xf32>
    %63 = tpu.matmul %60, %62, %cst_24 {dimension_numbers = #tpu.dot_dimension_numbers<[1], [0], [0], [1], [0, 0, 1, 1], [], []>} : vector<176x176xbf16>, vector<176x16xbf16>, vector<176x16xf32> -> vector<176x16xf32>
    %64 = tpu.concatenate %59, %63 in 0 : vector<176x16xf32>, vector<176x16xf32> -> vector<352x16xf32>
    %c16 = arith.constant 16 : index
    %c0_25 = arith.constant 0 : index
    %65 = vector.load %arg6[%c16, %c0_25] : memref<32x32xf32, #tpu.memory_space<vmem>>, vector<16x32xf32>
    %cst_26 = arith.constant dense<0.000000e+00> : vector<352x32xf32>
    %66 = tpu.matmul %64, %65, %cst_26 {dimension_numbers = #tpu.dot_dimension_numbers<[1], [0], [0], [1], [0, 0, 1, 1], [], []>} : vector<352x16xf32>, vector<16x32xf32>, vector<352x32xf32> -> vector<352x32xf32>
    %67 = arith.addf %55, %66 : vector<352x32xf32>
    %c0_27 = arith.constant 0 : index
    %c0_28 = arith.constant 0 : index
    %68 = vector.load %arg7[%c0_27, %c0_28] : memref<1x32xf32, #tpu.memory_space<vmem>>, vector<1x32xf32>
    %69 = vector.broadcast %68 : vector<1x32xf32> to vector<352x32xf32>
    %70 = arith.addf %67, %69 : vector<352x32xf32>
    %cst_29 = arith.constant 0.000000e+00 : f32
    %71 = vector.broadcast %cst_29 : f32 to vector<352x32xf32>
    %72 = arith.maximumf %70, %71 : vector<352x32xf32>
    %cst_30 = arith.constant dense<0.000000e+00> : vector<352xf32>
    %73 = vector.multi_reduction <add>, %72, %cst_30 [1] : vector<352x32xf32> to vector<352xf32>
    %74 = vector.shape_cast %73 : vector<352xf32> to vector<352x1xf32>
    %cst_31 = arith.constant 3.200000e+01 : f32
    %75 = vector.broadcast %cst_31 : f32 to vector<352x1xf32>
    %76 = arith.divf %74, %75 : vector<352x1xf32>
    %77 = vector.broadcast %76 : vector<352x1xf32> to vector<352x32xf32>
    %78 = arith.subf %72, %77 : vector<352x32xf32>
    %79 = arith.mulf %78, %78 : vector<352x32xf32>
    %cst_32 = arith.constant dense<0.000000e+00> : vector<352xf32>
    %80 = vector.multi_reduction <add>, %79, %cst_32 [1] : vector<352x32xf32> to vector<352xf32>
    %81 = vector.shape_cast %80 : vector<352xf32> to vector<352x1xf32>
    %cst_33 = arith.constant 0.0322580636 : f32
    %82 = vector.broadcast %cst_33 : f32 to vector<352x1xf32>
    %83 = arith.mulf %81, %82 : vector<352x1xf32>
    %84 = math.sqrt %83 : vector<352x1xf32>
    %cst_34 = arith.constant 9.99999997E-7 : f32
    %85 = vector.broadcast %cst_34 : f32 to vector<352x1xf32>
    %86 = arith.addf %84, %85 : vector<352x1xf32>
    %cst_35 = arith.constant 1.000000e+00 : f32
    %87 = vector.broadcast %cst_35 : f32 to vector<352x1xf32>
    %88 = arith.divf %87, %86 : vector<352x1xf32>
    %c0_36 = arith.constant 0 : index
    %c0_37 = arith.constant 0 : index
    %89 = vector.load %arg8[%c0_36, %c0_37] : memref<1x32xf32, #tpu.memory_space<vmem>>, vector<1x32xf32>
    %90 = vector.broadcast %89 : vector<1x32xf32> to vector<352x32xf32>
    %91 = arith.mulf %90, %78 : vector<352x32xf32>
    %92 = vector.broadcast %88 : vector<352x1xf32> to vector<352x32xf32>
    %93 = arith.mulf %91, %92 : vector<352x32xf32>
    %c0_38 = arith.constant 0 : index
    %c0_39 = arith.constant 0 : index
    %94 = vector.load %arg9[%c0_38, %c0_39] : memref<1x32xf32, #tpu.memory_space<vmem>>, vector<1x32xf32>
    %95 = vector.broadcast %94 : vector<1x32xf32> to vector<352x32xf32>
    %96 = arith.addf %93, %95 : vector<352x32xf32>
    %97 = vector.shape_cast %96 : vector<352x32xf32> to vector<2x176x32xf32>
    %c0_40 = arith.constant 0 : index
    %c0_41 = arith.constant 0 : index
    %c0_42 = arith.constant 0 : index
    %98 = vector.load %arg10[%c0_40, %c0_41, %c0_42] : memref<2x176x32xf32, #tpu.memory_space<vmem>>, vector<2x176x32xf32>
    tpu.vector_store %arg10[%c0_40, %c0_41, %c0_42], %97 {strides = array<i32>} : memref<2x176x32xf32, #tpu.memory_space<vmem>>, vector<2x176x32xf32>,
    return
  }
  func.func @transform_0(%arg0: i32) -> (i32, i32, i32) {
    %c0_i32 = arith.constant 0 : i32
    %c0_i32_0 = arith.constant 0 : i32
    %c0_i32_1 = arith.constant 0 : i32
    return %arg0, %c0_i32, %c0_i32_0 : i32, i32, i32
  }
  func.func @transform_1(%arg0: i32) -> (i32, i32) {
    %c0_i32 = arith.constant 0 : i32
    %c0_i32_0 = arith.constant 0 : i32
    %c0_i32_1 = arith.constant 0 : i32
    return %c0_i32, %c0_i32_0 : i32, i32
  }
  func.func @transform_2(%arg0: i32) -> (i32, i32) {
    %c0_i32 = arith.constant 0 : i32
    %c0_i32_0 = arith.constant 0 : i32
    %c0_i32_1 = arith.constant 0 : i32
    return %c0_i32, %c0_i32_0 : i32, i32
  }
  func.func @transform_3(%arg0: i32) -> (i32, i32) {
    %c0_i32 = arith.constant 0 : i32
    %c0_i32_0 = arith.constant 0 : i32
    %c0_i32_1 = arith.constant 0 : i32
    return %c0_i32, %c0_i32_0 : i32, i32
  }
  func.func @transform_4(%arg0: i32) -> (i32, i32) {
    %c0_i32 = arith.constant 0 : i32
    %c0_i32_0 = arith.constant 0 : i32
    %c0_i32_1 = arith.constant 0 : i32
    return %c0_i32, %c0_i32_0 : i32, i32
  }
  func.func @transform_5(%arg0: i32) -> (i32, i32) {
    %c0_i32 = arith.constant 0 : i32
    %c0_i32_0 = arith.constant 0 : i32
    %c0_i32_1 = arith.constant 0 : i32
    return %c0_i32, %c0_i32_0 : i32, i32
  }
  func.func @transform_6(%arg0: i32) -> (i32, i32) {
    %c0_i32 = arith.constant 0 : i32
    %c0_i32_0 = arith.constant 0 : i32
    %c0_i32_1 = arith.constant 0 : i32
    return %c0_i32, %c0_i32_0 : i32, i32
  }
  func.func @transform_7(%arg0: i32) -> (i32, i32) {
    %c0_i32 = arith.constant 0 : i32
    %c0_i32_0 = arith.constant 0 : i32
    %c0_i32_1 = arith.constant 0 : i32
    return %c0_i32, %c0_i32_0 : i32, i32
  }
  func.func @transform_8(%arg0: i32) -> (i32, i32) {
    %c0_i32 = arith.constant 0 : i32
    %c0_i32_0 = arith.constant 0 : i32
    %c0_i32_1 = arith.constant 0 : i32
    return %c0_i32, %c0_i32_0 : i32, i32
  }
  func.func @transform_9(%arg0: i32) -> (i32, i32, i32) {
    %c0_i32 = arith.constant 0 : i32
    %c0_i32_0 = arith.constant 0 : i32
    %c0_i32_1 = arith.constant 0 : i32
    return %arg0, %c0_i32, %c0_i32_0 : i32, i32, i32
  }
}

</mosaic_0001>

<bundles_post_ra>
// kernel: tpu_custom_call.1
= control target key start
LH: loop header
LB: loop body
LE: loop exit
PB: predicated region body
PF: predicated region fallthrough
CT: control target
= control target key end

     0   :  { %vm176_vm0 = vcmask 261120   ;;  %s8433_s17 = smov 112   ;;  %s8435_s18 = smov 80   ;;  %vm748_vm1 = vcmask 130048   ;;  %vm2131_vm3 = vcmask 392192   ;;  %s14311_s3 = inlined_call_operand.vmem [shape: f32[32,96], index: 3, kind: input, shape index: {}]   ;;  %s14312_s0 = inlined_call_operand.vmem [shape: f32[2,176,32], index: 0, kind: input, shape index: {}]   ;;  %s14313_s1 = inlined_call_operand.vmem [shape: f32[352,32], index: 1, kind: input, shape index: {}]   ;;  %s14314_s4 = inlined_call_operand.vmem [shape: f32[1,96], index: 4, kind: input, shape index: {}]   ;;  %s14315_s2 = inlined_call_operand.vmem [shape: f32[176,176], index: 2, kind: input, shape index: {}]   ;;  %s14316_s5 = inlined_call_operand.vmem [shape: f32[32,32], index: 5, kind: input, shape index: {}]   ;;  %s14317_s6 = inlined_call_operand.vmem [shape: f32[1,32], index: 6, kind: input, shape index: {}]   ;;  %s14318_s7 = inlined_call_operand.vmem [shape: f32[1,32], index: 7, kind: input, shape index: {}]   ;;  %s14319_s8 = inlined_call_operand.vmem [shape: f32[1,32], index: 8, kind: input, shape index: {}]   ;;  %s14320_s9 = inlined_call_operand.vmem [shape: f32[2,176,32], index: 9, kind: output, shape index: {}]  }
   0x1   :  { %v165_v0 = vld [vmem:[%s14311_s3] sm:$0xff]  ;;  %v166_v1 = vld [vmem:[%s14311_s3 + $0x8] sm:$0xff]  ;;  %v167_v2 = vld [vmem:[%s14311_s3 + $0x10] sm:$0xff]  ;;  %s8436_s19 = smov 64  }
   0x2   :  { %v7226_v3 = vpack.c.bf16 %v166_v1, %v165_v0  ;;  %v168_v4 = vld [vmem:[%s14311_s3 + $0x18] sm:$0xff]  ;;  %v33_v5 = vld [vmem:[%s14312_s0] sm:$0xff]  ;;  %v34_v9 = vld [vmem:[%s14312_s0 + $0x8] sm:$0xff] }
   0x3   :  { %v77_v6 = vld [vmem:[%s14313_s1] sm:$0xff]  ;;  %v7230_v7 = vpack.c.bf16 %v168_v4, %v167_v2  ;;  %v78_v10 = vld [vmem:[%s14313_s1 + $0x8] sm:$0xff]  ;;  %v35_v11 = vld [vmem:[%s14312_s0 + $0x10] sm:$0xff] }
   0x4   :  { %v121_v8 = vadd.f32 %v77_v6, %v33_v5  ;;  %7227 = vmatprep.subr.bf16.mxu0 %v7226_v3  ;;  %v79_v12 = vld [vmem:[%s14313_s1 + $0x10] sm:$0xff]  ;;  %v122_v13 = vadd.f32 %v78_v10, %v34_v9  ;;  %v36_v15 = vld [vmem:[%s14312_s0 + $0x18] sm:$0xff]  ;;  %v37_v17 = vld [vmem:[%s14312_s0 + $0x20] sm:$0xff] }
   0x5   :  { %7229 = vmatpush3.bf16.msra.mxu0 %v7226_v3  ;;  %v123_v14 = vadd.f32 %v79_v12, %v35_v11  ;;  %v80_v16 = vld [vmem:[%s14313_s1 + $0x18] sm:$0xff]  ;;  %v81_v18 = vld [vmem:[%s14313_s1 + $0x20] sm:$0xff]  ;;  %v38_v21 = vld [vmem:[%s14312_s0 + $0x28] sm:$0xff] }
   0x6   :  { %7020 = vmatprep.mubr.msk.f32.mxu0 %vm176_vm0, %v121_v8  ;;  %7231 = vmatprep.subr.bf16.mxu0 %v7230_v7  ;;  %v124_v19 = vadd.f32 %v80_v16, %v36_v15  ;;  %v125_v20 = vadd.f32 %v81_v18, %v37_v17  ;;  %v82_v22 = vld [vmem:[%s14313_s1 + $0x28] sm:$0xff]  ;;  %v39_v23 = vld [vmem:[%s14312_s0 + $0x30] sm:$0xff]  ;;  %v40_v27 = vld [vmem:[%s14312_s0 + $0x38] sm:$0xff] }
   0x7   :  { %v83_v24 = vld [vmem:[%s14313_s1 + $0x30] sm:$0xff]  ;;  %v126_v25 = vadd.f32 %v82_v22, %v38_v21  ;;  %v84_v28 = vld [vmem:[%s14313_s1 + $0x38] sm:$0xff]  ;;  %v41_v29 = vld [vmem:[%s14312_s0 + $0x40] sm:$0xff] }
   0x8   :  { %v127_v26 = vadd.f32 %v83_v24, %v39_v23  ;;  %v85_v30 = vld [vmem:[%s14313_s1 + $0x40] sm:$0xff]  ;;  %v128_v31 = vadd.f32 %v84_v28, %v40_v27  ;;  %v42_v33 = vld [vmem:[%s14312_s0 + $0x48] sm:$0xff]  ;;  %v43_v35 = vld [vmem:[%s14312_s0 + $0x50] sm:$0xff] }
   0x9   :  { %7233 = vmatpush3.bf16.msra.mxu0 %v7230_v7  ;;  %v129_v32 = vadd.f32 %v85_v30, %v41_v29  ;;  %v86_v34 = vld [vmem:[%s14313_s1 + $0x48] sm:$0xff]  ;;  %v87_v36 = vld [vmem:[%s14313_s1 + $0x50] sm:$0xff]  ;;  %v44_v39 = vld [vmem:[%s14312_s0 + $0x58] sm:$0xff] }
   0xa   :  { %v63_v37 = vld [vmem:[%s14312_s0 + $0xf0] sm:$0xff]  ;;  %v88_v40 = vld [vmem:[%s14313_s1 + $0x58] sm:$0xff]  ;;  %v65_v44 = vld [vmem:[%s14312_s0 + $0x100] sm:$0xff]  ;;  %v130_v45 = vadd.f32 %v86_v34, %v42_v33  ;;  %v131_v52 = vadd.f32 %v87_v36, %v43_v35 }
   0xb   :  { %v107_v38 = vld [vmem:[%s14313_s1 + $0xf0] sm:$0xff]  ;;  %v64_v42 = vld [vmem:[%s14312_s0 + $0xf8] sm:$0xff]  ;;  %v45_v46 = vld [vmem:[%s14312_s0 + $0x60] sm:$0xff]  ;;  %v132_v5 = vadd.f32 %v88_v40, %v44_v39 }
   0xc   :  { %7021 = vmatmul.mubr.msk.f32.vlgmr.msra.gmra.mrb[0].mxu0 %vm176_vm0, %v122_v13  ;;  %v8587_v41 = vadd.f32 %v107_v38, %v63_v37  ;;  %v108_v43 = vld [vmem:[%s14313_s1 + $0xf8] sm:$0xff]  ;;  %v89_v47 = vld [vmem:[%s14313_s1 + $0x60] sm:$0xff]  ;;  %v66_v50 = vld [vmem:[%s14312_s0 + $0x108] sm:$0xff] }
   0xd   :  { %7023 = vmatprep.mubr.msk.f32.mxu0 %vm176_vm0, %v123_v14  ;;  %v8605_v48 = vadd.f32 %v108_v43, %v64_v42  ;;  %v109_v49 = vld [vmem:[%s14313_s1 + $0x100] sm:$0xff]  ;;  %v110_v51 = vld [vmem:[%s14313_s1 + $0x108] sm:$0xff]  ;;  %v67_v55 = vld [vmem:[%s14312_s0 + $0x110] sm:$0xff]  ;;  %v133_v12 = vadd.f32 %v89_v47, %v45_v46 }
   0xe   :  { %v8617_v53 = vadd.f32 %v109_v49, %v65_v44  ;;  %v8619_v54 = vadd.f32 %v110_v51, %v66_v50  ;;  %v111_v56 = vld [vmem:[%s14313_s1 + $0x110] sm:$0xff]  ;;  %v68_v57 = vld [vmem:[%s14312_s0 + $0x118] sm:$0xff]  ;;  %v69_v60 = vld [vmem:[%s14312_s0 + $0x120] sm:$0xff] }
   0xf   :  { %v8630_v58 = vadd.f32 %v111_v56, %v67_v55  ;;  %v112_v59 = vld [vmem:[%s14313_s1 + $0x118] sm:$0xff]  ;;  %v113_v61 = vld [vmem:[%s14313_s1 + $0x120] sm:$0xff]  ;;  %v46_v62 = vld [vmem:[%s14312_s0 + $0x68] sm:$0xff] }
  0x10   :  { %7024 = vmatmul.mubr.msk.f32.gmra.mrb[2].mxu0 %vm176_vm0, %v124_v19  ;;  %v90_v63 = vld [vmem:[%s14313_s1 + $0x68] sm:$0xff]  ;;  %v8647_v0 = vadd.f32 %v112_v59, %v68_v57  ;;  %v8649_v1 = vadd.f32 %v113_v61, %v69_v60  ;;  %v71_v4 = vld [vmem:[%s14312_s0 + $0x130] sm:$0xff]  ;;  %v72_v10 = vld [vmem:[%s14312_s0 + $0x138] sm:$0xff] }
  0x11   :  { %7026 = vmatprep.mubr.msk.f32.mxu0 %vm176_vm0, %v125_v20  ;;  %v70_v2 = vld [vmem:[%s14312_s0 + $0x128] sm:$0xff]  ;;  %v47_v6 = vld [vmem:[%s14312_s0 + $0x70] sm:$0xff]  ;;  %v116_v11 = vld [vmem:[%s14313_s1 + $0x138] sm:$0xff] }
  0x12   :  { %v114_v3 = vld [vmem:[%s14313_s1 + $0x128] sm:$0xff]  ;;  %v91_v7 = vld [vmem:[%s14313_s1 + $0x70] sm:$0xff]  ;;  %v8681_v14 = vadd.f32 %v116_v11, %v72_v10  ;;  %v73_v15 = vld [vmem:[%s14312_s0 + $0x140] sm:$0xff] }
  0x13   :  { %v8667_v8 = vadd.f32 %v114_v3, %v70_v2  ;;  %v115_v9 = vld [vmem:[%s14313_s1 + $0x130] sm:$0xff]  ;;  %v117_v16 = vld [vmem:[%s14313_s1 + $0x140] sm:$0xff]  ;;  %v74_v17 = vld [vmem:[%s14312_s0 + $0x148] sm:$0xff]  ;;  %v135_v28 = vadd.f32 %v91_v7, %v47_v6 }
  0x14   :  { %7027 = vmatmul.mubr.msk.f32.gmra.mrb[4].mxu0 %vm176_vm0, %v126_v25  ;;  %v8679_v13 = vadd.f32 %v115_v9, %v71_v4  ;;  %v8692_v18 = vadd.f32 %v117_v16, %v73_v15  ;;  %v118_v19 = vld [vmem:[%s14313_s1 + $0x148] sm:$0xff]  ;;  %v75_v20 = vld [vmem:[%s14312_s0 + $0x150] sm:$0xff]  ;;  %v76_v24 = vld [vmem:[%s14312_s0 + $0x158] sm:$0xff] }
  0x15   :  { %7029 = vmatprep.mubr.msk.f32.mxu0 %vm176_vm0, %v127_v26  ;;  %v119_v21 = vld [vmem:[%s14313_s1 + $0x150] sm:$0xff]  ;;  %v8703_v22 = vadd.f32 %v118_v19, %v74_v17  ;;  %v120_v25 = vld [vmem:[%s14313_s1 + $0x158] sm:$0xff]  ;;  %v134_v26 = vadd.f32 %v90_v63, %v46_v62  ;;  %v50_v35 = vld [vmem:[%s14312_s0 + $0x88] sm:$0xff] }
  0x16   :  { %v8705_v23 = vadd.f32 %v119_v21, %v75_v20  ;;  %v8714_v27 = vadd.f32 %v120_v25, %v76_v24  ;;  %v48_v29 = vld [vmem:[%s14312_s0 + $0x78] sm:$0xff]  ;;  %v94_v36 = vld [vmem:[%s14313_s1 + $0x88] sm:$0xff]  ;;  %v51_v37 = vld [vmem:[%s14312_s0 + $0x90] sm:$0xff] }
  0x17   :  { %v92_v30 = vld [vmem:[%s14313_s1 + $0x78] sm:$0xff]  ;;  %v95_v38 = vld [vmem:[%s14313_s1 + $0x90] sm:$0xff]  ;;  %v138_v39 = vadd.f32 %v94_v36, %v50_v35  ;;  %v53_v44 = vld [vmem:[%s14312_s0 + $0xa0] sm:$0xff] }
  0x18   :  { %7030 = vmatmul.mubr.msk.f32.gmra.mrb[6].mxu0 %vm176_vm0, %v128_v31  ;;  %v49_v31 = vld [vmem:[%s14312_s0 + $0x80] sm:$0xff]  ;;  %v136_v33 = vadd.f32 %v92_v30, %v48_v29  ;;  %v139_v40 = vadd.f32 %v95_v38, %v51_v37  ;;  %v52_v42 = vld [vmem:[%s14312_s0 + $0x98] sm:$0xff]  ;;  %v54_v49 = vld [vmem:[%s14312_s0 + $0xa8] sm:$0xff] }
  0x19   :  { %7032 = vmatprep.mubr.msk.f32.mxu0 %vm176_vm0, %v129_v32  ;;  %v93_v32 = vld [vmem:[%s14313_s1 + $0x80] sm:$0xff]  ;;  %v96_v43 = vld [vmem:[%s14313_s1 + $0x98] sm:$0xff]  ;;  %v98_v50 = vld [vmem:[%s14313_s1 + $0xa8] sm:$0xff] }
  0x1a   :  { %v137_v34 = vadd.f32 %v93_v32, %v49_v31  ;;  %v140_v46 = vadd.f32 %v96_v43, %v52_v42  ;;  %v55_v51 = vld [vmem:[%s14312_s0 + $0xb0] sm:$0xff]  ;;  %v142_v55 = vadd.f32 %v98_v50, %v54_v49  ;;  %v56_v57 = vld [vmem:[%s14312_s0 + $0xb8] sm:$0xff]  ;;  %v57_v60 = vld [vmem:[%s14312_s0 + $0xc0] sm:$0xff] }
  0x1b   :  { %v100_v59 = vld [vmem:[%s14313_s1 + $0xb8] sm:$0xff]  ;;  %v101_v61 = vld [vmem:[%s14313_s1 + $0xc0] sm:$0xff]  ;;  %v58_v2 = vld [vmem:[%s14312_s0 + $0xc8] sm:$0xff] }
  0x1c   :  { %7033 = vmatmul.mubr.msk.f32.gmra.mrb[8].mxu0 %vm176_vm0, %v130_v45  ;;  %v97_v45 = vld [vmem:[%s14313_s1 + $0xa0] sm:$0xff]  ;;  %v144_v62 = vadd.f32 %v100_v59, %v56_v57  ;;  %v145_v63 = vadd.f32 %v101_v61, %v57_v60  ;;  %v102_v3 = vld [vmem:[%s14313_s1 + $0xc8] sm:$0xff]  ;;  %v59_v4 = vld [vmem:[%s14312_s0 + $0xd0] sm:$0xff] }
  0x1d   :  { %7035 = vmatprep.mubr.msk.f32.mxu0 %vm176_vm0, %v131_v52  ;;  %v141_v47 = vadd.f32 %v97_v45, %v53_v44  ;;  %v99_v52 = vld [vmem:[%s14313_s1 + $0xb0] sm:$0xff]  ;;  %v146_v6 = vadd.f32 %v102_v3, %v58_v2  ;;  %v60_v9 = vld [vmem:[%s14312_s0 + $0xd8] sm:$0xff]  ;;  %v61_v11 = vld [vmem:[%s14312_s0 + $0xe0] sm:$0xff] }
  0x1e   :  { %v143_v56 = vadd.f32 %v99_v52, %v55_v51  ;;  %v104_v10 = vld [vmem:[%s14313_s1 + $0xd8] sm:$0xff]  ;;  %v62_v17 = vld [vmem:[%s14312_s0 + $0xe8] sm:$0xff]  ;;  %vm9144_vm2 = vmpackc.low %vm748_vm1, %vm748_vm1 }
  0x1f   :  { %v148_v15 = vadd.f32 %v104_v10, %v60_v9  ;;  %v106_v19 = vld [vmem:[%s14313_s1 + $0xe8] sm:$0xff] }
  0x20   :  { %7036 = vmatmul.mubr.msk.f32.gmra.mrb[10].mxu0 %vm176_vm0, %v132_v5  ;;  %v103_v5 = vld [vmem:[%s14313_s1 + $0xd0] sm:$0xff]  ;;  %v150_v20 = vadd.f32 %v106_v19, %v62_v17 }
  0x21   :  { %7038 = vmatprep.mubr.msk.f32.mxu0 %vm176_vm0, %v133_v12  ;;  %v147_v7 = vadd.f32 %v103_v5, %v59_v4  ;;  %v105_v12 = vld [vmem:[%s14313_s1 + $0xe0] sm:$0xff] }
  0x22   :  { %v149_v16 = vadd.f32 %v105_v12, %v61_v11 }
  0x24   :  { %7039 = vmatmul.mubr.msk.f32.gmra.mrb[12].mxu0 %vm176_vm0, %v134_v26 }
  0x25   :  { %7041 = vmatprep.mubr.msk.f32.mxu0 %vm176_vm0, %v135_v28 }
  0x28   :  { %7042 = vmatmul.mubr.msk.f32.gmra.mrb[14].mxu0 %vm176_vm0, %v136_v33 }
  0x29   :  { %7044 = vmatprep.mubr.msk.f32.mxu0 %vm176_vm0, %v137_v34 }
  0x2c   :  { %7045 = vmatmul.mubr.msk.f32.gmra.mrb[16].mxu0 %vm176_vm0, %v138_v39 }
  0x2d   :  { %7047 = vmatprep.mubr.msk.f32.mxu0 %vm176_vm0, %v139_v40 }
  0x30   :  { %7048 = vmatmul.mubr.msk.f32.gmra.mrb[18].mxu0 %vm176_vm0, %v140_v46 }
  0x31   :  { %7050 = vmatprep.mubr.msk.f32.mxu0 %vm176_vm0, %v141_v47 }
  0x34   :  { %7051 = vmatmul.mubr.msk.f32.gmra.mrb[20].mxu0 %vm176_vm0, %v142_v55 }
  0x35   :  { %7053 = vmatprep.mubr.msk.f32.mxu0 %vm176_vm0, %v143_v56 }
  0x38   :  { %7054 = vmatmul.mubr.msk.f32.gmra.mrb[22].mxu0 %vm176_vm0, %v144_v62 }
  0x39   :  { %7056 = vmatprep.mubr.msk.f32.mxu0 %vm176_vm0, %v145_v63 }
  0x3c   :  { %7057 = vmatmul.mubr.msk.f32.gmra.mrb[24].mxu0 %vm176_vm0, %v146_v6 }
  0x3d   :  { %7059 = vmatprep.mubr.msk.f32.mxu0 %vm176_vm0, %v147_v7 }
  0x40   :  { %7060 = vmatmul.mubr.msk.f32.gmra.mrb[26].mxu0 %vm176_vm0, %v148_v15 }
  0x41   :  { %7062 = vmatprep.mubr.msk.f32.mxu0 %vm176_vm0, %v149_v16 }
  0x44   :  { %7063 = vmatmul.mubr.msk.f32.gmra.mrb[28].mxu0 %vm176_vm0, %v150_v20 }
  0x45   :  { %7065 = vmatprep.mubr.msk.f32.mxu0 %vm176_vm0, %v8587_v41  ;;  %v14323_v41 = vmov 0.0|0.0  }
  0x46   :  { %7234 = vmatprep.subr.bf16.mxu1 %v14323_v41  ;;  %7278 = vmatprep.subr.bf16.mxu0 %v14323_v41 }
  0x48   :  { %7066 = vmatmul.mubr.msk.f32.gmra.mrb[30].mxu0 %vm176_vm0, %v8605_v48  ;;  %v8857_v48 = vld [vmem:[%s14314_s4] ss:$0 sm:$0xff]  ;;  %s8434_s4 = smov 96  }
  0x49   :  { %7068 = vmatprep.mubr.msk.f32.mxu0 %vm176_vm0, %v8617_v53 }
  0x4c   :  { %7069 = vmatmul.mubr.msk.f32.gmra.mrb[32].mxu0 %vm176_vm0, %v8619_v54 }
  0x4d   :  { %7071 = vmatprep.mubr.msk.f32.mxu0 %vm176_vm0, %v8630_v58 }
  0x50   :  { %7072 = vmatmul.mubr.msk.f32.gmra.mrb[34].mxu0 %vm176_vm0, %v8647_v0 }
  0x51   :  { %7074 = vmatprep.mubr.msk.f32.mxu0 %vm176_vm0, %v8649_v1 }
  0x54   :  { %7075 = vmatmul.mubr.msk.f32.gmra.mrb[36].mxu0 %vm176_vm0, %v8667_v8 }
  0x55   :  { %7077 = vmatprep.mubr.msk.f32.mxu0 %vm176_vm0, %v8679_v13 }
  0x58   :  { %7078 = vmatmul.mubr.msk.f32.gmra.mrb[38].mxu0 %vm176_vm0, %v8681_v14 }
  0x59   :  { %7080 = vmatprep.mubr.msk.f32.mxu0 %vm176_vm0, %v8692_v18 }
  0x5c   :  { %7081 = vmatmul.mubr.msk.f32.gmra.mrb[40].mxu0 %vm176_vm0, %v8703_v22 }
  0x5d   :  { %7083 = vmatprep.mubr.msk.f32.mxu0 %vm176_vm0, %v8705_v23 }
  0x60   :  { %7084 = vmatmul.mubr.msk.f32.gmra.mrb[42].mxu0 %vm176_vm0, %v8714_v27 }
  0xdf   :  { %v7022_v53 = vpop.f32.mrb[0].mxu0 }
  0xe0   :  { %v8860_v54 = vadd.f32 %v7022_v53, %v8857_v48  ;;  %v375_v58 = vpop.f32.mrb[1].mxu0 }
  0xe1   :  { %v8863_v0 = vadd.f32 %v8857_v48, %v375_v58 }
  0xe2   :  { %1036 = vrot.lane.b32.xlu1 %v8860_v54, %s8433_s17  ;;  %v595_v28 = vmax.f32 %v8860_v54, 0.0 }
  0xe3   :  { %v7025_v1 = vpop.f32.mrb[2].mxu0  ;;  %v7472_v8 = vpack.i.bf16 %v8860_v54, %v8863_v0  ;;  %v594_v27 = vmax.f32 %v8863_v0, 0.0 }
  0xe4   :  { %v8870_v13 = vadd.f32 %v7025_v1, %v8857_v48  ;;  %v385_v14 = vpop.f32.mrb[3].mxu0 }
  0xe5   :  { %v8873_v18 = vadd.f32 %v8857_v48, %v385_v14  ;;  %7473 = vrot.lane.b32.xlu0 %v7472_v8, %s8434_s4  ;;  %v8897_v32 = vpack.c.bf16 %v595_v28, %v594_v27 }
  0xe6   :  { %7478 = vrot.lane.b32.xlu1 %v7472_v8, %s8435_s18  ;;  %v597_v38 = vmax.f32 %v8870_v13, 0.0 }
  0xe7   :  { %v7487_v21 = vpack.i.bf16 %v8870_v13, %v8873_v18  ;;  %v7028_v22 = vpop.f32.mrb[4].mxu0  ;;  %14636 = vst [vmem:[#allocation2_spill] sm:$0xff] %v8897_v32  ;;  %v596_v37 = vmax.f32 %v8873_v18, 0.0 }
  0xe8   :  { %v395_v23 = vpop.f32.mrb[5].mxu0  ;;  %v8885_v26 = vadd.f32 %v7028_v22, %v8857_v48 }
  0xe9   :  { %1034 = vrot.lane.b32.xlu0 %v8863_v0, %s8433_s17  ;;  %v8892_v30 = vadd.f32 %v8857_v48, %v395_v23  ;;  %v8921_v46 = vpack.c.bf16 %v597_v38, %v596_v37 }
  0xea   :  { %7488 = vrot.lane.b32.xlu1 %v7487_v21, %s8435_s18 }
  0xeb   :  { %v7031_v24 = vpop.f32.mrb[6].mxu0  ;;  %v7492_v34 = vpack.i.bf16 %v8885_v26, %v8892_v30  ;;  %14637 = vst [vmem:[#allocation3_spill] sm:$0xff] %v8921_v46 }
  0xec   :  { %v405_v25 = vpop.f32.mrb[7].mxu0  ;;  %v8907_v40 = vadd.f32 %v7031_v24, %v8857_v48 }
  0xed   :  { %1040 = vrot.lane.b32.xlu0 %v8870_v13, %s8433_s17  ;;  %v8918_v44 = vadd.f32 %v8857_v48, %v405_v25 }
  0xee   :  { %1038 = vrot.lane.b32.xlu1 %v8873_v18, %s8433_s17 }
  0xef   :  { %v7034_v29 = vpop.f32.mrb[8].mxu0  ;;  %v7502_v50 = vpack.i.bf16 %v8907_v40, %v8918_v44 }
  0xf0   :  { %v415_v31 = vpop.f32.mrb[9].mxu0  ;;  %v8912_v42 = vadd.f32 %v7034_v29, %v8857_v48 }
  0xf1   :  { %7483 = vrot.lane.b32.xlu0 %v7487_v21, %s8434_s4  ;;  %v8915_v43 = vadd.f32 %v8857_v48, %v415_v31 }
  0xf2   :  { %1044 = vrot.lane.b32.xlu1 %v8885_v26, %s8433_s17 }
  0xf3   :  { %v7037_v33 = vpop.f32.mrb[10].mxu0  ;;  %v7512_v49 = vpack.i.bf16 %v8912_v42, %v8915_v43 }
  0xf4   :  { %v425_v35 = vpop.f32.mrb[11].mxu0  ;;  %v8936_v57 = vadd.f32 %v7037_v33, %v8857_v48 }
  0xf5   :  { %3738 = vrot.lane.b32.xlu0 %v8897_v32, %s8436_s19  ;;  %v8957_v5 = vadd.f32 %v8857_v48, %v425_v35 }
  0xf6   :  { %7493 = vrot.lane.b32.xlu1 %v7492_v34, %s8434_s4 }
  0xf7   :  { %v7040_v36 = vpop.f32.mrb[12].mxu0  ;;  %v7522_v12 = vpack.i.bf16 %v8936_v57, %v8957_v5 }
  0xf8   :  { %v435_v39 = vpop.f32.mrb[13].mxu0  ;;  %v8941_v59 = vadd.f32 %v7040_v36, %v8857_v48 }
  0xf9   :  { %1042 = vrot.lane.b32.xlu0 %v8892_v30, %s8433_s17  ;;  %v8944_v60 = vadd.f32 %v8857_v48, %v435_v39 }
  0xfa   :  { %7498 = vrot.lane.b32.xlu1 %v7492_v34, %s8435_s18 }
  0xfb   :  { %v7043_v45 = vpop.f32.mrb[14].mxu0  ;;  %v7532_v63 = vpack.i.bf16 %v8941_v59, %v8944_v60 }
  0xfc   :  { %v445_v47 = vpop.f32.mrb[15].mxu0  ;;  %v8960_v7 = vadd.f32 %v7043_v45, %v8857_v48 }
  0xfd   :  { %1048 = vrot.lane.b32.xlu0 %v8907_v40, %s8433_s17  ;;  %v9010_v24 = vadd.f32 %v8857_v48, %v445_v47 }
  0xfe   :  { %3740 = vrot.lane.b32.xlu1 %v8921_v46, %s8436_s19 }
  0xff   :  { %v7046_v51 = vpop.f32.mrb[16].mxu0  ;;  %v7542_v31 = vpack.i.bf16 %v8960_v7, %v9010_v24 }
 0x100   :  { %v455_v52 = vpop.f32.mrb[17].mxu0  ;;  %v8965_v9 = vadd.f32 %v7046_v51, %v8857_v48 }
 0x101   :  { %7513 = vrot.lane.b32.xlu0 %v7512_v49, %s8434_s4  ;;  %v8968_v10 = vadd.f32 %v8857_v48, %v455_v52 }
 0x102   :  { %7503 = vrot.lane.b32.xlu1 %v7502_v50, %s8434_s4 }
 0x103   :  { %v7049_v55 = vpop.f32.mrb[18].mxu0  ;;  %v7552_v16 = vpack.i.bf16 %v8965_v9, %v8968_v10 }
 0x104   :  { %v8933_v56 = vpop.f32.mrb[19].mxu0  ;;  %v8985_v58 = vadd.f32 %v7049_v55, %v8857_v48 }
 0x105   :  { %1050 = vrot.lane.b32.xlu0 %v8915_v43, %s8433_s17  ;;  %v9064_v51 = vadd.f32 %v8857_v48, %v8933_v56 }
 0x106   :  { %7508 = vrot.lane.b32.xlu1 %v7502_v50, %s8435_s18  ;;  %14638 = vst [vmem:[#allocation4_spill] sm:$0xff] %v8985_v58 }
 0x107   :  { %v7052_v61 = vpop.f32.mrb[20].mxu0  ;;  %14645 = vst [vmem:[#allocation11_spill] sm:$0xff] %v9064_v51 }
 0x108   :  { %v475_v62 = vpop.f32.mrb[21].mxu0  ;;  %v8990_v1 = vadd.f32 %v7052_v61, %v8857_v48  ;;  %v7562_v61 = vpack.i.bf16 %v8985_v58, %v9064_v51 }
 0x109   :  { %1056 = vrot.lane.b32.xlu0 %v8936_v57, %s8433_s17  ;;  %v8993_v8 = vadd.f32 %v8857_v48, %v475_v62 }
 0x10a   :  { %1046 = vrot.lane.b32.xlu1 %v8918_v44, %s8433_s17  ;;  %14639 = vst [vmem:[#allocation5_spill] sm:$0xff] %v8990_v1 }
 0x10b   :  { %v7055_v2 = vpop.f32.mrb[22].mxu0  ;;  %14640 = vst [vmem:[#allocation6_spill] sm:$0xff] %v8993_v8  ;;  %v7572_v22 = vpack.i.bf16 %v8990_v1, %v8993_v8 }
 0x10c   :  { %v485_v3 = vpop.f32.mrb[23].mxu0  ;;  %v9016_v27 = vadd.f32 %v7055_v2, %v8857_v48  ;;  %v14321_v2 = vmov 0.0  }
 0x10d   :  { %7533 = vrot.lane.b32.xlu0 %v7532_v63, %s8434_s4  ;;  %v9019_v28 = vadd.f32 %v8857_v48, %v485_v3  ;;  %901 = vmatprep.mubr.f32.mxu1 %v14321_v2 }
 0x10e   :  { %1052 = vrot.lane.b32.xlu1 %v8912_v42, %s8433_s17  ;;  %14641 = vst [vmem:[#allocation7_spill] sm:$0xff] %v9016_v27  ;;  %1274 = vmatprep.mubr.f32.mxu0 %v14321_v2 }
 0x10f   :  { %v7058_v4 = vpop.f32.mrb[24].mxu0  ;;  %14642 = vst [vmem:[#allocation8_spill] sm:$0xff] %v9019_v28  ;;  %v7582_v34 = vpack.i.bf16 %v9016_v27, %v9019_v28 }
 0x110   :  { %v495_v6 = vpop.f32.mrb[25].mxu0  ;;  %v9039_v37 = vadd.f32 %v7058_v4, %v8857_v48 }
 0x111   :  { %1058 = vrot.lane.b32.xlu0 %v8944_v60, %s8433_s17  ;;  %v9042_v38 = vadd.f32 %v8857_v48, %v495_v6 }
 0x112   :  { %7518 = vrot.lane.b32.xlu1 %v7512_v49, %s8435_s18  ;;  %14643 = vst [vmem:[#allocation9_spill] sm:$0xff] %v9039_v37 }
 0x113   :  { %v7061_v11 = vpop.f32.mrb[26].mxu0  ;;  %14644 = vst [vmem:[#allocation10_spill] sm:$0xff] %v9042_v38  ;;  %v7592_v47 = vpack.i.bf16 %v9039_v37, %v9042_v38 }
 0x114   :  { %v505_v15 = vpop.f32.mrb[27].mxu0  ;;  %v9068_v52 = vadd.f32 %v7061_v11, %v8857_v48 }
 0x115   :  { %1064 = vrot.lane.b32.xlu0 %v8960_v7, %s8433_s17  ;;  %v9071_v55 = vadd.f32 %v8857_v48, %v505_v15 }
 0x116   :  { %7523 = vrot.lane.b32.xlu1 %v7522_v12, %s8434_s4  ;;  %14646 = vst [vmem:[#allocation12_spill] sm:$0xff] %v9068_v52  ;;  %v621_v6 = vmax.f32 %v9068_v52, 0.0 }
 0x117   :  { %v7064_v17 = vpop.f32.mrb[28].mxu0  ;;  %14647 = vst [vmem:[#allocation13_spill] sm:$0xff] %v9071_v55  ;;  %v9080_v56 = vpack.i.bf16 %v9068_v52, %v9071_v55  ;;  %v620_v4 = vmax.f32 %v9071_v55, 0.0 }
 0x118   :  { %v515_v19 = vpop.f32.mrb[29].mxu0  ;;  %v9086_v62 = vadd.f32 %v7064_v17, %v8857_v48 }
 0x119   :  { %7553 = vrot.lane.b32.xlu0 %v7552_v16, %s8434_s4  ;;  %v9119_v15 = vpack.c.bf16 %v621_v6, %v620_v4  ;;  %v14695_v6 = vld [vmem:[#allocation7_spill] sm:$0xff] }
 0x11a   :  { %7528 = vrot.lane.b32.xlu1 %v7522_v12, %s8435_s18  ;;  %14648 = vst [vmem:[#allocation14_spill] sm:$0xff] %v9086_v62 }
 0x11b   :  { %v8980_v20 = vpop.f32.mrb[30].mxu0  ;;  %14652 = vst [vmem:[#allocation18_spill] sm:$0xff] %v9119_v15 }
 0x11c   :  { %v8982_v53 = vpop.f32.mrb[31].mxu0  ;;  %v9111_v11 = vadd.f32 %v8980_v20, %v8857_v48 }
 0x11d   :  { %1066 = vrot.lane.b32.xlu0 %v8968_v10, %s8433_s17  ;;  %v9115_v12 = vadd.f32 %v8857_v48, %v8982_v53 }
 0x11e   :  { %1054 = vrot.lane.b32.xlu1 %v8957_v5, %s8433_s17  ;;  %14650 = vst [vmem:[#allocation16_spill] sm:$0xff] %v9111_v11 }
 0x11f   :  { %v8997_v14 = vpop.f32.mrb[32].mxu0  ;;  %14651 = vst [vmem:[#allocation17_spill] sm:$0xff] %v9115_v12  ;;  %v9127_v17 = vpack.i.bf16 %v9111_v11, %v9115_v12 }
 0x120   :  { %v8999_v21 = vpop.f32.mrb[33].mxu0  ;;  %v9136_v4 = vadd.f32 %v8997_v14, %v8857_v48 }
 0x121   :  { %1072 = vrot.lane.b32.xlu0 %v8985_v58, %s8433_s17 }
 0x122   :  { %1060 = vrot.lane.b32.xlu1 %v8941_v59, %s8433_s17  ;;  %14653 = vst [vmem:[#allocation19_spill] sm:$0xff] %v9136_v4 }
 0x123   :  { %v9007_v23 = vpop.f32.mrb[34].mxu0 }
 0x124   :  { %v9012_v25 = vpop.f32.mrb[35].mxu0 }
 0x125   :  { %7573 = vrot.lane.b32.xlu0 %v7572_v22, %s8434_s4 }
 0x126   :  { %7538 = vrot.lane.b32.xlu1 %v7532_v63, %s8435_s18  ;;  %v9089_v63 = vadd.f32 %v8857_v48, %v515_v19 }
 0x127   :  { %v9022_v29 = vpop.f32.mrb[36].mxu0 }
 0x128   :  { %v9026_v33 = vpop.f32.mrb[37].mxu0  ;;  %14649 = vst [vmem:[#allocation15_spill] sm:$0xff] %v9089_v63  ;;  %v7612_v3 = vpack.i.bf16 %v9086_v62, %v9089_v63 }
 0x129   :  { %1074 = vrot.lane.b32.xlu0 %v8993_v8, %s8433_s17 }
 0x12a   :  { %7543 = vrot.lane.b32.xlu1 %v7542_v31, %s8434_s4 }
 0x12b   :  { %v9033_v35 = vpop.f32.mrb[38].mxu0 }
 0x12c   :  { %v9035_v36 = vpop.f32.mrb[39].mxu0 }
 0x12d   :  { %7583 = vrot.lane.b32.xlu0 %v7582_v34, %s8434_s4 }
 0x12e   :  { %7548 = vrot.lane.b32.xlu1 %v7542_v31, %s8435_s18  ;;  %v616_v31 = vmax.f32 %v9019_v28, 0.0 }
 0x12f   :  { %v9045_v39 = vpop.f32.mrb[40].mxu0 }
 0x130   :  { %v9047_v45 = vpop.f32.mrb[41].mxu0 }
 0x131   :  { %1758 = vrot.lane.b32.xlu0 %v9019_v28, %s8433_s17 }
 0x132   :  { %1062 = vrot.lane.b32.xlu1 %v9010_v24, %s8433_s17 }
 0x133   :  { %v9055_v49 = vpop.f32.mrb[42].mxu0 }
 0x134   :  { %v9057_v50 = vpop.f32.mrb[43].mxu0 }
 0x135   :  { %7593 = vrot.lane.b32.xlu0 %v7592_v47, %s8434_s4 }
 0x136   :  { %1068 = vrot.lane.b32.xlu1 %v8965_v9, %s8433_s17 }
 0x139   :  { %7598 = vrot.lane.b32.xlu0 %v7592_v47, %s8435_s18  ;;  %v617_v47 = vmax.f32 %v9016_v27, 0.0 }
 0x13a   :  { %7558 = vrot.lane.b32.xlu1 %v7552_v16, %s8435_s18 }
 0x13b   :  { %v9154_v14 = vpack.c.bf16 %v617_v47, %v616_v31 }
 0x13d   :  { %1762 = vrot.lane.b32.xlu0 %v9042_v38, %s8433_s17  ;;  %14657 = vst [vmem:[#allocation21_spill] sm:$0xff] %v9154_v14 }
 0x13e   :  { %7563 = vrot.lane.b32.xlu1 %v7562_v61, %s8434_s4 }
 0x141   :  { %7603 = vrot.lane.b32.xlu0 %v9080_v56, %s8434_s4 }
 0x142   :  { %7568 = vrot.lane.b32.xlu1 %v7562_v61, %s8435_s18 }
 0x145   :  { %1766 = vrot.lane.b32.xlu0 %v9071_v55, %s8433_s17 }
 0x146   :  { %1070 = vrot.lane.b32.xlu1 %v9064_v51, %s8433_s17 }
 0x149   :  { %7613 = vrot.lane.b32.xlu0 %v7612_v3, %s8434_s4 }
 0x14a   :  { %1076 = vrot.lane.b32.xlu1 %v8990_v1, %s8433_s17 }
 0x14d   :  { %7618 = vrot.lane.b32.xlu0 %v7612_v3, %s8435_s18 }
 0x14e   :  { %7578 = vrot.lane.b32.xlu1 %v7572_v22, %s8435_s18 }
 0x151   :  { %1770 = vrot.lane.b32.xlu0 %v9089_v63, %s8433_s17 }
 0x152   :  { %1760 = vrot.lane.b32.xlu1 %v9016_v27, %s8433_s17 }
 0x154   :  { %v9121_v16 = vpop.permute.xlu1 %1036 }
 0x155   :  { %3951 = vrot.lane.b32.xlu0 %v9119_v15, %s8436_s19 }
 0x156   :  { %7588 = vrot.lane.b32.xlu1 %v7582_v34, %s8435_s18  ;;  %v9140_v34 = vadd.f32 %v8857_v48, %v8999_v21 }
 0x157   :  { %v7474_v19 = vpop.permute.xlu0 %7473 }
 0x158   :  { %v7476_v20 = vunpack.i.h.bf16 %v7474_v19  ;;  %v7475_v53 = vunpack.i.l.bf16 %v7474_v19  ;;  %v7479_v22 = vpop.permute.xlu1 %7478  ;;  %14654 = vst [vmem:[#allocation20_spill] sm:$0xff] %v9140_v34  ;;  %v7632_v21 = vpack.i.bf16 %v9136_v4, %v9140_v34 }
 0x159   :  { %v7481_v61 = vunpack.i.h.bf16 %v7479_v22  ;;  %v7480_v3 = vunpack.i.l.bf16 %v7479_v22  ;;  %7623 = vrot.lane.b32.xlu0 %v9127_v17, %s8434_s4 }
 0x15a   :  { %1764 = vrot.lane.b32.xlu1 %v9039_v37, %s8433_s17  ;;  %v7235_v19 = vpack.c.bf16 %v7476_v20, %v7475_v53  ;;  %v14658_v20 = vmov 0.0|0.0  }
 0x15b   :  { %v7279_v22 = vpack.c.bf16 %v7481_v61, %v7480_v3  ;;  %v9150_v2 = vpop.permute.xlu0 %1034 }
 0x15c   :  { %v7489_v41 = vpop.permute.xlu1 %7488  ;;  %7237 = vmatpush1.bf16.xpose.msk.msra.mxu1 %vm9144_vm2, %v7235_v19 }
 0x15d   :  { %7281 = vmatpush1.bf16.xpose.msk.msra.mxu0 %vm9144_vm2, %v7279_v22  ;;  %1774 = vrot.lane.b32.xlu0 %v9115_v12, %s8433_s17  ;;  %v7491_v53 = vunpack.i.h.bf16 %v7489_v41  ;;  %v7490_v61 = vunpack.i.l.bf16 %v7489_v41  ;;  %v619_v22 = vmax.f32 %v9039_v37, 0.0  ;;  %v618_v41 = vmax.f32 %v9042_v38, 0.0 }
 0x15e   :  { %3947 = vrot.lane.b32.xlu1 %v9154_v14, %s8436_s19  ;;  %7282 = vmatprep.subr.bf16.mxu0 %v14658_v20 }
 0x15f   :  { %v9165_v3 = vpop.permute.xlu0 %1040  ;;  %7238 = vmatprep.subr.bf16.mxu1 %v14658_v20  ;;  %v7283_v47 = vpack.c.bf16 %v7491_v53, %v7490_v61  ;;  %v624_v61 = vmax.f32 %v9115_v12, 0.0  ;;  %v9189_v55 = vpack.c.bf16 %v619_v22, %v618_v41 }
 0x160   :  { %v9168_v31 = vpop.permute.xlu1 %1038 }
 0x161   :  { %7633 = vrot.lane.b32.xlu0 %v7632_v21, %s8434_s4  ;;  %14660 = vst [vmem:[#allocation23_spill] sm:$0xff] %v9189_v55 }
 0x162   :  { %1768 = vrot.lane.b32.xlu1 %v9068_v52, %s8433_s17 }
 0x163   :  { %v7484_v19 = vpop.permute.xlu0 %7483 }
 0x164   :  { %v7486_v32 = vunpack.i.h.bf16 %v7484_v19  ;;  %v7485_v46 = vunpack.i.l.bf16 %v7484_v19  ;;  %v9174_v15 = vpop.permute.xlu1 %1044  ;;  %v625_v19 = vmax.f32 %v9111_v11, 0.0 }
 0x165   :  { %7285 = vmatpush1.bf16.xpose.msk.msra.mxu0 %vm9144_vm2, %v7283_v47  ;;  %7638 = vrot.lane.b32.xlu0 %v7632_v21, %s8435_s18 }
 0x166   :  { %v7239_v14 = vpack.c.bf16 %v7486_v32, %v7485_v46  ;;  %7608 = vrot.lane.b32.xlu1 %v9080_v56, %s8435_s18  ;;  %7286 = vmatprep.subr.bf16.mxu0 %v14658_v20  ;;  %v9195_v32 = vadd.f32 %v9007_v23, %v8857_v48  ;;  %v9199_v46 = vadd.f32 %v8857_v48, %v9012_v25 }
 0x167   :  { %v9183_v53 = vpop.permute.xlu0 %3738  ;;  %v9206_v47 = vpack.c.bf16 %v625_v19, %v624_v61  ;;  %v9225_v61 = vadd.f32 %v9022_v29, %v8857_v48  ;;  %v9229_v19 = vadd.f32 %v8857_v48, %v9026_v33 }
 0x168   :  { %14659 = vst [vmem:[#allocation22_spill] sm:$0xff] %v9183_v53  ;;  %v7494_v52 = vpop.permute.xlu1 %7493  ;;  %7241 = vmatpush1.bf16.xpose.msk.msra.mxu1 %vm9144_vm2, %v7239_v14  ;;  %14661 = vst [vmem:[#allocation24_spill] sm:$0xff] %v9195_v32  ;;  %v7642_v23 = vpack.i.bf16 %v9195_v32, %v9199_v46 }
 0x169   :  { %1778 = vrot.lane.b32.xlu0 %v9140_v34, %s8433_s17  ;;  %14662 = vst [vmem:[#allocation25_spill] sm:$0xff] %v9199_v46  ;;  %7242 = vmatprep.subr.bf16.mxu1 %v14658_v20  ;;  %v7496_v56 = vunpack.i.h.bf16 %v7494_v52  ;;  %v7495_v21 = vunpack.i.l.bf16 %v7494_v52  ;;  %14663 = vst [vmem:[#allocation26_spill] sm:$0xff] %v9206_v47  ;;  %v7652_v33 = vpack.i.bf16 %v9225_v61, %v9229_v19 }
 0x16a   :  { %3949 = vrot.lane.b32.xlu1 %v9189_v55, %s8436_s19  ;;  %14665 = vst [vmem:[#allocation28_spill] sm:$0xff] %v9225_v61  ;;  %14666 = vst [vmem:[#allocation29_spill] sm:$0xff] %v9229_v19 }
 0x16b   :  { %v9204_v14 = vpop.permute.xlu0 %1042  ;;  %v7243_v25 = vpack.c.bf16 %v7496_v56, %v7495_v21  ;;  %v622_v21 = vmax.f32 %v9089_v63, 0.0 }
 0x16c   :  { %v7499_v22 = vpop.permute.xlu1 %7498 }
 0x16d   :  { %v7501_v41 = vunpack.i.h.bf16 %v7499_v22  ;;  %v7500_v12 = vunpack.i.l.bf16 %v7499_v22  ;;  %3955 = vrot.lane.b32.xlu0 %v9206_v47, %s8436_s19  ;;  %v623_v22 = vmax.f32 %v9086_v62, 0.0 }
 0x16e   :  { %1772 = vrot.lane.b32.xlu1 %v9086_v62, %s8433_s17 }
 0x16f   :  { %v7287_v52 = vpack.c.bf16 %v7501_v41, %v7500_v12  ;;  %v9214_v37 = vpop.permute.xlu0 %1048 }
 0x170   :  { %v9216_v55 = vpop.permute.xlu1 %3740  ;;  %7245 = vmatpush1.bf16.xpose.msk.msra.mxu1 %vm9144_vm2, %v7243_v25 }
 0x171   :  { %14664 = vst [vmem:[#allocation27_spill] sm:$0xff] %v9216_v55  ;;  %7289 = vmatpush1.bf16.xpose.msk.msra.mxu0 %vm9144_vm2, %v7287_v52  ;;  %7643 = vrot.lane.b32.xlu0 %v7642_v23, %s8434_s4 }
 0x172   :  { %1776 = vrot.lane.b32.xlu1 %v9111_v11, %s8433_s17  ;;  %7246 = vmatprep.subr.bf16.mxu1 %v14658_v20  ;;  %v9245_v11 = vpack.c.bf16 %v623_v22, %v622_v21  ;;  %v628_v22 = vmax.f32 %v9199_v46, 0.0 }
 0x173   :  { %v7514_v12 = vpop.permute.xlu0 %7513  ;;  %7290 = vmatprep.subr.bf16.mxu0 %v14658_v20 }
 0x174   :  { %v7504_v56 = vpop.permute.xlu1 %7503  ;;  %14667 = vst [vmem:[#allocation30_spill] sm:$0xff] %v9245_v11 }
 0x175   :  { %v7506_v41 = vunpack.i.h.bf16 %v7504_v56  ;;  %v7505_v29 = vunpack.i.l.bf16 %v7504_v56  ;;  %1782 = vrot.lane.b32.xlu0 %v9199_v46, %s8433_s17  ;;  %v7516_v56 = vunpack.i.h.bf16 %v7514_v12 }
 0x176   :  { %7628 = vrot.lane.b32.xlu1 %v9127_v17, %s8435_s18  ;;  %v7515_v17 = vunpack.i.l.bf16 %v7514_v12  ;;  %v9273_v12 = vadd.f32 %v9033_v35, %v8857_v48 }
 0x177   :  { %v7247_v25 = vpack.c.bf16 %v7506_v41, %v7505_v29  ;;  %v9243_v52 = vpop.permute.xlu0 %1050 }
 0x178   :  { %v7509_v47 = vpop.permute.xlu1 %7508  ;;  %14668 = vst [vmem:[#allocation31_spill] sm:$0xff] %v9273_v12 }
 0x179   :  { %v7511_v63 = vunpack.i.h.bf16 %v7509_v47  ;;  %v7510_v38 = vunpack.i.l.bf16 %v7509_v47  ;;  %7249 = vmatpush1.bf16.xpose.msk.msra.mxu1 %vm9144_vm2, %v7247_v25  ;;  %7653 = vrot.lane.b32.xlu0 %v7652_v33, %s8434_s4  ;;  %v7251_v47 = vpack.c.bf16 %v7516_v56, %v7515_v17 }
 0x17a   :  { %3953 = vrot.lane.b32.xlu1 %v9245_v11, %s8436_s19  ;;  %7250 = vmatprep.subr.bf16.mxu1 %v14658_v20 }
 0x17b   :  { %v7291_v41 = vpack.c.bf16 %v7511_v63, %v7510_v38  ;;  %v9253_v29 = vpop.permute.xlu0 %1056  ;;  %v629_v38 = vmax.f32 %v9195_v32, 0.0 }
 0x17c   :  { %v9255_v62 = vpop.permute.xlu1 %1046 }
 0x17d   :  { %7293 = vmatpush1.bf16.xpose.msk.msra.mxu0 %vm9144_vm2, %v7291_v41  ;;  %7658 = vrot.lane.b32.xlu0 %v7652_v33, %s8435_s18  ;;  %v9277_v33 = vadd.f32 %v8857_v48, %v9035_v36  ;;  %v9284_v56 = vpack.c.bf16 %v629_v38, %v628_v22  ;;  %v626_v41 = vmax.f32 %v9140_v34, 0.0 }
 0x17e   :  { %1780 = vrot.lane.b32.xlu1 %v9136_v4, %s8433_s17  ;;  %7294 = vmatprep.subr.bf16.mxu0 %v14658_v20 }
 0x17f   :  { %v7534_v21 = vpop.permute.xlu0 %7533  ;;  %14669 = vst [vmem:[#allocation32_spill] sm:$0xff] %v9277_v33  ;;  %14670 = vst [vmem:[#allocation33_spill] sm:$0xff] %v9284_v56  ;;  %v7662_v36 = vpack.i.bf16 %v9273_v12, %v9277_v33 }
 0x180   :  { %v9265_v63 = vpop.permute.xlu1 %1052 }
 0x181   :  { %1786 = vrot.lane.b32.xlu0 %v9229_v19, %s8433_s17  ;;  %7253 = vmatpush1.bf16.xpose.msk.msra.mxu1 %vm9144_vm2, %v7251_v47  ;;  %v627_v47 = vmax.f32 %v9136_v4, 0.0 }
 0x182   :  { %1784 = vrot.lane.b32.xlu1 %v9195_v32, %s8433_s17  ;;  %7254 = vmatprep.subr.bf16.mxu1 %v14658_v20 }
 0x183   :  { %v9282_v25 = vpop.permute.xlu0 %1058  ;;  %v9295_v38 = vpack.c.bf16 %v627_v47, %v626_v41 }
 0x184   :  { %v7519_v17 = vpop.permute.xlu1 %7518 }
 0x185   :  { %v7521_v35 = vunpack.i.h.bf16 %v7519_v17  ;;  %v7520_v11 = vunpack.i.l.bf16 %v7519_v17  ;;  %3959 = vrot.lane.b32.xlu0 %v9284_v56, %s8436_s19  ;;  %14671 = vst [vmem:[#allocation34_spill] sm:$0xff] %v9295_v38  ;;  %v9302_v17 = vadd.f32 %v9045_v39, %v8857_v48 }
 0x186   :  { %7648 = vrot.lane.b32.xlu1 %v7642_v23, %s8435_s18  ;;  %v9306_v23 = vadd.f32 %v8857_v48, %v9047_v45  ;;  %v7536_v45 = vunpack.i.h.bf16 %v7534_v21 }
 0x187   :  { %v7295_v32 = vpack.c.bf16 %v7521_v35, %v7520_v11  ;;  %v9293_v46 = vpop.permute.xlu0 %1064  ;;  %14672 = vst [vmem:[#allocation35_spill] sm:$0xff] %v9302_v17 }
 0x188   :  { %v7524_v22 = vpop.permute.xlu1 %7523  ;;  %14673 = vst [vmem:[#allocation36_spill] sm:$0xff] %v9306_v23  ;;  %v7672_v39 = vpack.i.bf16 %v9302_v17, %v9306_v23 }
 0x189   :  { %v7526_v55 = vunpack.i.h.bf16 %v7524_v22  ;;  %v7525_v34 = vunpack.i.l.bf16 %v7524_v22  ;;  %7297 = vmatpush1.bf16.xpose.msk.msra.mxu0 %vm9144_vm2, %v7295_v32  ;;  %7663 = vrot.lane.b32.xlu0 %v7662_v36, %s8434_s4 }
 0x18a   :  { %3957 = vrot.lane.b32.xlu1 %v9295_v38, %s8436_s19  ;;  %7298 = vmatprep.subr.bf16.mxu0 %v14658_v20 }
 0x18b   :  { %v7255_v11 = vpack.c.bf16 %v7526_v55, %v7525_v34  ;;  %v9311_v41 = vpop.permute.xlu0 %7553  ;;  %v7535_v55 = vunpack.i.l.bf16 %v7534_v21  ;;  %v630_v21 = vmax.f32 %v9229_v19, 0.0 }
 0x18c   :  { %v7529_v47 = vpop.permute.xlu1 %7528 }
 0x18d   :  { %v7531_v32 = vunpack.i.h.bf16 %v7529_v47  ;;  %v7530_v35 = vunpack.i.l.bf16 %v7529_v47  ;;  %1790 = vrot.lane.b32.xlu0 %v9277_v33, %s8433_s17  ;;  %7257 = vmatpush1.bf16.xpose.msk.msra.mxu1 %vm9144_vm2, %v7255_v11  ;;  %v7259_v11 = vpack.c.bf16 %v7536_v45, %v7535_v55  ;;  %v632_v45 = vmax.f32 %v9277_v33, 0.0 }
 0x18e   :  { %1788 = vrot.lane.b32.xlu1 %v9225_v61, %s8433_s17  ;;  %7258 = vmatprep.subr.bf16.mxu1 %v14658_v20  ;;  %v633_v55 = vmax.f32 %v9273_v12, 0.0 }
 0x18f   :  { %v7299_v34 = vpack.c.bf16 %v7531_v32, %v7530_v35  ;;  %v9322_v22 = vpop.permute.xlu0 %1066  ;;  %v631_v32 = vmax.f32 %v9225_v61, 0.0 }
 0x190   :  { %v9324_v47 = vpop.permute.xlu1 %1054 }
 0x191   :  { %7301 = vmatpush1.bf16.xpose.msk.msra.mxu0 %vm9144_vm2, %v7299_v34  ;;  %7673 = vrot.lane.b32.xlu0 %v7672_v39, %s8434_s4  ;;  %v9347_v4 = vpack.c.bf16 %v631_v32, %v630_v21  ;;  %v9363_v21 = vpack.c.bf16 %v633_v55, %v632_v45 }
 0x192   :  { %1792 = vrot.lane.b32.xlu1 %v9273_v12, %s8433_s17  ;;  %7302 = vmatprep.subr.bf16.mxu0 %v14658_v20 }
 0x193   :  { %v9332_v38 = vpop.permute.xlu0 %1072  ;;  %14675 = vst [vmem:[#allocation38_spill] sm:$0xff] %v9347_v4  ;;  %14679 = vst [vmem:[#allocation42_spill] sm:$0xff] %v9363_v21 }
 0x194   :  { %14674 = vst [vmem:[#allocation37_spill] sm:$0xff] %v9332_v38  ;;  %v9334_v56 = vpop.permute.xlu1 %1060 }
 0x195   :  { %7678 = vrot.lane.b32.xlu0 %v7672_v39, %s8435_s18  ;;  %7261 = vmatpush1.bf16.xpose.msk.msra.mxu1 %vm9144_vm2, %v7259_v11  ;;  %v9353_v39 = vadd.f32 %v9055_v49, %v8857_v48 }
 0x196   :  { %7668 = vrot.lane.b32.xlu1 %v7662_v36, %s8435_s18  ;;  %7262 = vmatprep.subr.bf16.mxu1 %v14658_v20  ;;  %v9357_v36 = vadd.f32 %v8857_v48, %v9057_v50 }
 0x197   :  { %v9343_v35 = vpop.permute.xlu0 %7573  ;;  %14676 = vst [vmem:[#allocation39_spill] sm:$0xff] %v9353_v39  ;;  %v637_v55 = vmax.f32 %v9353_v39, 0.0 }
 0x198   :  { %v7539_v34 = vpop.permute.xlu1 %7538  ;;  %14677 = vst [vmem:[#allocation40_spill] sm:$0xff] %v9357_v36  ;;  %v7682_v48 = vpack.i.bf16 %v9353_v39, %v9357_v36 }
 0x199   :  { %v7541_v19 = vunpack.i.h.bf16 %v7539_v34  ;;  %v7540_v61 = vunpack.i.l.bf16 %v7539_v34  ;;  %1794 = vrot.lane.b32.xlu0 %v9306_v23, %s8433_s17 }
 0x19a   :  { %3961 = vrot.lane.b32.xlu1 %v9347_v4, %s8436_s19 }
 0x19b   :  { %v7303_v11 = vpack.c.bf16 %v7541_v19, %v7540_v61  ;;  %v9361_v12 = vpop.permute.xlu0 %1074 }
 0x19c   :  { %14678 = vst [vmem:[#allocation41_spill] sm:$0xff] %v9361_v12  ;;  %v7544_v32 = vpop.permute.xlu1 %7543  ;;  %v609_v12 = vmax.f32 %v8960_v7, 0.0 }
 0x19d   :  { %v7546_v34 = vunpack.i.h.bf16 %v7544_v32  ;;  %v7545_v33 = vunpack.i.l.bf16 %v7544_v32  ;;  %7305 = vmatpush1.bf16.xpose.msk.msra.mxu0 %vm9144_vm2, %v7303_v11  ;;  %3963 = vrot.lane.b32.xlu0 %v9363_v21, %s8436_s19  ;;  %v7556_v11 = vunpack.i.h.bf16 %v9311_v41  ;;  %v635_v21 = vmax.f32 %v9302_v17, 0.0 }
 0x19e   :  { %1796 = vrot.lane.b32.xlu1 %v9302_v17, %s8433_s17  ;;  %7306 = vmatprep.subr.bf16.mxu0 %v14658_v20 }
 0x19f   :  { %v7263_v49 = vpack.c.bf16 %v7546_v34, %v7545_v33  ;;  %v9374_v50 = vpop.permute.xlu0 %7583  ;;  %v7555_v33 = vunpack.i.l.bf16 %v9311_v41 }
 0x1a0   :  { %v7549_v61 = vpop.permute.xlu1 %7548 }
 0x1a1   :  { %v7551_v19 = vunpack.i.h.bf16 %v7549_v61  ;;  %v7550_v45 = vunpack.i.l.bf16 %v7549_v61  ;;  %7683 = vrot.lane.b32.xlu0 %v7682_v48, %s8434_s4  ;;  %7265 = vmatpush1.bf16.xpose.msk.msra.mxu1 %vm9144_vm2, %v7263_v49  ;;  %v636_v61 = vmax.f32 %v9357_v36, 0.0  ;;  %v634_v49 = vmax.f32 %v9306_v23, 0.0 }
 0x1a2   :  { %1800 = vrot.lane.b32.xlu1 %v9353_v39, %s8433_s17  ;;  %7266 = vmatprep.subr.bf16.mxu1 %v14658_v20  ;;  %v7267_v41 = vpack.c.bf16 %v7556_v11, %v7555_v33  ;;  %v598_v39 = vmax.f32 %v8892_v30, 0.0  ;;  %v599_v23 = vmax.f32 %v8885_v26, 0.0  ;;  %v603_v11 = vmax.f32 %v8912_v42, 0.0 }
 0x1a3   :  { %v7307_v32 = vpack.c.bf16 %v7551_v19, %v7550_v45  ;;  %v9385_v34 = vpop.permute.xlu0 %1758  ;;  %v9400_v45 = vpack.c.bf16 %v637_v55, %v636_v61 }
 0x1a4   :  { %14680 = vst [vmem:[#allocation43_spill] sm:$0xff] %v9385_v34  ;;  %v9388_v4 = vpop.permute.xlu1 %1062  ;;  %v9406_v34 = vpack.c.bf16 %v635_v21, %v634_v49  ;;  %v9419_v55 = vpack.c.bf16 %v599_v23, %v598_v39  ;;  %v602_v21 = vmax.f32 %v8915_v43, 0.0  ;;  %v604_v49 = vmax.f32 %v8957_v5, 0.0 }
 0x1a5   :  { %7309 = vmatpush1.bf16.xpose.msk.msra.mxu0 %vm9144_vm2, %v7307_v32  ;;  %1798 = vrot.lane.b32.xlu0 %v9357_v36, %s8433_s17  ;;  %14681 = vst [vmem:[#allocation44_spill] sm:$0xff] %v9400_v45  ;;  %v600_v32 = vmax.f32 %v8918_v44, 0.0  ;;  %v601_v36 = vmax.f32 %v8907_v40, 0.0  ;;  %s8439_s17 = smov 48  }
 0x1a6   :  { %7688 = vrot.lane.b32.xlu1 %v7682_v48, %s8435_s18  ;;  %7310 = vmatprep.subr.bf16.mxu0 %v14658_v20  ;;  %14682 = vst [vmem:[#allocation45_spill] sm:$0xff] %v9406_v34  ;;  %14683 = vst [vmem:[#allocation46_spill] sm:$0xff] %v9419_v55 }
 0x1a7   :  { %v9398_v19 = vpop.permute.xlu0 %7593  ;;  %v9423_v61 = vpack.c.bf16 %v601_v36, %v600_v32  ;;  %v606_v36 = vmax.f32 %v8944_v60, 0.0  ;;  %v607_v32 = vmax.f32 %v8941_v59, 0.0 }
 0x1a8   :  { %v9404_v17 = vpop.permute.xlu1 %1068 }
 0x1a9   :  { %3967 = vrot.lane.b32.xlu0 %v9400_v45, %s8436_s19  ;;  %7269 = vmatpush1.bf16.xpose.msk.msra.mxu1 %vm9144_vm2, %v7267_v41  ;;  %14684 = vst [vmem:[#allocation47_spill] sm:$0xff] %v9423_v61  ;;  %v605_v41 = vmax.f32 %v8936_v57, 0.0 }
 0x1aa   :  { %3965 = vrot.lane.b32.xlu1 %v9406_v34, %s8436_s19  ;;  %7270 = vmatprep.subr.bf16.mxu1 %v14658_v20  ;;  %v9433_v34 = vpack.c.bf16 %v603_v11, %v602_v21  ;;  %v9450_v21 = vpack.c.bf16 %v607_v32, %v606_v36  ;;  %v610_v11 = vmax.f32 %v8968_v10, 0.0 }
 0x1ab   :  { %v9417_v48 = vpop.permute.xlu0 %7598  ;;  %v9437_v28 = vpack.c.bf16 %v605_v41, %v604_v49 }
 0x1ac   :  { %v7559_v33 = vpop.permute.xlu1 %7558  ;;  %14685 = vst [vmem:[#allocation48_spill] sm:$0xff] %v9433_v34  ;;  %14687 = vst [vmem:[#allocation50_spill] sm:$0xff] %v9450_v21 }
 0x1ad   :  { %v7561_v45 = vunpack.i.h.bf16 %v7559_v33  ;;  %v7560_v27 = vunpack.i.l.bf16 %v7559_v33  ;;  %3742 = vrot.lane.b32.xlu0 %v9419_v55, %s8436_s19  ;;  %14686 = vst [vmem:[#allocation49_spill] sm:$0xff] %v9437_v28  ;;  %v608_v33 = vmax.f32 %v9010_v24, 0.0 }
 0x1ae   :  { %3744 = vrot.lane.b32.xlu1 %v9423_v61, %s8436_s19 }
 0x1af   :  { %v7311_v23 = vpack.c.bf16 %v7561_v45, %v7560_v27  ;;  %v9431_v39 = vpop.permute.xlu0 %1762  ;;  %v9454_v41 = vpack.c.bf16 %v609_v12, %v608_v33 }
 0x1b0   :  { %v7564_v53 = vpop.permute.xlu1 %7563 }
 0x1b1   :  { %v7566_v55 = vunpack.i.h.bf16 %v7564_v53  ;;  %v7565_v38 = vunpack.i.l.bf16 %v7564_v53  ;;  %7313 = vmatpush1.bf16.xpose.msk.msra.mxu0 %vm9144_vm2, %v7311_v23  ;;  %3746 = vrot.lane.b32.xlu0 %v9433_v34, %s8436_s19  ;;  %v611_v53 = vmax.f32 %v8965_v9, 0.0  ;;  %14688 = vst [vmem:[#allocation51_spill] sm:$0xff] %v9454_v41 }
 0x1b2   :  { %3748 = vrot.lane.b32.xlu1 %v9437_v28, %s8436_s19  ;;  %7314 = vmatprep.subr.bf16.mxu0 %v14658_v20 }
 0x1b3   :  { %v7271_v27 = vpack.c.bf16 %v7566_v55, %v7565_v38  ;;  %v9448_v45 = vpop.permute.xlu0 %7603  ;;  %v7576_v38 = vunpack.i.h.bf16 %v9343_v35  ;;  %v7575_v55 = vunpack.i.l.bf16 %v9343_v35  ;;  %v9467_v32 = vpack.c.bf16 %v611_v53, %v610_v11 }
 0x1b4   :  { %v7569_v49 = vpop.permute.xlu1 %7568  ;;  %v7586_v35 = vunpack.i.h.bf16 %v9374_v50 }
 0x1b5   :  { %v7571_v23 = vunpack.i.h.bf16 %v7569_v49  ;;  %v7570_v61 = vunpack.i.l.bf16 %v7569_v49  ;;  %3750 = vrot.lane.b32.xlu0 %v9450_v21, %s8436_s19  ;;  %7273 = vmatpush1.bf16.xpose.msk.msra.mxu1 %vm9144_vm2, %v7271_v27  ;;  %14689 = vst [vmem:[#allocation52_spill] sm:$0xff] %v9467_v32  ;;  %v7275_v27 = vpack.c.bf16 %v7576_v38, %v7575_v55 }
 0x1b6   :  { %3752 = vrot.lane.b32.xlu1 %v9454_v41, %s8436_s19  ;;  %7274 = vmatprep.subr.bf16.mxu1 %v14658_v20 }
 0x1b7   :  { %v7315_v36 = vpack.c.bf16 %v7571_v23, %v7570_v61  ;;  %v9465_v12 = vpop.permute.xlu0 %1766  ;;  %v7585_v61 = vunpack.i.l.bf16 %v9374_v50  ;;  %v14690_v50 = vmov 0.0  }
 0x1b8   :  { %v9469_v33 = vpop.permute.xlu1 %1070 }
 0x1b9   :  { %7317 = vmatpush1.bf16.xpose.msk.msra.mxu0 %vm9144_vm2, %v7315_v36  ;;  %3754 = vrot.lane.b32.xlu0 %v9467_v32, %s8436_s19  ;;  %v7323_v32 = vpack.c.bf16 %v7586_v35, %v7585_v61  ;;  %v7595_v35 = vunpack.i.l.bf16 %v9398_v19 }
 0x1ba   :  { %7318 = vmatprep.subr.bf16.mxu0 %v14658_v20 }
 0x1bb   :  { %v9476_v49 = vpop.permute.xlu0 %7613 }
 0x1bc   :  { %v9478_v21 = vpop.permute.xlu1 %1076 }
 0x1bd   :  { %7277 = vmatpush1.bf16.xpose.msk.msra.mxu1 %vm9144_vm2, %v7275_v27  ;;  %v7596_v27 = vunpack.i.h.bf16 %v9398_v19  ;;  %v7600_v19 = vunpack.i.l.bf16 %v9417_v48 }
 0x1be   :  { %7322 = vmatprep.subr.bf16.mxu1 %v14658_v20 }
 0x1bf   :  { %v9485_v11 = vpop.permute.xlu0 %7618 }
 0x1c0   :  { %v7579_v53 = vpop.permute.xlu1 %7578 }
 0x1c1   :  { %v7581_v23 = vunpack.i.h.bf16 %v7579_v53  ;;  %v7580_v36 = vunpack.i.l.bf16 %v7579_v53 }
 0x1c3   :  { %v7319_v38 = vpack.c.bf16 %v7581_v23, %v7580_v36  ;;  %v9487_v55 = vpop.permute.xlu0 %1770 }
 0x1c4   :  { %v9489_v41 = vpop.permute.xlu1 %1760  ;;  %6583 = vmatmul.mubr.msk.f32.vlgmr.msra.gmra.mrb[0].mxu1 %vm748_vm1, %v8863_v0 }
 0x1c5   :  { %7321 = vmatpush1.bf16.xpose.msk.msra.mxu0 %vm9144_vm2, %v7319_v38  ;;  %7325 = vmatpush1.bf16.xpose.msk.msra.mxu1 %vm9144_vm2, %v7323_v32  ;;  %v7327_v32 = vpack.c.bf16 %v7596_v27, %v7595_v35  ;;  %v7606_v27 = vunpack.i.h.bf16 %v9448_v45 }
 0x1c6   :  { %907 = vmatprep.mubr.f32.mxu1 %v14690_v50  ;;  %7326 = vmatprep.subr.bf16.mxu1 %v14658_v20 }
 0x1c7   :  { %v9501_v61 = vpop.permute.xlu0 %3951  ;;  %7366 = vmatprep.subr.bf16.mxu0 %v14658_v20 }
 0x1c8   :  { %v7589_v53 = vpop.permute.xlu1 %7588  ;;  %6584 = vmatmul.mubr.msk.f32.gmra.mrb[2].mxu1 %vm748_vm1, %v8860_v54  ;;  %v7601_v54 = vunpack.i.h.bf16 %v9417_v48 }
 0x1c9   :  { %v7591_v0 = vunpack.i.h.bf16 %v7589_v53  ;;  %v7590_v23 = vunpack.i.l.bf16 %v7589_v53  ;;  %913 = vmatprep.mubr.f32.mxu1 %v14690_v50 }
 0x1ca   :  { %v7371_v48 = vpack.c.bf16 %v7601_v54, %v7600_v19 }
 0x1cb   :  { %v7367_v36 = vpack.c.bf16 %v7591_v0, %v7590_v23  ;;  %v9507_v38 = vpop.permute.xlu0 %7623 }
 0x1cc   :  { %v9509_v34 = vpop.permute.xlu1 %1764  ;;  %6585 = vmatmul.mubr.msk.f32.gmra.mrb[4].mxu1 %vm748_vm1, %v8873_v18  ;;  %6627 = vmatmul.mubr.msk.f32.vlgmr.msra.gmra.mrb[44].mxu0 %vm748_vm1, %v9150_v2  ;;  %v7605_v18 = vunpack.i.l.bf16 %v9448_v45 }
 0x1cd   :  { %7329 = vmatpush1.bf16.xpose.msk.msra.mxu1 %vm9144_vm2, %v7327_v32  ;;  %7369 = vmatpush1.bf16.xpose.msk.msra.mxu0 %vm9144_vm2, %v7367_v36 }
 0x1ce   :  { %1280 = vmatprep.mubr.f32.mxu0 %v14690_v50  ;;  %919 = vmatprep.mubr.f32.mxu1 %v14690_v50  ;;  %v7331_v45 = vpack.c.bf16 %v7606_v27, %v7605_v18  ;;  %v7626_v27 = vunpack.i.h.bf16 %v9507_v38 }
 0x1cf   :  { %v9525_v35 = vpop.permute.xlu0 %1774  ;;  %7330 = vmatprep.subr.bf16.mxu1 %v14658_v20  ;;  %7370 = vmatprep.subr.bf16.mxu0 %v14658_v20 }
 0x1d0   :  { %v9529_v2 = vpop.permute.xlu1 %3947  ;;  %6586 = vmatmul.mubr.msk.f32.gmra.mrb[6].mxu1 %vm748_vm1, %v8870_v13  ;;  %6628 = vmatmul.mubr.msk.f32.gmra.mrb[46].mxu0 %vm748_vm1, %v9121_v16  ;;  %v7616_v13 = vunpack.i.h.bf16 %v9476_v49  ;;  %v7615_v16 = vunpack.i.l.bf16 %v9476_v49 }
 0x1d1   :  { %1286 = vmatprep.mubr.f32.mxu0 %v14690_v50  ;;  %925 = vmatprep.mubr.f32.mxu1 %v14690_v50 }
 0x1d2   :  { %v7335_v49 = vpack.c.bf16 %v7616_v13, %v7615_v16 }
 0x1d3   :  { %v9537_v53 = vpop.permute.xlu0 %7633 }
 0x1d4   :  { %v9539_v0 = vpop.permute.xlu1 %1768  ;;  %6587 = vmatmul.mubr.msk.f32.gmra.mrb[8].mxu1 %vm748_vm1, %v8892_v30  ;;  %6629 = vmatmul.mubr.msk.f32.gmra.mrb[48].mxu0 %vm748_vm1, %v9168_v31 }
 0x1d5   :  { %7333 = vmatpush1.bf16.xpose.msk.msra.mxu1 %vm9144_vm2, %v7331_v45  ;;  %7373 = vmatpush1.bf16.xpose.msk.msra.mxu0 %vm9144_vm2, %v7371_v48 }
 0x1d6   :  { %1292 = vmatprep.mubr.f32.mxu0 %v14690_v50  ;;  %931 = vmatprep.mubr.f32.mxu1 %v14690_v50 }
 0x1d7   :  { %v9553_v23 = vpop.permute.xlu0 %7638  ;;  %7334 = vmatprep.subr.bf16.mxu1 %v14658_v20  ;;  %7374 = vmatprep.subr.bf16.mxu0 %v14658_v20 }
 0x1d8   :  { %v7609_v30 = vpop.permute.xlu1 %7608  ;;  %6588 = vmatmul.mubr.msk.f32.gmra.mrb[10].mxu1 %vm748_vm1, %v8885_v26  ;;  %6630 = vmatmul.mubr.msk.f32.gmra.mrb[50].mxu0 %vm748_vm1, %v9165_v3  ;;  %v7621_v26 = vunpack.i.h.bf16 %v9485_v11  ;;  %v7620_v3 = vunpack.i.l.bf16 %v9485_v11 }
 0x1d9   :  { %v7611_v31 = vunpack.i.h.bf16 %v7609_v30  ;;  %v7610_v32 = vunpack.i.l.bf16 %v7609_v30  ;;  %1298 = vmatprep.mubr.f32.mxu0 %v14690_v50  ;;  %937 = vmatprep.mubr.f32.mxu1 %v14690_v50 }
 0x1da   :  { %v7379_v11 = vpack.c.bf16 %v7621_v26, %v7620_v3 }
 0x1db   :  { %v7375_v36 = vpack.c.bf16 %v7611_v31, %v7610_v32  ;;  %v9563_v54 = vpop.permute.xlu0 %1778 }
 0x1dc   :  { %v9565_v19 = vpop.permute.xlu1 %3949  ;;  %6589 = vmatmul.mubr.msk.f32.gmra.mrb[12].mxu1 %vm748_vm1, %v8918_v44  ;;  %6631 = vmatmul.mubr.msk.f32.gmra.mrb[52].mxu0 %vm748_vm1, %v9204_v14  ;;  %v7625_v44 = vunpack.i.l.bf16 %v9507_v38 }
 0x1dd   :  { %7337 = vmatpush1.bf16.xpose.msk.msra.mxu1 %vm9144_vm2, %v7335_v49  ;;  %7377 = vmatpush1.bf16.xpose.msk.msra.mxu0 %vm9144_vm2, %v7375_v36 }
 0x1de   :  { %1304 = vmatprep.mubr.f32.mxu0 %v14690_v50  ;;  %943 = vmatprep.mubr.f32.mxu1 %v14690_v50  ;;  %v7339_v38 = vpack.c.bf16 %v7626_v27, %v7625_v44 }
 0x1df   :  { %v9581_v18 = vpop.permute.xlu0 %3955  ;;  %7338 = vmatprep.subr.bf16.mxu1 %v14658_v20  ;;  %7378 = vmatprep.subr.bf16.mxu0 %v14658_v20 }
 0x1e0   :  { %v9585_v14 = vpop.permute.xlu1 %1772  ;;  %6590 = vmatmul.mubr.msk.f32.gmra.mrb[14].mxu1 %vm748_vm1, %v8907_v40  ;;  %6632 = vmatmul.mubr.msk.f32.gmra.mrb[54].mxu0 %vm748_vm1, %v9174_v15  ;;  %v7636_v40 = vunpack.i.h.bf16 %v9537_v53  ;;  %v7635_v15 = vunpack.i.l.bf16 %v9537_v53 }
 0x1e1   :  { %1310 = vmatprep.mubr.f32.mxu0 %v14690_v50  ;;  %949 = vmatprep.mubr.f32.mxu1 %v14690_v50 }
 0x1e2   :  { %v7343_v53 = vpack.c.bf16 %v7636_v40, %v7635_v15 }
 0x1e3   :  { %v7644_v48 = vpop.permute.xlu0 %7643 }
 0x1e4   :  { %v9593_v45 = vpop.permute.xlu1 %1776  ;;  %6591 = vmatmul.mubr.msk.f32.gmra.mrb[16].mxu1 %vm748_vm1, %v8915_v43  ;;  %6633 = vmatmul.mubr.msk.f32.gmra.mrb[56].mxu0 %vm748_vm1, %v9255_v62  ;;  %v7646_v49 = vunpack.i.h.bf16 %v7644_v48  ;;  %v7645_v36 = vunpack.i.l.bf16 %v7644_v48 }
 0x1e5   :  { %7341 = vmatpush1.bf16.xpose.msk.msra.mxu1 %vm9144_vm2, %v7339_v38  ;;  %7381 = vmatpush1.bf16.xpose.msk.msra.mxu0 %vm9144_vm2, %v7379_v11 }
 0x1e6   :  { %1316 = vmatprep.mubr.f32.mxu0 %v14690_v50  ;;  %955 = vmatprep.mubr.f32.mxu1 %v14690_v50  ;;  %v7347_v26 = vpack.c.bf16 %v7646_v49, %v7645_v36 }
 0x1e7   :  { %v9607_v13 = vpop.permute.xlu0 %1782  ;;  %7342 = vmatprep.subr.bf16.mxu1 %v14658_v20  ;;  %7382 = vmatprep.subr.bf16.mxu0 %v14658_v20 }
 0x1e8   :  { %v7629_v43 = vpop.permute.xlu1 %7628  ;;  %6592 = vmatmul.mubr.msk.f32.gmra.mrb[18].mxu1 %vm748_vm1, %v8912_v42  ;;  %6634 = vmatmul.mubr.msk.f32.gmra.mrb[58].mxu0 %vm748_vm1, %v9214_v37  ;;  %v7641_v42 = vunpack.i.h.bf16 %v9553_v23  ;;  %v7640_v37 = vunpack.i.l.bf16 %v9553_v23 }
 0x1e9   :  { %v7631_v62 = vunpack.i.h.bf16 %v7629_v43  ;;  %v7630_v16 = vunpack.i.l.bf16 %v7629_v43  ;;  %1322 = vmatprep.mubr.f32.mxu0 %v14690_v50  ;;  %961 = vmatprep.mubr.f32.mxu1 %v14690_v50 }
 0x1ea   :  { %v7387_v23 = vpack.c.bf16 %v7641_v42, %v7640_v37 }
 0x1eb   :  { %v7383_v30 = vpack.c.bf16 %v7631_v62, %v7630_v16  ;;  %v7654_v31 = vpop.permute.xlu0 %7653 }
 0x1ec   :  { %v9617_v32 = vpop.permute.xlu1 %3953  ;;  %6593 = vmatmul.mubr.msk.f32.gmra.mrb[20].mxu1 %vm748_vm1, %v8957_v5  ;;  %6635 = vmatmul.mubr.msk.f32.gmra.mrb[60].mxu0 %vm748_vm1, %v9243_v52 }
 0x1ed   :  { %7345 = vmatpush1.bf16.xpose.msk.msra.mxu1 %vm9144_vm2, %v7343_v53  ;;  %7385 = vmatpush1.bf16.xpose.msk.msra.mxu0 %vm9144_vm2, %v7383_v30 }
 0x1ee   :  { %1328 = vmatprep.mubr.f32.mxu0 %v14690_v50  ;;  %967 = vmatprep.mubr.f32.mxu1 %v14690_v50 }
 0x1ef   :  { %v7659_v5 = vpop.permute.xlu0 %7658  ;;  %7346 = vmatprep.subr.bf16.mxu1 %v14658_v20  ;;  %7386 = vmatprep.subr.bf16.mxu0 %v14658_v20 }
 0x1f0   :  { %v9633_v52 = vpop.permute.xlu1 %1780  ;;  %6594 = vmatmul.mubr.msk.f32.gmra.mrb[22].mxu1 %vm748_vm1, %v8936_v57  ;;  %6636 = vmatmul.mubr.msk.f32.gmra.mrb[62].mxu0 %vm748_vm1, %v9265_v63  ;;  %v7656_v57 = vunpack.i.h.bf16 %v7654_v31  ;;  %v7655_v63 = vunpack.i.l.bf16 %v7654_v31  ;;  %v7660_v62 = vunpack.i.l.bf16 %v7659_v5 }
 0x1f1   :  { %1334 = vmatprep.mubr.f32.mxu0 %v14690_v50  ;;  %973 = vmatprep.mubr.f32.mxu1 %v14690_v50 }
 0x1f2   :  { %v7351_v38 = vpack.c.bf16 %v7656_v57, %v7655_v63 }
 0x1f3   :  { %v9641_v3 = vpop.permute.xlu0 %1786 }
 0x1f4   :  { %v9643_v27 = vpop.permute.xlu1 %1784  ;;  %6595 = vmatmul.mubr.msk.f32.gmra.mrb[24].mxu1 %vm748_vm1, %v8944_v60  ;;  %6637 = vmatmul.mubr.msk.f32.gmra.mrb[64].mxu0 %vm748_vm1, %v9324_v47 }
 0x1f5   :  { %7349 = vmatpush1.bf16.xpose.msk.msra.mxu1 %vm9144_vm2, %v7347_v26  ;;  %7389 = vmatpush1.bf16.xpose.msk.msra.mxu0 %vm9144_vm2, %v7387_v23 }
 0x1f6   :  { %1340 = vmatprep.mubr.f32.mxu0 %v14690_v50  ;;  %979 = vmatprep.mubr.f32.mxu1 %v14690_v50 }
 0x1f7   :  { %v9655_v44 = vpop.permute.xlu0 %3959  ;;  %7350 = vmatprep.subr.bf16.mxu1 %v14658_v20  ;;  %7390 = vmatprep.subr.bf16.mxu0 %v14658_v20 }
 0x1f8   :  { %v7649_v60 = vpop.permute.xlu1 %7648  ;;  %6596 = vmatmul.mubr.msk.f32.gmra.mrb[26].mxu1 %vm748_vm1, %v8941_v59  ;;  %6638 = vmatmul.mubr.msk.f32.gmra.mrb[66].mxu0 %vm748_vm1, %v9253_v29  ;;  %v7661_v29 = vunpack.i.h.bf16 %v7659_v5 }
 0x1f9   :  { %v7651_v47 = vunpack.i.h.bf16 %v7649_v60  ;;  %v7650_v11 = vunpack.i.l.bf16 %v7649_v60  ;;  %1346 = vmatprep.mubr.f32.mxu0 %v14690_v50  ;;  %985 = vmatprep.mubr.f32.mxu1 %v14690_v50 }
 0x1fa   :  { %v7395_v53 = vpack.c.bf16 %v7661_v29, %v7660_v62  ;;  %v14692_v29 = vld [vmem:[#allocation41_spill] sm:$0xff]  ;;  %v14693_v62 = vld [vmem:[#allocation8_spill] sm:$0xff] }
 0x1fb   :  { %v7391_v48 = vpack.c.bf16 %v7651_v47, %v7650_v11  ;;  %v7664_v40 = vpop.permute.xlu0 %7663 }
 0x1fc   :  { %v9665_v15 = vpop.permute.xlu1 %3957  ;;  %6597 = vmatmul.mubr.msk.f32.gmra.mrb[28].mxu1 %vm748_vm1, %v9010_v24  ;;  %6639 = vmatmul.mubr.msk.f32.gmra.mrb[68].mxu0 %vm748_vm1, %v9282_v25  ;;  %v7666_v59 = vunpack.i.h.bf16 %v7664_v40  ;;  %v7665_v43 = vunpack.i.l.bf16 %v7664_v40 }
 0x1fd   :  { %7353 = vmatpush1.bf16.xpose.msk.msra.mxu1 %vm9144_vm2, %v7351_v38  ;;  %7393 = vmatpush1.bf16.xpose.msk.msra.mxu0 %vm9144_vm2, %v7391_v48  ;;  %v14691_v48 = vld [vmem:[#allocation37_spill] sm:$0xff] }
 0x1fe   :  { %1352 = vmatprep.mubr.f32.mxu0 %v14690_v50  ;;  %991 = vmatprep.mubr.f32.mxu1 %v14690_v50  ;;  %v7355_v25 = vpack.c.bf16 %v7666_v59, %v7665_v43 }
 0x1ff   :  { %v9677_v16 = vpop.permute.xlu0 %1790  ;;  %7354 = vmatprep.subr.bf16.mxu1 %v14658_v20  ;;  %7394 = vmatprep.subr.bf16.mxu0 %v14658_v20 }
 0x200   :  { %v9681_v24 = vpop.permute.xlu1 %1788  ;;  %6598 = vmatmul.mubr.msk.f32.gmra.mrb[30].mxu1 %vm748_vm1, %v8960_v7  ;;  %6640 = vmatmul.mubr.msk.f32.gmra.mrb[70].mxu0 %vm748_vm1, %v9334_v56 }
 0x201   :  { %1358 = vmatprep.mubr.f32.mxu0 %v14690_v50  ;;  %997 = vmatprep.mubr.f32.mxu1 %v14690_v50 }
 0x203   :  { %v7674_v30 = vpop.permute.xlu0 %7673 }
 0x204   :  { %v9689_v31 = vpop.permute.xlu1 %1792  ;;  %6599 = vmatmul.mubr.msk.f32.gmra.mrb[32].mxu1 %vm748_vm1, %v8968_v10  ;;  %6641 = vmatmul.mubr.msk.f32.gmra.mrb[72].mxu0 %vm748_vm1, %v9388_v4  ;;  %v7676_v42 = vunpack.i.h.bf16 %v7674_v30  ;;  %v7675_v7 = vunpack.i.l.bf16 %v7674_v30  ;;  %v14696_v30 = vld [vmem:[#allocation43_spill] sm:$0xff] }
 0x205   :  { %7357 = vmatpush1.bf16.xpose.msk.msra.mxu1 %vm9144_vm2, %v7355_v25  ;;  %7397 = vmatpush1.bf16.xpose.msk.msra.mxu0 %vm9144_vm2, %v7395_v53  ;;  %v14694_v25 = vld [vmem:[#allocation22_spill] sm:$0xff] }
 0x206   :  { %1364 = vmatprep.mubr.f32.mxu0 %v14690_v50  ;;  %1003 = vmatprep.mubr.f32.mxu1 %v14690_v50  ;;  %v7359_v4 = vpack.c.bf16 %v7676_v42, %v7675_v7  ;;  %v14697_v42 = vld [vmem:[#allocation27_spill] sm:$0xff] }
 0x207   :  { %v7679_v56 = vpop.permute.xlu0 %7678  ;;  %7358 = vmatprep.subr.bf16.mxu1 %v14658_v20  ;;  %7398 = vmatprep.subr.bf16.mxu0 %v14658_v20 }
 0x208   :  { %v7669_v10 = vpop.permute.xlu1 %7668  ;;  %6600 = vmatmul.mubr.msk.f32.gmra.mrb[34].mxu1 %vm748_vm1, %v8965_v9  ;;  %6642 = vmatmul.mubr.msk.f32.gmra.mrb[74].mxu0 %vm748_vm1, %v9293_v46  ;;  %v7681_v9 = vunpack.i.h.bf16 %v7679_v56  ;;  %v7680_v46 = vunpack.i.l.bf16 %v7679_v56  ;;  %v14698_v56 = vld [vmem:[#allocation10_spill] sm:$0xff] }
 0x209   :  { %v7671_v37 = vunpack.i.h.bf16 %v7669_v10  ;;  %v7670_v49 = vunpack.i.l.bf16 %v7669_v10  ;;  %1370 = vmatprep.mubr.f32.mxu0 %v14690_v50  ;;  %1009 = vmatprep.mubr.f32.mxu1 %v14690_v50  ;;  %v14699_v10 = vld [vmem:[#allocation9_spill] sm:$0xff] }
 0x20b   :  { %v7399_v36 = vpack.c.bf16 %v7671_v37, %v7670_v49  ;;  %v9709_v5 = vpop.permute.xlu0 %1794  ;;  %v9941_v37 = vld [vmem:[%s14315_s2] sm:$0xff] }
 0x20c   :  { %v9711_v23 = vpop.permute.xlu1 %3961  ;;  %6601 = vmatmul.mubr.msk.f32.gmra.mrb[36].mxu1 %vm748_vm1, %v9064_v51  ;;  %6643 = vmatmul.mubr.msk.f32.gmra.mrb[76].mxu0 %vm748_vm1, %v9322_v22  ;;  %v7403_v22 = vpack.c.bf16 %v7681_v9, %v7680_v46  ;;  %v9959_v46 = vld [vmem:[%s14315_s2 + $0x10] sm:$0xff] }
 0x20d   :  { %7361 = vmatpush1.bf16.xpose.msk.msra.mxu1 %vm9144_vm2, %v7359_v4  ;;  %7401 = vmatpush1.bf16.xpose.msk.msra.mxu0 %vm9144_vm2, %v7399_v36  ;;  %v9936_v4 = vld [vmem:[%s14315_s2 + $0x8] sm:$0xff] }
 0x20e   :  { %1376 = vmatprep.mubr.f32.mxu0 %v14690_v50  ;;  %1015 = vmatprep.mubr.f32.mxu1 %v14690_v50 }
 0x20f   :  { %v9723_v26 = vpop.permute.xlu0 %3963  ;;  %7402 = vmatprep.subr.bf16.mxu0 %v14658_v20  ;;  %7362 = vmatprep.subr.bf16.mxu1 %v14658_v20 }
 0x210   :  { %v9727_v57 = vpop.permute.xlu1 %1796  ;;  %6602 = vmatmul.mubr.msk.f32.gmra.mrb[38].mxu1 %vm748_vm1, %v8985_v58  ;;  %6644 = vmatmul.mubr.msk.f32.gmra.mrb[78].mxu0 %vm748_vm1, %v9404_v17 }
 0x211   :  { %1382 = vmatprep.mubr.f32.mxu0 %v14690_v50  ;;  %1021 = vmatprep.mubr.f32.mxu1 %v14690_v50 }
 0x213   :  { %v7684_v63 = vpop.permute.xlu0 %7683 }
 0x214   :  { %v7686_v60 = vunpack.i.h.bf16 %v7684_v63  ;;  %v7685_v47 = vunpack.i.l.bf16 %v7684_v63  ;;  %v9735_v11 = vpop.permute.xlu1 %1800  ;;  %6603 = vmatmul.mubr.msk.f32.gmra.mrb[40].mxu1 %vm748_vm1, %v8993_v8  ;;  %6645 = vmatmul.mubr.msk.f32.gmra.mrb[80].mxu0 %vm748_vm1, %v9469_v33  ;;  %v14366_v33 = vmov 0  }
 0x215   :  { %7405 = vmatpush1.bf16.xpose.msk.msra.mxu0 %vm9144_vm2, %v7403_v22  ;;  %1388 = vmatprep.mubr.f32.mxu0 %v14690_v50 }
 0x216   :  { %v7363_v17 = vpack.c.bf16 %v7686_v60, %v7685_v47  ;;  %1027 = vmatprep.mubr.f32.mxu1 %v14690_v50  ;;  %7406 = vmatprep.subr.bf16.mxu0 %v14658_v20 }
 0x217   :  { %v9755_v43 = vpop.permute.xlu0 %1798 }
 0x218   :  { %v7689_v38 = vpop.permute.xlu1 %7688  ;;  %6604 = vmatmul.mubr.msk.f32.gmra.mrb[42].mxu1 %vm748_vm1, %v8990_v1  ;;  %6646 = vmatmul.mubr.msk.f32.gmra.mrb[82].mxu0 %vm748_vm1, %v14691_v48 }
 0x219   :  { %v7691_v40 = vunpack.i.h.bf16 %v7689_v38  ;;  %v7690_v59 = vunpack.i.l.bf16 %v7689_v38  ;;  %7365 = vmatpush1.bf16.xpose.msk.msra.mxu1 %vm9144_vm2, %v7363_v17  ;;  %1394 = vmatprep.mubr.f32.mxu0 %v14690_v50 }
 0x21a   :  { %1625 = vmatprep.mubr.f32.mxu1 %v14690_v50  ;;  %3804 = vmatprep.subr.bf16.mxu1 %v14366_v33 }
 0x21b   :  { %v7407_v20 = vpack.c.bf16 %v7691_v40, %v7690_v59  ;;  %v9769_v53 = vpop.permute.xlu0 %3967 }
 0x21c   :  { %6647 = vmatmul.mubr.msk.f32.gmra.mrb[84].mxu0 %vm748_vm1, %v14692_v29  ;;  %v9985_v29 = vld [vmem:[%s14315_s2 + $0x38] sm:$0xff] }
 0x21d   :  { %7409 = vmatpush1.bf16.xpose.msk.msra.mxu0 %vm9144_vm2, %v7407_v20  ;;  %1400 = vmatprep.mubr.f32.mxu0 %v14690_v50 }
 0x21e   :  { %4013 = vmatprep.subr.bf16.mxu0 %v14366_v33 }
 0x21f   :  { %v3743_v7 = vpop.permute.xlu0 %3742 }
 0x220   :  { %6671 = vmatmul.mubr.msk.f32.vlgmr.msra.gmra.mrb[44].mxu1 %vm748_vm1, %v14693_v62  ;;  %6648 = vmatmul.mubr.msk.f32.gmra.mrb[86].mxu0 %vm748_vm1, %v9478_v21  ;;  %v9779_v21 = vpop.permute.xlu1 %3965 }
 0x221   :  { %3805 = vmatpush1.bf16.msra.mxu1 %v14694_v25  ;;  %1631 = vmatprep.mubr.f32.mxu1 %v14690_v50  ;;  %v9992_v25 = vld [vmem:[%s14315_s2 + $0x30] sm:$0xff] }
 0x222   :  { %1998 = vmatprep.mubr.f32.mxu0 %v14690_v50  ;;  %3806 = vmatprep.subr.bf16.mxu1 %v14366_v33 }
 0x224   :  { %6672 = vmatmul.mubr.msk.f32.gmra.mrb[46].mxu1 %vm748_vm1, %v14695_v6  ;;  %6715 = vmatmul.mubr.msk.f32.vlgmr.msra.gmra.mrb[88].mxu0 %vm748_vm1, %v14696_v30 }
 0x225   :  { %3807 = vmatpush1.bf16.msra.mxu1 %v14697_v42  ;;  %4014 = vmatpush1.bf16.msra.mxu0 %v9529_v2  ;;  %v3745_v2 = vpop.permute.xlu1 %3744 }
 0x226   :  { %1637 = vmatprep.mubr.f32.mxu1 %v14690_v50  ;;  %2004 = vmatprep.mubr.f32.mxu0 %v14690_v50 }
 0x227   :  { %3808 = vmatprep.subr.bf16.mxu1 %v14366_v33  ;;  %4015 = vmatprep.subr.bf16.mxu0 %v14366_v33 }
 0x228   :  { %6673 = vmatmul.mubr.msk.f32.gmra.mrb[48].mxu1 %vm748_vm1, %v14698_v56  ;;  %6716 = vmatmul.mubr.msk.f32.gmra.mrb[90].mxu0 %vm748_vm1, %v9489_v41  ;;  %v3747_v41 = vpop.permute.xlu0 %3746 }
 0x229   :  { %3809 = vmatpush1.bf16.msra.mxu1 %v3743_v7  ;;  %4016 = vmatpush1.bf16.msra.mxu0 %v9565_v19  ;;  %v14700_v19 = vld [vmem:[#allocation13_spill] sm:$0xff] }
 0x22a   :  { %1643 = vmatprep.mubr.f32.mxu1 %v14690_v50  ;;  %2010 = vmatprep.mubr.f32.mxu0 %v14690_v50 }
 0x22b   :  { %3810 = vmatprep.subr.bf16.mxu1 %v14366_v33  ;;  %4017 = vmatprep.subr.bf16.mxu0 %v14366_v33 }
 0x22c   :  { %6674 = vmatmul.mubr.msk.f32.gmra.mrb[50].mxu1 %vm748_vm1, %v14699_v10  ;;  %6717 = vmatmul.mubr.msk.f32.gmra.mrb[92].mxu0 %vm748_vm1, %v9431_v39  ;;  %v3749_v39 = vpop.permute.xlu1 %3748 }
 0x22d   :  { %3811 = vmatpush1.bf16.msra.mxu1 %v3745_v2  ;;  %4018 = vmatpush1.bf16.msra.mxu0 %v9501_v61  ;;  %v14701_v61 = vld [vmem:[#allocation12_spill] sm:$0xff] }
 0x22e   :  { %1649 = vmatprep.mubr.f32.mxu1 %v14690_v50  ;;  %2016 = vmatprep.mubr.f32.mxu0 %v14690_v50 }
 0x22f   :  { %3812 = vmatprep.subr.bf16.mxu1 %v14366_v33  ;;  %4019 = vmatprep.subr.bf16.mxu0 %v14366_v33 }
 0x230   :  { %6675 = vmatmul.mubr.msk.f32.gmra.mrb[52].mxu1 %vm748_vm1, %v14700_v19  ;;  %6718 = vmatmul.mubr.msk.f32.gmra.mrb[94].mxu0 %vm748_vm1, %v9509_v34  ;;  %v3751_v34 = vpop.permute.xlu0 %3750  ;;  %v10013_v19 = vld [vmem:[%s14315_s2 + $0x20] sm:$0xff] }
 0x231   :  { %3813 = vmatpush1.bf16.msra.mxu1 %v3747_v41  ;;  %4020 = vmatpush1.bf16.msra.mxu0 %v9617_v32  ;;  %v14702_v32 = vld [vmem:[#allocation15_spill] sm:$0xff] }
 0x232   :  { %1655 = vmatprep.mubr.f32.mxu1 %v14690_v50  ;;  %2022 = vmatprep.mubr.f32.mxu0 %v14690_v50 }
 0x233   :  { %3814 = vmatprep.subr.bf16.mxu1 %v14366_v33  ;;  %4021 = vmatprep.subr.bf16.mxu0 %v14366_v33 }
 0x234   :  { %6676 = vmatmul.mubr.msk.f32.gmra.mrb[54].mxu1 %vm748_vm1, %v14701_v61  ;;  %6719 = vmatmul.mubr.msk.f32.gmra.mrb[96].mxu0 %vm748_vm1, %v9465_v12  ;;  %v3753_v12 = vpop.permute.xlu1 %3752 }
 0x235   :  { %3815 = vmatpush1.bf16.msra.mxu1 %v3749_v39  ;;  %4022 = vmatpush1.bf16.msra.mxu0 %v9581_v18  ;;  %v14703_v18 = vld [vmem:[#allocation14_spill] sm:$0xff] }
 0x236   :  { %1661 = vmatprep.mubr.f32.mxu1 %v14690_v50  ;;  %2028 = vmatprep.mubr.f32.mxu0 %v14690_v50 }
 0x237   :  { %3816 = vmatprep.subr.bf16.mxu1 %v14366_v33  ;;  %4023 = vmatprep.subr.bf16.mxu0 %v14366_v33 }
 0x238   :  { %6677 = vmatmul.mubr.msk.f32.gmra.mrb[56].mxu1 %vm748_vm1, %v14702_v32  ;;  %6720 = vmatmul.mubr.msk.f32.gmra.mrb[98].mxu0 %vm748_vm1, %v9539_v0  ;;  %v3755_v0 = vpop.permute.xlu0 %3754 }
 0x239   :  { %3817 = vmatpush1.bf16.msra.mxu1 %v3751_v34  ;;  %4024 = vmatpush1.bf16.msra.mxu0 %v9665_v15  ;;  %v14704_v15 = vld [vmem:[#allocation17_spill] sm:$0xff] }
 0x23a   :  { %1667 = vmatprep.mubr.f32.mxu1 %v14690_v50  ;;  %2034 = vmatprep.mubr.f32.mxu0 %v14690_v50 }
 0x23b   :  { %3818 = vmatprep.subr.bf16.mxu1 %v14366_v33  ;;  %4025 = vmatprep.subr.bf16.mxu0 %v14366_v33 }
 0x23c   :  { %6678 = vmatmul.mubr.msk.f32.gmra.mrb[58].mxu1 %vm748_vm1, %v14703_v18  ;;  %6721 = vmatmul.mubr.msk.f32.gmra.mrb[100].mxu0 %vm748_vm1, %v9487_v55  ;;  %v14705_v55 = vld [vmem:[#allocation16_spill] sm:$0xff] }
 0x23d   :  { %3819 = vmatpush1.bf16.msra.mxu1 %v3753_v12  ;;  %4026 = vmatpush1.bf16.msra.mxu0 %v9655_v44  ;;  %v14709_v44 = vld [vmem:[#allocation24_spill] sm:$0xff] }
 0x23e   :  { %1673 = vmatprep.mubr.f32.mxu1 %v14690_v50  ;;  %2040 = vmatprep.mubr.f32.mxu0 %v14690_v50 }
 0x23f   :  { %3820 = vmatprep.subr.bf16.mxu1 %v14366_v33  ;;  %4027 = vmatprep.subr.bf16.mxu0 %v14366_v33 }
 0x240   :  { %6679 = vmatmul.mubr.msk.f32.gmra.mrb[60].mxu1 %vm748_vm1, %v14704_v15  ;;  %6722 = vmatmul.mubr.msk.f32.gmra.mrb[102].mxu0 %vm748_vm1, %v9585_v14  ;;  %v14706_v14 = vld [vmem:[#allocation20_spill] sm:$0xff] }
 0x241   :  { %3821 = vmatpush1.bf16.msra.mxu1 %v3755_v0  ;;  %4028 = vmatpush1.bf16.msra.mxu0 %v9711_v23  ;;  %v9952_v23 = vld [vmem:[%s14315_s2 + $0x18] sm:$0xff] }
 0x242   :  { %1679 = vmatprep.mubr.f32.mxu1 %v14690_v50  ;;  %2046 = vmatprep.mubr.f32.mxu0 %v14690_v50 }
 0x243   :  { %4029 = vmatprep.subr.bf16.mxu0 %v14366_v33  ;;  %3822 = vmatprep.subr.bf16.mxu1 %v14366_v33 }
 0x244   :  { %6680 = vmatmul.mubr.msk.f32.gmra.mrb[62].mxu1 %vm748_vm1, %v14705_v55  ;;  %6723 = vmatmul.mubr.msk.f32.gmra.mrb[104].mxu0 %vm748_vm1, %v9525_v35  ;;  %v14707_v35 = vld [vmem:[#allocation19_spill] sm:$0xff] }
 0x245   :  { %4030 = vmatpush1.bf16.msra.mxu0 %v9723_v26  ;;  %1685 = vmatprep.mubr.f32.mxu1 %v14690_v50 }
 0x246   :  { %2052 = vmatprep.mubr.f32.mxu0 %v14690_v50  ;;  %4031 = vmatprep.subr.bf16.mxu0 %v14366_v33 }
 0x248   :  { %6681 = vmatmul.mubr.msk.f32.gmra.mrb[64].mxu1 %vm748_vm1, %v14706_v14  ;;  %6724 = vmatmul.mubr.msk.f32.gmra.mrb[106].mxu0 %vm748_vm1, %v9593_v45  ;;  %v14708_v45 = vld [vmem:[#allocation25_spill] sm:$0xff] }
 0x249   :  { %4032 = vmatpush1.bf16.msra.mxu0 %v9779_v21  ;;  %1691 = vmatprep.mubr.f32.mxu1 %v14690_v50 }
 0x24a   :  { %2058 = vmatprep.mubr.f32.mxu0 %v14690_v50  ;;  %4033 = vmatprep.subr.bf16.mxu0 %v14366_v33 }
 0x24c   :  { %6682 = vmatmul.mubr.msk.f32.gmra.mrb[66].mxu1 %vm748_vm1, %v14707_v35  ;;  %6725 = vmatmul.mubr.msk.f32.gmra.mrb[108].mxu0 %vm748_vm1, %v9563_v54  ;;  %v14710_v54 = vld [vmem:[#allocation29_spill] sm:$0xff] }
 0x24d   :  { %4034 = vmatpush1.bf16.msra.mxu0 %v9769_v53  ;;  %1697 = vmatprep.mubr.f32.mxu1 %v14690_v50 }
 0x24e   :  { %2064 = vmatprep.mubr.f32.mxu0 %v14690_v50  ;;  %4389 = vmatprep.subr.bf16.mxu0 %v14366_v33 }
 0x250   :  { %6683 = vmatmul.mubr.msk.f32.gmra.mrb[68].mxu1 %vm748_vm1, %v14708_v45  ;;  %6726 = vmatmul.mubr.msk.f32.gmra.mrb[110].mxu0 %vm748_vm1, %v9633_v52  ;;  %v14711_v52 = vld [vmem:[#allocation28_spill] sm:$0xff]  ;;  %v10032_v45 = vld [vmem:[%s14315_s2 + $0x58] sm:$0xff] }
 0x251   :  { %1703 = vmatprep.mubr.f32.mxu1 %v14690_v50  ;;  %2070 = vmatprep.mubr.f32.mxu0 %v14690_v50 }
 0x254   :  { %6684 = vmatmul.mubr.msk.f32.gmra.mrb[70].mxu1 %vm748_vm1, %v14709_v44  ;;  %6727 = vmatmul.mubr.msk.f32.gmra.mrb[112].mxu0 %vm748_vm1, %v9607_v13  ;;  %v14712_v13 = vld [vmem:[#allocation32_spill] sm:$0xff] }
 0x255   :  { %1709 = vmatprep.mubr.f32.mxu1 %v14690_v50  ;;  %2076 = vmatprep.mubr.f32.mxu0 %v14690_v50  ;;  %v10037_v44 = vld [vmem:[%s14315_s2 + $0x50] sm:$0xff] }
 0x258   :  { %6685 = vmatmul.mubr.msk.f32.gmra.mrb[72].mxu1 %vm748_vm1, %v14710_v54  ;;  %6728 = vmatmul.mubr.msk.f32.gmra.mrb[114].mxu0 %vm748_vm1, %v9643_v27  ;;  %v14713_v27 = vld [vmem:[#allocation31_spill] sm:$0xff] }
 0x259   :  { %1715 = vmatprep.mubr.f32.mxu1 %v14690_v50  ;;  %2082 = vmatprep.mubr.f32.mxu0 %v14690_v50 }
 0x25c   :  { %6686 = vmatmul.mubr.msk.f32.gmra.mrb[74].mxu1 %vm748_vm1, %v14711_v52  ;;  %6729 = vmatmul.mubr.msk.f32.gmra.mrb[116].mxu0 %vm748_vm1, %v9641_v3  ;;  %v14714_v3 = vld [vmem:[#allocation36_spill] sm:$0xff] }
 0x25d   :  { %1721 = vmatprep.mubr.f32.mxu1 %v14690_v50  ;;  %2088 = vmatprep.mubr.f32.mxu0 %v14690_v50 }
 0x260   :  { %6687 = vmatmul.mubr.msk.f32.gmra.mrb[76].mxu1 %vm748_vm1, %v14712_v13  ;;  %6730 = vmatmul.mubr.msk.f32.gmra.mrb[118].mxu0 %vm748_vm1, %v9681_v24  ;;  %v14715_v24 = vld [vmem:[#allocation35_spill] sm:$0xff] }
 0x261   :  { %1727 = vmatprep.mubr.f32.mxu1 %v14690_v50  ;;  %2094 = vmatprep.mubr.f32.mxu0 %v14690_v50 }
 0x264   :  { %6688 = vmatmul.mubr.msk.f32.gmra.mrb[78].mxu1 %vm748_vm1, %v14713_v27  ;;  %6731 = vmatmul.mubr.msk.f32.gmra.mrb[120].mxu0 %vm748_vm1, %v9677_v16  ;;  %v14716_v16 = vld [vmem:[#allocation40_spill] sm:$0xff] }
 0x265   :  { %1733 = vmatprep.mubr.f32.mxu1 %v14690_v50  ;;  %2100 = vmatprep.mubr.f32.mxu0 %v14690_v50 }
 0x268   :  { %6689 = vmatmul.mubr.msk.f32.gmra.mrb[80].mxu1 %vm748_vm1, %v14714_v3  ;;  %6732 = vmatmul.mubr.msk.f32.gmra.mrb[122].mxu0 %vm748_vm1, %v9689_v31  ;;  %v14717_v31 = vld [vmem:[#allocation39_spill] sm:$0xff] }
 0x269   :  { %1739 = vmatprep.mubr.f32.mxu1 %v14690_v50  ;;  %2106 = vmatprep.mubr.f32.mxu0 %v14690_v50 }
 0x26c   :  { %6690 = vmatmul.mubr.msk.f32.gmra.mrb[82].mxu1 %vm748_vm1, %v14715_v24  ;;  %6733 = vmatmul.mubr.msk.f32.gmra.mrb[124].mxu0 %vm748_vm1, %v9709_v5 }
 0x26d   :  { %1745 = vmatprep.mubr.f32.mxu1 %v14690_v50  ;;  %2112 = vmatprep.mubr.f32.mxu0 %v14690_v50 }
 0x270   :  { %6691 = vmatmul.mubr.msk.f32.gmra.mrb[84].mxu1 %vm748_vm1, %v14716_v16  ;;  %6734 = vmatmul.mubr.msk.f32.gmra.mrb[126].mxu0 %vm748_vm1, %v9727_v57 }
 0x271   :  { %1751 = vmatprep.mubr.f32.mxu1 %v14690_v50  ;;  %2118 = vmatprep.mubr.f32.mxu0 %v14690_v50 }
 0x274   :  { %6692 = vmatmul.mubr.msk.f32.gmra.mrb[86].mxu1 %vm748_vm1, %v14717_v31  ;;  %6735 = vmatmul.mubr.msk.f32.gmra.mrb[128].mxu0 %vm748_vm1, %v9755_v43  ;;  %v9980_v43 = vld [vmem:[%s14315_s2 + $0x28] sm:$0xff] }
 0x275   :  { %2124 = vmatprep.mubr.f32.mxu0 %v14690_v50 }
 0x278   :  { %6736 = vmatmul.mubr.msk.f32.gmra.mrb[130].mxu0 %vm748_vm1, %v9735_v11 }
 0x297   :  { %v903_v49 = vpop.f32.mrb[0].mxu1 }
 0x298   :  { %v905_v36 = vpop.f32.mrb[1].mxu1  ;;  %v9947_v50 = vadd.f32 %v903_v49, %v9941_v37 }
 0x299   :  { %v9944_v5 = vadd.f32 %v905_v36, %v9936_v4  ;;  %v10054_v36 = vld [vmem:[%s14315_s2 + $0x48] sm:$0xff] }
 0x29b   :  { %v2132_v9 = vsel %vm2131_vm3, %v9944_v5, -inf  ;;  %v909_v26 = vpop.f32.mrb[2].mxu1 }
 0x29c   :  { %v2133_v57 = vmax.f32 %v9947_v50, %v2132_v9  ;;  %v911_v22 = vpop.f32.mrb[3].mxu1  ;;  %v9966_v60 = vadd.f32 %v909_v26, %v9959_v46 }
 0x29d   :  { %v9963_v63 = vadd.f32 %v911_v22, %v9952_v23 }
 0x29e   :  { %2134 = vmax.xlane.f32.xlu1 %v2133_v57 }
 0x29f   :  { %v2136_v47 = vsel %vm2131_vm3, %v9963_v63, -inf  ;;  %v915_v11 = vpop.f32.mrb[4].mxu1  ;;  %v1276_v17 = vpop.f32.mrb[44].mxu0 }
 0x2a0   :  { %v2137_v38 = vmax.f32 %v9966_v60, %v2136_v47  ;;  %v917_v48 = vpop.f32.mrb[5].mxu1  ;;  %v1278_v40 = vpop.f32.mrb[45].mxu0  ;;  %v9975_v20 = vadd.f32 %v1276_v17, %v9941_v37  ;;  %v10027_v35 = vadd.f32 %v915_v11, %v10013_v19 }
 0x2a1   :  { %v9972_v59 = vadd.f32 %v1278_v40, %v9936_v4  ;;  %v9996_v7 = vadd.f32 %v917_v48, %v9980_v43 }
 0x2a2   :  { %14719 = vst [vmem:[#allocation41_spill] sm:$0xff] %v9975_v20  ;;  %2138 = vmax.xlane.f32.xlu0 %v2137_v38 }
 0x2a3   :  { %14718 = vst [vmem:[#allocation37_spill] sm:$0xff] %v9972_v59  ;;  %v2220_v62 = vsel %vm2131_vm3, %v9972_v59, -inf  ;;  %v921_v53 = vpop.f32.mrb[6].mxu1  ;;  %v1282_v6 = vpop.f32.mrb[46].mxu0  ;;  %v2140_v55 = vsel %vm2131_vm3, %v9996_v7, -inf }
 0x2a4   :  { %v2221_v30 = vmax.f32 %v9975_v20, %v2220_v62  ;;  %v923_v42 = vpop.f32.mrb[7].mxu1  ;;  %v1284_v21 = vpop.f32.mrb[47].mxu0  ;;  %v10005_v10 = vadd.f32 %v921_v53, %v9992_v25  ;;  %v10008_v41 = vadd.f32 %v1282_v6, %v9959_v46  ;;  %v2141_v13 = vmax.f32 %v10027_v35, %v2140_v55  ;;  %v10076_v53 = vld [vmem:[%s14315_s2 + $0x78] sm:$0xff]  ;;  %v10081_v6 = vld [vmem:[%s14315_s2 + $0x40] sm:$0xff] }
 0x2a5   :  { %v9999_v56 = vadd.f32 %v923_v42, %v9985_v29  ;;  %v10002_v2 = vadd.f32 %v1284_v21, %v9952_v23 }
 0x2a6   :  { %14721 = vst [vmem:[#allocation22_spill] sm:$0xff] %v10008_v41  ;;  %2222 = vmax.xlane.f32.xlu1 %v2221_v30  ;;  %v10086_v30 = vld [vmem:[%s14315_s2 + $0x70] sm:$0xff] }
 0x2a7   :  { %14720 = vst [vmem:[#allocation8_spill] sm:$0xff] %v10002_v2  ;;  %v2144_v39 = vsel %vm2131_vm3, %v9999_v56, -inf  ;;  %v2224_v61 = vsel %vm2131_vm3, %v10002_v2, -inf  ;;  %v927_v34 = vpop.f32.mrb[8].mxu1  ;;  %v1288_v32 = vpop.f32.mrb[48].mxu0 }
 0x2a8   :  { %v2145_v12 = vmax.f32 %v10005_v10, %v2144_v39  ;;  %v2225_v18 = vmax.f32 %v10008_v41, %v2224_v61  ;;  %v929_v0 = vpop.f32.mrb[9].mxu1  ;;  %v1290_v15 = vpop.f32.mrb[49].mxu0  ;;  %v10049_v49 = vadd.f32 %v1288_v32, %v10013_v19 }
 0x2a9   :  { %v10024_v14 = vadd.f32 %v1290_v15, %v9980_v43  ;;  %v10066_v48 = vadd.f32 %v929_v0, %v10054_v36  ;;  %v10098_v15 = vadd.f32 %v927_v34, %v10081_v6 }
 0x2aa   :  { %2146 = vmax.xlane.f32.xlu0 %v2145_v12  ;;  %2226 = vmax.xlane.f32.xlu1 %v2225_v18  ;;  %14725 = vst [vmem:[#allocation10_spill] sm:$0xff] %v10049_v49 }
 0x2ab   :  { %14722 = vst [vmem:[#allocation7_spill] sm:$0xff] %v10024_v14  ;;  %v933_v54 = vpop.f32.mrb[10].mxu1  ;;  %v1294_v52 = vpop.f32.mrb[50].mxu0  ;;  %v2228_v24 = vsel %vm2131_vm3, %v10024_v14, -inf  ;;  %14727 = vst [vmem:[#allocation13_spill] sm:$0xff] %v10066_v48  ;;  %v2148_v12 = vsel %vm2131_vm3, %v10066_v48, -inf }
 0x2ac   :  { %v935_v27 = vpop.f32.mrb[11].mxu1  ;;  %v1296_v3 = vpop.f32.mrb[51].mxu0  ;;  %v10057_v9 = vadd.f32 %v933_v54, %v10037_v44  ;;  %v2229_v47 = vmax.f32 %v10049_v49, %v2228_v24  ;;  %v10071_v62 = vadd.f32 %v1294_v52, %v9992_v25  ;;  %14731 = vst [vmem:[#allocation17_spill] sm:$0xff] %v10098_v15  ;;  %v10106_v54 = vld [vmem:[%s14315_s2 + $0x88] sm:$0xff] }
 0x2ad   :  { %v10043_v16 = vadd.f32 %v935_v27, %v10032_v45  ;;  %v10046_v31 = vadd.f32 %v1296_v3, %v9985_v29  ;;  %v2149_v3 = vmax.f32 %v10098_v15, %v2148_v12 }
 0x2ae   :  { %14726 = vst [vmem:[#allocation9_spill] sm:$0xff] %v10057_v9  ;;  %2142 = vmax.xlane.f32.xlu1 %v2141_v13  ;;  %14728 = vst [vmem:[#allocation12_spill] sm:$0xff] %v10071_v62  ;;  %v10113_v13 = vld [vmem:[%s14315_s2 + $0x80] sm:$0xff] }
 0x2af   :  { %14723 = vst [vmem:[#allocation43_spill] sm:$0xff] %v10043_v16  ;;  %14724 = vst [vmem:[#allocation27_spill] sm:$0xff] %v10046_v31  ;;  %v2152_v26 = vsel %vm2131_vm3, %v10043_v16, -inf  ;;  %v10061_v57 = vpop.f32.mrb[12].mxu1  ;;  %v1300_v22 = vpop.f32.mrb[52].mxu0  ;;  %v2232_v40 = vsel %vm2131_vm3, %v10046_v31, -inf }
 0x2b0   :  { %v2153_v11 = vmax.f32 %v10057_v9, %v2152_v26  ;;  %v941_v17 = vpop.f32.mrb[13].mxu1  ;;  %v1302_v38 = vpop.f32.mrb[53].mxu0  ;;  %v2233_v39 = vmax.f32 %v10071_v62, %v2232_v40 }
 0x2b1   :  { %v10092_v18 = vadd.f32 %v1302_v38, %v10054_v36 }
 0x2b2   :  { %2154 = vmax.xlane.f32.xlu0 %v2153_v11  ;;  %2230 = vmax.xlane.f32.xlu1 %v2229_v47 }
 0x2b3   :  { %v945_v42 = vpop.f32.mrb[14].mxu1  ;;  %v1306_v21 = vpop.f32.mrb[54].mxu0  ;;  %14729 = vst [vmem:[#allocation15_spill] sm:$0xff] %v10092_v18  ;;  %v2236_v11 = vsel %vm2131_vm3, %v10092_v18, -inf }
 0x2b4   :  { %v947_v61 = vpop.f32.mrb[15].mxu1  ;;  %v1308_v32 = vpop.f32.mrb[55].mxu0  ;;  %v10101_v55 = vadd.f32 %v945_v42, %v10086_v30  ;;  %v10130_v42 = vadd.f32 %v1300_v22, %v10081_v6  ;;  %v10150_v22 = vld [vmem:[%s14315_s2 + $0x90] sm:$0xff]  ;;  %v10167_v49 = vadd.f32 %v1306_v21, %v10037_v44 }
 0x2b5   :  { %v10095_v0 = vadd.f32 %v947_v61, %v10076_v53  ;;  %v10124_v38 = vadd.f32 %v1308_v32, %v10032_v45  ;;  %v10143_v32 = vld [vmem:[%s14315_s2 + $0x98] sm:$0xff] }
 0x2b6   :  { %14732 = vst [vmem:[#allocation16_spill] sm:$0xff] %v10101_v55  ;;  %2234 = vmax.xlane.f32.xlu1 %v2233_v39  ;;  %14736 = vst [vmem:[#allocation24_spill] sm:$0xff] %v10130_v42  ;;  %v10135_v39 = vld [vmem:[%s14315_s2 + $0x68] sm:$0xff] }
 0x2b7   :  { %14730 = vst [vmem:[#allocation14_spill] sm:$0xff] %v10095_v0  ;;  %v2160_v52 = vsel %vm2131_vm3, %v10095_v0, -inf  ;;  %v951_v27 = vpop.f32.mrb[16].mxu1  ;;  %v10115_v34 = vpop.f32.mrb[56].mxu0  ;;  %14734 = vst [vmem:[#allocation19_spill] sm:$0xff] %v10124_v38  ;;  %v10159_v18 = vadd.f32 %v941_v17, %v10135_v39  ;;  %v2240_v62 = vsel %vm2131_vm3, %v10124_v38, -inf }
 0x2b8   :  { %14733 = vst [vmem:[#allocation20_spill] sm:$0xff] %v10115_v34  ;;  %v2161_v24 = vmax.f32 %v10101_v55, %v2160_v52  ;;  %v953_v26 = vpop.f32.mrb[17].mxu1  ;;  %v10119_v47 = vpop.f32.mrb[57].mxu0  ;;  %v10138_v61 = vadd.f32 %v951_v27, %v10113_v13  ;;  %v2237_v27 = vmax.f32 %v10130_v42, %v2236_v11  ;;  %14742 = vst [vmem:[#allocation35_spill] sm:$0xff] %v10167_v49  ;;  %v10175_v11 = vld [vmem:[%s14315_s2 + $0xa8] sm:$0xff]  ;;  %v10180_v17 = vld [vmem:[%s14315_s2 + $0x60] sm:$0xff] }
 0x2b9   :  { %v10127_v40 = vadd.f32 %v953_v26, %v10106_v54  ;;  %14740 = vst [vmem:[#allocation31_spill] sm:$0xff] %v10159_v18  ;;  %v2156_v42 = vsel %vm2131_vm3, %v10159_v18, -inf  ;;  %v10197_v41 = vadd.f32 %v10061_v57, %v10180_v17 }
 0x2ba   :  { %14737 = vst [vmem:[#allocation29_spill] sm:$0xff] %v10138_v61  ;;  %2162 = vmax.xlane.f32.xlu0 %v2161_v24  ;;  %2150 = vmax.xlane.f32.xlu1 %v2149_v3 }
 0x2bb   :  { %14735 = vst [vmem:[#allocation25_spill] sm:$0xff] %v10127_v40  ;;  %v2164_v12 = vsel %vm2131_vm3, %v10127_v40, -inf  ;;  %v957_v52 = vpop.f32.mrb[18].mxu1  ;;  %v10152_v26 = vpop.f32.mrb[58].mxu0  ;;  %14747 = vst [vmem:[#allocation55_spill] sm:$0xff] %v10197_v41 }
 0x2bc   :  { %14738 = vst [vmem:[#allocation28_spill] sm:$0xff] %v10152_v26  ;;  %v2165_v3 = vmax.f32 %v10138_v61, %v2164_v12  ;;  %v959_v24 = vpop.f32.mrb[19].mxu1  ;;  %v10156_v33 = vpop.f32.mrb[59].mxu0  ;;  %v10170_v14 = vadd.f32 %v957_v52, %v10150_v22  ;;  %v2241_v52 = vmax.f32 %v10167_v49, %v2240_v62  ;;  %v10202_v62 = vld [vmem:[%s14315_s2 + $0xb8] sm:$0xff] }
 0x2bd   :  { %14739 = vst [vmem:[#allocation32_spill] sm:$0xff] %v10156_v33  ;;  %v10164_v31 = vadd.f32 %v959_v24, %v10143_v32 }
 0x2be   :  { %14743 = vst [vmem:[#allocation40_spill] sm:$0xff] %v10170_v14  ;;  %2166 = vmax.xlane.f32.xlu0 %v2165_v3  ;;  %2238 = vmax.xlane.f32.xlu1 %v2237_v27 }
 0x2bf   :  { %14741 = vst [vmem:[#allocation36_spill] sm:$0xff] %v10164_v31  ;;  %v2168_v12 = vsel %vm2131_vm3, %v10164_v31, -inf  ;;  %v963_v21 = vpop.f32.mrb[20].mxu1  ;;  %v10184_v24 = vpop.f32.mrb[60].mxu0 }
 0x2c0   :  { %14744 = vst [vmem:[#allocation39_spill] sm:$0xff] %v10184_v24  ;;  %v2169_v27 = vmax.f32 %v10170_v14, %v2168_v12  ;;  %v965_v3 = vpop.f32.mrb[21].mxu1  ;;  %v10188_v38 = vpop.f32.mrb[61].mxu0  ;;  %v10207_v12 = vld [vmem:[%s14315_s2 + $0xa0] sm:$0xff] }
 0x2c1   :  { %14745 = vst [vmem:[#allocation53_spill] sm:$0xff] %v10188_v38  ;;  %v10193_v28 = vadd.f32 %v965_v3, %v10175_v11  ;;  %v10212_v3 = vld [vmem:[%s14315_s2 + $0xb0] sm:$0xff]  ;;  %v10225_v24 = vadd.f32 %v963_v21, %v10207_v12 }
 0x2c2   :  { %2170 = vmax.xlane.f32.xlu0 %v2169_v27  ;;  %2242 = vmax.xlane.f32.xlu1 %v2241_v52  ;;  %v2157_v52 = vmax.f32 %v10197_v41, %v2156_v42  ;;  %v10233_v42 = vld [vmem:[%s14315_s2 + $0xc8] sm:$0xff] }
 0x2c3   :  { %14746 = vst [vmem:[#allocation54_spill] sm:$0xff] %v10193_v28  ;;  %v969_v49 = vpop.f32.mrb[22].mxu1  ;;  %v10214_v57 = vpop.f32.mrb[62].mxu0  ;;  %v2172_v20 = vsel %vm2131_vm3, %v10193_v28, -inf  ;;  %14751 = vst [vmem:[#allocation59_spill] sm:$0xff] %v10225_v24 }
 0x2c4   :  { %14748 = vst [vmem:[#allocation56_spill] sm:$0xff] %v10214_v57  ;;  %v971_v27 = vpop.f32.mrb[23].mxu1  ;;  %v10217_v2 = vpop.f32.mrb[63].mxu0  ;;  %v10228_v31 = vadd.f32 %v969_v49, %v10212_v3  ;;  %v2173_v49 = vmax.f32 %v10225_v24, %v2172_v20  ;;  %v10257_v57 = vld [vmem:[%s14315_s2 + $0xd8] sm:$0xff] }
 0x2c5   :  { %14749 = vst [vmem:[#allocation57_spill] sm:$0xff] %v10217_v2  ;;  %v10222_v59 = vadd.f32 %v971_v27, %v10202_v62  ;;  %v10240_v27 = vld [vmem:[%s14315_s2 + $0xc0] sm:$0xff] }
 0x2c6   :  { %14752 = vst [vmem:[#allocation60_spill] sm:$0xff] %v10228_v31  ;;  %2158 = vmax.xlane.f32.xlu1 %v2157_v52 }
 0x2c7   :  { %14750 = vst [vmem:[#allocation58_spill] sm:$0xff] %v10222_v59  ;;  %v2176_v14 = vsel %vm2131_vm3, %v10222_v59, -inf  ;;  %v975_v28 = vpop.f32.mrb[24].mxu1  ;;  %v10242_v21 = vpop.f32.mrb[64].mxu0 }
 0x2c8   :  { %14753 = vst [vmem:[#allocation61_spill] sm:$0xff] %v10242_v21  ;;  %v2177_v52 = vmax.f32 %v10228_v31, %v2176_v14  ;;  %v977_v38 = vpop.f32.mrb[25].mxu1  ;;  %v10246_v61 = vpop.f32.mrb[65].mxu0  ;;  %v10252_v59 = vadd.f32 %v975_v28, %v10240_v27  ;;  %v10264_v14 = vld [vmem:[%s14315_s2 + $0xd0] sm:$0xff] }
 0x2c9   :  { %14754 = vst [vmem:[#allocation62_spill] sm:$0xff] %v10246_v61  ;;  %v10249_v40 = vadd.f32 %v977_v38, %v10233_v42 }
 0x2ca   :  { %14756 = vst [vmem:[#allocation64_spill] sm:$0xff] %v10252_v59  ;;  %2178 = vmax.xlane.f32.xlu0 %v2177_v52  ;;  %2174 = vmax.xlane.f32.xlu1 %v2173_v49 }
 0x2cb   :  { %14755 = vst [vmem:[#allocation63_spill] sm:$0xff] %v10249_v40  ;;  %v2180_v20 = vsel %vm2131_vm3, %v10249_v40, -inf  ;;  %v981_v38 = vpop.f32.mrb[26].mxu1  ;;  %v10266_v21 = vpop.f32.mrb[66].mxu0  ;;  %v10280_v40 = vld [vmem:[%s14315_s2 + $0xe8] sm:$0xff] }
 0x2cc   :  { %14757 = vst [vmem:[#allocation65_spill] sm:$0xff] %v10266_v21  ;;  %v2181_v28 = vmax.f32 %v10252_v59, %v2180_v20  ;;  %v983_v52 = vpop.f32.mrb[27].mxu1  ;;  %v10269_v49 = vpop.f32.mrb[67].mxu0  ;;  %v10275_v31 = vadd.f32 %v981_v38, %v10264_v14  ;;  %v10287_v20 = vld [vmem:[%s14315_s2 + $0xe0] sm:$0xff] }
 0x2cd   :  { %14758 = vst [vmem:[#allocation66_spill] sm:$0xff] %v10269_v49  ;;  %v10272_v61 = vadd.f32 %v983_v52, %v10257_v57 }
 0x2ce   :  { %14760 = vst [vmem:[#allocation68_spill] sm:$0xff] %v10275_v31  ;;  %2182 = vmax.xlane.f32.xlu1 %v2181_v28 }
 0x2cf   :  { %14759 = vst [vmem:[#allocation67_spill] sm:$0xff] %v10272_v61  ;;  %v2184_v21 = vsel %vm2131_vm3, %v10272_v61, -inf  ;;  %v987_v59 = vpop.f32.mrb[28].mxu1  ;;  %v10289_v52 = vpop.f32.mrb[68].mxu0  ;;  %v10303_v61 = vld [vmem:[%s14315_s2 + $0xf8] sm:$0xff] }
 0x2d0   :  { %14761 = vst [vmem:[#allocation69_spill] sm:$0xff] %v10289_v52  ;;  %v2185_v38 = vmax.f32 %v10275_v31, %v2184_v21  ;;  %v989_v49 = vpop.f32.mrb[29].mxu1  ;;  %v10292_v28 = vpop.f32.mrb[69].mxu0  ;;  %v10298_v2 = vadd.f32 %v987_v59, %v10287_v20  ;;  %v10310_v21 = vld [vmem:[%s14315_s2 + $0xf0] sm:$0xff] }
 0x2d1   :  { %14762 = vst [vmem:[#allocation70_spill] sm:$0xff] %v10292_v28  ;;  %v10295_v24 = vadd.f32 %v989_v49, %v10280_v40 }
 0x2d2   :  { %14764 = vst [vmem:[#allocation72_spill] sm:$0xff] %v10298_v2  ;;  %2186 = vmax.xlane.f32.xlu0 %v2185_v38 }
 0x2d3   :  { %14763 = vst [vmem:[#allocation71_spill] sm:$0xff] %v10295_v24  ;;  %v2188_v52 = vsel %vm2131_vm3, %v10295_v24, -inf  ;;  %v993_v28 = vpop.f32.mrb[30].mxu1  ;;  %v10312_v49 = vpop.f32.mrb[70].mxu0  ;;  %v10326_v24 = vld [vmem:[%s14315_s2 + $0x108] sm:$0xff] }
 0x2d4   :  { %14765 = vst [vmem:[#allocation73_spill] sm:$0xff] %v10312_v49  ;;  %v2189_v59 = vmax.f32 %v10298_v2, %v2188_v52  ;;  %v995_v31 = vpop.f32.mrb[31].mxu1  ;;  %v10315_v38 = vpop.f32.mrb[71].mxu0  ;;  %v10321_v8 = vadd.f32 %v993_v28, %v10310_v21  ;;  %v10333_v52 = vld [vmem:[%s14315_s2 + $0x100] sm:$0xff] }
 0x2d5   :  { %14766 = vst [vmem:[#allocation74_spill] sm:$0xff] %v10315_v38  ;;  %v10318_v1 = vadd.f32 %v995_v31, %v10303_v61 }
 0x2d6   :  { %14768 = vst [vmem:[#allocation76_spill] sm:$0xff] %v10321_v8  ;;  %2190 = vmax.xlane.f32.xlu1 %v2189_v59 }
 0x2d7   :  { %14767 = vst [vmem:[#allocation75_spill] sm:$0xff] %v10318_v1  ;;  %v2192_v49 = vsel %vm2131_vm3, %v10318_v1, -inf  ;;  %v999_v2 = vpop.f32.mrb[32].mxu1  ;;  %v10335_v31 = vpop.f32.mrb[72].mxu0  ;;  %v10349_v1 = vld [vmem:[%s14315_s2 + $0x118] sm:$0xff] }
 0x2d8   :  { %14769 = vst [vmem:[#allocation77_spill] sm:$0xff] %v10335_v31  ;;  %v2193_v28 = vmax.f32 %v10321_v8, %v2192_v49  ;;  %v1001_v38 = vpop.f32.mrb[33].mxu1  ;;  %v10338_v59 = vpop.f32.mrb[73].mxu0  ;;  %v10344_v51 = vadd.f32 %v999_v2, %v10333_v52  ;;  %v10356_v49 = vld [vmem:[%s14315_s2 + $0x110] sm:$0xff] }
 0x2d9   :  { %14770 = vst [vmem:[#allocation78_spill] sm:$0xff] %v10338_v59  ;;  %v10341_v58 = vadd.f32 %v1001_v38, %v10326_v24 }
 0x2da   :  { %14772 = vst [vmem:[#allocation80_spill] sm:$0xff] %v10344_v51  ;;  %2194 = vmax.xlane.f32.xlu0 %v2193_v28 }
 0x2db   :  { %14771 = vst [vmem:[#allocation79_spill] sm:$0xff] %v10341_v58  ;;  %v2196_v31 = vsel %vm2131_vm3, %v10341_v58, -inf  ;;  %v1005_v59 = vpop.f32.mrb[34].mxu1  ;;  %v10358_v38 = vpop.f32.mrb[74].mxu0  ;;  %v10372_v58 = vld [vmem:[%s14315_s2 + $0x128] sm:$0xff] }
 0x2dc   :  { %14773 = vst [vmem:[#allocation81_spill] sm:$0xff] %v10358_v38  ;;  %v2197_v2 = vmax.f32 %v10344_v51, %v2196_v31  ;;  %v1007_v8 = vpop.f32.mrb[35].mxu1  ;;  %v10361_v28 = vpop.f32.mrb[75].mxu0  ;;  %v10367_v0 = vadd.f32 %v1005_v59, %v10356_v49  ;;  %v10379_v31 = vld [vmem:[%s14315_s2 + $0x120] sm:$0xff] }
 0x2dd   :  { %14774 = vst [vmem:[#allocation82_spill] sm:$0xff] %v10361_v28  ;;  %v10364_v55 = vadd.f32 %v1007_v8, %v10349_v1 }
 0x2de   :  { %14776 = vst [vmem:[#allocation84_spill] sm:$0xff] %v10367_v0  ;;  %2198 = vmax.xlane.f32.xlu1 %v2197_v2 }
 0x2df   :  { %14775 = vst [vmem:[#allocation83_spill] sm:$0xff] %v10364_v55  ;;  %v2200_v38 = vsel %vm2131_vm3, %v10364_v55, -inf  ;;  %v1011_v51 = vpop.f32.mrb[36].mxu1  ;;  %v10381_v8 = vpop.f32.mrb[76].mxu0  ;;  %v10395_v55 = vld [vmem:[%s14315_s2 + $0x138] sm:$0xff] }
 0x2e0   :  { %14777 = vst [vmem:[#allocation85_spill] sm:$0xff] %v10381_v8  ;;  %v2201_v59 = vmax.f32 %v10367_v0, %v2200_v38  ;;  %v1013_v28 = vpop.f32.mrb[37].mxu1  ;;  %v10384_v2 = vpop.f32.mrb[77].mxu0  ;;  %v10390_v18 = vadd.f32 %v1011_v51, %v10379_v31  ;;  %v10402_v38 = vld [vmem:[%s14315_s2 + $0x130] sm:$0xff] }
 0x2e1   :  { %14778 = vst [vmem:[#allocation86_spill] sm:$0xff] %v10384_v2  ;;  %v10387_v41 = vadd.f32 %v1013_v28, %v10372_v58 }
 0x2e2   :  { %14780 = vst [vmem:[#allocation88_spill] sm:$0xff] %v10390_v18  ;;  %2202 = vmax.xlane.f32.xlu0 %v2201_v59 }
 0x2e3   :  { %14779 = vst [vmem:[#allocation87_spill] sm:$0xff] %v10387_v41  ;;  %v2204_v8 = vsel %vm2131_vm3, %v10387_v41, -inf  ;;  %v1017_v2 = vpop.f32.mrb[38].mxu1  ;;  %v10404_v28 = vpop.f32.mrb[78].mxu0  ;;  %v10418_v41 = vld [vmem:[%s14315_s2 + $0x148] sm:$0xff] }
 0x2e4   :  { %14781 = vst [vmem:[#allocation89_spill] sm:$0xff] %v10404_v28  ;;  %v2205_v51 = vmax.f32 %v10390_v18, %v2204_v8  ;;  %v1019_v0 = vpop.f32.mrb[39].mxu1  ;;  %v10407_v59 = vpop.f32.mrb[79].mxu0  ;;  %v10413_v26 = vadd.f32 %v1017_v2, %v10402_v38  ;;  %14785 = vst [vmem:[#allocation93_spill] sm:$0xff] %v10418_v41  ;;  %v10425_v8 = vld [vmem:[%s14315_s2 + $0x140] sm:$0xff] }
 0x2e5   :  { %14782 = vst [vmem:[#allocation90_spill] sm:$0xff] %v10407_v59  ;;  %v10410_v9 = vadd.f32 %v1019_v0, %v10395_v55  ;;  %14786 = vst [vmem:[#allocation94_spill] sm:$0xff] %v10425_v8 }
 0x2e6   :  { %14784 = vst [vmem:[#allocation92_spill] sm:$0xff] %v10413_v26  ;;  %2206 = vmax.xlane.f32.xlu1 %v2205_v51 }
 0x2e7   :  { %14783 = vst [vmem:[#allocation91_spill] sm:$0xff] %v10410_v9  ;;  %v2208_v28 = vsel %vm2131_vm3, %v10410_v9, -inf  ;;  %v1023_v18 = vpop.f32.mrb[40].mxu1  ;;  %v10427_v0 = vpop.f32.mrb[80].mxu0  ;;  %v10441_v9 = vld [vmem:[%s14315_s2 + $0x158] sm:$0xff] }
 0x2e8   :  { %14787 = vst [vmem:[#allocation95_spill] sm:$0xff] %v10427_v0  ;;  %v2209_v2 = vmax.f32 %v10413_v26, %v2208_v28  ;;  %v1025_v59 = vpop.f32.mrb[41].mxu1  ;;  %v10430_v51 = vpop.f32.mrb[81].mxu0  ;;  %v10436_v15 = vadd.f32 %v1023_v18, %v10425_v8  ;;  %14791 = vst [vmem:[#allocation99_spill] sm:$0xff] %v10441_v9  ;;  %v10448_v28 = vld [vmem:[%s14315_s2 + $0x150] sm:$0xff] }
 0x2e9   :  { %14788 = vst [vmem:[#allocation96_spill] sm:$0xff] %v10430_v51  ;;  %v10433_v16 = vadd.f32 %v1025_v59, %v10418_v41  ;;  %14792 = vst [vmem:[#allocation100_spill] sm:$0xff] %v10448_v28 }
 0x2ea   :  { %14790 = vst [vmem:[#allocation98_spill] sm:$0xff] %v10436_v15  ;;  %2210 = vmax.xlane.f32.xlu0 %v2209_v2 }
 0x2eb   :  { %14789 = vst [vmem:[#allocation97_spill] sm:$0xff] %v10433_v16  ;;  %v2212_v0 = vsel %vm2131_vm3, %v10433_v16, -inf  ;;  %v1029_v51 = vpop.f32.mrb[42].mxu1  ;;  %v10450_v59 = vpop.f32.mrb[82].mxu0 }
 0x2ec   :  { %14793 = vst [vmem:[#allocation101_spill] sm:$0xff] %v10450_v59  ;;  %v2213_v18 = vmax.f32 %v10436_v15, %v2212_v0  ;;  %v1031_v26 = vpop.f32.mrb[43].mxu1  ;;  %v10453_v2 = vpop.f32.mrb[83].mxu0  ;;  %v10459_v33 = vadd.f32 %v1029_v51, %v10448_v28 }
 0x2ed   :  { %14794 = vst [vmem:[#allocation102_spill] sm:$0xff] %v10453_v2  ;;  %v10456_v8 = vadd.f32 %v1031_v26, %v10441_v9 }
 0x2ee   :  { %14796 = vst [vmem:[#allocation104_spill] sm:$0xff] %v10459_v33  ;;  %2214 = vmax.xlane.f32.xlu1 %v2213_v18 }
 0x2ef   :  { %14795 = vst [vmem:[#allocation103_spill] sm:$0xff] %v10456_v8  ;;  %v2216_v16 = vsel %vm2131_vm3, %v10456_v8, -inf  ;;  %v10463_v34 = vpop.f32.mrb[84].mxu0 }
 0x2f0   :  { %14797 = vst [vmem:[#allocation105_spill] sm:$0xff] %v10463_v34  ;;  %v2217_v41 = vmax.f32 %v10459_v33, %v2216_v16  ;;  %v10466_v59 = vpop.f32.mrb[85].mxu0 }
 0x2f1   :  { %14798 = vst [vmem:[#allocation106_spill] sm:$0xff] %v10466_v59 }
 0x2f2   :  { %2218 = vmax.xlane.f32.xlu1 %v2217_v41 }
 0x2f3   :  { %v1627_v0 = vpop.f32.mrb[44].mxu1  ;;  %v10468_v15 = vpop.f32.mrb[86].mxu0 }
 0x2f4   :  { %14799 = vst [vmem:[#allocation107_spill] sm:$0xff] %v10468_v15  ;;  %v1629_v2 = vpop.f32.mrb[45].mxu1  ;;  %v10470_v26 = vpop.f32.mrb[87].mxu0  ;;  %v10476_v18 = vadd.f32 %v1627_v0, %v9941_v37 }
 0x2f5   :  { %14800 = vst [vmem:[#allocation108_spill] sm:$0xff] %v10470_v26  ;;  %v10473_v51 = vadd.f32 %v1629_v2, %v9936_v4 }
 0x2f6   :  { %14802 = vst [vmem:[#allocation110_spill] sm:$0xff] %v10476_v18 }
 0x2f7   :  { %14801 = vst [vmem:[#allocation109_spill] sm:$0xff] %v10473_v51  ;;  %v2308_v8 = vsel %vm2131_vm3, %v10473_v51, -inf  ;;  %v1633_v34 = vpop.f32.mrb[46].mxu1  ;;  %v2000_v16 = vpop.f32.mrb[88].mxu0 }
 0x2f8   :  { %v2309_v33 = vmax.f32 %v10476_v18, %v2308_v8  ;;  %v1635_v41 = vpop.f32.mrb[47].mxu1  ;;  %v2002_v59 = vpop.f32.mrb[89].mxu0  ;;  %v10488_v2 = vadd.f32 %v2000_v16, %v9941_v37 }
 0x2f9   :  { %v10482_v15 = vadd.f32 %v1635_v41, %v9952_v23  ;;  %v10485_v26 = vadd.f32 %v2002_v59, %v9936_v4 }
 0x2fa   :  { %14805 = vst [vmem:[#allocation113_spill] sm:$0xff] %v10488_v2  ;;  %2310 = vmax.xlane.f32.xlu0 %v2309_v33  ;;  %v10502_v33 = vadd.f32 %v1633_v34, %v9959_v46 }
 0x2fb   :  { %14803 = vst [vmem:[#allocation111_spill] sm:$0xff] %v10482_v15  ;;  %14804 = vst [vmem:[#allocation112_spill] sm:$0xff] %v10485_v26  ;;  %v2396_v0 = vsel %vm2131_vm3, %v10485_v26, -inf  ;;  %v1639_v51 = vpop.f32.mrb[48].mxu1  ;;  %v2006_v28 = vpop.f32.mrb[90].mxu0  ;;  %v2312_v41 = vsel %vm2131_vm3, %v10482_v15, -inf }
 0x2fc   :  { %v2397_v9 = vmax.f32 %v10488_v2, %v2396_v0  ;;  %v1641_v8 = vpop.f32.mrb[49].mxu1  ;;  %v2008_v18 = vpop.f32.mrb[91].mxu0  ;;  %v10505_v37 = vadd.f32 %v1639_v51, %v10013_v19  ;;  %v2313_v2 = vmax.f32 %v10502_v33, %v2312_v41 }
 0x2fd   :  { %v10496_v48 = vadd.f32 %v1641_v8, %v9980_v43  ;;  %v10499_v4 = vadd.f32 %v2008_v18, %v9952_v23 }
 0x2fe   :  { %14808 = vst [vmem:[#allocation116_spill] sm:$0xff] %v10505_v37  ;;  %2398 = vmax.xlane.f32.xlu1 %v2397_v9  ;;  %v10520_v9 = vadd.f32 %v2006_v28, %v9959_v46 }
 0x2ff   :  { %14806 = vst [vmem:[#allocation114_spill] sm:$0xff] %v10496_v48  ;;  %14807 = vst [vmem:[#allocation115_spill] sm:$0xff] %v10499_v4  ;;  %v2316_v59 = vsel %vm2131_vm3, %v10496_v48, -inf  ;;  %v1645_v16 = vpop.f32.mrb[50].mxu1  ;;  %v2012_v0 = vpop.f32.mrb[92].mxu0  ;;  %v2400_v23 = vsel %vm2131_vm3, %v10499_v4, -inf }
 0x300   :  { %v2317_v8 = vmax.f32 %v10505_v37, %v2316_v59  ;;  %v1647_v26 = vpop.f32.mrb[51].mxu1  ;;  %v2014_v15 = vpop.f32.mrb[93].mxu0  ;;  %14810 = vst [vmem:[#allocation118_spill] sm:$0xff] %v10520_v9  ;;  %v10523_v18 = vadd.f32 %v1645_v16, %v9992_v25  ;;  %v2401_v4 = vmax.f32 %v10520_v9, %v2400_v23  ;;  %v10535_v28 = vadd.f32 %v2012_v0, %v10013_v19 }
 0x301   :  { %v10514_v34 = vadd.f32 %v1647_v26, %v9985_v29  ;;  %v10517_v51 = vadd.f32 %v2014_v15, %v9980_v43 }
 0x302   :  { %2318 = vmax.xlane.f32.xlu0 %v2317_v8  ;;  %2314 = vmax.xlane.f32.xlu1 %v2313_v2  ;;  %14812 = vst [vmem:[#allocation120_spill] sm:$0xff] %v10535_v28 }
 0x303   :  { %14809 = vst [vmem:[#allocation117_spill] sm:$0xff] %v10517_v51  ;;  %v2320_v41 = vsel %vm2131_vm3, %v10514_v34, -inf  ;;  %v1651_v59 = vpop.f32.mrb[52].mxu1  ;;  %v2018_v37 = vpop.f32.mrb[94].mxu0  ;;  %v2404_v46 = vsel %vm2131_vm3, %v10517_v51, -inf }
 0x304   :  { %v2321_v26 = vmax.f32 %v10523_v18, %v2320_v41  ;;  %v1653_v48 = vpop.f32.mrb[53].mxu1  ;;  %v2020_v43 = vpop.f32.mrb[95].mxu0  ;;  %v2405_v8 = vmax.f32 %v10535_v28, %v2404_v46  ;;  %v10547_v19 = vadd.f32 %v2018_v37, %v9992_v25  ;;  %v10562_v37 = vadd.f32 %v1651_v59, %v10081_v6 }
 0x305   :  { %v10532_v15 = vadd.f32 %v2020_v43, %v9985_v29  ;;  %v10539_v41 = vadd.f32 %v1653_v48, %v10054_v36 }
 0x306   :  { %2322 = vmax.xlane.f32.xlu0 %v2321_v26  ;;  %2402 = vmax.xlane.f32.xlu1 %v2401_v4  ;;  %14815 = vst [vmem:[#allocation123_spill] sm:$0xff] %v10547_v19  ;;  %14818 = vst [vmem:[#allocation126_spill] sm:$0xff] %v10562_v37 }
 0x307   :  { %14811 = vst [vmem:[#allocation119_spill] sm:$0xff] %v10532_v15  ;;  %v1657_v2 = vpop.f32.mrb[54].mxu1  ;;  %v2024_v16 = vpop.f32.mrb[96].mxu0  ;;  %14813 = vst [vmem:[#allocation121_spill] sm:$0xff] %v10539_v41  ;;  %v2408_v51 = vsel %vm2131_vm3, %v10532_v15, -inf }
 0x308   :  { %v1659_v23 = vpop.f32.mrb[55].mxu1  ;;  %v2026_v9 = vpop.f32.mrb[97].mxu0  ;;  %v10550_v4 = vadd.f32 %v1657_v2, %v10037_v44  ;;  %v2409_v48 = vmax.f32 %v10547_v19, %v2408_v51 }
 0x309   :  { %v10544_v29 = vadd.f32 %v1659_v23, %v10032_v45  ;;  %v2324_v23 = vsel %vm2131_vm3, %v10539_v41, -inf  ;;  %v10559_v25 = vadd.f32 %v2026_v9, %v10054_v36  ;;  %v10574_v9 = vadd.f32 %v2024_v16, %v10081_v6 }
 0x30a   :  { %14816 = vst [vmem:[#allocation124_spill] sm:$0xff] %v10550_v4  ;;  %2406 = vmax.xlane.f32.xlu1 %v2405_v8 }
 0x30b   :  { %14814 = vst [vmem:[#allocation122_spill] sm:$0xff] %v10544_v29  ;;  %v2328_v0 = vsel %vm2131_vm3, %v10544_v29, -inf  ;;  %v1663_v26 = vpop.f32.mrb[56].mxu1  ;;  %v2030_v43 = vpop.f32.mrb[98].mxu0  ;;  %14817 = vst [vmem:[#allocation125_spill] sm:$0xff] %v10559_v25  ;;  %v2325_v29 = vmax.f32 %v10562_v37, %v2324_v23 }
 0x30c   :  { %v2329_v46 = vmax.f32 %v10550_v4, %v2328_v0  ;;  %v1665_v15 = vpop.f32.mrb[57].mxu1  ;;  %v2032_v28 = vpop.f32.mrb[99].mxu0  ;;  %v2412_v0 = vsel %vm2131_vm3, %v10559_v25, -inf  ;;  %14821 = vst [vmem:[#allocation129_spill] sm:$0xff] %v10574_v9  ;;  %v10589_v16 = vadd.f32 %v2030_v43, %v10037_v44  ;;  %v10601_v44 = vadd.f32 %v1663_v26, %v10180_v17 }
 0x30d   :  { %v10568_v4 = vadd.f32 %v2032_v28, %v10032_v45  ;;  %v2413_v25 = vmax.f32 %v10574_v9, %v2412_v0 }
 0x30e   :  { %2330 = vmax.xlane.f32.xlu0 %v2329_v46  ;;  %2410 = vmax.xlane.f32.xlu1 %v2409_v48  ;;  %14824 = vst [vmem:[#allocation132_spill] sm:$0xff] %v10589_v16  ;;  %14827 = vst [vmem:[#allocation135_spill] sm:$0xff] %v10601_v44 }
 0x30f   :  { %v1669_v2 = vpop.f32.mrb[58].mxu1  ;;  %v2036_v8 = vpop.f32.mrb[100].mxu0  ;;  %14819 = vst [vmem:[#allocation127_spill] sm:$0xff] %v10568_v4  ;;  %v2416_v6 = vsel %vm2131_vm3, %v10568_v4, -inf }
 0x310   :  { %v1671_v51 = vpop.f32.mrb[59].mxu1  ;;  %v2038_v19 = vpop.f32.mrb[101].mxu0  ;;  %v10577_v59 = vadd.f32 %v1669_v2, %v10086_v30 }
 0x311   :  { %v10571_v36 = vadd.f32 %v1671_v51, %v10076_v53  ;;  %v10584_v51 = vadd.f32 %v1665_v15, %v10135_v39  ;;  %v10595_v15 = vadd.f32 %v2038_v19, %v10135_v39 }
 0x312   :  { %14822 = vst [vmem:[#allocation130_spill] sm:$0xff] %v10577_v59  ;;  %2326 = vmax.xlane.f32.xlu1 %v2325_v29 }
 0x313   :  { %14820 = vst [vmem:[#allocation128_spill] sm:$0xff] %v10571_v36  ;;  %v2336_v48 = vsel %vm2131_vm3, %v10571_v36, -inf  ;;  %v1675_v46 = vpop.f32.mrb[60].mxu1  ;;  %v2042_v23 = vpop.f32.mrb[102].mxu0  ;;  %14823 = vst [vmem:[#allocation131_spill] sm:$0xff] %v10584_v51  ;;  %v2417_v36 = vmax.f32 %v10589_v16, %v2416_v6  ;;  %v2420_v26 = vsel %vm2131_vm3, %v10595_v15, -inf }
 0x314   :  { %v2337_v45 = vmax.f32 %v10577_v59, %v2336_v48  ;;  %v1677_v28 = vpop.f32.mrb[61].mxu1  ;;  %v2044_v37 = vpop.f32.mrb[103].mxu0  ;;  %v2332_v48 = vsel %vm2131_vm3, %v10584_v51, -inf  ;;  %14825 = vst [vmem:[#allocation133_spill] sm:$0xff] %v10595_v15 }
 0x315   :  { %v2333_v16 = vmax.f32 %v10601_v44, %v2332_v48  ;;  %v10615_v51 = vadd.f32 %v2044_v37, %v10076_v53 }
 0x316   :  { %2338 = vmax.xlane.f32.xlu0 %v2337_v45  ;;  %2414 = vmax.xlane.f32.xlu1 %v2413_v25 }
 0x317   :  { %v1681_v29 = vpop.f32.mrb[62].mxu1  ;;  %v2048_v2 = vpop.f32.mrb[104].mxu0  ;;  %14829 = vst [vmem:[#allocation137_spill] sm:$0xff] %v10615_v51  ;;  %v2424_v15 = vsel %vm2131_vm3, %v10615_v51, -inf }
 0x318   :  { %v1683_v0 = vpop.f32.mrb[63].mxu1  ;;  %v2050_v9 = vpop.f32.mrb[105].mxu0  ;;  %v10604_v43 = vadd.f32 %v1681_v29, %v10150_v22 }
 0x319   :  { %v10598_v59 = vadd.f32 %v1683_v0, %v10143_v32 }
 0x31a   :  { %14828 = vst [vmem:[#allocation136_spill] sm:$0xff] %v10604_v43  ;;  %2418 = vmax.xlane.f32.xlu1 %v2417_v36  ;;  %v10618_v36 = vadd.f32 %v2036_v8, %v10180_v17  ;;  %v10633_v8 = vadd.f32 %v2042_v23, %v10086_v30  ;;  %v10654_v23 = vadd.f32 %v1675_v46, %v10113_v13 }
 0x31b   :  { %14826 = vst [vmem:[#allocation134_spill] sm:$0xff] %v10598_v59  ;;  %v2344_v25 = vsel %vm2131_vm3, %v10598_v59, -inf  ;;  %v10608_v45 = vpop.f32.mrb[64].mxu1  ;;  %v2054_v6 = vpop.f32.mrb[106].mxu0 }
 0x31c   :  { %v2345_v19 = vmax.f32 %v10604_v43, %v2344_v25  ;;  %v1689_v4 = vpop.f32.mrb[65].mxu1  ;;  %v2056_v0 = vpop.f32.mrb[107].mxu0  ;;  %14830 = vst [vmem:[#allocation138_spill] sm:$0xff] %v10618_v36  ;;  %v2421_v41 = vmax.f32 %v10618_v36, %v2420_v26  ;;  %v10622_v25 = vadd.f32 %v1677_v28, %v10106_v54  ;;  %14833 = vst [vmem:[#allocation141_spill] sm:$0xff] %v10633_v8 }
 0x31e   :  { %2346 = vmax.xlane.f32.xlu0 %v2345_v19  ;;  %2334 = vmax.xlane.f32.xlu1 %v2333_v16  ;;  %v2340_v30 = vsel %vm2131_vm3, %v10622_v25, -inf }
 0x31f   :  { %v1693_v29 = vpop.f32.mrb[66].mxu1  ;;  %v2060_v59 = vpop.f32.mrb[108].mxu0 }
 0x320   :  { %v1695_v48 = vpop.f32.mrb[67].mxu1  ;;  %v2062_v44 = vpop.f32.mrb[109].mxu0  ;;  %v10636_v16 = vadd.f32 %v2060_v59, %v10207_v12  ;;  %v10649_v59 = vadd.f32 %v2050_v9, %v10106_v54 }
 0x321   :  { %v10627_v53 = vadd.f32 %v1695_v48, %v10202_v62  ;;  %v10630_v37 = vadd.f32 %v2062_v44, %v10175_v11  ;;  %v2425_v48 = vmax.f32 %v10633_v8, %v2424_v15 }
 0x322   :  { %14834 = vst [vmem:[#allocation142_spill] sm:$0xff] %v10636_v16  ;;  %2422 = vmax.xlane.f32.xlu1 %v2421_v41  ;;  %14835 = vst [vmem:[#allocation143_spill] sm:$0xff] %v10649_v59  ;;  %v2428_v9 = vsel %vm2131_vm3, %v10649_v59, -inf  ;;  %v10705_v59 = vadd.f32 %v10608_v45, %v10207_v12 }
 0x323   :  { %14831 = vst [vmem:[#allocation139_spill] sm:$0xff] %v10627_v53  ;;  %14832 = vst [vmem:[#allocation140_spill] sm:$0xff] %v10630_v37  ;;  %v2436_v28 = vsel %vm2131_vm3, %v10630_v37, -inf  ;;  %v10640_v19 = vpop.f32.mrb[68].mxu1  ;;  %v10642_v26 = vpop.f32.mrb[110].mxu0  ;;  %v2352_v41 = vsel %vm2131_vm3, %v10627_v53, -inf  ;;  %v10657_v37 = vadd.f32 %v1693_v29, %v10212_v3  ;;  %v10664_v53 = vadd.f32 %v2056_v0, %v10143_v32 }
 0x324   :  { %v2437_v51 = vmax.f32 %v10636_v16, %v2436_v28  ;;  %v1701_v44 = vpop.f32.mrb[69].mxu1  ;;  %v2068_v36 = vpop.f32.mrb[111].mxu0  ;;  %v2341_v16 = vmax.f32 %v10654_v23, %v2340_v30  ;;  %v10673_v29 = vadd.f32 %v2048_v2, %v10113_v13  ;;  %v10689_v13 = vadd.f32 %v1689_v4, %v10175_v11 }
 0x325   :  { %v2353_v8 = vmax.f32 %v10657_v37, %v2352_v41  ;;  %14836 = vst [vmem:[#allocation144_spill] sm:$0xff] %v10664_v53  ;;  %v2432_v2 = vsel %vm2131_vm3, %v10664_v53, -inf }
 0x326   :  { %2438 = vmax.xlane.f32.xlu0 %v2437_v51  ;;  %2426 = vmax.xlane.f32.xlu1 %v2425_v48  ;;  %14838 = vst [vmem:[#allocation146_spill] sm:$0xff] %v10673_v29 }
 0x327   :  { %v1705_v15 = vpop.f32.mrb[70].mxu1  ;;  %v2072_v28 = vpop.f32.mrb[112].mxu0 }
 0x328   :  { %v1707_v43 = vpop.f32.mrb[71].mxu1  ;;  %v2074_v54 = vpop.f32.mrb[113].mxu0  ;;  %v10676_v48 = vadd.f32 %v2072_v28, %v10240_v27  ;;  %v10696_v28 = vadd.f32 %v2054_v6, %v10150_v22  ;;  %v2348_v22 = vsel %vm2131_vm3, %v10689_v13, -inf  ;;  %v10710_v6 = vadd.f32 %v2068_v36, %v10202_v62 }
 0x329   :  { %v10667_v46 = vadd.f32 %v1707_v43, %v10257_v57  ;;  %v10670_v51 = vadd.f32 %v2074_v54, %v10233_v42  ;;  %v2429_v43 = vmax.f32 %v10673_v29, %v2428_v9  ;;  %v2349_v62 = vmax.f32 %v10705_v59, %v2348_v22 }
 0x32a   :  { %14839 = vst [vmem:[#allocation147_spill] sm:$0xff] %v10676_v48  ;;  %2354 = vmax.xlane.f32.xlu0 %v2353_v8  ;;  %2342 = vmax.xlane.f32.xlu1 %v2341_v16  ;;  %14840 = vst [vmem:[#allocation148_spill] sm:$0xff] %v10696_v28  ;;  %v2433_v11 = vmax.f32 %v10696_v28, %v2432_v2  ;;  %v10742_v22 = vadd.f32 %v10642_v26, %v10212_v3 }
 0x32b   :  { %14837 = vst [vmem:[#allocation145_spill] sm:$0xff] %v10670_v51  ;;  %v2444_v30 = vsel %vm2131_vm3, %v10670_v51, -inf  ;;  %v10680_v41 = vpop.f32.mrb[72].mxu1  ;;  %v10682_v32 = vpop.f32.mrb[114].mxu0  ;;  %v2360_v8 = vsel %vm2131_vm3, %v10667_v46, -inf  ;;  %v10699_v51 = vadd.f32 %v1705_v15, %v10264_v14  ;;  %14841 = vst [vmem:[#allocation149_spill] sm:$0xff] %v10710_v6 }
 0x32c   :  { %v2445_v0 = vmax.f32 %v10676_v48, %v2444_v30  ;;  %v10686_v54 = vpop.f32.mrb[73].mxu1  ;;  %v2080_v16 = vpop.f32.mrb[115].mxu0  ;;  %14845 = vst [vmem:[#allocation153_spill] sm:$0xff] %v10742_v22 }
 0x32d   :  { %v2135_v9 = vpop.xlane.xlu1 %2134  ;;  %v2361_v4 = vmax.f32 %v10699_v51, %v2360_v8  ;;  %v10753_v3 = vadd.f32 %v2080_v16, %v10257_v57 }
 0x32e   :  { %2446 = vmax.xlane.f32.xlu0 %v2445_v0  ;;  %2430 = vmax.xlane.f32.xlu1 %v2429_v43  ;;  %v2485_v43 = vsub.f32 %v9944_v5, %v2135_v9 }
 0x32f   :  { %v1717_v30 = vpop.f32.mrb[74].mxu1  ;;  %v2084_v29 = vpop.f32.mrb[116].mxu0  ;;  %14846 = vst [vmem:[#allocation154_spill] sm:$0xff] %v10753_v3 }
 0x330   :  { %v1719_v48 = vpop.f32.mrb[75].mxu1  ;;  %v2086_v15 = vpop.f32.mrb[117].mxu0  ;;  %v10720_v12 = vadd.f32 %v2084_v29, %v10287_v20  ;;  %v2440_v29 = vsel %vm2131_vm3, %v10710_v6, -inf }
 0x331   :  { %v10714_v0 = vadd.f32 %v1719_v48, %v10303_v61  ;;  %v10717_v2 = vadd.f32 %v2086_v15, %v10280_v40  ;;  %v10734_v15 = vadd.f32 %v1701_v44, %v10233_v42  ;;  %v10747_v42 = vadd.f32 %v1717_v30, %v10310_v21  ;;  %v2139_v16 = vpop.xlane.xlu0 %2138 }
 0x332   :  { %2362 = vmax.xlane.f32.xlu0 %v2361_v4  ;;  %2434 = vmax.xlane.f32.xlu1 %v2433_v11  ;;  %14843 = vst [vmem:[#allocation151_spill] sm:$0xff] %v10720_v12  ;;  %v2484_v11 = vsub.f32 %v9947_v50, %v2135_v9  ;;  %v2441_v50 = vmax.f32 %v10742_v22, %v2440_v29 }
 0x333   :  { %14842 = vst [vmem:[#allocation150_spill] sm:$0xff] %v10717_v2  ;;  %v10722_v45 = vpop.f32.mrb[76].mxu1  ;;  %v10724_v8 = vpop.f32.mrb[118].mxu0  ;;  %v2452_v5 = vsel %vm2131_vm3, %v10717_v2, -inf  ;;  %v2662_v2 = vmul.f32 1.442695, %v2485_v43  ;;  %v10760_v30 = vadd.f32 %v10640_v19, %v10240_v27  ;;  %v10778_v27 = vadd.f32 %v10686_v54, %v10280_v40 }
 0x334   :  { %v10729_v36 = vpop.f32.mrb[77].mxu1  ;;  %v10731_v48 = vpop.xlane.xlu1 %2222  ;;  %v2453_v4 = vmax.f32 %v10720_v12, %v2452_v5  ;;  %v2368_v53 = vsel %vm2131_vm3, %v10714_v0, -inf  ;;  %v2356_v5 = vsel %vm2131_vm3, %v10734_v15, -inf  ;;  %v2660_v12 = vmul.f32 1.442695, %v2484_v11 }
 0x335   :  { %14844 = vst [vmem:[#allocation152_spill] sm:$0xff] %v10731_v48  ;;  %v2092_v28 = vpop.f32.mrb[119].mxu0  ;;  %v2369_v26 = vmax.f32 %v10747_v42, %v2368_v53  ;;  %7692 = vpow2.f32 %v2662_v2  ;;  %v2357_v53 = vmax.f32 %v10760_v30, %v2356_v5  ;;  %v2448_v19 = vsel %vm2131_vm3, %v10753_v3, -inf }
 0x336   :  { %2350 = vmax.xlane.f32.xlu1 %v2349_v62  ;;  %2454 = vmax.xlane.f32.xlu0 %v2453_v4  ;;  %7694 = vpow2.f32 %v2660_v12  ;;  %v10790_v5 = vadd.f32 %v10682_v32, %v10264_v14  ;;  %v2364_v32 = vsel %vm2131_vm3, %v10778_v27, -inf }
 0x337   :  { %v1729_v44 = vpop.f32.mrb[78].mxu1  ;;  %v2096_v48 = vpop.f32.mrb[120].mxu0 }
 0x338   :  { %v1731_v9 = vpop.f32.mrb[79].mxu1  ;;  %v10756_v43 = vpop.xlane.xlu1 %2226  ;;  %14850 = vst [vmem:[#allocation158_spill] sm:$0xff] %v10790_v5  ;;  %v10800_v3 = vadd.f32 %v1729_v44, %v10356_v49 }
 0x339   :  { %14847 = vst [vmem:[#allocation155_spill] sm:$0xff] %v10756_v43  ;;  %v2098_v62 = vpop.f32.mrb[121].mxu0  ;;  %v10763_v29 = vadd.f32 %v1731_v9, %v10349_v1  ;;  %v10774_v43 = vadd.f32 %v2096_v48, %v10333_v52 }
 0x33a   :  { %2442 = vmax.xlane.f32.xlu1 %v2441_v50  ;;  %v10766_v4 = vadd.f32 %v2098_v62, %v10326_v24  ;;  %2370 = vmax.xlane.f32.xlu0 %v2369_v26  ;;  %v2449_v62 = vmax.f32 %v10790_v5, %v2448_v19  ;;  %v10812_v19 = vadd.f32 %v10680_v41, %v10287_v20 }
 0x33b   :  { %v10768_v11 = vpop.f32.mrb[80].mxu1  ;;  %v10770_v57 = vpop.f32.mrb[122].mxu0  ;;  %14849 = vst [vmem:[#allocation157_spill] sm:$0xff] %v10774_v43  ;;  %v2376_v40 = vsel %vm2131_vm3, %v10763_v29, -inf  ;;  %v10826_v20 = vadd.f32 %v10729_v36, %v10326_v24 }
 0x33c   :  { %14848 = vst [vmem:[#allocation156_spill] sm:$0xff] %v10766_v4  ;;  %v2460_v2 = vsel %vm2131_vm3, %v10766_v4, -inf  ;;  %v10784_v50 = vpop.f32.mrb[81].mxu1  ;;  %v10786_v9 = vpop.xlane.xlu1 %2142  ;;  %v2487_v4 = vsub.f32 %v9963_v63, %v2139_v16  ;;  %v2377_v63 = vmax.f32 %v10800_v3, %v2376_v40 }
 0x33d   :  { %v2461_v48 = vmax.f32 %v10774_v43, %v2460_v2  ;;  %v2104_v26 = vpop.f32.mrb[123].mxu0  ;;  %v10806_v2 = vadd.f32 %v2092_v28, %v10303_v61 }
 0x33e   :  { %2358 = vmax.xlane.f32.xlu1 %v2357_v53  ;;  %v2486_v53 = vsub.f32 %v9966_v60, %v2139_v16  ;;  %v2365_v60 = vmax.f32 %v10812_v19, %v2364_v32  ;;  %v2666_v61 = vmul.f32 1.442695, %v2487_v4  ;;  %v2489_v4 = vsub.f32 %v9996_v7, %v10786_v9 }
 0x33f   :  { %v10795_v54 = vpop.f32.mrb[82].mxu1  ;;  %v2108_v12 = vpop.f32.mrb[124].mxu0  ;;  %2462 = vmax.xlane.f32.xlu0 %v2461_v48  ;;  %14851 = vst [vmem:[#allocation159_spill] sm:$0xff] %v10806_v2  ;;  %v2456_v41 = vsel %vm2131_vm3, %v10806_v2, -inf  ;;  %v2372_v7 = vsel %vm2131_vm3, %v10826_v20, -inf }
 0x340   :  { %v1743_v14 = vpop.f32.mrb[83].mxu1  ;;  %v10808_v43 = vpop.xlane.xlu1 %2230  ;;  %7696 = vpow2.f32 %v2666_v61  ;;  %v10865_v61 = vadd.f32 %v10722_v45, %v10333_v52  ;;  %v10883_v45 = vadd.f32 %v10784_v50, %v10372_v58  ;;  %v10899_v50 = vadd.f32 %v10119_v47, %v10135_v39 }
 0x341   :  { %14852 = vst [vmem:[#allocation160_spill] sm:$0xff] %v10808_v43  ;;  %v2110_v22 = vpop.f32.mrb[125].mxu0  ;;  %v10819_v5 = vpop.eup %7692  ;;  %v2664_v43 = vmul.f32 1.442695, %v2486_v53  ;;  %v10869_v6 = vadd.f32 %v1743_v14, %v10395_v55  ;;  %v10915_v47 = vadd.f32 %v10768_v11, %v10379_v31 }
 0x342   :  { %2450 = vmax.xlane.f32.xlu1 %v2449_v62  ;;  %v10834_v62 = vadd.f32 %v10724_v8, %v10310_v21  ;;  %v10838_v32 = vpop.eup %7694  ;;  %v10841_v53 = vadd.f32 %v2110_v22, %v10372_v58  ;;  %v3012_v36 = vsel %vm2131_vm3, %v10819_v5, 0.0  ;;  %v2488_v22 = vsub.f32 %v10027_v35, %v10786_v9  ;;  %14860 = vst [vmem:[#allocation168_spill] sm:$0xff] %v10899_v50 }
 0x343   :  { %v10815_v44 = vpop.f32.mrb[84].mxu1  ;;  %v10817_v48 = vpop.f32.mrb[126].mxu0  ;;  %2378 = vmax.xlane.f32.xlu0 %v2377_v63  ;;  %7698 = vpow2.f32 %v2664_v43  ;;  %v3013_v43 = vadd.f32 %v10838_v32, %v3012_v36  ;;  %v2373_v9 = vmax.f32 %v10865_v61, %v2372_v7  ;;  %v10892_v7 = vadd.f32 %v10770_v57, %v10356_v49 }
 0x344   :  { %v1749_v28 = vpop.f32.mrb[85].mxu1  ;;  %v10822_v16 = vpop.f32.mrb[127].mxu0  ;;  %14854 = vst [vmem:[#allocation162_spill] sm:$0xff] %v10834_v62  ;;  %14855 = vst [vmem:[#allocation163_spill] sm:$0xff] %v10841_v53  ;;  %v2457_v21 = vmax.f32 %v10834_v62, %v2456_v41  ;;  %v2670_v41 = vmul.f32 1.442695, %v2489_v4 }
 0x345   :  { %v10830_v40 = vpop.xlane.xlu1 %2234  ;;  %v2147_v62 = vpop.xlane.xlu0 %2146  ;;  %v2668_v4 = vmul.f32 1.442695, %v2488_v22  ;;  %14859 = vst [vmem:[#allocation167_spill] sm:$0xff] %v10892_v7  ;;  %v2384_v58 = vsel %vm2131_vm3, %v10869_v6, -inf  ;;  %v2380_v57 = vsel %vm2131_vm3, %v10883_v45, -inf }
 0x346   :  { %14853 = vst [vmem:[#allocation161_spill] sm:$0xff] %v10830_v40  ;;  %2366 = vmax.xlane.f32.xlu1 %v2365_v60  ;;  %v10857_v60 = vadd.f32 %v2104_v26, %v10349_v1  ;;  %v2468_v1 = vsel %vm2131_vm3, %v10841_v53, -inf  ;;  %v10877_v26 = vadd.f32 %v2108_v12, %v10379_v31  ;;  %7700 = vpow2.f32 %v2670_v41 }
 0x347   :  { %v10843_v24 = vpop.f32.mrb[86].mxu1  ;;  %v10847_v63 = vpop.f32.mrb[128].mxu0  ;;  %3014 = vadd.xlane.f32.xlu0 %v3013_v43  ;;  %v2490_v49 = vsub.f32 %v10005_v10, %v2147_v62  ;;  %7702 = vpow2.f32 %v2668_v4  ;;  %v2244_v31 = vsel %vm2131_vm3, %v10899_v50, -inf  ;;  %v2381_v11 = vmax.f32 %v10915_v47, %v2380_v57 }
 0x348   :  { %v10850_v8 = vpop.f32.mrb[87].mxu1  ;;  %14856 = vst [vmem:[#allocation164_spill] sm:$0xff] %v10857_v60  ;;  %v10861_v2 = vpop.f32.mrb[129].mxu0  ;;  %14857 = vst [vmem:[#allocation165_spill] sm:$0xff] %v10877_v26  ;;  %v2464_v14 = vsel %vm2131_vm3, %v10857_v60, -inf  ;;  %v2469_v12 = vmax.f32 %v10877_v26, %v2468_v1  ;;  %v14874_v60 = vld [vmem:[#allocation31_spill] sm:$0xff] }
 0x349   :  { %v10859_v40 = vpop.xlane.xlu1 %2150  ;;  %v2465_v22 = vmax.f32 %v10892_v7, %v2464_v14  ;;  %v14863_v14 = vld [vmem:[#allocation93_spill] sm:$0xff] }
 0x34a   :  { %2458 = vmax.xlane.f32.xlu1 %v2457_v21  ;;  %v2491_v21 = vsub.f32 %v9999_v56, %v2147_v62  ;;  %v10904_v56 = vadd.f32 %v10795_v54, %v10402_v38  ;;  %v10911_v43 = vpop.eup %7696  ;;  %v14862_v54 = vld [vmem:[#allocation13_spill] sm:$0xff]  ;;  %v2155_v62 = vpop.xlane.xlu0 %2154  ;;  %v10923_v4 = vadd.f32 %v1749_v28, %v14863_v14 }
 0x34b   :  { %v10873_v35 = vpop.f32.mrb[130].mxu0  ;;  %2470 = vmax.xlane.f32.xlu0 %v2469_v12  ;;  %v14864_v12 = vld [vmem:[#allocation20_spill] sm:$0xff]  ;;  %v14868_v28 = vld [vmem:[#allocation17_spill] sm:$0xff] }
 0x34c   :  { %v10879_v52 = vpop.f32.mrb[131].mxu0  ;;  %v2674_v1 = vmul.f32 1.442695, %v2491_v21  ;;  %v2385_v39 = vmax.f32 %v10904_v56, %v2384_v58  ;;  %v10927_v53 = vadd.f32 %v14864_v12, %v10180_v17  ;;  %v8396_v21 = vld [vmem:[%s14315_s2 + $0x78] sm:$0xff]  ;;  %v14866_v58 = vld [vmem:[#allocation32_spill] sm:$0xff]  ;;  %v2492_v14 = vsub.f32 %v14868_v28, %v10859_v40  ;;  %v14869_v12 = vld [vmem:[#allocation43_spill] sm:$0xff] }
 0x34d   :  { %v10887_v36 = vpop.xlane.xlu1 %2238  ;;  %v10920_v10 = vpop.eup %7698  ;;  %v3016_v17 = vsel %vm2131_vm3, %v10911_v43, 0.0  ;;  %v2495_v26 = vsub.f32 %v14869_v12, %v2155_v62  ;;  %v14872_v28 = vld [vmem:[#allocation94_spill] sm:$0xff] }
 0x34e   :  { %14858 = vst [vmem:[#allocation166_spill] sm:$0xff] %v10887_v36  ;;  %2374 = vmax.xlane.f32.xlu1 %v2373_v9  ;;  %v2493_v9 = vsub.f32 %v14862_v54, %v10859_v40  ;;  %14865 = vst [vmem:[#allocation13_spill] sm:$0xff] %v10927_v53  ;;  %v2672_v54 = vmul.f32 1.442695, %v2490_v49  ;;  %7704 = vpow2.f32 %v2674_v1  ;;  %v3017_v57 = vadd.f32 %v10920_v10, %v3016_v17  ;;  %v8397_v40 = vld [vmem:[%s14315_s2 + $0x70] sm:$0xff]  ;;  %v14873_v17 = vld [vmem:[#allocation9_spill] sm:$0xff] }
 0x34f   :  { %2386 = vmax.xlane.f32.xlu0 %v2385_v39  ;;  %v2388_v39 = vsel %vm2131_vm3, %v10923_v4, -inf  ;;  %v2245_v49 = vmax.f32 %v10927_v53, %v2244_v31  ;;  %v2494_v12 = vsub.f32 %v14873_v17, %v2155_v62  ;;  %v2676_v7 = vmul.f32 1.442695, %v2492_v14  ;;  %v14876_v14 = vld [vmem:[#allocation55_spill] sm:$0xff] }
 0x350   :  { %v2678_v50 = vmul.f32 1.442695, %v2493_v9  ;;  %v10957_v9 = vadd.f32 %v10815_v44, %v14872_v28  ;;  %7706 = vpow2.f32 %v2672_v54  ;;  %v2682_v31 = vmul.f32 1.442695, %v2495_v26 }
 0x351   :  { %v10909_v41 = vpop.xlane.xlu1 %2242  ;;  %v2680_v26 = vmul.f32 1.442695, %v2494_v12 }
 0x352   :  { %14861 = vst [vmem:[#allocation169_spill] sm:$0xff] %v10909_v41  ;;  %2466 = vmax.xlane.f32.xlu1 %v2465_v22  ;;  %v10936_v22 = vadd.f32 %v8396_v21, %v14866_v58  ;;  %v10946_v21 = vpop.eup %7700  ;;  %v14870_v58 = vld [vmem:[#allocation28_spill] sm:$0xff]  ;;  %v2389_v53 = vmax.f32 %v10957_v9, %v2388_v39  ;;  %7708 = vpow2.f32 %v2678_v50 }
 0x353   :  { %v10953_v1 = vadd.f32 %v8397_v40, %v14870_v58  ;;  %3018 = vadd.xlane.f32.xlu0 %v3017_v57  ;;  %v10964_v40 = vpop.eup %7702  ;;  %v14875_v58 = vld [vmem:[#allocation99_spill] sm:$0xff]  ;;  %v2163_v57 = vpop.xlane.xlu0 %2162  ;;  %v3020_v54 = vsel %vm2131_vm3, %v10946_v21, 0.0  ;;  %7710 = vpow2.f32 %v2676_v7 }
 0x354   :  { %14867 = vst [vmem:[#allocation93_spill] sm:$0xff] %v10936_v22  ;;  %v10968_v44 = vadd.f32 %v10850_v8, %v14875_v58  ;;  %7712 = vpow2.f32 %v2682_v31  ;;  %v3021_v28 = vadd.f32 %v10964_v40, %v3020_v54  ;;  %v14878_v58 = vld [vmem:[#allocation100_spill] sm:$0xff] }
 0x355   :  { %v2159_v41 = vpop.xlane.xlu1 %2158  ;;  %14871 = vst [vmem:[#allocation20_spill] sm:$0xff] %v10953_v1  ;;  %7714 = vpow2.f32 %v2680_v26 }
 0x356   :  { %2382 = vmax.xlane.f32.xlu1 %v2381_v11  ;;  %v2248_v11 = vsel %vm2131_vm3, %v10936_v22, -inf  ;;  %v2497_v36 = vsub.f32 %v14874_v60, %v2159_v41  ;;  %v2496_v50 = vsub.f32 %v14876_v14, %v2159_v41  ;;  %v14877_v60 = vld [vmem:[#allocation14_spill] sm:$0xff]  ;;  %v2392_v8 = vsel %vm2131_vm3, %v10968_v44, -inf }
 0x357   :  { %v2249_v62 = vmax.f32 %v10953_v1, %v2248_v11  ;;  %2390 = vmax.xlane.f32.xlu0 %v2389_v53  ;;  %v2499_v39 = vsub.f32 %v14877_v60, %v2163_v57  ;;  %v10982_v11 = vadd.f32 %v10843_v24, %v14878_v58  ;;  %v14879_v53 = vld [vmem:[#allocation16_spill] sm:$0xff]  ;;  %v14882_v60 = vld [vmem:[#allocation11_spill] sm:$0xff] }
 0x358   :  { %v10978_v17 = vpop.eup %7704  ;;  %v2498_v7 = vsub.f32 %v14879_v53, %v2163_v57  ;;  %v2684_v41 = vmul.f32 1.442695, %v2496_v50 }
 0x359   :  { %v2393_v12 = vmax.f32 %v10982_v11, %v2392_v8  ;;  %v3024_v54 = vsel %vm2131_vm3, %v10978_v17, 0.0  ;;  %v11004_v53 = vpop.xlane.xlu1 %2174 }
 0x35a   :  { %2246 = vmax.xlane.f32.xlu1 %v2245_v49  ;;  %v2686_v49 = vmul.f32 1.442695, %v2497_v36  ;;  %v2690_v36 = vmul.f32 1.442695, %v2499_v39  ;;  %v10986_v31 = vpop.eup %7706  ;;  %v2688_v14 = vmul.f32 1.442695, %v2498_v7 }
 0x35b   :  { %3022 = vadd.xlane.f32.xlu0 %v3021_v28  ;;  %v3025_v24 = vadd.f32 %v10986_v31, %v3024_v54  ;;  %v612_v39 = vmax.f32 %v14882_v60, 0.0  ;;  %14885 = vst [vmem:[#allocation28_spill] sm:$0xff] %v11004_v53 }
 0x35c   :  { %7716 = vpow2.f32 %v2686_v49  ;;  %v14883_v49 = vld [vmem:[#allocation4_spill] sm:$0xff] }
 0x35d   :  { %7718 = vpow2.f32 %v2684_v41  ;;  %v613_v28 = vmax.f32 %v14883_v49, 0.0 }
 0x35e   :  { %2250 = vmax.xlane.f32.xlu1 %v2249_v62  ;;  %v10990_v62 = vpop.eup %7708  ;;  %7720 = vpow2.f32 %v2690_v36 }
 0x35f   :  { %14880 = vst [vmem:[#allocation32_spill] sm:$0xff] %v10990_v62  ;;  %2394 = vmax.xlane.f32.xlu0 %v2393_v12  ;;  %v10993_v26 = vpop.eup %7710  ;;  %v3028_v57 = vsel %vm2131_vm3, %v10990_v62, 0.0  ;;  %7722 = vpow2.f32 %v2688_v14  ;;  %v11010_v12 = vpack.c.bf16 %v613_v28, %v612_v39 }
 0x360   :  { %14881 = vst [vmem:[#allocation17_spill] sm:$0xff] %v10993_v26  ;;  %v10997_v50 = vpop.eup %7712  ;;  %v3029_v8 = vadd.f32 %v10993_v26, %v3028_v57  ;;  %v11021_v57 = vpop.xlane.xlu1 %2182 }
 0x361   :  { %v11002_v58 = vpop.eup %7714  ;;  %v3032_v7 = vsel %vm2131_vm3, %v10997_v50, 0.0  ;;  %14887 = vst [vmem:[#allocation9_spill] sm:$0xff] %v11010_v12  ;;  %14890 = vst [vmem:[#allocation55_spill] sm:$0xff] %v11021_v57 }
 0x362   :  { %14884 = vst [vmem:[#allocation43_spill] sm:$0xff] %v11002_v58  ;;  %v3033_v36 = vadd.f32 %v11002_v58, %v3032_v7 }
 0x363   :  { %3026 = vadd.xlane.f32.xlu0 %v3025_v24 }
 0x364   :  { %v11028_v28 = vpop.xlane.xlu1 %2190 }
 0x365   :  { %14892 = vst [vmem:[#allocation100_spill] sm:$0xff] %v11028_v28 }
 0x366   :  { %v11008_v41 = vpop.eup %7716 }
 0x367   :  { %14886 = vst [vmem:[#allocation94_spill] sm:$0xff] %v11008_v41  ;;  %3030 = vadd.xlane.f32.xlu0 %v3029_v8  ;;  %v11013_v54 = vpop.eup %7718  ;;  %v3036_v14 = vsel %vm2131_vm3, %v11008_v41, 0.0  ;;  %v11030_v8 = vpop.xlane.xlu0 %2166 }
 0x368   :  { %14888 = vst [vmem:[#allocation31_spill] sm:$0xff] %v11013_v54  ;;  %v11019_v24 = vpop.eup %7720  ;;  %v3037_v60 = vadd.f32 %v11013_v54, %v3036_v14  ;;  %v14900_v54 = vld [vmem:[#allocation6_spill] sm:$0xff] }
 0x369   :  { %14889 = vst [vmem:[#allocation99_spill] sm:$0xff] %v11019_v24  ;;  %v11024_v49 = vpop.eup %7722  ;;  %v3040_v39 = vsel %vm2131_vm3, %v11019_v24, 0.0  ;;  %v614_v41 = vmax.f32 %v14900_v54, 0.0  ;;  %v11067_v54 = vadd.f32 %v10817_v48, %v10402_v38  ;;  %v14911_v24 = vld [vmem:[#allocation111_spill] sm:$0xff] }
 0x36a   :  { %14891 = vst [vmem:[#allocation14_spill] sm:$0xff] %v11024_v49  ;;  %v3041_v7 = vadd.f32 %v11024_v49, %v3040_v39  ;;  %v14901_v39 = vld [vmem:[#allocation5_spill] sm:$0xff] }
 0x36b   :  { %3034 = vadd.xlane.f32.xlu0 %v3033_v36  ;;  %v11033_v1 = vpop.xlane.xlu1 %2198  ;;  %v11035_v36 = vpop.xlane.xlu0 %2170  ;;  %14905 = vst [vmem:[#allocation175_spill] sm:$0xff] %v11067_v54 }
 0x36c   :  { %14893 = vst [vmem:[#allocation16_spill] sm:$0xff] %v11033_v1  ;;  %v11053_v1 = vadd.f32 %v10822_v16, %v10395_v55 }
 0x36e   :  { %14902 = vst [vmem:[#allocation6_spill] sm:$0xff] %v11053_v1 }
 0x36f   :  { %3756 = vrot.lane.b32.xlu1 %v11010_v12, %s8436_s19  ;;  %3038 = vadd.xlane.f32.xlu0 %v3037_v60  ;;  %v11039_v14 = vpop.xlane.xlu0 %2178 }
 0x370   :  { %14895 = vst [vmem:[#allocation4_spill] sm:$0xff] %v11039_v14 }
 0x373   :  { %3042 = vadd.xlane.f32.xlu0 %v3041_v7  ;;  %v11037_v22 = vpop.xlane.xlu1 %2206  ;;  %v11043_v57 = vpop.xlane.xlu0 %2186  ;;  %v615_v7 = vmax.f32 %v14901_v39, 0.0 }
 0x374   :  { %14894 = vst [vmem:[#allocation11_spill] sm:$0xff] %v11037_v22  ;;  %14897 = vst [vmem:[#allocation171_spill] sm:$0xff] %v11043_v57 }
 0x375   :  { %v11059_v14 = vpack.c.bf16 %v615_v7, %v614_v41  ;;  %v14908_v7 = vld [vmem:[#allocation109_spill] sm:$0xff] }
 0x377   :  { %v11047_v28 = vpop.xlane.xlu0 %2194  ;;  %14904 = vst [vmem:[#allocation174_spill] sm:$0xff] %v11059_v14 }
 0x378   :  { %14899 = vst [vmem:[#allocation173_spill] sm:$0xff] %v11047_v28 }
 0x37b   :  { %v11041_v12 = vpop.xlane.xlu1 %2214  ;;  %v11057_v22 = vpop.xlane.xlu0 %2202 }
 0x37c   :  { %14896 = vst [vmem:[#allocation170_spill] sm:$0xff] %v11041_v12  ;;  %14903 = vst [vmem:[#allocation5_spill] sm:$0xff] %v11057_v22  ;;  %v2472_v12 = vsel %vm2131_vm3, %v11053_v1, -inf  ;;  %v14910_v1 = vld [vmem:[#allocation110_spill] sm:$0xff] }
 0x37d   :  { %v2473_v55 = vmax.f32 %v11067_v54, %v2472_v12  ;;  %v14913_v12 = vld [vmem:[#allocation114_spill] sm:$0xff] }
 0x37f   :  { %v11045_v60 = vpop.xlane.xlu1 %2218 }
 0x380   :  { %14898 = vst [vmem:[#allocation172_spill] sm:$0xff] %v11045_v60  ;;  %v11069_v60 = vpop.xlane.xlu0 %2210 }
 0x381   :  { %14906 = vst [vmem:[#allocation176_spill] sm:$0xff] %v11069_v60 }
 0x387   :  { %v2311_v41 = vpop.xlane.xlu0 %2310 }
 0x388   :  { %v2573_v22 = vsub.f32 %v14908_v7, %v2311_v41  ;;  %v2572_v57 = vsub.f32 %v14910_v1, %v2311_v41  ;;  %v14914_v7 = vld [vmem:[#allocation116_spill] sm:$0xff] }
 0x389   :  { %3758 = vrot.lane.b32.xlu0 %v11059_v14, %s8436_s19 }
 0x38a   :  { %v2838_v26 = vmul.f32 1.442695, %v2573_v22  ;;  %v2836_v58 = vmul.f32 1.442695, %v2572_v57 }
 0x38b   :  { %v11055_v49 = vpop.xlane.xlu1 %2398 }
 0x38c   :  { %7724 = vpow2.f32 %v2838_v26  ;;  %v14916_v26 = vld [vmem:[#allocation57_spill] sm:$0xff] }
 0x38d   :  { %7726 = vpow2.f32 %v2836_v58 }
 0x38f   :  { %v2315_v39 = vpop.xlane.xlu1 %2314  ;;  %v2319_v14 = vpop.xlane.xlu0 %2318 }
 0x390   :  { %v2575_v38 = vsub.f32 %v14911_v24, %v2315_v39  ;;  %v2574_v60 = vsub.f32 %v10502_v33, %v2315_v39  ;;  %v8398_v33 = vld [vmem:[%s14315_s2 + $0x98] sm:$0xff] }
 0x391   :  { %v11091_v57 = vadd.f32 %v8398_v33, %v14916_v26  ;;  %v14918_v39 = vld [vmem:[#allocation21_spill] sm:$0xff]  ;;  %v14925_v33 = vld [vmem:[#allocation122_spill] sm:$0xff] }
 0x392   :  { %v2842_v54 = vmul.f32 1.442695, %v2575_v38  ;;  %v2840_v62 = vmul.f32 1.442695, %v2574_v60 }
 0x393   :  { %2474 = vmax.xlane.f32.xlu1 %v2473_v55  ;;  %v11072_v16 = vpop.xlane.xlu1 %2402  ;;  %v2577_v55 = vsub.f32 %v14913_v12, %v2319_v14  ;;  %14917 = vst [vmem:[#allocation114_spill] sm:$0xff] %v11091_v57  ;;  %v2256_v12 = vsel %vm2131_vm3, %v11091_v57, -inf }
 0x394   :  { %14907 = vst [vmem:[#allocation177_spill] sm:$0xff] %v11072_v16  ;;  %v2323_v16 = vpop.xlane.xlu0 %2322  ;;  %7728 = vpow2.f32 %v2842_v54  ;;  %v14919_v54 = vld [vmem:[#allocation121_spill] sm:$0xff] }
 0x395   :  { %v2846_v1 = vmul.f32 1.442695, %v2577_v55  ;;  %v2579_v22 = vsub.f32 %v10514_v34, %v2323_v16  ;;  %7730 = vpow2.f32 %v2840_v62 }
 0x396   :  { %v11101_v55 = vpop.eup %7724 }
 0x397   :  { %v11075_v28 = vpop.xlane.xlu1 %2406  ;;  %7732 = vpow2.f32 %v2846_v1  ;;  %v2850_v60 = vmul.f32 1.442695, %v2579_v22  ;;  %14921 = vst [vmem:[#allocation57_spill] sm:$0xff] %v11101_v55 }
 0x398   :  { %14909 = vst [vmem:[#allocation109_spill] sm:$0xff] %v11075_v28  ;;  %v2576_v28 = vsub.f32 %v14914_v7, %v2319_v14  ;;  %v2578_v14 = vsub.f32 %v10523_v18, %v2323_v16  ;;  %v8399_v7 = vld [vmem:[%s14315_s2 + $0x90] sm:$0xff]  ;;  %v14924_v16 = vld [vmem:[#allocation126_spill] sm:$0xff] }
 0x39a   :  { %v2844_v58 = vmul.f32 1.442695, %v2576_v28  ;;  %v14922_v28 = vld [vmem:[#allocation56_spill] sm:$0xff]  ;;  %v2848_v18 = vmul.f32 1.442695, %v2578_v14 }
 0x39b   :  { %v11079_v48 = vpop.xlane.xlu1 %2410  ;;  %v2331_v34 = vpop.xlane.xlu0 %2330  ;;  %v11107_v62 = vadd.f32 %v8399_v7, %v14922_v28 }
 0x39c   :  { %14912 = vst [vmem:[#allocation110_spill] sm:$0xff] %v11079_v48  ;;  %7734 = vpow2.f32 %v2844_v58  ;;  %v2583_v26 = vsub.f32 %v14925_v33, %v2331_v34  ;;  %v14928_v58 = vld [vmem:[#allocation124_spill] sm:$0xff] }
 0x39d   :  { %14923 = vst [vmem:[#allocation21_spill] sm:$0xff] %v11107_v62  ;;  %v2257_v22 = vmax.f32 %v11107_v62, %v2256_v12  ;;  %7736 = vpow2.f32 %v2850_v60  ;;  %v2582_v14 = vsub.f32 %v14928_v58, %v2331_v34  ;;  %v14933_v34 = vld [vmem:[#allocation135_spill] sm:$0xff] }
 0x39e   :  { %7738 = vpow2.f32 %v2848_v18  ;;  %v2858_v7 = vmul.f32 1.442695, %v2583_v26 }
 0x39f   :  { %v2327_v53 = vpop.xlane.xlu1 %2326  ;;  %v2856_v18 = vmul.f32 1.442695, %v2582_v14 }
 0x3a0   :  { %v2581_v41 = vsub.f32 %v14919_v54, %v2327_v53  ;;  %v2580_v1 = vsub.f32 %v14924_v16, %v2327_v53 }
 0x3a2   :  { %v2852_v53 = vmul.f32 1.442695, %v2580_v1 }
 0x3a3   :  { %v11085_v24 = vpop.xlane.xlu1 %2414  ;;  %v2339_v54 = vpop.xlane.xlu0 %2338 }
 0x3a4   :  { %14915 = vst [vmem:[#allocation111_spill] sm:$0xff] %v11085_v24  ;;  %4323 = vrot.lane.b32.xlu1 %v14918_v39, %s8439_s17  ;;  %v2854_v39 = vmul.f32 1.442695, %v2581_v41  ;;  %v3188_v24 = vsel %vm2131_vm3, %v11101_v55, 0.0  ;;  %v14929_v41 = vld [vmem:[#allocation131_spill] sm:$0xff] }
 0x3a6   :  { %7740 = vpow2.f32 %v2854_v39 }
 0x3a7   :  { %v11097_v38 = vpop.xlane.xlu1 %2418  ;;  %7742 = vpow2.f32 %v2852_v53 }
 0x3a8   :  { %14920 = vst [vmem:[#allocation116_spill] sm:$0xff] %v11097_v38  ;;  %v11112_v38 = vpop.eup %7726  ;;  %2258 = vmax.xlane.f32.xlu0 %v2257_v22  ;;  %7744 = vpow2.f32 %v2858_v7  ;;  %v14934_v22 = vld [vmem:[#allocation128_spill] sm:$0xff] }
 0x3a9   :  { %14926 = vst [vmem:[#allocation121_spill] sm:$0xff] %v11112_v38  ;;  %v11116_v48 = vpop.eup %7728  ;;  %v3189_v12 = vadd.f32 %v11112_v38, %v3188_v24  ;;  %v2587_v26 = vsub.f32 %v14934_v22, %v2339_v54  ;;  %7746 = vpow2.f32 %v2856_v18 }
 0x3aa   :  { %14927 = vst [vmem:[#allocation56_spill] sm:$0xff] %v11116_v48  ;;  %v11123_v33 = vpop.eup %7730  ;;  %v3192_v62 = vsel %vm2131_vm3, %v11116_v48, 0.0  ;;  %v14938_v48 = vld [vmem:[#allocation130_spill] sm:$0xff] }
 0x3ab   :  { %v2335_v57 = vpop.xlane.xlu1 %2334  ;;  %v2347_v60 = vpop.xlane.xlu0 %2346  ;;  %14931 = vst [vmem:[#allocation122_spill] sm:$0xff] %v11123_v33  ;;  %v3193_v39 = vadd.f32 %v11123_v33, %v3192_v62  ;;  %v2586_v38 = vsub.f32 %v14938_v48, %v2339_v54 }
 0x3ac   :  { %v2585_v28 = vsub.f32 %v14929_v41, %v2335_v57  ;;  %v11127_v55 = vpop.eup %7732  ;;  %3190 = vadd.xlane.f32.xlu0 %v3189_v12  ;;  %v2584_v1 = vsub.f32 %v14933_v34, %v2335_v57  ;;  %v14940_v57 = vld [vmem:[#allocation134_spill] sm:$0xff] }
 0x3ad   :  { %14932 = vst [vmem:[#allocation124_spill] sm:$0xff] %v11127_v55  ;;  %v3196_v14 = vsel %vm2131_vm3, %v11127_v55, 0.0  ;;  %v2591_v7 = vsub.f32 %v14940_v57, %v2347_v60  ;;  %v2864_v48 = vmul.f32 1.442695, %v2586_v38 }
 0x3ae   :  { %v2862_v24 = vmul.f32 1.442695, %v2585_v28  ;;  %v2860_v12 = vmul.f32 1.442695, %v2584_v1  ;;  %v2866_v28 = vmul.f32 1.442695, %v2587_v26 }
 0x3af   :  { %v11121_v16 = vpop.xlane.xlu1 %2422  ;;  %v14941_v1 = vld [vmem:[#allocation136_spill] sm:$0xff] }
 0x3b0   :  { %14930 = vst [vmem:[#allocation126_spill] sm:$0xff] %v11121_v16  ;;  %v11136_v16 = vpop.eup %7734  ;;  %3194 = vadd.xlane.f32.xlu0 %v3193_v39  ;;  %7748 = vpow2.f32 %v2862_v24  ;;  %v2874_v39 = vmul.f32 1.442695, %v2591_v7  ;;  %v2590_v26 = vsub.f32 %v14941_v1, %v2347_v60  ;;  %v14950_v1 = vld [vmem:[#allocation36_spill] sm:$0xff] }
 0x3b1   :  { %14937 = vst [vmem:[#allocation128_spill] sm:$0xff] %v11136_v16  ;;  %v11141_v53 = vpop.eup %7736  ;;  %v3197_v62 = vadd.f32 %v11136_v16, %v3196_v14  ;;  %7750 = vpow2.f32 %v2860_v12  ;;  %v14942_v14 = vld [vmem:[#allocation25_spill] sm:$0xff]  ;;  %v8400_v12 = vld [vmem:[%s14315_s2 + $0x88] sm:$0xff] }
 0x3b2   :  { %14939 = vst [vmem:[#allocation130_spill] sm:$0xff] %v11141_v53  ;;  %v3200_v54 = vsel %vm2131_vm3, %v11141_v53, 0.0  ;;  %v2501_v57 = vsub.f32 %v14942_v14, %v11030_v8  ;;  %7752 = vpow2.f32 %v2866_v28  ;;  %v14947_v28 = vld [vmem:[#allocation53_spill] sm:$0xff]  ;;  %v2503_v14 = vsub.f32 %v14950_v1, %v11035_v36 }
 0x3b3   :  { %v11132_v58 = vpop.xlane.xlu0 %2438  ;;  %v11134_v41 = vpop.xlane.xlu1 %2426  ;;  %7754 = vpow2.f32 %v2864_v48 }
 0x3b4   :  { %14935 = vst [vmem:[#allocation131_spill] sm:$0xff] %v11132_v58  ;;  %14936 = vst [vmem:[#allocation135_spill] sm:$0xff] %v11134_v41  ;;  %v11147_v58 = vpop.eup %7738  ;;  %3198 = vadd.xlane.f32.xlu0 %v3197_v62  ;;  %7756 = vpow2.f32 %v2874_v39  ;;  %v11175_v62 = vadd.f32 %v8400_v12, %v14947_v28  ;;  %v14952_v12 = vld [vmem:[#allocation139_spill] sm:$0xff] }
 0x3b5   :  { %v11152_v55 = vpop.eup %7740  ;;  %v3201_v38 = vadd.f32 %v11147_v58, %v3200_v54  ;;  %v2872_v54 = vmul.f32 1.442695, %v2590_v26 }
 0x3b6   :  { %v11163_v33 = vpop.eup %7742 }
 0x3b7   :  { %v11145_v34 = vpop.xlane.xlu0 %2354  ;;  %v2343_v22 = vpop.xlane.xlu1 %2342  ;;  %14945 = vst [vmem:[#allocation25_spill] sm:$0xff] %v11163_v33 }
 0x3b8   :  { %v2588_v41 = vsub.f32 %v10654_v23, %v2343_v22  ;;  %v2589_v18 = vsub.f32 %v10622_v25, %v2343_v22  ;;  %v3204_v25 = vsel %vm2131_vm3, %v11152_v55, 0.0  ;;  %v11167_v60 = vpop.eup %7744  ;;  %3202 = vadd.xlane.f32.xlu0 %v3201_v38  ;;  %v14949_v22 = vld [vmem:[#allocation40_spill] sm:$0xff]  ;;  %v2595_v28 = vsub.f32 %v14952_v12, %v11145_v34 }
 0x3b9   :  { %v2502_v48 = vsub.f32 %v14949_v22, %v11035_v36  ;;  %v3208_v22 = vsel %vm2131_vm3, %v11167_v60, 0.0  ;;  %v2252_v12 = vsel %vm2131_vm3, %v11175_v62, -inf }
 0x3ba   :  { %v2868_v24 = vmul.f32 1.442695, %v2588_v41  ;;  %v2870_v16 = vmul.f32 1.442695, %v2589_v18  ;;  %v14946_v41 = vld [vmem:[#allocation29_spill] sm:$0xff] }
 0x3bb   :  { %v11159_v53 = vpop.xlane.xlu0 %2446  ;;  %v11161_v23 = vpop.xlane.xlu1 %2430  ;;  %v2500_v7 = vsub.f32 %v14946_v41, %v11030_v8  ;;  %14948 = vst [vmem:[#allocation29_spill] sm:$0xff] %v11175_v62  ;;  %v2694_v18 = vmul.f32 1.442695, %v2501_v57  ;;  %v3205_v8 = vadd.f32 %v11163_v33, %v3204_v25  ;;  %v14953_v57 = vld [vmem:[#allocation39_spill] sm:$0xff]  ;;  %v2696_v1 = vmul.f32 1.442695, %v2502_v48 }
 0x3bc   :  { %14943 = vst [vmem:[#allocation134_spill] sm:$0xff] %v11159_v53  ;;  %14944 = vst [vmem:[#allocation136_spill] sm:$0xff] %v11161_v23  ;;  %7758 = vpow2.f32 %v2868_v24  ;;  %v11184_v41 = vpop.eup %7746  ;;  %v2698_v53 = vmul.f32 1.442695, %v2503_v14 }
 0x3bd   :  { %7760 = vpow2.f32 %v2870_v16  ;;  %v11190_v26 = vpop.eup %7748  ;;  %v2692_v24 = vmul.f32 1.442695, %v2500_v7  ;;  %3206 = vadd.xlane.f32.xlu0 %v3205_v8  ;;  %v8401_v16 = vld [vmem:[%s14315_s2 + $0x80] sm:$0xff]  ;;  %v3209_v23 = vadd.f32 %v11184_v41, %v3208_v22 }
 0x3be   :  { %v11197_v25 = vadd.f32 %v8401_v16, %v14953_v57  ;;  %7762 = vpow2.f32 %v2872_v54  ;;  %v11202_v8 = vpop.eup %7750  ;;  %v3212_v33 = vsel %vm2131_vm3, %v11190_v26, 0.0 }
 0x3bf   :  { %v2363_v39 = vpop.xlane.xlu0 %2362  ;;  %v11182_v38 = vpop.xlane.xlu1 %2434  ;;  %7764 = vpow2.f32 %v2694_v18  ;;  %v8402_v18 = vld [vmem:[%s14315_s2 + $0x148] sm:$0xff] }
 0x3c0   :  { %14951 = vst [vmem:[#allocation53_spill] sm:$0xff] %v11182_v38  ;;  %v2599_v36 = vsub.f32 %v10667_v46, %v2363_v39  ;;  %14954 = vst [vmem:[#allocation40_spill] sm:$0xff] %v11197_v25  ;;  %v2882_v46 = vmul.f32 1.442695, %v2595_v28  ;;  %v11210_v54 = vpop.eup %7752  ;;  %v11216_v14 = vadd.f32 %v8402_v18, %v10861_v2  ;;  %7766 = vpow2.f32 %v2692_v24 }
 0x3c1   :  { %v2594_v28 = vsub.f32 %v10657_v37, %v11145_v34  ;;  %3210 = vadd.xlane.f32.xlu0 %v3209_v23  ;;  %v11220_v57 = vpop.eup %7754  ;;  %7768 = vpow2.f32 %v2696_v1  ;;  %v3213_v2 = vadd.f32 %v11202_v8, %v3212_v33  ;;  %v3216_v34 = vsel %vm2131_vm3, %v11210_v54, 0.0 }
 0x3c2   :  { %14956 = vst [vmem:[#allocation139_spill] sm:$0xff] %v11216_v14  ;;  %v2890_v22 = vmul.f32 1.442695, %v2599_v36  ;;  %v11224_v62 = vpop.eup %7756  ;;  %7770 = vpow2.f32 %v2698_v53 }
 0x3c3   :  { %v2351_v7 = vpop.xlane.xlu1 %2350  ;;  %v11204_v38 = vpop.xlane.xlu0 %2454  ;;  %7772 = vpow2.f32 %v2882_v46  ;;  %v3217_v46 = vadd.f32 %v11220_v57, %v3216_v34 }
 0x3c4   :  { %14955 = vst [vmem:[#allocation36_spill] sm:$0xff] %v11204_v38  ;;  %v2592_v16 = vsub.f32 %v10705_v59, %v2351_v7  ;;  %v2593_v48 = vsub.f32 %v10689_v13, %v2351_v7  ;;  %v2253_v59 = vmax.f32 %v11197_v25, %v2252_v12  ;;  %v2598_v13 = vsub.f32 %v10699_v51, %v2363_v39 }
 0x3c5   :  { %v2476_v51 = vsel %vm2131_vm3, %v11216_v14, -inf  ;;  %v2880_v39 = vmul.f32 1.442695, %v2594_v28  ;;  %7774 = vpow2.f32 %v2890_v22  ;;  %3214 = vadd.xlane.f32.xlu0 %v3213_v2  ;;  %v8404_v2 = vld [vmem:[%s14315_s2 + $0x140] sm:$0xff] }
 0x3c6   :  { %v2876_v7 = vmul.f32 1.442695, %v2592_v16  ;;  %v2878_v18 = vmul.f32 1.442695, %v2593_v48  ;;  %v11229_v38 = vpop.eup %7758  ;;  %v2888_v53 = vmul.f32 1.442695, %v2598_v13 }
 0x3c7   :  { %v11227_v24 = vpop.xlane.xlu1 %2442  ;;  %v2371_v37 = vpop.xlane.xlu0 %2370  ;;  %v3224_v13 = vsel %vm2131_vm3, %v11224_v62, 0.0 }
 0x3c8   :  { %14957 = vst [vmem:[#allocation39_spill] sm:$0xff] %v11227_v24  ;;  %2254 = vmax.xlane.f32.xlu1 %v2253_v59  ;;  %v11233_v23 = vpop.eup %7760  ;;  %v2603_v33 = vsub.f32 %v10714_v0, %v2371_v37  ;;  %7776 = vpow2.f32 %v2876_v7  ;;  %v2602_v36 = vsub.f32 %v10747_v42, %v2371_v37  ;;  %v8403_v0 = vld [vmem:[%s14315_s2 + $0x158] sm:$0xff] }
 0x3c9   :  { %v3220_v1 = vsel %vm2131_vm3, %v11233_v23, 0.0  ;;  %7778 = vpow2.f32 %v2878_v18  ;;  %v11243_v59 = vpop.eup %7762  ;;  %v11249_v28 = vadd.f32 %v8403_v0, %v10879_v52  ;;  %v11261_v18 = vadd.f32 %v8404_v2, %v10847_v63  ;;  %3218 = vadd.xlane.f32.xlu0 %v3217_v46 }
 0x3ca   :  { %v2898_v12 = vmul.f32 1.442695, %v2603_v33  ;;  %v3221_v48 = vadd.f32 %v11229_v38, %v3220_v1  ;;  %v11255_v7 = vpop.eup %7764  ;;  %7780 = vpow2.f32 %v2880_v39 }
 0x3cb   :  { %v2359_v16 = vpop.xlane.xlu1 %2358  ;;  %14958 = vst [vmem:[#allocation178_spill] sm:$0xff] %v11249_v28  ;;  %14959 = vst [vmem:[#allocation179_spill] sm:$0xff] %v11261_v18  ;;  %7782 = vpow2.f32 %v2888_v53  ;;  %v11265_v37 = vpop.eup %7766  ;;  %v2477_v34 = vmax.f32 %v11261_v18, %v2476_v51  ;;  %v2480_v39 = vsel %vm2131_vm3, %v11249_v28, -inf  ;;  %v3044_v53 = vsel %vm2131_vm3, %v11255_v7, 0.0  ;;  %v8405_v51 = vld [vmem:[%s14315_s2 + $0x150] sm:$0xff] }
 0x3cc   :  { %v2596_v42 = vsub.f32 %v10760_v30, %v2359_v16  ;;  %v2597_v22 = vsub.f32 %v10734_v15, %v2359_v16  ;;  %v11263_v52 = vpop.xlane.xlu0 %2462  ;;  %3222 = vadd.xlane.f32.xlu1 %v3221_v48  ;;  %v2896_v30 = vmul.f32 1.442695, %v2602_v36  ;;  %7784 = vpow2.f32 %v2898_v12  ;;  %v11271_v63 = vpop.eup %7768 }
 0x3cd   :  { %14960 = vst [vmem:[#allocation180_spill] sm:$0xff] %v11263_v52  ;;  %v3225_v16 = vadd.f32 %v11243_v59, %v3224_v13  ;;  %v11277_v36 = vpop.eup %7770  ;;  %v11283_v12 = vadd.f32 %v8405_v51, %v10873_v35  ;;  %2478 = vmax.xlane.f32.xlu0 %v2477_v34  ;;  %v3045_v2 = vadd.f32 %v11265_v37, %v3044_v53 }
 0x3ce   :  { %v2884_v15 = vmul.f32 1.442695, %v2596_v42  ;;  %v2886_v33 = vmul.f32 1.442695, %v2597_v22  ;;  %v11285_v48 = vpop.eup %7772 }
 0x3cf   :  { %v11268_v1 = vpop.xlane.xlu1 %2450  ;;  %14962 = vst [vmem:[#allocation182_spill] sm:$0xff] %v11283_v12  ;;  %v11289_v22 = vpop.eup %7774  ;;  %v2481_v13 = vmax.f32 %v11283_v12, %v2480_v39 }
 0x3d0   :  { %14961 = vst [vmem:[#allocation181_spill] sm:$0xff] %v11268_v1  ;;  %7786 = vpow2.f32 %v2884_v15  ;;  %v2379_v46 = vpop.xlane.xlu0 %2378  ;;  %3226 = vadd.xlane.f32.xlu1 %v3225_v16 }
 0x3d1   :  { %7788 = vpow2.f32 %v2886_v33  ;;  %v2606_v0 = vsub.f32 %v10800_v3, %v2379_v46  ;;  %v2607_v42 = vsub.f32 %v10763_v29, %v2379_v46  ;;  %3046 = vadd.xlane.f32.xlu0 %v3045_v2 }
 0x3d2   :  { %7790 = vpow2.f32 %v2896_v30  ;;  %v11293_v35 = vpop.eup %7776  ;;  %v3048_v30 = vsel %vm2131_vm3, %v11277_v36, 0.0 }
 0x3d3   :  { %v2367_v15 = vpop.xlane.xlu1 %2366  ;;  %v2904_v34 = vmul.f32 1.442695, %v2606_v0  ;;  %v2906_v33 = vmul.f32 1.442695, %v2607_v42  ;;  %v11298_v51 = vpop.eup %7778  ;;  %v3049_v42 = vadd.f32 %v11271_v63, %v3048_v30 }
 0x3d4   :  { %v2600_v16 = vsub.f32 %v10812_v19, %v2367_v15  ;;  %v2601_v3 = vsub.f32 %v10778_v27, %v2367_v15  ;;  %2482 = vmax.xlane.f32.xlu1 %v2481_v13  ;;  %v3228_v39 = vsel %vm2131_vm3, %v11298_v51, 0.0  ;;  %v11303_v53 = vpop.eup %7780  ;;  %v3232_v27 = vsel %vm2131_vm3, %v11285_v48, 0.0  ;;  %v3015_v15 = vpop.xlane.xlu0 %3014 }
 0x3d5   :  { %7792 = vpow2.f32 %v2906_v33  ;;  %v3229_v0 = vadd.f32 %v11293_v35, %v3228_v39  ;;  %v11309_v12 = vpop.eup %7782  ;;  %v3240_v13 = vsel %vm2131_vm3, %v11289_v22, 0.0  ;;  %v3233_v30 = vadd.f32 %v11303_v53, %v3232_v27 }
 0x3d6   :  { %v2892_v29 = vmul.f32 1.442695, %v2600_v16  ;;  %v2894_v46 = vmul.f32 1.442695, %v2601_v3  ;;  %7794 = vpow2.f32 %v2904_v34  ;;  %v11315_v2 = vpop.eup %7784  ;;  %v3241_v3 = vadd.f32 %v11309_v12, %v3240_v13 }
 0x3d7   :  { %v11306_v19 = vpop.xlane.xlu1 %2458  ;;  %3230 = vadd.xlane.f32.xlu0 %v3229_v0  ;;  %v3248_v0 = vsel %vm2131_vm3, %v11315_v2, 0.0 }
 0x3d8   :  { %14963 = vst [vmem:[#allocation183_spill] sm:$0xff] %v11306_v19  ;;  %7796 = vpow2.f32 %v2894_v46  ;;  %3050 = vadd.xlane.f32.xlu1 %v3049_v42 }
 0x3d9   :  { %7798 = vpow2.f32 %v2892_v29  ;;  %v11331_v29 = vpop.xlane.xlu0 %2470 }
 0x3da   :  { %v11317_v33 = vpop.eup %7786  ;;  %14964 = vst [vmem:[#allocation184_spill] sm:$0xff] %v11331_v29 }
 0x3db   :  { %v11319_v16 = vpop.eup %7788  ;;  %v2375_v34 = vpop.xlane.xlu1 %2374  ;;  %3234 = vadd.xlane.f32.xlu0 %v3233_v30 }
 0x3dc   :  { %v11323_v39 = vpop.eup %7790  ;;  %v2604_v28 = vsub.f32 %v10865_v61, %v2375_v34  ;;  %v2605_v18 = vsub.f32 %v10826_v20, %v2375_v34  ;;  %v3236_v46 = vsel %vm2131_vm3, %v11319_v16, 0.0  ;;  %3242 = vadd.xlane.f32.xlu1 %v3241_v3 }
 0x3dd   :  { %v3237_v42 = vadd.f32 %v11317_v33, %v3236_v46  ;;  %v3249_v61 = vadd.f32 %v11323_v39, %v3248_v0  ;;  %v11339_v34 = vpop.xlane.xlu0 %2386 }
 0x3de   :  { %v2900_v27 = vmul.f32 1.442695, %v2604_v28  ;;  %v2902_v13 = vmul.f32 1.442695, %v2605_v18 }
 0x3df   :  { %v11334_v14 = vpop.xlane.xlu1 %2466  ;;  %v11337_v20 = vpop.eup %7792  ;;  %3238 = vadd.xlane.f32.xlu0 %v3237_v42 }
 0x3e0   :  { %14965 = vst [vmem:[#allocation185_spill] sm:$0xff] %v11334_v14  ;;  %7800 = vpow2.f32 %v2900_v27  ;;  %14966 = vst [vmem:[#allocation186_spill] sm:$0xff] %v11337_v20  ;;  %3250 = vadd.xlane.f32.xlu1 %v3249_v61  ;;  %v11341_v25 = vpop.eup %7794  ;;  %v3256_v28 = vsel %vm2131_vm3, %v11337_v20, 0.0 }
 0x3e1   :  { %7802 = vpow2.f32 %v2902_v13  ;;  %14967 = vst [vmem:[#allocation187_spill] sm:$0xff] %v11341_v25  ;;  %v3019_v0 = vpop.xlane.xlu0 %3018  ;;  %v3257_v29 = vadd.f32 %v11341_v25, %v3256_v28 }
 0x3e2   :  { %v11343_v30 = vpop.eup %7796  ;;  %7804 = vrcp.f32 %v3015_v15 }
 0x3e3   :  { %v2383_v3 = vpop.xlane.xlu1 %2382  ;;  %v11347_v18 = vpop.eup %7798  ;;  %v3244_v13 = vsel %vm2131_vm3, %v11343_v30, 0.0  ;;  %7806 = vrcp.f32 %v3019_v0 }
 0x3e4   :  { %v2608_v46 = vsub.f32 %v10915_v47, %v2383_v3  ;;  %v2609_v27 = vsub.f32 %v10883_v45, %v2383_v3  ;;  %3258 = vadd.xlane.f32.xlu1 %v3257_v29  ;;  %v3245_v52 = vadd.f32 %v11347_v18, %v3244_v13 }
 0x3e5   :  { %v2391_v19 = vpop.xlane.xlu0 %2390 }
 0x3e6   :  { %v2908_v42 = vmul.f32 1.442695, %v2608_v46  ;;  %v2910_v61 = vmul.f32 1.442695, %v2609_v27  ;;  %3246 = vadd.xlane.f32.xlu0 %v3245_v52 }
 0x3e7   :  { %v11355_v14 = vpop.xlane.xlu1 %2246 }
 0x3e8   :  { %14968 = vst [vmem:[#allocation188_spill] sm:$0xff] %v11355_v14  ;;  %7808 = vpow2.f32 %v2908_v42  ;;  %v14971_v42 = vmov 0  }
 0x3e9   :  { %7810 = vpow2.f32 %v2910_v61  ;;  %v3023_v3 = vpop.xlane.xlu0 %3022 }
 0x3ea   :  { %v11357_v47 = vpop.eup %7800 }
 0x3eb   :  { %14969 = vst [vmem:[#allocation189_spill] sm:$0xff] %v11357_v47  ;;  %v11359_v45 = vpop.eup %7802  ;;  %v11361_v15 = vpop.xlane.xlu1 %2250 }
 0x3ec   :  { %14970 = vst [vmem:[#allocation190_spill] sm:$0xff] %v11361_v15  ;;  %v3252_v28 = vsel %vm2131_vm3, %v11359_v45, 0.0  ;;  %v7805_v27 = vpop.eup %7804 }
 0x3ed   :  { %v3253_v29 = vadd.f32 %v11357_v47, %v3252_v28  ;;  %v2395_v0 = vpop.xlane.xlu0 %2394  ;;  %v7807_v52 = vpop.eup %7806  ;;  %v3453_v61 = vmul.f32 %v7805_v27, %v10819_v5  ;;  %v3452_v47 = vmul.f32 %v7805_v27, %v10838_v32 }
 0x3ee   :  { %v3455_v15 = vmul.f32 %v7807_v52, %v10911_v43  ;;  %v2614_v32 = vsub.f32 %v10982_v11, %v2395_v0  ;;  %v14976_v11 = vld [vmem:[#allocation112_spill] sm:$0xff] }
 0x3ef   :  { %v3757_v46 = vpop.permute.xlu1 %3756  ;;  %3254 = vadd.xlane.f32.xlu0 %v3253_v29 }
 0x3f0   :  { %3823 = vmatpush1.bf16.msra.mxu1 %v3757_v46  ;;  %v3629_v1 = vpack.c.bf16 %v3455_v15, %v3453_v61  ;;  %v14974_v46 = vld [vmem:[#allocation18_spill] sm:$0xff]  ;;  %v2611_v15 = vsub.f32 %v10869_v6, %v11339_v34  ;;  %v2610_v61 = vsub.f32 %v10904_v56, %v11339_v34  ;;  %v2612_v6 = vsub.f32 %v10957_v9, %v2391_v19 }
 0x3f1   :  { %3824 = vmatprep.subr.bf16.mxu1 %v14971_v42  ;;  %v3027_v24 = vpop.xlane.xlu0 %3026  ;;  %v2615_v56 = vsub.f32 %v10968_v44, %v2395_v0  ;;  %v14975_v44 = vld [vmem:[#allocation23_spill] sm:$0xff]  ;;  %v2920_v27 = vmul.f32 1.442695, %v2614_v32  ;;  %v2617_v0 = vsub.f32 %v14976_v11, %v11055_v49 }
 0x3f2   :  { %v11367_v13 = vpop.eup %7808  ;;  %6737 = vmatprep.mubr.msk.bf16.mxu1 %vm2131_vm3, %v3629_v1  ;;  %7812 = vrcp.f32 %v3027_v24  ;;  %v2914_v1 = vmul.f32 1.442695, %v2611_v15  ;;  %v2912_v24 = vmul.f32 1.442695, %v2610_v61  ;;  %v14985_v32 = vld [vmem:[#allocation59_spill] sm:$0xff] }
 0x3f3   :  { %14972 = vst [vmem:[#allocation191_spill] sm:$0xff] %v11367_v13  ;;  %v11371_v14 = vpop.eup %7810  ;;  %7814 = vrcp.f32 %v3023_v3  ;;  %v2922_v9 = vmul.f32 1.442695, %v2615_v56  ;;  %v14983_v56 = vld [vmem:[#allocation43_spill] sm:$0xff] }
 0x3f4   :  { %14973 = vst [vmem:[#allocation192_spill] sm:$0xff] %v11371_v14  ;;  %v3260_v28 = vsel %vm2131_vm3, %v11371_v14, 0.0 }
 0x3f5   :  { %v3261_v29 = vadd.f32 %v11367_v13, %v3260_v28  ;;  %4327 = vrot.lane.b32.xlu1 %v14974_v46, %s8439_s17  ;;  %v3031_v25 = vpop.xlane.xlu0 %3030  ;;  %v2613_v13 = vsub.f32 %v10923_v4, %v2391_v19 }
 0x3f7   :  { %3262 = vadd.xlane.f32.xlu0 %v3261_v29  ;;  %v3454_v29 = vmul.f32 %v7807_v52, %v10920_v10  ;;  %v2918_v20 = vmul.f32 1.442695, %v2613_v13 }
 0x3f9   :  { %v3035_v5 = vpop.xlane.xlu0 %3034  ;;  %v3628_v4 = vpack.c.bf16 %v3454_v29, %v3452_v47 }
 0x3fa   :  { %7816 = vrcp.f32 %v3035_v5 }
 0x3fb   :  { %7818 = vrcp.f32 %v3031_v25 }
 0x3fc   :  { %v7813_v14 = vpop.eup %7812  ;;  %7820 = vpow2.f32 %v2914_v1  ;;  %v14978_v1 = vld [vmem:[#allocation113_spill] sm:$0xff] }
 0x3fd   :  { %v3039_v43 = vpop.xlane.xlu0 %3038  ;;  %v7815_v46 = vpop.eup %7814  ;;  %v3459_v3 = vmul.f32 %v7813_v14, %v10978_v17  ;;  %v2916_v17 = vmul.f32 1.442695, %v2612_v6  ;;  %v3458_v19 = vmul.f32 %v7813_v14, %v10986_v31  ;;  %v2616_v31 = vsub.f32 %v14978_v1, %v11055_v49  ;;  %v14982_v6 = vld [vmem:[#allocation54_spill] sm:$0xff] }
 0x3fe   :  { %v3457_v25 = vmul.f32 %v7815_v46, %v10946_v21  ;;  %v3456_v52 = vmul.f32 %v7815_v46, %v10964_v40  ;;  %v2926_v14 = vmul.f32 1.442695, %v2617_v0  ;;  %v14979_v40 = vld [vmem:[#allocation177_spill] sm:$0xff]  ;;  %v14980_v46 = vld [vmem:[#allocation115_spill] sm:$0xff]  ;;  %v14988_v0 = vld [vmem:[#allocation94_spill] sm:$0xff] }
 0x3ff   :  { %v2619_v29 = vsub.f32 %v14980_v46, %v14979_v40 }
 0x400   :  { %v3631_v10 = vpack.c.bf16 %v3459_v3, %v3457_v25  ;;  %v14981_v3 = vld [vmem:[#allocation28_spill] sm:$0xff] }
 0x401   :  { %v3043_v28 = vpop.xlane.xlu0 %3042  ;;  %v2930_v11 = vmul.f32 1.442695, %v2619_v29 }
 0x402   :  { %7822 = vrcp.f32 %v3043_v28 }
 0x403   :  { %7824 = vpow2.f32 %v2912_v24 }
 0x404   :  { %v7817_v34 = vpop.eup %7816  ;;  %7826 = vrcp.f32 %v3039_v43  ;;  %v3630_v43 = vpack.c.bf16 %v3458_v19, %v3456_v52  ;;  %v14986_v19 = vld [vmem:[#allocation118_spill] sm:$0xff] }
 0x405   :  { %v3759_v5 = vpop.permute.xlu0 %3758  ;;  %7828 = vpow2.f32 %v2918_v20  ;;  %v7819_v21 = vpop.eup %7818  ;;  %v3463_v47 = vmul.f32 %v7817_v34, %v10997_v50  ;;  %v14977_v20 = vld [vmem:[#allocation32_spill] sm:$0xff]  ;;  %v3462_v25 = vmul.f32 %v7817_v34, %v14983_v56 }
 0x406   :  { %3825 = vmatpush1.bf16.msra.mxu1 %v3759_v5  ;;  %7830 = vpow2.f32 %v2916_v17  ;;  %v3461_v13 = vmul.f32 %v7819_v21, %v14977_v20  ;;  %v11401_v15 = vpop.eup %7820  ;;  %v2505_v5 = vsub.f32 %v14982_v6, %v14981_v3 }
 0x407   :  { %4202 = vmatprep.subr.bf16.mxu1 %v14971_v42  ;;  %7832 = vpow2.f32 %v2922_v9  ;;  %v2504_v9 = vsub.f32 %v14985_v32, %v14981_v3 }
 0x408   :  { %v3633_v61 = vpack.c.bf16 %v3463_v47, %v3461_v13  ;;  %7834 = vpow2.f32 %v2920_v27  ;;  %v2618_v47 = vsub.f32 %v14986_v19, %v14979_v40  ;;  %v14987_v27 = vld [vmem:[#allocation17_spill] sm:$0xff]  ;;  %v2702_v46 = vmul.f32 1.442695, %v2505_v5  ;;  %v14993_v5 = vld [vmem:[#allocation60_spill] sm:$0xff]  ;;  %v14994_v19 = vld [vmem:[#allocation14_spill] sm:$0xff] }
 0x409   :  { %3837 = vmatmul.mubr.bf16.vlgmr.msra.gmra.mrb[88].mxu1 %v3628_v4  ;;  %v3264_v4 = vsel %vm2131_vm3, %v11401_v15, 0.0  ;;  %v3460_v52 = vmul.f32 %v7819_v21, %v14987_v27  ;;  %7836 = vpow2.f32 %v2926_v14  ;;  %v8406_v21 = vld [vmem:[%s14315_s2 + $0xb8] sm:$0xff]  ;;  %v14991_v14 = vld [vmem:[#allocation66_spill] sm:$0xff] }
 0x40a   :  { %6738 = vmatprep.mubr.msk.bf16.mxu1 %vm2131_vm3, %v3631_v10  ;;  %v14984_v10 = vld [vmem:[#allocation99_spill] sm:$0xff]  ;;  %v11437_v29 = vadd.f32 %v8406_v21, %v14991_v14  ;;  %v2928_v56 = vmul.f32 1.442695, %v2618_v47 }
 0x40b   :  { %v3632_v6 = vpack.c.bf16 %v3462_v25, %v3460_v52  ;;  %v14995_v47 = vld [vmem:[#allocation31_spill] sm:$0xff] }
 0x40c   :  { %v7823_v28 = vpop.eup %7822  ;;  %14992 = vst [vmem:[#allocation18_spill] sm:$0xff] %v11437_v29 }
 0x40d   :  { %4325 = vrot.lane.b32.xlu0 %v14975_v44, %s8439_s17  ;;  %v11405_v50 = vpop.eup %7824  ;;  %v3467_v17 = vmul.f32 %v7823_v28, %v14984_v10  ;;  %v2924_v44 = vmul.f32 1.442695, %v2616_v31  ;;  %v3466_v27 = vmul.f32 %v7823_v28, %v14994_v19  ;;  %v8407_v28 = vld [vmem:[%s14315_s2 + $0xa8] sm:$0xff] }
 0x40e   :  { %v7827_v24 = vpop.eup %7826  ;;  %v3265_v20 = vadd.f32 %v11405_v50, %v3264_v4  ;;  %v2700_v4 = vmul.f32 1.442695, %v2504_v9 }
 0x40f   :  { %v11415_v49 = vpop.eup %7828  ;;  %v3465_v34 = vmul.f32 %v7827_v24, %v14988_v0  ;;  %7838 = vpow2.f32 %v2924_v44  ;;  %v3464_v52 = vmul.f32 %v7827_v24, %v14995_v47  ;;  %v8408_v24 = vld [vmem:[%s14315_s2 + $0xb0] sm:$0xff] }
 0x410   :  { %v11425_v13 = vpop.eup %7830  ;;  %v3268_v31 = vsel %vm2131_vm3, %v11415_v49, 0.0  ;;  %7840 = vpow2.f32 %v2930_v11  ;;  %v2264_v11 = vsel %vm2131_vm3, %v11437_v29, -inf }
 0x411   :  { %3845 = vmatmul.mubr.bf16.gmra.mrb[92].mxu1 %v3630_v43  ;;  %v14989_v43 = vld [vmem:[#allocation4_spill] sm:$0xff]  ;;  %v11431_v3 = vpop.eup %7832  ;;  %v3635_v40 = vpack.c.bf16 %v3467_v17, %v3465_v34  ;;  %v3269_v10 = vadd.f32 %v11425_v13, %v3268_v31  ;;  %7842 = vpow2.f32 %v2702_v46  ;;  %v3634_v34 = vpack.c.bf16 %v3466_v27, %v3464_v52 }
 0x412   :  { %6739 = vmatprep.mubr.msk.bf16.mxu1 %vm2131_vm3, %v3633_v61  ;;  %v14990_v61 = vld [vmem:[#allocation58_spill] sm:$0xff]  ;;  %v2506_v25 = vsub.f32 %v14993_v5, %v14989_v43  ;;  %v11443_v17 = vpop.eup %7834  ;;  %v3272_v44 = vsel %vm2131_vm3, %v11431_v3, 0.0  ;;  %7844 = vpow2.f32 %v2928_v56 }
 0x413   :  { %v2507_v1 = vsub.f32 %v14990_v61, %v14989_v43  ;;  %7846 = vpow2.f32 %v2700_v4  ;;  %v3273_v9 = vadd.f32 %v11443_v17, %v3272_v44  ;;  %v14996_v43 = vld [vmem:[#allocation62_spill] sm:$0xff] }
 0x414   :  { %v2704_v0 = vmul.f32 1.442695, %v2506_v25  ;;  %v11458_v61 = vadd.f32 %v8407_v28, %v14996_v43  ;;  %v8409_v5 = vld [vmem:[%s14315_s2 + $0xa0] sm:$0xff]  ;;  %v15002_v25 = vld [vmem:[#allocation61_spill] sm:$0xff] }
 0x415   :  { %v2706_v32 = vmul.f32 1.442695, %v2507_v1  ;;  %v14998_v1 = vld [vmem:[#allocation65_spill] sm:$0xff]  ;;  %v11481_v4 = vadd.f32 %v8409_v5, %v15002_v25 }
 0x416   :  { %14997 = vst [vmem:[#allocation23_spill] sm:$0xff] %v11458_v61  ;;  %v11464_v46 = vadd.f32 %v8408_v24, %v14998_v1  ;;  %v2260_v14 = vsel %vm2131_vm3, %v11458_v61, -inf  ;;  %v15008_v1 = vld [vmem:[#allocation26_spill] sm:$0xff] }
 0x417   :  { %7848 = vpow2.f32 %v2706_v32  ;;  %15003 = vst [vmem:[#allocation177_spill] sm:$0xff] %v11481_v4  ;;  %v2261_v19 = vmax.f32 %v11481_v4, %v2260_v14  ;;  %v15017_v4 = vld [vmem:[#allocation56_spill] sm:$0xff] }
 0x418   :  { %14999 = vst [vmem:[#allocation112_spill] sm:$0xff] %v11464_v46  ;;  %7850 = vpow2.f32 %v2704_v0 }
 0x419   :  { %3266 = vadd.xlane.f32.xlu1 %v3265_v20  ;;  %3853 = vmatmul.mubr.bf16.gmra.mrb[96].mxu1 %v3632_v6  ;;  %v11452_v20 = vpop.eup %7836  ;;  %v2265_v6 = vmax.f32 %v11464_v46, %v2264_v11  ;;  %v15016_v46 = vld [vmem:[#allocation57_spill] sm:$0xff] }
 0x41a   :  { %6740 = vmatprep.mubr.msk.bf16.mxu1 %vm2131_vm3, %v3635_v40  ;;  %v11467_v31 = vpop.eup %7838  ;;  %v3276_v40 = vsel %vm2131_vm3, %v11452_v20, 0.0 }
 0x41b   :  { %v11471_v21 = vpop.eup %7840 }
 0x41c   :  { %15000 = vst [vmem:[#allocation32_spill] sm:$0xff] %v11471_v21  ;;  %v11475_v56 = vpop.eup %7842  ;;  %v3280_v27 = vsel %vm2131_vm3, %v11471_v21, 0.0 }
 0x41d   :  { %3270 = vadd.xlane.f32.xlu1 %v3269_v10  ;;  %15001 = vst [vmem:[#allocation113_spill] sm:$0xff] %v11475_v56  ;;  %v3277_v10 = vadd.f32 %v11467_v31, %v3276_v40  ;;  %v11484_v32 = vpop.eup %7844  ;;  %v3052_v47 = vsel %vm2131_vm3, %v11475_v56, 0.0 }
 0x41e   :  { %v11489_v44 = vpop.eup %7846  ;;  %v3281_v0 = vadd.f32 %v11484_v32, %v3280_v27  ;;  %v15012_v27 = vld [vmem:[#allocation64_spill] sm:$0xff] }
 0x41f   :  { %15004 = vst [vmem:[#allocation115_spill] sm:$0xff] %v11489_v44 }
 0x420   :  { %v11506_v25 = vpop.xlane.xlu1 %2474 }
 0x421   :  { %3274 = vadd.xlane.f32.xlu1 %v3273_v9  ;;  %3861 = vmatmul.mubr.bf16.gmra.mrb[100].mxu1 %v3634_v34  ;;  %v11493_v52 = vpop.eup %7848  ;;  %v3053_v9 = vadd.f32 %v11489_v44, %v3052_v47  ;;  %15009 = vst [vmem:[#allocation99_spill] sm:$0xff] %v11506_v25 }
 0x422   :  { %15005 = vst [vmem:[#allocation28_spill] sm:$0xff] %v11493_v52  ;;  %v11497_v11 = vpop.eup %7850  ;;  %v3056_v34 = vsel %vm2131_vm3, %v11493_v52, 0.0 }
 0x423   :  { %15006 = vst [vmem:[#allocation54_spill] sm:$0xff] %v11497_v11  ;;  %v3057_v28 = vadd.f32 %v11497_v11, %v3056_v34  ;;  %v15020_v11 = vld [vmem:[#allocation120_spill] sm:$0xff] }
 0x424   :  { %v4324_v21 = vpop.permute.xlu1 %4323 }
 0x425   :  { %2266 = vmax.xlane.f32.xlu1 %v2265_v6 }
 0x429   :  { %3278 = vadd.xlane.f32.xlu1 %v3277_v10  ;;  %v15010_v10 = vld [vmem:[#allocation30_spill] sm:$0xff] }
 0x42c   :  { %2262 = vmax.xlane.f32.xlu0 %v2261_v19  ;;  %v15011_v19 = vld [vmem:[#allocation55_spill] sm:$0xff] }
 0x42d   :  { %3282 = vadd.xlane.f32.xlu1 %v3281_v0  ;;  %v2508_v47 = vsub.f32 %v15012_v27, %v15011_v19 }
 0x430   :  { %3054 = vadd.xlane.f32.xlu0 %v3053_v9  ;;  %v15013_v9 = vld [vmem:[#allocation63_spill] sm:$0xff] }
 0x431   :  { %v2509_v34 = vsub.f32 %v15013_v9, %v15011_v19  ;;  %v15021_v19 = vld [vmem:[#allocation110_spill] sm:$0xff]  ;;  %v15022_v9 = vld [vmem:[#allocation119_spill] sm:$0xff] }
 0x433   :  { %v2710_v56 = vmul.f32 1.442695, %v2509_v34 }
 0x434   :  { %3058 = vadd.xlane.f32.xlu0 %v3057_v28  ;;  %v15014_v28 = vld [vmem:[#allocation121_spill] sm:$0xff] }
 0x435   :  { %v11502_v43 = vpop.xlane.xlu0 %2258 }
 0x436   :  { %15007 = vst [vmem:[#allocation43_spill] sm:$0xff] %v11502_v43  ;;  %v15019_v43 = vld [vmem:[#allocation117_spill] sm:$0xff] }
 0x439   :  { %v3191_v24 = vpop.xlane.xlu0 %3190 }
 0x43a   :  { %7852 = vrcp.f32 %v3191_v24 }
 0x43d   :  { %v3195_v6 = vpop.xlane.xlu0 %3194 }
 0x43e   :  { %4331 = vrot.lane.b32.xlu1 %v15008_v1, %s8439_s17  ;;  %7854 = vrcp.f32 %v3195_v6  ;;  %v15015_v1 = vld [vmem:[#allocation122_spill] sm:$0xff] }
 0x441   :  { %v3199_v40 = vpop.xlane.xlu0 %3198 }
 0x442   :  { %7856 = vrcp.f32 %v3199_v40 }
 0x444   :  { %v7853_v5 = vpop.eup %7852 }
 0x445   :  { %v3203_v14 = vpop.xlane.xlu0 %3202  ;;  %v3540_v24 = vmul.f32 %v7853_v5, %v15014_v28  ;;  %v3541_v29 = vmul.f32 %v7853_v5, %v15016_v46  ;;  %v2623_v28 = vsub.f32 %v15022_v9, %v15021_v19 }
 0x446   :  { %7858 = vrcp.f32 %v3203_v14  ;;  %v15018_v14 = vld [vmem:[#allocation109_spill] sm:$0xff] }
 0x447   :  { %v2621_v25 = vsub.f32 %v15019_v43, %v15018_v14  ;;  %v2620_v27 = vsub.f32 %v15020_v11, %v15018_v14  ;;  %v15027_v14 = vld [vmem:[#allocation171_spill] sm:$0xff] }
 0x448   :  { %v7855_v0 = vpop.eup %7854 }
 0x449   :  { %v3542_v6 = vmul.f32 %v7855_v0, %v15015_v1  ;;  %v3543_v61 = vmul.f32 %v7855_v0, %v15017_v4  ;;  %v2934_v4 = vmul.f32 1.442695, %v2621_v25  ;;  %v2932_v43 = vmul.f32 1.442695, %v2620_v27  ;;  %v15025_v1 = vld [vmem:[#allocation130_spill] sm:$0xff] }
 0x44a   :  { %4329 = vrot.lane.b32.xlu0 %v15010_v10, %s8439_s17  ;;  %v3207_v40 = vpop.xlane.xlu0 %3206  ;;  %v2708_v10 = vmul.f32 1.442695, %v2508_v47  ;;  %v15023_v47 = vld [vmem:[#allocation123_spill] sm:$0xff] }
 0x44b   :  { %v3673_v44 = vpack.c.bf16 %v3543_v61, %v3541_v29  ;;  %v3672_v52 = vpack.c.bf16 %v3542_v6, %v3540_v24  ;;  %7860 = vrcp.f32 %v3207_v40  ;;  %v2622_v11 = vsub.f32 %v15023_v47, %v15021_v19  ;;  %v15026_v6 = vld [vmem:[#allocation128_spill] sm:$0xff] }
 0x44c   :  { %v7857_v5 = vpop.eup %7856  ;;  %v2938_v61 = vmul.f32 1.442695, %v2623_v28  ;;  %v15029_v47 = vld [vmem:[#allocation68_spill] sm:$0xff] }
 0x44d   :  { %6748 = vmatprep.mubr.msk.bf16.mxu0 %vm2131_vm3, %v3673_v44  ;;  %v15024_v44 = vld [vmem:[#allocation124_spill] sm:$0xff] }
 0x44e   :  { %v3211_v46 = vpop.xlane.xlu0 %3210  ;;  %4046 = vmatmul.mubr.bf16.vlgmr.msra.gmra.mrb[132].mxu0 %v3672_v52  ;;  %v3545_v24 = vmul.f32 %v7857_v5, %v15024_v44  ;;  %v3544_v52 = vmul.f32 %v7857_v5, %v15026_v6  ;;  %v2510_v5 = vsub.f32 %v15029_v47, %v15027_v14 }
 0x44f   :  { %7862 = vrcp.f32 %v3211_v46  ;;  %4390 = vmatpush1.bf16.msra.mxu0 %v4324_v21  ;;  %v2936_v21 = vmul.f32 1.442695, %v2622_v11 }
 0x450   :  { %7864 = vpow2.f32 %v2708_v10  ;;  %v7859_v29 = vpop.eup %7858  ;;  %4391 = vmatprep.subr.bf16.mxu0 %v14971_v42  ;;  %v15028_v10 = vld [vmem:[#allocation67_spill] sm:$0xff] }
 0x451   :  { %7866 = vpow2.f32 %v2710_v56  ;;  %v3547_v25 = vmul.f32 %v7859_v29, %v15025_v1  ;;  %v3546_v40 = vmul.f32 %v7859_v29, %v11147_v58  ;;  %v2511_v27 = vsub.f32 %v15028_v10, %v15027_v14  ;;  %v8410_v58 = vld [vmem:[%s14315_s2 + $0xd8] sm:$0xff]  ;;  %v8411_v14 = vld [vmem:[%s14315_s2 + $0xc8] sm:$0xff]  ;;  %v15032_v10 = vld [vmem:[#allocation70_spill] sm:$0xff] }
 0x452   :  { %v3215_v34 = vpop.xlane.xlu0 %3214  ;;  %7868 = vpow2.f32 %v2934_v4  ;;  %v15030_v4 = vld [vmem:[#allocation74_spill] sm:$0xff]  ;;  %v15031_v1 = vld [vmem:[#allocation25_spill] sm:$0xff] }
 0x453   :  { %7870 = vpow2.f32 %v2932_v43  ;;  %v3675_v56 = vpack.c.bf16 %v3547_v25, %v3545_v24  ;;  %v3674_v19 = vpack.c.bf16 %v3546_v40, %v3544_v52  ;;  %v11543_v43 = vadd.f32 %v8410_v58, %v15030_v4 }
 0x454   :  { %7872 = vrcp.f32 %v3215_v34  ;;  %v2714_v11 = vmul.f32 1.442695, %v2511_v27  ;;  %v11559_v27 = vadd.f32 %v8411_v14, %v15032_v10 }
 0x455   :  { %v11527_v0 = vpop.xlane.xlu1 %2254  ;;  %7874 = vpow2.f32 %v2938_v61  ;;  %6749 = vmatprep.mubr.msk.bf16.mxu0 %vm2131_vm3, %v3675_v56  ;;  %v7861_v46 = vpop.eup %7860 }
 0x456   :  { %v3219_v9 = vpop.xlane.xlu0 %3218  ;;  %4054 = vmatmul.mubr.bf16.gmra.mrb[136].mxu0 %v3674_v19  ;;  %v3549_v44 = vmul.f32 %v7861_v46, %v11152_v55  ;;  %v3548_v25 = vmul.f32 %v7861_v46, %v15031_v1  ;;  %15033 = vst [vmem:[#allocation59_spill] sm:$0xff] %v11559_v27  ;;  %v2272_v55 = vsel %vm2131_vm3, %v11543_v43, -inf  ;;  %v8413_v1 = vld [vmem:[%s14315_s2 + $0xc0] sm:$0xff] }
 0x457   :  { %7876 = vrcp.f32 %v3219_v9  ;;  %v15034_v9 = vld [vmem:[#allocation73_spill] sm:$0xff] }
 0x458   :  { %7878 = vpow2.f32 %v2936_v21  ;;  %v2712_v21 = vmul.f32 1.442695, %v2510_v5 }
 0x459   :  { %v3223_v28 = vpop.xlane.xlu1 %3222  ;;  %v7863_v29 = vpop.eup %7862 }
 0x45a   :  { %7880 = vrcp.f32 %v3223_v28  ;;  %v11545_v61 = vpop.eup %7864  ;;  %v11547_v34 = vpop.xlane.xlu0 %2478  ;;  %v3551_v24 = vmul.f32 %v7863_v29, %v11167_v60  ;;  %v3550_v6 = vmul.f32 %v7863_v29, %v11184_v41  ;;  %v8412_v41 = vld [vmem:[%s14315_s2 + $0xd0] sm:$0xff]  ;;  %v2268_v29 = vsel %vm2131_vm3, %v11559_v27, -inf }
 0x45b   :  { %v11553_v40 = vpop.eup %7866  ;;  %v11569_v28 = vadd.f32 %v8412_v41, %v15034_v9 }
 0x45c   :  { %v3677_v60 = vpack.c.bf16 %v3551_v24, %v3549_v44  ;;  %v3676_v56 = vpack.c.bf16 %v3550_v6, %v3548_v25  ;;  %v11563_v19 = vpop.eup %7868  ;;  %v15036_v25 = vld [vmem:[#allocation69_spill] sm:$0xff] }
 0x45d   :  { %v3227_v52 = vpop.xlane.xlu1 %3226  ;;  %15035 = vst [vmem:[#allocation118_spill] sm:$0xff] %v11569_v28  ;;  %v11571_v46 = vpop.eup %7870  ;;  %v2273_v4 = vmax.f32 %v11569_v28, %v2272_v55  ;;  %v3284_v44 = vsel %vm2131_vm3, %v11563_v19, 0.0  ;;  %v11587_v6 = vadd.f32 %v8413_v1, %v15036_v25 }
 0x45e   :  { %7882 = vrcp.f32 %v3227_v52  ;;  %6750 = vmatprep.mubr.msk.bf16.mxu0 %vm2131_vm3, %v3677_v60  ;;  %v3047_v47 = vpop.xlane.xlu0 %3046  ;;  %v7873_v58 = vpop.eup %7872  ;;  %v3285_v27 = vadd.f32 %v11571_v46, %v3284_v44 }
 0x45f   :  { %7884 = vpow2.f32 %v2714_v11  ;;  %4062 = vmatmul.mubr.bf16.gmra.mrb[140].mxu0 %v3676_v56  ;;  %v11577_v11 = vpop.eup %7874  ;;  %15037 = vst [vmem:[#allocation17_spill] sm:$0xff] %v11587_v6  ;;  %v3553_v10 = vmul.f32 %v7873_v58, %v11190_v26  ;;  %v3552_v55 = vmul.f32 %v7873_v58, %v11202_v8  ;;  %v2269_v9 = vmax.f32 %v11587_v6, %v2268_v29  ;;  %v15108_v6 = vld [vmem:[#allocation176_spill] sm:$0xff] }
 0x460   :  { %7886 = vpow2.f32 %v2712_v21  ;;  %v3288_v25 = vsel %vm2131_vm3, %v11577_v11, 0.0  ;;  %v3060_v26 = vsel %vm2131_vm3, %v11553_v40, 0.0 }
 0x461   :  { %v11574_v5 = vpop.xlane.xlu1 %2482  ;;  %v7877_v24 = vpop.eup %7876  ;;  %7888 = vrcp.f32 %v3047_v47  ;;  %v3061_v44 = vadd.f32 %v11545_v61, %v3060_v26 }
 0x462   :  { %2274 = vmax.xlane.f32.xlu1 %v2273_v4  ;;  %v11589_v52 = vpop.eup %7878  ;;  %v3555_v21 = vmul.f32 %v7877_v24, %v11210_v54  ;;  %v3554_v60 = vmul.f32 %v7877_v24, %v11220_v57 }
 0x463   :  { %v3289_v29 = vadd.f32 %v11589_v52, %v3288_v25 }
 0x464   :  { %v3231_v14 = vpop.xlane.xlu0 %3230  ;;  %v7881_v41 = vpop.eup %7880  ;;  %v3679_v1 = vpack.c.bf16 %v3555_v21, %v3553_v10  ;;  %v3678_v4 = vpack.c.bf16 %v3554_v60, %v3552_v55 }
 0x465   :  { %v3051_v56 = vpop.xlane.xlu1 %3050  ;;  %7890 = vrcp.f32 %v3231_v14  ;;  %v3557_v47 = vmul.f32 %v7881_v41, %v11233_v23  ;;  %v3556_v10 = vmul.f32 %v7881_v41, %v11229_v38 }
 0x466   :  { %3286 = vadd.xlane.f32.xlu1 %v3285_v27  ;;  %6751 = vmatprep.mubr.msk.bf16.mxu0 %vm2131_vm3, %v3679_v1  ;;  %7892 = vrcp.f32 %v3051_v56 }
 0x467   :  { %4070 = vmatmul.mubr.bf16.gmra.mrb[144].mxu0 %v3678_v4 }
 0x468   :  { %v7883_v28 = vpop.eup %7882  ;;  %v3235_v54 = vpop.xlane.xlu0 %3234 }
 0x469   :  { %v11601_v8 = vpop.eup %7884  ;;  %2270 = vmax.xlane.f32.xlu0 %v2269_v9  ;;  %v3243_v57 = vpop.xlane.xlu1 %3242  ;;  %v3559_v58 = vmul.f32 %v7883_v28, %v11224_v62  ;;  %7894 = vrcp.f32 %v3235_v54  ;;  %v3558_v27 = vmul.f32 %v7883_v28, %v11243_v59 }
 0x46a   :  { %v11609_v14 = vpop.eup %7886  ;;  %7896 = vrcp.f32 %v3243_v57  ;;  %3290 = vadd.xlane.f32.xlu1 %v3289_v29  ;;  %v3064_v23 = vsel %vm2131_vm3, %v11601_v8, 0.0 }
 0x46b   :  { %v3681_v24 = vpack.c.bf16 %v3559_v58, %v3557_v47  ;;  %v3680_v62 = vpack.c.bf16 %v3558_v27, %v3556_v10  ;;  %v3065_v59 = vadd.f32 %v11609_v14, %v3064_v23  ;;  %v7889_v55 = vpop.eup %7888  ;;  %v15038_v10 = vld [vmem:[#allocation33_spill] sm:$0xff] }
 0x46c   :  { %v3239_v21 = vpop.xlane.xlu0 %3238  ;;  %v3469_v38 = vmul.f32 %v7889_v55, %v11255_v7  ;;  %v3468_v1 = vmul.f32 %v7889_v55, %v11265_v37 }
 0x46d   :  { %3062 = vadd.xlane.f32.xlu0 %v3061_v44  ;;  %6752 = vmatprep.mubr.msk.bf16.mxu0 %vm2131_vm3, %v3681_v24  ;;  %7898 = vrcp.f32 %v3239_v21  ;;  %v3251_v28 = vpop.xlane.xlu1 %3250 }
 0x46e   :  { %7900 = vrcp.f32 %v3251_v28 }
 0x46f   :  { %v7891_v60 = vpop.eup %7890  ;;  %4078 = vmatmul.mubr.bf16.gmra.mrb[148].mxu0 %v3680_v62 }
 0x470   :  { %v7893_v56 = vpop.eup %7892  ;;  %v3561_v26 = vmul.f32 %v7891_v60, %v11298_v51  ;;  %v3560_v57 = vmul.f32 %v7891_v60, %v11293_v35 }
 0x471   :  { %3066 = vadd.xlane.f32.xlu0 %v3065_v59  ;;  %v3471_v41 = vmul.f32 %v7893_v56, %v11277_v36  ;;  %v3470_v4 = vmul.f32 %v7893_v56, %v11271_v63  ;;  %v3259_v24 = vpop.xlane.xlu1 %3258 }
 0x473   :  { %v7895_v9 = vpop.eup %7894  ;;  %v3247_v25 = vpop.xlane.xlu0 %3246  ;;  %v3637_v29 = vpack.c.bf16 %v3471_v41, %v3469_v38  ;;  %v3636_v27 = vpack.c.bf16 %v3470_v4, %v3468_v1  ;;  %v15042_v4 = vld [vmem:[#allocation125_spill] sm:$0xff] }
 0x474   :  { %v3563_v54 = vmul.f32 %v7895_v9, %v11285_v48  ;;  %v3562_v47 = vmul.f32 %v7895_v9, %v11303_v53  ;;  %v7897_v58 = vpop.eup %7896  ;;  %7902 = vrcp.f32 %v3247_v25 }
 0x475   :  { %6741 = vmatprep.mubr.msk.bf16.mxu1 %vm2131_vm3, %v3637_v29  ;;  %v3567_v63 = vmul.f32 %v7897_v58, %v11289_v22  ;;  %7904 = vrcp.f32 %v3259_v24  ;;  %v3566_v23 = vmul.f32 %v7897_v58, %v11309_v12  ;;  %v15039_v12 = vld [vmem:[#allocation34_spill] sm:$0xff]  ;;  %v15049_v24 = vld [vmem:[#allocation71_spill] sm:$0xff] }
 0x476   :  { %v3683_v7 = vpack.c.bf16 %v3563_v54, %v3561_v26  ;;  %v3682_v44 = vpack.c.bf16 %v3562_v47, %v3560_v57  ;;  %3869 = vmatmul.mubr.bf16.gmra.mrb[104].mxu1 %v3636_v27  ;;  %v4328_v26 = vpop.permute.xlu1 %4327  ;;  %v15044_v57 = vld [vmem:[#allocation129_spill] sm:$0xff]  ;;  %v15046_v27 = vld [vmem:[#allocation116_spill] sm:$0xff] }
 0x477   :  { %v7899_v36 = vpop.eup %7898 }
 0x478   :  { %6753 = vmatprep.mubr.msk.bf16.mxu0 %vm2131_vm3, %v3683_v7  ;;  %v3565_v37 = vmul.f32 %v7899_v36, %v11319_v16  ;;  %v3564_v51 = vmul.f32 %v7899_v36, %v11317_v33  ;;  %v7901_v53 = vpop.eup %7900  ;;  %v15047_v7 = vld [vmem:[#allocation127_spill] sm:$0xff]  ;;  %v15048_v36 = vld [vmem:[#allocation100_spill] sm:$0xff] }
 0x479   :  { %4086 = vmatmul.mubr.bf16.gmra.mrb[152].mxu0 %v3682_v44  ;;  %v3571_v22 = vmul.f32 %v7901_v53, %v11315_v2  ;;  %v3570_v60 = vmul.f32 %v7901_v53, %v11323_v39  ;;  %v15040_v2 = vld [vmem:[#allocation186_spill] sm:$0xff]  ;;  %v15043_v39 = vld [vmem:[#allocation189_spill] sm:$0xff]  ;;  %v2627_v44 = vsub.f32 %v15047_v7, %v15046_v27  ;;  %v15051_v53 = vld [vmem:[#allocation72_spill] sm:$0xff] }
 0x47a   :  { %v3685_v48 = vpack.c.bf16 %v3567_v63, %v3565_v37  ;;  %v3684_v62 = vpack.c.bf16 %v3566_v23, %v3564_v51  ;;  %v2513_v37 = vsub.f32 %v15049_v24, %v15048_v36  ;;  %v15060_v7 = vld [vmem:[#allocation77_spill] sm:$0xff] }
 0x47b   :  { %4335 = vrot.lane.b32.xlu1 %v15038_v10, %s8439_s17  ;;  %v2512_v10 = vsub.f32 %v15051_v53, %v15048_v36  ;;  %v2946_v23 = vmul.f32 1.442695, %v2627_v44 }
 0x47c   :  { %v3255_v35 = vpop.xlane.xlu0 %3254  ;;  %6754 = vmatprep.mubr.msk.bf16.mxu0 %vm2131_vm3, %v3685_v48 }
 0x47d   :  { %7906 = vrcp.f32 %v3255_v35  ;;  %v15050_v35 = vld [vmem:[#allocation132_spill] sm:$0xff] }
 0x47e   :  { %v7903_v21 = vpop.eup %7902  ;;  %v2626_v51 = vsub.f32 %v15050_v35, %v15046_v27  ;;  %v8417_v27 = vld [vmem:[%s14315_s2 + $0xe0] sm:$0xff] }
 0x47f   :  { %v3569_v16 = vmul.f32 %v7903_v21, %v11343_v30  ;;  %v3568_v33 = vmul.f32 %v7903_v21, %v11347_v18  ;;  %v7905_v55 = vpop.eup %7904  ;;  %v15041_v18 = vld [vmem:[#allocation111_spill] sm:$0xff]  ;;  %v2718_v21 = vmul.f32 1.442695, %v2513_v37  ;;  %v11702_v44 = vadd.f32 %v8417_v27, %v15060_v7 }
 0x480   :  { %v3575_v41 = vmul.f32 %v7905_v55, %v15040_v2  ;;  %v2625_v25 = vsub.f32 %v15042_v4, %v15041_v18  ;;  %v2624_v47 = vsub.f32 %v15044_v57, %v15041_v18  ;;  %v15057_v18 = vld [vmem:[#allocation78_spill] sm:$0xff] }
 0x481   :  { %4094 = vmatmul.mubr.bf16.gmra.mrb[156].mxu0 %v3684_v62  ;;  %v3687_v59 = vpack.c.bf16 %v3571_v22, %v3569_v16  ;;  %v3686_v38 = vpack.c.bf16 %v3570_v60, %v3568_v33  ;;  %v15052_v62 = vld [vmem:[#allocation173_spill] sm:$0xff]  ;;  %v15053_v16 = vld [vmem:[#allocation75_spill] sm:$0xff]  ;;  %v2716_v33 = vmul.f32 1.442695, %v2512_v10  ;;  %15061 = vst [vmem:[#allocation58_spill] sm:$0xff] %v11702_v44 }
 0x482   :  { %v2942_v29 = vmul.f32 1.442695, %v2625_v25  ;;  %v2940_v48 = vmul.f32 1.442695, %v2624_v47  ;;  %v2515_v22 = vsub.f32 %v15053_v16, %v15052_v62  ;;  %v8416_v25 = vld [vmem:[%s14315_s2 + $0xf0] sm:$0xff] }
 0x483   :  { %6755 = vmatprep.mubr.msk.bf16.mxu0 %vm2131_vm3, %v3687_v59  ;;  %v2944_v59 = vmul.f32 1.442695, %v2626_v51 }
 0x484   :  { %v11635_v28 = vpop.xlane.xlu0 %3262  ;;  %7908 = vpow2.f32 %v2942_v29 }
 0x485   :  { %7910 = vpow2.f32 %v2940_v48 }
 0x486   :  { %7912 = vpow2.f32 %v2946_v23 }
 0x487   :  { %v7907_v56 = vpop.eup %7906  ;;  %4333 = vrot.lane.b32.xlu0 %v15039_v12, %s8439_s17  ;;  %v15055_v12 = vld [vmem:[#allocation82_spill] sm:$0xff]  ;;  %7914 = vpow2.f32 %v2718_v21 }
 0x488   :  { %v4326_v9 = vpop.permute.xlu0 %4325  ;;  %v3573_v30 = vmul.f32 %v7907_v56, %v11359_v45  ;;  %v3572_v54 = vmul.f32 %v7907_v56, %v15043_v39  ;;  %v15045_v45 = vld [vmem:[#allocation187_spill] sm:$0xff]  ;;  %v8414_v56 = vld [vmem:[%s14315_s2 + $0xf8] sm:$0xff]  ;;  %7916 = vpow2.f32 %v2944_v59 }
 0x489   :  { %4392 = vmatpush1.bf16.msra.mxu0 %v4326_v9  ;;  %v3574_v58 = vmul.f32 %v7905_v55, %v15045_v45  ;;  %v15054_v55 = vld [vmem:[#allocation76_spill] sm:$0xff]  ;;  %v11669_v9 = vadd.f32 %v8414_v56, %v15055_v12  ;;  %7918 = vpow2.f32 %v2716_v33 }
 0x48a   :  { %4102 = vmatmul.mubr.bf16.gmra.mrb[160].mxu0 %v3686_v38  ;;  %v3689_v1 = vpack.c.bf16 %v3575_v41, %v3573_v30  ;;  %4393 = vmatprep.subr.bf16.mxu0 %v14971_v42  ;;  %v2514_v60 = vsub.f32 %v15054_v55, %v15052_v62  ;;  %v2722_v38 = vmul.f32 1.442695, %v2515_v22 }
 0x48b   :  { %v3688_v63 = vpack.c.bf16 %v3574_v58, %v3572_v54  ;;  %15056 = vst [vmem:[#allocation94_spill] sm:$0xff] %v11669_v9  ;;  %v2280_v2 = vsel %vm2131_vm3, %v11669_v9, -inf }
 0x48c   :  { %6756 = vmatprep.mubr.msk.bf16.mxu0 %vm2131_vm3, %v3689_v1  ;;  %v2720_v30 = vmul.f32 1.442695, %v2514_v60  ;;  %7920 = vpow2.f32 %v2722_v38  ;;  %v8415_v1 = vld [vmem:[%s14315_s2 + $0xe8] sm:$0xff]  ;;  %v15062_v60 = vld [vmem:[#allocation192_spill] sm:$0xff] }
 0x48d   :  { %4394 = vmatpush1.bf16.msra.mxu0 %v4328_v26  ;;  %v11679_v4 = vadd.f32 %v8415_v1, %v15057_v18  ;;  %v15058_v26 = vld [vmem:[#allocation81_spill] sm:$0xff]  ;;  %v15063_v38 = vld [vmem:[#allocation191_spill] sm:$0xff] }
 0x48e   :  { %4395 = vmatprep.subr.bf16.mxu0 %v14971_v42  ;;  %v11673_v41 = vpop.eup %7908  ;;  %v11685_v39 = vadd.f32 %v8416_v25, %v15058_v26  ;;  %7922 = vpow2.f32 %v2720_v30 }
 0x48f   :  { %v11688_v57 = vpop.eup %7910  ;;  %v3292_v47 = vsel %vm2131_vm3, %v11673_v41, 0.0  ;;  %v2276_v58 = vsel %vm2131_vm3, %v11679_v4, -inf  ;;  %7924 = vrcp.f32 %v11635_v28 }
 0x490   :  { %15059 = vst [vmem:[#allocation4_spill] sm:$0xff] %v11685_v39  ;;  %v2281_v54 = vmax.f32 %v11685_v39, %v2280_v2  ;;  %v11692_v45 = vpop.eup %7912  ;;  %v3293_v36 = vadd.f32 %v11688_v57, %v3292_v47  ;;  %v2277_v37 = vmax.f32 %v11702_v44, %v2276_v58  ;;  %v15064_v47 = vld [vmem:[#allocation42_spill] sm:$0xff] }
 0x491   :  { %v11696_v29 = vpop.eup %7914 }
 0x492   :  { %4110 = vmatmul.mubr.bf16.gmra.mrb[164].mxu0 %v3688_v63  ;;  %v11705_v24 = vpop.eup %7916  ;;  %v3296_v63 = vsel %vm2131_vm3, %v11692_v45, 0.0  ;;  %v3068_v35 = vsel %vm2131_vm3, %v11696_v29, 0.0 }
 0x493   :  { %v11710_v48 = vpop.eup %7918  ;;  %v3297_v53 = vadd.f32 %v11705_v24, %v3296_v63 }
 0x494   :  { %v3069_v23 = vadd.f32 %v11710_v48, %v3068_v35 }
 0x496   :  { %v11714_v51 = vpop.eup %7920 }
 0x497   :  { %v3072_v62 = vsel %vm2131_vm3, %v11714_v51, 0.0 }
 0x498   :  { %v11719_v21 = vpop.eup %7922 }
 0x499   :  { %v3073_v22 = vadd.f32 %v11719_v21, %v3072_v62  ;;  %v7925_v28 = vpop.eup %7924  ;;  %v15067_v62 = vld [vmem:[#allocation133_spill] sm:$0xff] }
 0x49a   :  { %v3577_v56 = vmul.f32 %v7925_v28, %v15062_v60  ;;  %v3576_v30 = vmul.f32 %v7925_v28, %v15063_v38  ;;  %v15068_v28 = vld [vmem:[#allocation32_spill] sm:$0xff] }
 0x49f   :  { %2282 = vmax.xlane.f32.xlu1 %v2281_v54 }
 0x4a3   :  { %3294 = vadd.xlane.f32.xlu1 %v3293_v36 }
 0x4a6   :  { %2278 = vmax.xlane.f32.xlu0 %v2277_v37  ;;  %v3267_v10 = vpop.xlane.xlu1 %3266 }
 0x4a7   :  { %7926 = vrcp.f32 %v3267_v10  ;;  %3298 = vadd.xlane.f32.xlu1 %v3297_v53  ;;  %v15065_v10 = vld [vmem:[#allocation38_spill] sm:$0xff] }
 0x4aa   :  { %3070 = vadd.xlane.f32.xlu0 %v3069_v23  ;;  %v3271_v16 = vpop.xlane.xlu1 %3270 }
 0x4ab   :  { %7928 = vrcp.f32 %v3271_v16 }
 0x4ae   :  { %3074 = vadd.xlane.f32.xlu0 %v3073_v22  ;;  %v3275_v59 = vpop.xlane.xlu1 %3274 }
 0x4af   :  { %7930 = vrcp.f32 %v3275_v59 }
 0x4b1   :  { %v7927_v33 = vpop.eup %7926 }
 0x4b2   :  { %v11724_v55 = vpop.xlane.xlu1 %2266  ;;  %v3579_v12 = vmul.f32 %v7927_v33, %v11401_v15  ;;  %v3578_v2 = vmul.f32 %v7927_v33, %v11405_v50 }
 0x4b4   :  { %v3691_v1 = vpack.c.bf16 %v3579_v12, %v3577_v56  ;;  %v3690_v18 = vpack.c.bf16 %v3578_v2, %v3576_v30  ;;  %v15069_v30 = vld [vmem:[#allocation138_spill] sm:$0xff] }
 0x4b5   :  { %v7929_v26 = vpop.eup %7928 }
 0x4b6   :  { %6757 = vmatprep.mubr.msk.bf16.mxu0 %vm2131_vm3, %v3691_v1  ;;  %v3279_v25 = vpop.xlane.xlu1 %3278  ;;  %v3581_v15 = vmul.f32 %v7929_v26, %v11415_v49  ;;  %v3580_v50 = vmul.f32 %v7929_v26, %v11425_v13  ;;  %v15066_v13 = vld [vmem:[#allocation126_spill] sm:$0xff]  ;;  %v15070_v1 = vld [vmem:[#allocation16_spill] sm:$0xff]  ;;  %v15073_v26 = vld [vmem:[#allocation137_spill] sm:$0xff] }
 0x4b7   :  { %4118 = vmatmul.mubr.bf16.gmra.mrb[168].mxu0 %v3690_v18  ;;  %7932 = vrcp.f32 %v3279_v25  ;;  %v2628_v2 = vsub.f32 %v15069_v30, %v15066_v13 }
 0x4b8   :  { %4339 = vrot.lane.b32.xlu1 %v15064_v47, %s8439_s17 }
 0x4b9   :  { %v11731_v54 = vpop.xlane.xlu0 %2262  ;;  %v7931_v58 = vpop.eup %7930 }
 0x4ba   :  { %v3283_v27 = vpop.xlane.xlu1 %3282  ;;  %v3583_v7 = vmul.f32 %v7931_v58, %v11431_v3  ;;  %v3582_v36 = vmul.f32 %v7931_v58, %v11443_v17  ;;  %v2629_v17 = vsub.f32 %v15067_v62, %v15066_v13  ;;  %v15074_v58 = vld [vmem:[#allocation113_spill] sm:$0xff] }
 0x4bb   :  { %7934 = vrcp.f32 %v3283_v27 }
 0x4bc   :  { %v3693_v63 = vpack.c.bf16 %v3583_v7, %v3581_v15  ;;  %v3692_v35 = vpack.c.bf16 %v3582_v36, %v3580_v50  ;;  %v2950_v25 = vmul.f32 1.442695, %v2629_v17  ;;  %v15075_v15 = vld [vmem:[#allocation28_spill] sm:$0xff]  ;;  %v15076_v50 = vld [vmem:[#allocation115_spill] sm:$0xff] }
 0x4bd   :  { %v3055_v37 = vpop.xlane.xlu0 %3054 }
 0x4be   :  { %7936 = vrcp.f32 %v3055_v37  ;;  %6758 = vmatprep.mubr.msk.bf16.mxu0 %vm2131_vm3, %v3693_v63  ;;  %v4332_v60 = vpop.permute.xlu1 %4331  ;;  %v15077_v37 = vld [vmem:[#allocation54_spill] sm:$0xff] }
 0x4bf   :  { %4126 = vmatmul.mubr.bf16.gmra.mrb[172].mxu0 %v3692_v35  ;;  %v2948_v35 = vmul.f32 1.442695, %v2628_v2  ;;  %v8418_v2 = vld [vmem:[%s14315_s2 + $0x118] sm:$0xff] }
 0x4c1   :  { %v3059_v53 = vpop.xlane.xlu0 %3058  ;;  %v7933_v49 = vpop.eup %7932 }
 0x4c2   :  { %7938 = vrcp.f32 %v3059_v53  ;;  %v11746_v16 = vmul.f32 %v7933_v49, %v11467_v31  ;;  %v3585_v59 = vmul.f32 %v7933_v49, %v11452_v20  ;;  %v15072_v20 = vld [vmem:[#allocation135_spill] sm:$0xff]  ;;  %v15078_v53 = vld [vmem:[#allocation141_spill] sm:$0xff] }
 0x4c3   :  { %v2631_v47 = vsub.f32 %v15073_v26, %v15072_v20  ;;  %7940 = vpow2.f32 %v2950_v25  ;;  %v8419_v26 = vld [vmem:[%s14315_s2 + $0x108] sm:$0xff] }
 0x4c4   :  { %4337 = vrot.lane.b32.xlu0 %v15065_v10, %s8439_s17  ;;  %v2630_v10 = vsub.f32 %v15078_v53, %v15072_v20  ;;  %7942 = vpow2.f32 %v2948_v35 }
 0x4c5   :  { %v4330_v23 = vpop.permute.xlu0 %4329  ;;  %v7935_v3 = vpop.eup %7934  ;;  %v2954_v62 = vmul.f32 1.442695, %v2631_v47  ;;  %v15085_v47 = vld [vmem:[#allocation86_spill] sm:$0xff] }
 0x4c6   :  { %4396 = vmatpush1.bf16.msra.mxu0 %v4330_v23  ;;  %v11749_v22 = vmul.f32 %v7935_v3, %v11484_v32  ;;  %v3587_v33 = vmul.f32 %v7935_v3, %v15068_v28  ;;  %v15071_v32 = vld [vmem:[#allocation79_spill] sm:$0xff]  ;;  %v15079_v3 = vld [vmem:[#allocation80_spill] sm:$0xff] }
 0x4c7   :  { %4397 = vmatprep.subr.bf16.mxu0 %v14971_v42  ;;  %v2517_v18 = vsub.f32 %v15071_v32, %v15070_v1  ;;  %v2516_v13 = vsub.f32 %v15079_v3, %v15070_v1  ;;  %v15081_v28 = vld [vmem:[#allocation83_spill] sm:$0xff]  ;;  %7944 = vpow2.f32 %v2954_v62 }
 0x4c8   :  { %v7937_v56 = vpop.eup %7936  ;;  %v3695_v12 = vpack.c.bf16 %v3587_v33, %v3585_v59  ;;  %v15080_v59 = vld [vmem:[#allocation5_spill] sm:$0xff] }
 0x4c9   :  { %v3473_v27 = vmul.f32 %v7937_v56, %v15074_v58  ;;  %v3472_v36 = vmul.f32 %v7937_v56, %v15076_v50  ;;  %v2726_v17 = vmul.f32 1.442695, %v2517_v18  ;;  %v2519_v33 = vsub.f32 %v15081_v28, %v15080_v59 }
 0x4ca   :  { %4398 = vmatpush1.bf16.msra.mxu0 %v4332_v60  ;;  %6770 = vmatprep.mubr.msk.bf16.mxu0 %vm2131_vm3, %v3695_v12  ;;  %v2952_v60 = vmul.f32 1.442695, %v2630_v10  ;;  %v2724_v56 = vmul.f32 1.442695, %v2516_v13  ;;  %v15082_v12 = vld [vmem:[#allocation84_spill] sm:$0xff]  ;;  %v11790_v58 = vadd.f32 %v8419_v26, %v15085_v47  ;;  %v8421_v10 = vld [vmem:[%s14315_s2 + $0x100] sm:$0xff] }
 0x4cb   :  { %4399 = vmatprep.subr.bf16.mxu0 %v14971_v42  ;;  %v2518_v30 = vsub.f32 %v15082_v12, %v15080_v59  ;;  %7946 = vpow2.f32 %v2726_v17  ;;  %v2730_v32 = vmul.f32 1.442695, %v2519_v33 }
 0x4cc   :  { %v7939_v31 = vpop.eup %7938  ;;  %7948 = vpow2.f32 %v2952_v60  ;;  %15086 = vst [vmem:[#allocation60_spill] sm:$0xff] %v11790_v58  ;;  %v2284_v35 = vsel %vm2131_vm3, %v11790_v58, -inf }
 0x4cd   :  { %v3475_v7 = vmul.f32 %v7939_v31, %v15075_v15  ;;  %v3474_v63 = vmul.f32 %v7939_v31, %v15077_v37  ;;  %v15083_v31 = vld [vmem:[#allocation90_spill] sm:$0xff]  ;;  %7950 = vpow2.f32 %v2724_v56  ;;  %v2728_v18 = vmul.f32 1.442695, %v2518_v30  ;;  %v11784_v20 = vpop.eup %7940  ;;  %v15087_v15 = vld [vmem:[#allocation89_spill] sm:$0xff] }
 0x4ce   :  { %v11780_v1 = vadd.f32 %v8418_v2, %v15083_v31  ;;  %7952 = vpow2.f32 %v2730_v32  ;;  %v3300_v37 = vsel %vm2131_vm3, %v11784_v20, 0.0 }
 0x4cf   :  { %v3639_v49 = vpack.c.bf16 %v3475_v7, %v3473_v27  ;;  %v3638_v23 = vpack.c.bf16 %v3474_v63, %v3472_v36  ;;  %v8420_v27 = vld [vmem:[%s14315_s2 + $0x110] sm:$0xff]  ;;  %7954 = vpow2.f32 %v2728_v18  ;;  %v11799_v36 = vpop.eup %7942 }
 0x4d0   :  { %15084 = vst [vmem:[#allocation66_spill] sm:$0xff] %v11780_v1  ;;  %v2288_v25 = vsel %vm2131_vm3, %v11780_v1, -inf  ;;  %v11796_v7 = vadd.f32 %v8420_v27, %v15087_v15  ;;  %v3301_v62 = vadd.f32 %v11799_v36, %v3300_v37 }
 0x4d1   :  { %6742 = vmatprep.mubr.msk.bf16.mxu1 %vm2131_vm3, %v3639_v49  ;;  %v11803_v63 = vpop.eup %7944  ;;  %v15089_v49 = vld [vmem:[#allocation85_spill] sm:$0xff] }
 0x4d2   :  { %3877 = vmatmul.mubr.bf16.gmra.mrb[108].mxu1 %v3638_v23  ;;  %15088 = vst [vmem:[#allocation14_spill] sm:$0xff] %v11796_v7  ;;  %v2289_v50 = vmax.f32 %v11796_v7, %v2288_v25  ;;  %v11813_v23 = vadd.f32 %v8421_v10, %v15089_v49  ;;  %v3304_v33 = vsel %vm2131_vm3, %v11803_v63, 0.0 }
 0x4d4   :  { %15090 = vst [vmem:[#allocation31_spill] sm:$0xff] %v11813_v23  ;;  %v2285_v59 = vmax.f32 %v11813_v23, %v2284_v35 }
 0x4d5   :  { %v11807_v53 = vpop.eup %7946 }
 0x4d6   :  { %v11818_v17 = vpop.eup %7948  ;;  %v3076_v12 = vsel %vm2131_vm3, %v11807_v53, 0.0 }
 0x4d7   :  { %v11825_v60 = vpop.eup %7950  ;;  %v3305_v2 = vadd.f32 %v11818_v17, %v3304_v33 }
 0x4d8   :  { %v11829_v30 = vpop.eup %7952  ;;  %v3077_v31 = vadd.f32 %v11825_v60, %v3076_v12 }
 0x4d9   :  { %v11833_v32 = vpop.eup %7954  ;;  %v3080_v18 = vsel %vm2131_vm3, %v11829_v30, 0.0 }
 0x4da   :  { %v3081_v27 = vadd.f32 %v11833_v32, %v3080_v18 }
 0x4dc   :  { %2290 = vmax.xlane.f32.xlu1 %v2289_v50  ;;  %v11815_v3 = vpop.f32.mrb[88].mxu1 }
 0x4dd   :  { %15091 = vst [vmem:[#allocation62_spill] sm:$0xff] %v11815_v3  ;;  %v3840_v13 = vpop.f32.mrb[89].mxu1 }
 0x4de   :  { %v11821_v28 = vpop.f32.mrb[90].mxu1 }
 0x4df   :  { %15092 = vst [vmem:[#allocation65_spill] sm:$0xff] %v11821_v28  ;;  %v3843_v56 = vpop.f32.mrb[91].mxu1 }
 0x4e0   :  { %3302 = vadd.xlane.f32.xlu1 %v3301_v62 }
 0x4e3   :  { %2286 = vmax.xlane.f32.xlu0 %v2285_v59  ;;  %v15099_v59 = vld [vmem:[#allocation44_spill] sm:$0xff] }
 0x4e4   :  { %3306 = vadd.xlane.f32.xlu1 %v3305_v2  ;;  %v11837_v25 = vpop.f32.mrb[92].mxu1 }
 0x4e5   :  { %15093 = vst [vmem:[#allocation61_spill] sm:$0xff] %v11837_v25  ;;  %v3848_v26 = vpop.f32.mrb[93].mxu1 }
 0x4e6   :  { %v11839_v47 = vpop.f32.mrb[94].mxu1 }
 0x4e7   :  { %3078 = vadd.xlane.f32.xlu0 %v3077_v31  ;;  %15094 = vst [vmem:[#allocation26_spill] sm:$0xff] %v11839_v47  ;;  %v3851_v15 = vpop.f32.mrb[95].mxu1 }
 0x4eb   :  { %3082 = vadd.xlane.f32.xlu0 %v3081_v27  ;;  %v15101_v27 = vld [vmem:[#allocation45_spill] sm:$0xff] }
 0x4ec   :  { %v11842_v50 = vpop.f32.mrb[96].mxu1 }
 0x4ed   :  { %15095 = vst [vmem:[#allocation30_spill] sm:$0xff] %v11842_v50  ;;  %v3856_v37 = vpop.f32.mrb[97].mxu1 }
 0x4ee   :  { %v11844_v35 = vpop.f32.mrb[98].mxu1  ;;  %v15102_v37 = vld [vmem:[#allocation53_spill] sm:$0xff] }
 0x4ef   :  { %15096 = vst [vmem:[#allocation55_spill] sm:$0xff] %v11844_v35  ;;  %v3859_v10 = vpop.f32.mrb[99].mxu1  ;;  %v11846_v49 = vpop.xlane.xlu1 %2274 }
 0x4f0   :  { %v15103_v10 = vld [vmem:[#allocation144_spill] sm:$0xff] }
 0x4f3   :  { %v11854_v56 = vpop.xlane.xlu1 %3286 }
 0x4f4   :  { %v11850_v62 = vpop.f32.mrb[100].mxu1 }
 0x4f5   :  { %15098 = vst [vmem:[#allocation63_spill] sm:$0xff] %v11850_v62  ;;  %4343 = vrot.lane.b32.xlu1 %v15099_v59, %s8439_s17  ;;  %v3864_v33 = vpop.f32.mrb[101].mxu1  ;;  %v2635_v59 = vsub.f32 %v15103_v10, %v15102_v37  ;;  %v15106_v62 = vld [vmem:[#allocation87_spill] sm:$0xff] }
 0x4f6   :  { %v11848_v13 = vpop.xlane.xlu0 %2270  ;;  %v11856_v12 = vpop.f32.mrb[102].mxu1 }
 0x4f7   :  { %15097 = vst [vmem:[#allocation64_spill] sm:$0xff] %v11848_v13  ;;  %15100 = vst [vmem:[#allocation121_spill] sm:$0xff] %v11856_v12  ;;  %v3867_v2 = vpop.f32.mrb[103].mxu1  ;;  %v11858_v26 = vpop.xlane.xlu1 %3290  ;;  %v15105_v12 = vld [vmem:[#allocation11_spill] sm:$0xff] }
 0x4f8   :  { %v15104_v2 = vld [vmem:[#allocation148_spill] sm:$0xff]  ;;  %v2521_v35 = vsub.f32 %v15106_v62, %v15105_v12  ;;  %v15109_v13 = vld [vmem:[#allocation91_spill] sm:$0xff] }
 0x4f9   :  { %v2523_v62 = vsub.f32 %v15109_v13, %v15108_v6 }
 0x4fa   :  { %v3063_v31 = vpop.xlane.xlu0 %3062  ;;  %v2734_v3 = vmul.f32 1.442695, %v2521_v35  ;;  %v15113_v35 = vld [vmem:[#allocation136_spill] sm:$0xff] }
 0x4fb   :  { %7956 = vrcp.f32 %v3063_v31  ;;  %v4336_v33 = vpop.permute.xlu1 %4335  ;;  %v2634_v31 = vsub.f32 %v15104_v2, %v15102_v37  ;;  %v15107_v37 = vld [vmem:[#allocation88_spill] sm:$0xff] }
 0x4fc   :  { %v2520_v2 = vsub.f32 %v15107_v37, %v15105_v12  ;;  %v15114_v12 = vld [vmem:[#allocation143_spill] sm:$0xff] }
 0x4fd   :  { %v2960_v25 = vmul.f32 1.442695, %v2634_v31  ;;  %v2633_v13 = vsub.f32 %v15114_v12, %v15113_v35  ;;  %v8426_v12 = vld [vmem:[%s14315_s2 + $0x120] sm:$0xff] }
 0x4fe   :  { %v3067_v18 = vpop.xlane.xlu0 %3066 }
 0x4ff   :  { %7958 = vrcp.f32 %v3067_v18  ;;  %v2958_v31 = vmul.f32 1.442695, %v2633_v13  ;;  %v15122_v13 = vld [vmem:[#allocation95_spill] sm:$0xff] }
 0x501   :  { %4341 = vrot.lane.b32.xlu0 %v15101_v27, %s8439_s17  ;;  %v2962_v27 = vmul.f32 1.442695, %v2635_v59 }
 0x502   :  { %v4334_v15 = vpop.permute.xlu0 %4333 }
 0x503   :  { %4400 = vmatpush1.bf16.msra.mxu0 %v4334_v15  ;;  %7960 = vpow2.f32 %v2962_v27  ;;  %v15116_v27 = vld [vmem:[#allocation96_spill] sm:$0xff] }
 0x504   :  { %4401 = vmatprep.subr.bf16.mxu0 %v14971_v42  ;;  %7962 = vpow2.f32 %v2960_v25 }
 0x505   :  { %v7957_v38 = vpop.eup %7956  ;;  %7964 = vpow2.f32 %v2734_v3  ;;  %v8423_v3 = vld [vmem:[%s14315_s2 + $0x128] sm:$0xff] }
 0x506   :  { %v3477_v15 = vmul.f32 %v7957_v38, %v11553_v40  ;;  %v3476_v47 = vmul.f32 %v7957_v38, %v11545_v61  ;;  %v2732_v40 = vmul.f32 1.442695, %v2520_v2  ;;  %v15110_v61 = vld [vmem:[#allocation92_spill] sm:$0xff]  ;;  %v15111_v38 = vld [vmem:[#allocation102_spill] sm:$0xff] }
 0x507   :  { %4402 = vmatpush1.bf16.msra.mxu0 %v4336_v33 }
 0x508   :  { %4403 = vmatprep.subr.bf16.mxu0 %v14971_v42  ;;  %7966 = vpow2.f32 %v2732_v40 }
 0x509   :  { %v7959_v18 = vpop.eup %7958 }
 0x50a   :  { %v3479_v50 = vmul.f32 %v7959_v18, %v11601_v8  ;;  %v3478_v10 = vmul.f32 %v7959_v18, %v11609_v14  ;;  %v2522_v8 = vsub.f32 %v15110_v61, %v15108_v6  ;;  %v8422_v14 = vld [vmem:[%s14315_s2 + $0x138] sm:$0xff]  ;;  %v8425_v61 = vld [vmem:[%s14315_s2 + $0x148] sm:$0xff] }
 0x50c   :  { %v3641_v33 = vpack.c.bf16 %v3479_v50, %v3477_v15  ;;  %v3640_v28 = vpack.c.bf16 %v3478_v10, %v3476_v47  ;;  %v11885_v47 = vadd.f32 %v8422_v14, %v15111_v38  ;;  %v2738_v50 = vmul.f32 1.442695, %v2523_v62  ;;  %v8424_v10 = vld [vmem:[%s14315_s2 + $0x130] sm:$0xff] }
 0x50d   :  { %v2736_v59 = vmul.f32 1.442695, %v2522_v8  ;;  %v11893_v18 = vpop.eup %7960  ;;  %v11899_v15 = vadd.f32 %v8423_v3, %v15116_v27  ;;  %v15120_v8 = vld [vmem:[#allocation106_spill] sm:$0xff]  ;;  %v15124_v3 = vld [vmem:[#allocation108_spill] sm:$0xff] }
 0x50e   :  { %6743 = vmatprep.mubr.msk.bf16.mxu1 %vm2131_vm3, %v3641_v33  ;;  %15112 = vst [vmem:[#allocation122_spill] sm:$0xff] %v11885_v47  ;;  %v2296_v6 = vsel %vm2131_vm3, %v11885_v47, -inf  ;;  %7968 = vpow2.f32 %v2738_v50  ;;  %v15118_v33 = vld [vmem:[#allocation101_spill] sm:$0xff]  ;;  %v11908_v40 = vpop.eup %7962  ;;  %v11914_v14 = vadd.f32 %v8425_v61, %v15120_v8  ;;  %v3312_v38 = vsel %vm2131_vm3, %v11893_v18, 0.0 }
 0x50f   :  { %3885 = vmatmul.mubr.bf16.gmra.mrb[112].mxu1 %v3640_v28  ;;  %v15115_v28 = vld [vmem:[#allocation146_spill] sm:$0xff]  ;;  %15117 = vst [vmem:[#allocation57_spill] sm:$0xff] %v11899_v15  ;;  %v11905_v37 = vadd.f32 %v8424_v10, %v15118_v33  ;;  %7970 = vpow2.f32 %v2736_v59  ;;  %v2292_v50 = vsel %vm2131_vm3, %v11899_v15, -inf  ;;  %v11926_v59 = vadd.f32 %v8426_v12, %v15122_v13  ;;  %v15143_v15 = vld [vmem:[#allocation104_spill] sm:$0xff] }
 0x510   :  { %v2632_v25 = vsub.f32 %v15115_v28, %v15113_v35  ;;  %15121 = vst [vmem:[#allocation109_spill] sm:$0xff] %v11914_v14  ;;  %7972 = vpow2.f32 %v2958_v31  ;;  %v11920_v35 = vpop.eup %7964  ;;  %v3313_v28 = vadd.f32 %v11908_v40, %v3312_v38  ;;  %v8427_v31 = vld [vmem:[%s14315_s2 + $0x158] sm:$0xff]  ;;  %v8428_v33 = vld [vmem:[%s14315_s2 + $0x140] sm:$0xff] }
 0x511   :  { %15119 = vst [vmem:[#allocation56_spill] sm:$0xff] %v11905_v37  ;;  %v2297_v2 = vmax.f32 %v11905_v37, %v2296_v6  ;;  %15123 = vst [vmem:[#allocation117_spill] sm:$0xff] %v11926_v59  ;;  %v2300_v6 = vsel %vm2131_vm3, %v11914_v14, -inf  ;;  %v11936_v27 = vadd.f32 %v8427_v31, %v15124_v3  ;;  %v3084_v61 = vsel %vm2131_vm3, %v11920_v35, 0.0  ;;  %v8429_v31 = vld [vmem:[%s14315_s2 + $0x150] sm:$0xff] }
 0x512   :  { %v2956_v62 = vmul.f32 1.442695, %v2632_v25  ;;  %v2293_v25 = vmax.f32 %v11926_v59, %v2292_v50  ;;  %v11938_v10 = vpop.eup %7966 }
 0x513   :  { %15125 = vst [vmem:[#allocation120_spill] sm:$0xff] %v11936_v27  ;;  %v2304_v50 = vsel %vm2131_vm3, %v11936_v27, -inf  ;;  %v3085_v12 = vadd.f32 %v11938_v10, %v3084_v61 }
 0x514   :  { %7974 = vpow2.f32 %v2956_v62 }
 0x518   :  { %v11948_v8 = vpop.eup %7968 }
 0x519   :  { %2298 = vmax.xlane.f32.xlu1 %v2297_v2  ;;  %v15126_v2 = vld [vmem:[#allocation105_spill] sm:$0xff]  ;;  %v11954_v13 = vpop.eup %7970 }
 0x51a   :  { %v11944_v62 = vadd.f32 %v8428_v33, %v15126_v2  ;;  %v11964_v33 = vpop.eup %7972 }
 0x51c   :  { %15127 = vst [vmem:[#allocation110_spill] sm:$0xff] %v11944_v62  ;;  %v2301_v38 = vmax.f32 %v11944_v62, %v2300_v6 }
 0x51d   :  { %3314 = vadd.xlane.f32.xlu1 %v3313_v28  ;;  %v15128_v28 = vld [vmem:[#allocation107_spill] sm:$0xff] }
 0x51e   :  { %v11960_v3 = vadd.f32 %v8429_v31, %v15128_v28  ;;  %v11970_v14 = vpop.eup %7974 }
 0x520   :  { %2294 = vmax.xlane.f32.xlu0 %v2293_v25  ;;  %15129 = vst [vmem:[#allocation119_spill] sm:$0xff] %v11960_v3  ;;  %v3088_v25 = vsel %vm2131_vm3, %v11948_v8, 0.0  ;;  %v2305_v6 = vmax.f32 %v11960_v3, %v2304_v50 }
 0x521   :  { %2302 = vmax.xlane.f32.xlu1 %v2301_v38  ;;  %v11967_v2 = vpop.f32.mrb[132].mxu0  ;;  %v3089_v62 = vadd.f32 %v11954_v13, %v3088_v25  ;;  %v3308_v38 = vsel %vm2131_vm3, %v11964_v33, 0.0 }
 0x522   :  { %15130 = vst [vmem:[#allocation123_spill] sm:$0xff] %v11967_v2  ;;  %v4049_v61 = vpop.f32.mrb[133].mxu0  ;;  %v3309_v28 = vadd.f32 %v11970_v14, %v3308_v38 }
 0x523   :  { %v11972_v27 = vpop.f32.mrb[134].mxu0 }
 0x524   :  { %3086 = vadd.xlane.f32.xlu0 %v3085_v12  ;;  %15131 = vst [vmem:[#allocation124_spill] sm:$0xff] %v11972_v27  ;;  %v4052_v31 = vpop.f32.mrb[135].mxu0 }
 0x525   :  { %2306 = vmax.xlane.f32.xlu1 %v2305_v6 }
 0x528   :  { %3090 = vadd.xlane.f32.xlu0 %v3089_v62 }
 0x529   :  { %v11977_v12 = vpop.f32.mrb[136].mxu0 }
 0x52a   :  { %15132 = vst [vmem:[#allocation130_spill] sm:$0xff] %v11977_v12  ;;  %v4057_v50 = vpop.f32.mrb[137].mxu0 }
 0x52b   :  { %v11979_v2 = vpop.f32.mrb[138].mxu0 }
 0x52c   :  { %3310 = vadd.xlane.f32.xlu0 %v3309_v28  ;;  %15133 = vst [vmem:[#allocation128_spill] sm:$0xff] %v11979_v2  ;;  %v4060_v61 = vpop.f32.mrb[139].mxu0  ;;  %v11981_v25 = vpop.xlane.xlu1 %2282  ;;  %v15137_v28 = vld [vmem:[#allocation3_spill] sm:$0xff] }
 0x52d   :  { %15134 = vst [vmem:[#allocation171_spill] sm:$0xff] %v11981_v25  ;;  %v15148_v25 = vld [vmem:[#allocation98_spill] sm:$0xff] }
 0x530   :  { %v11987_v6 = vpop.xlane.xlu1 %3294 }
 0x532   :  { %v11985_v27 = vpop.f32.mrb[140].mxu0 }
 0x533   :  { %v11983_v3 = vpop.xlane.xlu0 %2278  ;;  %15135 = vst [vmem:[#allocation67_spill] sm:$0xff] %v11985_v27  ;;  %v4065_v37 = vpop.f32.mrb[141].mxu0 }
 0x534   :  { %v11989_v31 = vpop.f32.mrb[142].mxu0  ;;  %v11993_v61 = vpop.xlane.xlu1 %3298  ;;  %v15140_v37 = vld [vmem:[#allocation172_spill] sm:$0xff] }
 0x535   :  { %15136 = vst [vmem:[#allocation68_spill] sm:$0xff] %v11989_v31  ;;  %v4068_v38 = vpop.f32.mrb[143].mxu0 }
 0x536   :  { %4138 = vrot.lane.b32.xlu1 %v15137_v28, %s8439_s17  ;;  %v15141_v38 = vld [vmem:[#allocation103_spill] sm:$0xff]  ;;  %v15142_v28 = vld [vmem:[#allocation2_spill] sm:$0xff] }
 0x537   :  { %v3071_v62 = vpop.xlane.xlu0 %3070  ;;  %v2527_v31 = vsub.f32 %v15141_v38, %v15140_v37 }
 0x538   :  { %7976 = vrcp.f32 %v3071_v62  ;;  %v4340_v62 = vpop.permute.xlu1 %4339 }
 0x539   :  { %v2746_v1 = vmul.f32 1.442695, %v2527_v31  ;;  %v15150_v31 = vld [vmem:[#allocation140_spill] sm:$0xff] }
 0x53a   :  { %v11995_v2 = vpop.f32.mrb[144].mxu0 }
 0x53b   :  { %v3075_v50 = vpop.xlane.xlu0 %3074  ;;  %15138 = vst [vmem:[#allocation74_spill] sm:$0xff] %v11995_v2  ;;  %v4073_v12 = vpop.f32.mrb[145].mxu0  ;;  %v2526_v2 = vsub.f32 %v15143_v15, %v15140_v37 }
 0x53c   :  { %7978 = vrcp.f32 %v3075_v50  ;;  %v11997_v47 = vpop.f32.mrb[146].mxu0 }
 0x53d   :  { %15139 = vst [vmem:[#allocation25_spill] sm:$0xff] %v11997_v47  ;;  %v4076_v59 = vpop.f32.mrb[147].mxu0  ;;  %v15146_v47 = vld [vmem:[#allocation97_spill] sm:$0xff]  ;;  %7980 = vpow2.f32 %v2746_v1 }
 0x53f   :  { %v4338_v27 = vpop.permute.xlu0 %4337 }
 0x540   :  { %4404 = vmatpush1.bf16.msra.mxu0 %v4338_v27  ;;  %v15145_v27 = vld [vmem:[#allocation170_spill] sm:$0xff] }
 0x541   :  { %4405 = vmatprep.subr.bf16.mxu0 %v14971_v42  ;;  %v2525_v7 = vsub.f32 %v15146_v47, %v15145_v27  ;;  %v2524_v44 = vsub.f32 %v15148_v25, %v15145_v27  ;;  %v15155_v25 = vld [vmem:[#allocation39_spill] sm:$0xff] }
 0x542   :  { %4136 = vrot.lane.b32.xlu0 %v15142_v28, %s8439_s17  ;;  %v7977_v50 = vpop.eup %7976  ;;  %v12006_v12 = vpop.f32.mrb[148].mxu0 }
 0x543   :  { %15144 = vst [vmem:[#allocation70_spill] sm:$0xff] %v12006_v12  ;;  %v4081_v23 = vpop.f32.mrb[149].mxu0  ;;  %v3481_v28 = vmul.f32 %v7977_v50, %v11696_v29  ;;  %v2744_v12 = vmul.f32 1.442695, %v2526_v2  ;;  %v2742_v47 = vmul.f32 1.442695, %v2525_v7 }
 0x544   :  { %4406 = vmatpush1.bf16.msra.mxu0 %v4340_v62  ;;  %v12011_v38 = vpop.f32.mrb[150].mxu0  ;;  %v3480_v62 = vmul.f32 %v7977_v50, %v11710_v48  ;;  %v15149_v23 = vld [vmem:[#allocation131_spill] sm:$0xff] }
 0x545   :  { %4407 = vmatprep.subr.bf16.mxu0 %v14971_v42  ;;  %15147 = vst [vmem:[#allocation73_spill] sm:$0xff] %v12011_v38  ;;  %v4084_v37 = vpop.f32.mrb[151].mxu0  ;;  %v2637_v38 = vsub.f32 %v15150_v31, %v15149_v23  ;;  %7982 = vpow2.f32 %v2744_v12 }
 0x546   :  { %v7979_v59 = vpop.eup %7978  ;;  %7984 = vpow2.f32 %v2742_v47 }
 0x547   :  { %v3483_v58 = vmul.f32 %v7979_v59, %v11714_v51  ;;  %v3482_v15 = vmul.f32 %v7979_v59, %v11719_v21  ;;  %v2740_v21 = vmul.f32 1.442695, %v2524_v44  ;;  %v2966_v7 = vmul.f32 1.442695, %v2637_v38  ;;  %v15156_v59 = vld [vmem:[#allocation149_spill] sm:$0xff]  ;;  %v12036_v37 = vpop.eup %7980 }
 0x548   :  { %v2639_v27 = vsub.f32 %v15156_v59, %v15155_v25 }
 0x549   :  { %v3643_v39 = vpack.c.bf16 %v3483_v58, %v3481_v28  ;;  %v3642_v9 = vpack.c.bf16 %v3482_v15, %v3480_v62  ;;  %v12022_v29 = vpop.f32.mrb[104].mxu1  ;;  %v15153_v58 = vld [vmem:[#allocation142_spill] sm:$0xff]  ;;  %7986 = vpow2.f32 %v2740_v21  ;;  %v15158_v62 = vld [vmem:[#allocation153_spill] sm:$0xff]  ;;  %v3096_v21 = vsel %vm2131_vm3, %v12036_v37, 0.0 }
 0x54a   :  { %15151 = vst [vmem:[#allocation69_spill] sm:$0xff] %v12022_v29  ;;  %v3872_v48 = vpop.f32.mrb[105].mxu1  ;;  %v2636_v2 = vsub.f32 %v15153_v58, %v15149_v23  ;;  %v2638_v44 = vsub.f32 %v15158_v62, %v15155_v25  ;;  %7988 = vpow2.f32 %v2966_v7  ;;  %v2970_v15 = vmul.f32 1.442695, %v2639_v27 }
 0x54b   :  { %6744 = vmatprep.mubr.msk.bf16.mxu1 %vm2131_vm3, %v3643_v39  ;;  %v12028_v50 = vpop.f32.mrb[106].mxu1 }
 0x54c   :  { %3893 = vmatmul.mubr.bf16.gmra.mrb[116].mxu1 %v3642_v9  ;;  %v12024_v51 = vpop.f32.mrb[152].mxu0  ;;  %15154 = vst [vmem:[#allocation34_spill] sm:$0xff] %v12028_v50  ;;  %v3875_v39 = vpop.f32.mrb[107].mxu1  ;;  %v2964_v12 = vmul.f32 1.442695, %v2636_v2 }
 0x54d   :  { %15152 = vst [vmem:[#allocation33_spill] sm:$0xff] %v12024_v51  ;;  %v4089_v1 = vpop.f32.mrb[153].mxu0  ;;  %v2968_v38 = vmul.f32 1.442695, %v2638_v44 }
 0x54e   :  { %v12032_v28 = vpop.f32.mrb[154].mxu0  ;;  %7990 = vpow2.f32 %v2964_v12 }
 0x54f   :  { %15157 = vst [vmem:[#allocation186_spill] sm:$0xff] %v12032_v28  ;;  %v4092_v9 = vpop.f32.mrb[155].mxu0  ;;  %v12040_v31 = vpop.eup %7982  ;;  %7992 = vpow2.f32 %v2970_v15 }
 0x550   :  { %v12046_v2 = vpop.eup %7984  ;;  %7994 = vpow2.f32 %v2968_v38  ;;  %v3097_v1 = vadd.f32 %v12040_v31, %v3096_v21 }
 0x551   :  { %v3092_v25 = vsel %vm2131_vm3, %v12046_v2, 0.0  ;;  %7996 = vrcp.f32 %v11858_v26 }
 0x552   :  { %7998 = vrcp.f32 %v11854_v56 }
 0x553   :  { %v12049_v7 = vpop.eup %7986 }
 0x554   :  { %v12038_v23 = vpop.f32.mrb[156].mxu0  ;;  %v12053_v59 = vpop.eup %7988  ;;  %v3093_v12 = vadd.f32 %v12049_v7, %v3092_v25 }
 0x555   :  { %15159 = vst [vmem:[#allocation111_spill] sm:$0xff] %v12038_v23  ;;  %v4097_v47 = vpop.f32.mrb[157].mxu0  ;;  %v3316_v15 = vsel %vm2131_vm3, %v12053_v59, 0.0  ;;  %v15170_v23 = vld [vmem:[#allocation181_spill] sm:$0xff] }
 0x556   :  { %v12042_v48 = vpop.f32.mrb[158].mxu0 }
 0x557   :  { %15160 = vst [vmem:[#allocation125_spill] sm:$0xff] %v12042_v48  ;;  %v4100_v58 = vpop.f32.mrb[159].mxu0  ;;  %v15168_v48 = vld [vmem:[#allocation37_spill] sm:$0xff] }
 0x558   :  { %v12060_v62 = vpop.eup %7990 }
 0x559   :  { %v12064_v38 = vpop.eup %7992  ;;  %v3317_v47 = vadd.f32 %v12060_v62, %v3316_v15 }
 0x55a   :  { %3098 = vadd.xlane.f32.xlu1 %v3097_v1  ;;  %v12067_v21 = vpop.eup %7994  ;;  %v3320_v58 = vsel %vm2131_vm3, %v12064_v38, 0.0 }
 0x55b   :  { %v7997_v50 = vpop.eup %7996 }
 0x55d   :  { %v12055_v27 = vpop.f32.mrb[160].mxu0 }
 0x55e   :  { %15161 = vst [vmem:[#allocation189_spill] sm:$0xff] %v12055_v27  ;;  %v4105_v39 = vpop.f32.mrb[161].mxu0  ;;  %v15165_v27 = vld [vmem:[#allocation47_spill] sm:$0xff] }
 0x55f   :  { %v12057_v9 = vpop.f32.mrb[162].mxu0 }
 0x560   :  { %15162 = vst [vmem:[#allocation129_spill] sm:$0xff] %v12057_v9  ;;  %v4108_v44 = vpop.f32.mrb[163].mxu0 }
 0x561   :  { %3094 = vadd.xlane.f32.xlu0 %v3093_v12  ;;  %v3321_v44 = vadd.f32 %v12067_v21, %v3320_v58 }
 0x565   :  { %v12071_v1 = vpop.f32.mrb[164].mxu0  ;;  %3318 = vadd.xlane.f32.xlu0 %v3317_v47 }
 0x566   :  { %15163 = vst [vmem:[#allocation187_spill] sm:$0xff] %v12071_v1  ;;  %v4113_v25 = vpop.f32.mrb[165].mxu0 }
 0x567   :  { %v12073_v39 = vpop.f32.mrb[166].mxu0  ;;  %v15167_v25 = vld [vmem:[#allocation152_spill] sm:$0xff] }
 0x568   :  { %15164 = vst [vmem:[#allocation116_spill] sm:$0xff] %v12073_v39  ;;  %v4116_v9 = vpop.f32.mrb[167].mxu0  ;;  %v2529_v39 = vsub.f32 %v15168_v48, %v15167_v25  ;;  %v7999_v48 = vpop.eup %7998 }
 0x569   :  { %3322 = vadd.xlane.f32.xlu0 %v3321_v44  ;;  %v12078_v12 = vpop.xlane.xlu1 %2290  ;;  %v15169_v9 = vld [vmem:[#allocation41_spill] sm:$0xff] }
 0x56a   :  { %15166 = vst [vmem:[#allocation127_spill] sm:$0xff] %v12078_v12  ;;  %v2528_v58 = vsub.f32 %v15169_v9, %v15167_v25  ;;  %v2750_v26 = vmul.f32 1.442695, %v2529_v39  ;;  %v15173_v9 = vld [vmem:[#allocation46_spill] sm:$0xff] }
 0x56b   :  { %4142 = vrot.lane.b32.xlu1 %v15165_v27, %s8439_s17  ;;  %v15171_v27 = vld [vmem:[#allocation154_spill] sm:$0xff] }
 0x56c   :  { %v2643_v28 = vsub.f32 %v15171_v27, %v15170_v23  ;;  %v2748_v56 = vmul.f32 1.442695, %v2528_v58 }
 0x56d   :  { %v3303_v1 = vpop.xlane.xlu1 %3302 }
 0x56e   :  { %v2978_v12 = vmul.f32 1.442695, %v2643_v28 }
 0x570   :  { %v12080_v15 = vpop.xlane.xlu0 %2286 }
 0x571   :  { %v3307_v51 = vpop.xlane.xlu1 %3306 }
 0x574   :  { %v3079_v47 = vpop.xlane.xlu0 %3078 }
 0x575   :  { %8000 = vrcp.f32 %v3079_v47  ;;  %v15172_v47 = vld [vmem:[#allocation158_spill] sm:$0xff]  ;;  %v4344_v39 = vpop.permute.xlu1 %4343 }
 0x576   :  { %v2642_v25 = vsub.f32 %v15172_v47, %v15170_v23  ;;  %v15175_v23 = vld [vmem:[#allocation8_spill] sm:$0xff] }
 0x578   :  { %v3083_v44 = vpop.xlane.xlu0 %3082 }
 0x579   :  { %8002 = vrcp.f32 %v3083_v44  ;;  %v15174_v44 = vld [vmem:[#allocation155_spill] sm:$0xff] }
 0x57a   :  { %8004 = vrcp.f32 %v11993_v61  ;;  %v3591_v61 = vmul.f32 %v7997_v50, %v11577_v11  ;;  %v2531_v27 = vsub.f32 %v15175_v23, %v15174_v44 }
 0x57b   :  { %8006 = vrcp.f32 %v11987_v6  ;;  %v3589_v6 = vmul.f32 %v7999_v48, %v11563_v19 }
 0x57c   :  { %v4342_v29 = vpop.permute.xlu0 %4341  ;;  %8008 = vpow2.f32 %v2750_v26 }
 0x57d   :  { %4408 = vmatpush1.bf16.msra.mxu0 %v4342_v29  ;;  %8010 = vpow2.f32 %v2748_v56  ;;  %v2976_v29 = vmul.f32 1.442695, %v2642_v25  ;;  %v3697_v26 = vpack.c.bf16 %v3591_v61, %v3589_v6  ;;  %v3590_v61 = vmul.f32 %v7997_v50, %v11589_v52  ;;  %v15178_v6 = vld [vmem:[#allocation134_spill] sm:$0xff] }
 0x57e   :  { %4409 = vmatprep.subr.bf16.mxu0 %v14971_v42  ;;  %8012 = vpow2.f32 %v2978_v12 }
 0x57f   :  { %4140 = vrot.lane.b32.xlu0 %v15173_v9, %s8439_s17  ;;  %v8001_v58 = vpop.eup %8000  ;;  %8014 = vrcp.f32 %v3307_v51  ;;  %v15176_v9 = vpack.c.bf16 %v11749_v22, %v11746_v16 }
 0x580   :  { %8016 = vrcp.f32 %v3303_v1  ;;  %v3485_v11 = vmul.f32 %v8001_v58, %v11807_v53  ;;  %v3484_v56 = vmul.f32 %v8001_v58, %v11825_v60  ;;  %v2754_v53 = vmul.f32 1.442695, %v2531_v27 }
 0x581   :  { %4410 = vmatpush1.bf16.msra.mxu0 %v4344_v39  ;;  %8018 = vpow2.f32 %v2976_v29  ;;  %v15177_v39 = vld [vmem:[#allocation22_spill] sm:$0xff]  ;;  %v3588_v60 = vmul.f32 %v7999_v48, %v11571_v46 }
 0x582   :  { %v2530_v16 = vsub.f32 %v15177_v39, %v15174_v44  ;;  %8020 = vpow2.f32 %v2754_v53 }
 0x583   :  { %v8003_v28 = vpop.eup %8002  ;;  %v3696_v52 = vpack.c.bf16 %v3590_v61, %v3588_v60 }
 0x584   :  { %v8005_v47 = vpop.eup %8004  ;;  %4422 = vmatmul.mubr.bf16.vlgmr.msra.gmra.mrb[176].mxu0 %v15176_v9  ;;  %v3487_v12 = vmul.f32 %v8003_v28, %v11829_v30  ;;  %v3486_v19 = vmul.f32 %v8003_v28, %v11833_v32  ;;  %v15179_v30 = vld [vmem:[#allocation145_spill] sm:$0xff]  ;;  %v2752_v28 = vmul.f32 1.442695, %v2530_v16 }
 0x585   :  { %6771 = vmatprep.mubr.msk.bf16.mxu0 %vm2131_vm3, %v3697_v26  ;;  %v8007_v51 = vpop.eup %8006  ;;  %v3595_v22 = vmul.f32 %v8005_v47, %v11692_v45  ;;  %v2641_v23 = vsub.f32 %v15179_v30, %v15178_v6  ;;  %v15180_v45 = vld [vmem:[#allocation147_spill] sm:$0xff] }
 0x586   :  { %v3645_v25 = vpack.c.bf16 %v3487_v12, %v3485_v11  ;;  %v3644_v1 = vpack.c.bf16 %v3486_v19, %v3484_v56  ;;  %v12117_v32 = vpop.eup %8008  ;;  %v3593_v58 = vmul.f32 %v8007_v51, %v11673_v41  ;;  %v2640_v44 = vsub.f32 %v15180_v45, %v15178_v6 }
 0x587   :  { %v12120_v29 = vpop.eup %8010  ;;  %v2974_v9 = vmul.f32 1.442695, %v2641_v23  ;;  %v3100_v46 = vsel %vm2131_vm3, %v12117_v32, 0.0  ;;  %v3594_v56 = vmul.f32 %v8005_v47, %v11705_v24  ;;  %8022 = vpow2.f32 %v2752_v28 }
 0x588   :  { %6745 = vmatprep.mubr.msk.bf16.mxu1 %vm2131_vm3, %v3645_v25  ;;  %v12122_v50 = vpop.eup %8012  ;;  %v3699_v27 = vpack.c.bf16 %v3595_v22, %v3593_v58  ;;  %v2972_v19 = vmul.f32 1.442695, %v2640_v44  ;;  %v3592_v22 = vmul.f32 %v8007_v51, %v11688_v57 }
 0x589   :  { %3901 = vmatmul.mubr.bf16.gmra.mrb[120].mxu1 %v3644_v1  ;;  %v8015_v26 = vpop.eup %8014  ;;  %v3101_v1 = vadd.f32 %v12120_v29, %v3100_v46  ;;  %8024 = vpow2.f32 %v2974_v9  ;;  %v3328_v16 = vsel %vm2131_vm3, %v12122_v50, 0.0 }
 0x58a   :  { %v12126_v11 = vpop.f32.mrb[168].mxu0  ;;  %v8017_v41 = vpop.eup %8016  ;;  %v3599_v61 = vmul.f32 %v8015_v26, %v11803_v63  ;;  %v3698_v6 = vpack.c.bf16 %v3594_v56, %v3592_v22  ;;  %8026 = vpow2.f32 %v2972_v19  ;;  %v3598_v57 = vmul.f32 %v8015_v26, %v11818_v17  ;;  %v15186_v26 = vld [vmem:[#allocation49_spill] sm:$0xff] }
 0x58b   :  { %15181 = vst [vmem:[#allocation100_spill] sm:$0xff] %v12126_v11  ;;  %v4121_v48 = vpop.f32.mrb[169].mxu0  ;;  %v12136_v39 = vpop.eup %8018  ;;  %v3597_v53 = vmul.f32 %v8017_v41, %v11784_v20  ;;  %v3596_v20 = vmul.f32 %v8017_v41, %v11799_v36 }
 0x58c   :  { %4430 = vmatmul.mubr.bf16.gmra.mrb[180].mxu0 %v3696_v52  ;;  %v12131_v12 = vpop.f32.mrb[170].mxu0  ;;  %v3329_v24 = vadd.f32 %v12136_v39, %v3328_v16  ;;  %v12146_v23 = vpop.eup %8020 }
 0x58d   :  { %6772 = vmatprep.mubr.msk.bf16.mxu0 %vm2131_vm3, %v3699_v27  ;;  %15182 = vst [vmem:[#allocation71_spill] sm:$0xff] %v12131_v12  ;;  %v4124_v25 = vpop.f32.mrb[171].mxu0  ;;  %v3701_v47 = vpack.c.bf16 %v3599_v61, %v3597_v53  ;;  %v3104_v52 = vsel %vm2131_vm3, %v12146_v23, 0.0  ;;  %v3700_v45 = vpack.c.bf16 %v3598_v57, %v3596_v20  ;;  %v15189_v61 = vld [vmem:[#allocation7_spill] sm:$0xff]  ;;  %v15190_v53 = vld [vmem:[#allocation10_spill] sm:$0xff]  ;;  %v15228_v12 = vld [vmem:[#allocation29_spill] sm:$0xff] }
 0x58f   :  { %3102 = vadd.xlane.f32.xlu1 %v3101_v1  ;;  %v15188_v1 = vld [vmem:[#allocation160_spill] sm:$0xff] }
 0x590   :  { %v2533_v16 = vsub.f32 %v15189_v61, %v15188_v1  ;;  %v15196_v61 = vld [vmem:[#allocation27_spill] sm:$0xff] }
 0x591   :  { %v12152_v58 = vpop.eup %8022 }
 0x592   :  { %v12143_v30 = vpop.f32.mrb[172].mxu0  ;;  %v3105_v44 = vadd.f32 %v12152_v58, %v3104_v52 }
 0x593   :  { %15183 = vst [vmem:[#allocation132_spill] sm:$0xff] %v12143_v30  ;;  %3330 = vadd.xlane.f32.xlu1 %v3329_v24  ;;  %v4129_v63 = vpop.f32.mrb[173].mxu0  ;;  %v12156_v28 = vpop.eup %8024  ;;  %v2758_v24 = vmul.f32 1.442695, %v2533_v16 }
 0x594   :  { %4438 = vmatmul.mubr.bf16.gmra.mrb[184].mxu0 %v3698_v6  ;;  %v12148_v60 = vpop.f32.mrb[174].mxu0  ;;  %v12159_v27 = vpop.eup %8026  ;;  %v3324_v9 = vsel %vm2131_vm3, %v12156_v28, 0.0  ;;  %v2532_v6 = vsub.f32 %v15190_v53, %v15188_v1  ;;  %v15192_v63 = vld [vmem:[#allocation159_spill] sm:$0xff]  ;;  %v15195_v1 = vld [vmem:[#allocation161_spill] sm:$0xff] }
 0x595   :  { %6773 = vmatprep.mubr.msk.bf16.mxu0 %vm2131_vm3, %v3701_v47  ;;  %15184 = vst [vmem:[#allocation72_spill] sm:$0xff] %v12148_v60  ;;  %v4132_v51 = vpop.f32.mrb[175].mxu0  ;;  %v3325_v17 = vadd.f32 %v12159_v27, %v3324_v9  ;;  %v15191_v47 = vld [vmem:[#allocation183_spill] sm:$0xff]  ;;  %v2535_v16 = vsub.f32 %v15196_v61, %v15195_v1 }
 0x596   :  { %v2647_v57 = vsub.f32 %v15192_v63, %v15191_v47  ;;  %v2756_v52 = vmul.f32 1.442695, %v2532_v6  ;;  %v15197_v6 = vld [vmem:[#allocation12_spill] sm:$0xff] }
 0x597   :  { %v15198_v63 = vld [vmem:[#allocation36_spill] sm:$0xff] }
 0x598   :  { %v2986_v9 = vmul.f32 1.442695, %v2647_v57  ;;  %v15199_v57 = vld [vmem:[#allocation150_spill] sm:$0xff] }
 0x59c   :  { %4446 = vmatmul.mubr.bf16.gmra.mrb[188].mxu0 %v3700_v45  ;;  %v15193_v45 = vld [vmem:[#allocation162_spill] sm:$0xff] }
 0x59e   :  { %3106 = vadd.xlane.f32.xlu0 %v3105_v44  ;;  %v2646_v44 = vsub.f32 %v15193_v45, %v15191_v47  ;;  %v2762_v47 = vmul.f32 1.442695, %v2535_v16  ;;  %v15200_v16 = vld [vmem:[#allocation151_spill] sm:$0xff] }
 0x5a2   :  { %3326 = vadd.xlane.f32.xlu0 %v3325_v17  ;;  %v15194_v17 = vld [vmem:[#allocation48_spill] sm:$0xff] }
 0x5a4   :  { %4146 = vrot.lane.b32.xlu1 %v15186_v26, %s8439_s17 }
 0x5a5   :  { %v12164_v36 = vpop.f32.mrb[108].mxu1 }
 0x5a6   :  { %15185 = vst [vmem:[#allocation173_spill] sm:$0xff] %v12164_v36  ;;  %v3880_v46 = vpop.f32.mrb[109].mxu1  ;;  %v12170_v56 = vpop.xlane.xlu1 %2298 }
 0x5a7   :  { %v12168_v41 = vpop.f32.mrb[110].mxu1  ;;  %v2984_v46 = vmul.f32 1.442695, %v2646_v44 }
 0x5a8   :  { %15187 = vst [vmem:[#allocation75_spill] sm:$0xff] %v12168_v41  ;;  %v3883_v48 = vpop.f32.mrb[111].mxu1 }
 0x5aa   :  { %v3315_v25 = vpop.xlane.xlu1 %3314 }
 0x5ad   :  { %v12172_v19 = vpop.xlane.xlu0 %2294 }
 0x5ae   :  { %v12180_v51 = vpop.xlane.xlu1 %2302 }
 0x5b1   :  { %v3087_v22 = vpop.xlane.xlu0 %3086 }
 0x5b2   :  { %8028 = vrcp.f32 %v3087_v22  ;;  %v12186_v48 = vpop.xlane.xlu1 %2306 }
 0x5b5   :  { %v3091_v20 = vpop.xlane.xlu0 %3090 }
 0x5b6   :  { %8030 = vrcp.f32 %v3091_v20  ;;  %v2645_v20 = vsub.f32 %v15199_v57, %v15198_v63 }
 0x5b7   :  { %8032 = vpow2.f32 %v2758_v24  ;;  %v2534_v24 = vsub.f32 %v15197_v6, %v15195_v1 }
 0x5b8   :  { %4144 = vrot.lane.b32.xlu0 %v15194_v17, %s8439_s17  ;;  %8034 = vrcp.f32 %v3315_v25 }
 0x5b9   :  { %v3311_v26 = vpop.xlane.xlu0 %3310  ;;  %8036 = vpow2.f32 %v2756_v52  ;;  %v4139_v52 = vpop.permute.xlu1 %4138  ;;  %v2760_v1 = vmul.f32 1.442695, %v2534_v24 }
 0x5ba   :  { %8038 = vrcp.f32 %v3311_v26 }
 0x5bb   :  { %8040 = vpow2.f32 %v2986_v9 }
 0x5bc   :  { %v8029_v53 = vpop.eup %8028  ;;  %8042 = vpow2.f32 %v2984_v46 }
 0x5bd   :  { %v4137_v22 = vpop.permute.xlu0 %4136  ;;  %v3489_v44 = vmul.f32 %v8029_v53, %v11920_v35  ;;  %v3488_v17 = vmul.f32 %v8029_v53, %v11938_v10  ;;  %8044 = vpow2.f32 %v2762_v47  ;;  %v2982_v35 = vmul.f32 1.442695, %v2645_v20 }
 0x5be   :  { %4203 = vmatpush1.bf16.msra.mxu1 %v4137_v22  ;;  %v2644_v22 = vsub.f32 %v15200_v16, %v15198_v63  ;;  %8046 = vpow2.f32 %v2760_v1 }
 0x5bf   :  { %4204 = vmatprep.subr.bf16.mxu1 %v14971_v42  ;;  %8048 = vpow2.f32 %v2982_v35 }
 0x5c0   :  { %v8031_v25 = vpop.eup %8030  ;;  %v2980_v63 = vmul.f32 1.442695, %v2644_v22 }
 0x5c1   :  { %v12195_v45 = vpop.eup %8032  ;;  %v3491_v9 = vmul.f32 %v8031_v25, %v11948_v8  ;;  %v3490_v26 = vmul.f32 %v8031_v25, %v11954_v13 }
 0x5c2   :  { %4205 = vmatpush1.bf16.msra.mxu1 %v4139_v52  ;;  %v8035_v46 = vpop.eup %8034  ;;  %v3108_v8 = vsel %vm2131_vm3, %v12195_v45, 0.0  ;;  %8050 = vpow2.f32 %v2980_v63  ;;  %v15206_v63 = vld [vmem:[#allocation24_spill] sm:$0xff] }
 0x5c3   :  { %4206 = vmatprep.subr.bf16.mxu1 %v14971_v42  ;;  %v12202_v61 = vpop.eup %8036  ;;  %v3647_v6 = vpack.c.bf16 %v3491_v9, %v3489_v44  ;;  %v3646_v57 = vpack.c.bf16 %v3490_v26, %v3488_v17  ;;  %v3603_v53 = vmul.f32 %v8035_v46, %v11893_v18  ;;  %v3602_v25 = vmul.f32 %v8035_v46, %v11908_v40 }
 0x5c4   :  { %v8039_v52 = vpop.eup %8038  ;;  %v3109_v47 = vadd.f32 %v12202_v61, %v3108_v8 }
 0x5c5   :  { %v12208_v10 = vpop.eup %8040  ;;  %6746 = vmatprep.mubr.msk.bf16.mxu1 %vm2131_vm3, %v3647_v6  ;;  %v3601_v13 = vmul.f32 %v8039_v52, %v11964_v33  ;;  %v3600_v24 = vmul.f32 %v8039_v52, %v11970_v14  ;;  %v15201_v6 = vld [vmem:[#allocation51_spill] sm:$0xff] }
 0x5c6   :  { %3909 = vmatmul.mubr.bf16.gmra.mrb[124].mxu1 %v3646_v57  ;;  %v12216_v9 = vpop.eup %8042  ;;  %v3336_v17 = vsel %vm2131_vm3, %v12208_v10, 0.0 }
 0x5c7   :  { %v3703_v20 = vpack.c.bf16 %v3603_v53, %v3601_v13  ;;  %v3702_v44 = vpack.c.bf16 %v3602_v25, %v3600_v24  ;;  %v3337_v18 = vadd.f32 %v12216_v9, %v3336_v17  ;;  %v12222_v40 = vpop.eup %8044  ;;  %v15204_v13 = vld [vmem:[#allocation166_spill] sm:$0xff]  ;;  %v15205_v53 = vld [vmem:[#allocation15_spill] sm:$0xff] }
 0x5c8   :  { %3110 = vadd.xlane.f32.xlu1 %v3109_v47  ;;  %v12224_v14 = vpop.eup %8046  ;;  %v3112_v33 = vsel %vm2131_vm3, %v12222_v40, 0.0  ;;  %v2537_v24 = vsub.f32 %v15205_v53, %v15204_v13  ;;  %v2536_v47 = vsub.f32 %v15206_v63, %v15204_v13  ;;  %v15211_v13 = vld [vmem:[#allocation169_spill] sm:$0xff]  ;;  %v15212_v63 = vld [vmem:[#allocation19_spill] sm:$0xff] }
 0x5c9   :  { %6774 = vmatprep.mubr.msk.bf16.mxu0 %vm2131_vm3, %v3703_v20  ;;  %v12228_v26 = vpop.eup %8048  ;;  %v3113_v46 = vadd.f32 %v12224_v14, %v3112_v33  ;;  %v15207_v20 = vld [vmem:[#allocation185_spill] sm:$0xff] }
 0x5ca   :  { %4454 = vmatmul.mubr.bf16.gmra.mrb[192].mxu0 %v3702_v44  ;;  %v3332_v16 = vsel %vm2131_vm3, %v12228_v26, 0.0  ;;  %v15208_v44 = vld [vmem:[#allocation164_spill] sm:$0xff] }
 0x5cb   :  { %v2651_v17 = vsub.f32 %v15208_v44, %v15207_v20  ;;  %v2539_v44 = vsub.f32 %v15212_v63, %v15211_v13 }
 0x5cc   :  { %3338 = vadd.xlane.f32.xlu1 %v3337_v18  ;;  %v12231_v1 = vpop.eup %8050  ;;  %v2766_v18 = vmul.f32 1.442695, %v2537_v24 }
 0x5cd   :  { %v3333_v22 = vadd.f32 %v12231_v1, %v3332_v16  ;;  %v15209_v16 = vld [vmem:[#allocation167_spill] sm:$0xff] }
 0x5d7   :  { %3114 = vadd.xlane.f32.xlu0 %v3113_v46  ;;  %v2764_v46 = vmul.f32 1.442695, %v2536_v47  ;;  %v15213_v47 = vld [vmem:[#allocation35_spill] sm:$0xff] }
 0x5db   :  { %3334 = vadd.xlane.f32.xlu0 %v3333_v22  ;;  %v2650_v22 = vsub.f32 %v15209_v16, %v15207_v20  ;;  %v15215_v16 = vld [vmem:[#allocation156_spill] sm:$0xff] }
 0x5dd   :  { %4150 = vrot.lane.b32.xlu1 %v15201_v6, %s8439_s17  ;;  %v2994_v6 = vmul.f32 1.442695, %v2651_v17  ;;  %v2992_v53 = vmul.f32 1.442695, %v2650_v22  ;;  %v2770_v17 = vmul.f32 1.442695, %v2539_v44 }
 0x5e2   :  { %v12238_v57 = vpop.f32.mrb[112].mxu1 }
 0x5e3   :  { %15202 = vst [vmem:[#allocation76_spill] sm:$0xff] %v12238_v57  ;;  %v3888_v52 = vpop.f32.mrb[113].mxu1 }
 0x5e4   :  { %v12240_v35 = vpop.f32.mrb[114].mxu1  ;;  %v15210_v52 = vld [vmem:[#allocation50_spill] sm:$0xff] }
 0x5e5   :  { %15203 = vst [vmem:[#allocation82_spill] sm:$0xff] %v12240_v35  ;;  %v3891_v8 = vpop.f32.mrb[115].mxu1 }
 0x5e7   :  { %v3099_v25 = vpop.xlane.xlu1 %3098 }
 0x5e8   :  { %8052 = vrcp.f32 %v3099_v25 }
 0x5ee   :  { %v3095_v33 = vpop.xlane.xlu0 %3094 }
 0x5ef   :  { %8054 = vrcp.f32 %v3095_v33  ;;  %v2538_v33 = vsub.f32 %v15213_v47, %v15211_v13  ;;  %v15216_v47 = vld [vmem:[#allocation157_spill] sm:$0xff] }
 0x5f0   :  { %8056 = vpow2.f32 %v2766_v18  ;;  %v15214_v18 = vld [vmem:[#allocation180_spill] sm:$0xff] }
 0x5f1   :  { %4148 = vrot.lane.b32.xlu0 %v15210_v52, %s8439_s17  ;;  %8058 = vpow2.f32 %v2764_v46  ;;  %v2649_v52 = vsub.f32 %v15215_v16, %v15214_v18  ;;  %v2648_v16 = vsub.f32 %v15216_v47, %v15214_v18 }
 0x5f2   :  { %v3319_v8 = vpop.xlane.xlu0 %3318  ;;  %8060 = vpow2.f32 %v2994_v6  ;;  %v8053_v25 = vpop.eup %8052 }
 0x5f3   :  { %8062 = vrcp.f32 %v3319_v8  ;;  %v3495_v22 = vmul.f32 %v8053_v25, %v12036_v37  ;;  %v3494_v8 = vmul.f32 %v8053_v25, %v12040_v31  ;;  %v2988_v25 = vmul.f32 1.442695, %v2648_v16 }
 0x5f6   :  { %v3323_v24 = vpop.xlane.xlu0 %3322 }
 0x5f7   :  { %8064 = vrcp.f32 %v3323_v24  ;;  %v2768_v24 = vmul.f32 1.442695, %v2538_v33 }
 0x5f8   :  { %8066 = vpow2.f32 %v2992_v53 }
 0x5f9   :  { %v8055_v20 = vpop.eup %8054  ;;  %8068 = vpow2.f32 %v2770_v17 }
 0x5fa   :  { %v4141_v60 = vpop.permute.xlu0 %4140  ;;  %v3493_v46 = vmul.f32 %v8055_v20, %v12046_v2  ;;  %v3492_v6 = vmul.f32 %v8055_v20, %v12049_v7  ;;  %v12262_v63 = vpop.eup %8056  ;;  %v2990_v2 = vmul.f32 1.442695, %v2649_v52  ;;  %8070 = vpow2.f32 %v2768_v24 }
 0x5fb   :  { %4207 = vmatpush1.bf16.msra.mxu1 %v4141_v60  ;;  %v12265_v44 = vpop.eup %8058  ;;  %v3116_v37 = vsel %vm2131_vm3, %v12262_v63, 0.0  ;;  %v4143_v7 = vpop.permute.xlu1 %4142 }
 0x5fc   :  { %v3649_v13 = vpack.c.bf16 %v3495_v22, %v3493_v46  ;;  %4208 = vmatprep.subr.bf16.mxu1 %v14971_v42  ;;  %v3648_v53 = vpack.c.bf16 %v3494_v8, %v3492_v6  ;;  %v12269_v30 = vpop.eup %8060  ;;  %8072 = vpow2.f32 %v2990_v2  ;;  %v3117_v33 = vadd.f32 %v12265_v44, %v3116_v37  ;;  %v15217_v2 = vld [vmem:[#allocation9_spill] sm:$0xff] }
 0x5fd   :  { %v8063_v31 = vpop.eup %8062  ;;  %v3344_v20 = vsel %vm2131_vm3, %v12269_v30, 0.0  ;;  %8074 = vpow2.f32 %v2988_v25 }
 0x5fe   :  { %6747 = vmatprep.mubr.msk.bf16.mxu1 %vm2131_vm3, %v3649_v13  ;;  %v3605_v18 = vmul.f32 %v8063_v31, %v12053_v59  ;;  %v3604_v46 = vmul.f32 %v8063_v31, %v12060_v62  ;;  %v15219_v31 = vld [vmem:[#allocation188_spill] sm:$0xff] }
 0x5ff   :  { %3917 = vmatmul.mubr.bf16.gmra.mrb[128].mxu1 %v3648_v53 }
 0x600   :  { %4209 = vmatpush1.bf16.msra.mxu1 %v4143_v7  ;;  %v15220_v7 = vld [vmem:[#allocation168_spill] sm:$0xff] }
 0x601   :  { %v8065_v60 = vpop.eup %8064  ;;  %4210 = vmatprep.subr.bf16.mxu1 %v14971_v42  ;;  %3118 = vadd.xlane.f32.xlu1 %v3117_v33 }
 0x602   :  { %v12278_v17 = vpop.eup %8066  ;;  %v3607_v52 = vmul.f32 %v8065_v60, %v12064_v38  ;;  %v3606_v22 = vmul.f32 %v8065_v60, %v12067_v21  ;;  %v2541_v60 = vsub.f32 %v15220_v7, %v15219_v31 }
 0x603   :  { %v3345_v24 = vadd.f32 %v12278_v17, %v3344_v20  ;;  %v12286_v13 = vpop.eup %8068 }
 0x604   :  { %v3705_v6 = vpack.c.bf16 %v3607_v52, %v3605_v18  ;;  %v3704_v8 = vpack.c.bf16 %v3606_v22, %v3604_v46  ;;  %v12288_v53 = vpop.eup %8070  ;;  %v3120_v62 = vsel %vm2131_vm3, %v12286_v13, 0.0  ;;  %v15222_v18 = vld [vmem:[#allocation13_spill] sm:$0xff]  ;;  %v2774_v46 = vmul.f32 1.442695, %v2541_v60  ;;  %v15223_v22 = vld [vmem:[#allocation99_spill] sm:$0xff] }
 0x605   :  { %3346 = vadd.xlane.f32.xlu1 %v3345_v24  ;;  %v3121_v38 = vadd.f32 %v12288_v53, %v3120_v62  ;;  %v2540_v52 = vsub.f32 %v15222_v18, %v15219_v31  ;;  %v15225_v62 = vld [vmem:[#allocation184_spill] sm:$0xff]  ;;  %v15230_v60 = vld [vmem:[#allocation163_spill] sm:$0xff] }
 0x606   :  { %6775 = vmatprep.mubr.msk.bf16.mxu0 %vm2131_vm3, %v3705_v6  ;;  %v12290_v59 = vpop.eup %8072  ;;  %v15224_v6 = vld [vmem:[#allocation6_spill] sm:$0xff]  ;;  %8076 = vpow2.f32 %v2774_v46  ;;  %v15229_v31 = vld [vmem:[#allocation52_spill] sm:$0xff]  ;;  %v2653_v18 = vsub.f32 %v15230_v60, %v15225_v62  ;;  %v15232_v46 = vld [vmem:[#allocation93_spill] sm:$0xff] }
 0x607   :  { %4462 = vmatmul.mubr.bf16.gmra.mrb[196].mxu0 %v3704_v8  ;;  %v12295_v21 = vpop.eup %8074  ;;  %v3340_v47 = vsel %vm2131_vm3, %v12290_v59, 0.0  ;;  %v2655_v8 = vsub.f32 %v15224_v6, %v15223_v22 }
 0x608   :  { %v3341_v16 = vadd.f32 %v12295_v21, %v3340_v47 }
 0x610   :  { %3122 = vadd.xlane.f32.xlu0 %v3121_v38  ;;  %v15226_v38 = vld [vmem:[#allocation165_spill] sm:$0xff] }
 0x611   :  { %v2652_v47 = vsub.f32 %v15226_v38, %v15225_v62  ;;  %v2998_v62 = vmul.f32 1.442695, %v2653_v18 }
 0x613   :  { %v2996_v6 = vmul.f32 1.442695, %v2652_v47 }
 0x614   :  { %3342 = vadd.xlane.f32.xlu0 %v3341_v16  ;;  %v2772_v16 = vmul.f32 1.442695, %v2540_v52  ;;  %v15231_v52 = vld [vmem:[#allocation190_spill] sm:$0xff] }
 0x616   :  { %4154 = vrot.lane.b32.xlu1 %v15217_v2, %s8439_s17  ;;  %v15227_v2 = vld [vmem:[#allocation175_spill] sm:$0xff] }
 0x617   :  { %v2654_v7 = vsub.f32 %v15227_v2, %v15223_v22  ;;  %v15235_v2 = vld [vmem:[#allocation114_spill] sm:$0xff] }
 0x619   :  { %v3000_v22 = vmul.f32 1.442695, %v2654_v7  ;;  %v15237_v7 = vld [vmem:[#allocation21_spill] sm:$0xff] }
 0x61c   :  { %v3103_v24 = vpop.xlane.xlu1 %3102 }
 0x61d   :  { %8078 = vrcp.f32 %v3103_v24  ;;  %v15234_v24 = vld [vmem:[#allocation43_spill] sm:$0xff] }
 0x61e   :  { %8080 = vpow2.f32 %v2772_v16  ;;  %v15236_v16 = vld [vmem:[#allocation20_spill] sm:$0xff] }
 0x61f   :  { %v12302_v37 = vpop.f32.mrb[116].mxu1  ;;  %v2542_v60 = vsub.f32 %v15236_v16, %v15231_v52 }
 0x620   :  { %15218 = vst [vmem:[#allocation78_spill] sm:$0xff] %v12302_v37  ;;  %v3896_v25 = vpop.f32.mrb[117].mxu1  ;;  %v3331_v11 = vpop.xlane.xlu1 %3330  ;;  %v2547_v37 = vsub.f32 %v15235_v2, %v15234_v24 }
 0x621   :  { %v12306_v33 = vpop.f32.mrb[118].mxu1  ;;  %v3002_v25 = vmul.f32 1.442695, %v2655_v8  ;;  %v15233_v8 = vld [vmem:[#allocation40_spill] sm:$0xff] }
 0x622   :  { %15221 = vst [vmem:[#allocation81_spill] sm:$0xff] %v12306_v33  ;;  %v3899_v20 = vpop.f32.mrb[119].mxu1  ;;  %v2543_v33 = vsub.f32 %v15232_v46, %v15231_v52  ;;  %v12332_v46 = vpop.eup %8076 }
 0x623   :  { %v2545_v20 = vsub.f32 %v15228_v12, %v11527_v0  ;;  %v2544_v12 = vsub.f32 %v15233_v8, %v11527_v0  ;;  %v2786_v0 = vmul.f32 1.442695, %v2547_v37  ;;  %v2776_v8 = vmul.f32 1.442695, %v2542_v60 }
 0x624   :  { %v2778_v35 = vmul.f32 1.442695, %v2543_v33  ;;  %v15239_v33 = vld [vmem:[#allocation179_spill] sm:$0xff]  ;;  %v3124_v37 = vsel %vm2131_vm3, %v12332_v46, 0.0 }
 0x625   :  { %v2656_v52 = vsub.f32 %v15239_v33, %v11547_v34 }
 0x62a   :  { %4152 = vrot.lane.b32.xlu0 %v15229_v31, %s8439_s17  ;;  %v2782_v31 = vmul.f32 1.442695, %v2545_v20  ;;  %v15238_v20 = vld [vmem:[#allocation139_spill] sm:$0xff] }
 0x62b   :  { %v3107_v38 = vpop.xlane.xlu0 %3106 }
 0x62c   :  { %8082 = vrcp.f32 %v3107_v38  ;;  %v2780_v38 = vmul.f32 1.442695, %v2544_v12 }
 0x62d   :  { %8084 = vpow2.f32 %v3002_v25  ;;  %v2546_v25 = vsub.f32 %v15237_v7, %v15234_v24 }
 0x62e   :  { %8086 = vrcp.f32 %v3331_v11  ;;  %v2657_v11 = vsub.f32 %v15238_v20, %v11547_v34 }
 0x62f   :  { %8088 = vpow2.f32 %v2996_v6  ;;  %v3327_v47 = vpop.xlane.xlu0 %3326  ;;  %v8079_v6 = vpop.eup %8078  ;;  %v2784_v24 = vmul.f32 1.442695, %v2546_v25 }
 0x630   :  { %8090 = vrcp.f32 %v3327_v47  ;;  %v3006_v2 = vmul.f32 1.442695, %v2657_v11  ;;  %v12348_v34 = vmul.f32 %v8079_v6, %v12120_v29  ;;  %v4147_v47 = vpop.permute.xlu1 %4146  ;;  %v3497_v60 = vmul.f32 %v8079_v6, %v12117_v32  ;;  %v15241_v29 = vld [vmem:[#allocation182_spill] sm:$0xff]  ;;  %v15242_v6 = vld [vmem:[#allocation23_spill] sm:$0xff] }
 0x631   :  { %8092 = vpow2.f32 %v3000_v22  ;;  %v12338_v22 = vpop.eup %8080  ;;  %v2658_v11 = vsub.f32 %v15241_v29, %v11574_v5 }
 0x632   :  { %8094 = vpow2.f32 %v2782_v31  ;;  %v15240_v31 = vld [vmem:[#allocation178_spill] sm:$0xff] }
 0x633   :  { %8096 = vpow2.f32 %v2998_v62  ;;  %v4145_v18 = vpop.permute.xlu0 %4144  ;;  %v2659_v62 = vsub.f32 %v15240_v31, %v11574_v5 }
 0x634   :  { %8098 = vpow2.f32 %v2778_v35  ;;  %4211 = vmatpush1.bf16.msra.mxu1 %v4145_v18 }
 0x635   :  { %8100 = vpow2.f32 %v2780_v38  ;;  %4212 = vmatprep.subr.bf16.mxu1 %v14971_v42  ;;  %v3004_v38 = vmul.f32 1.442695, %v2656_v52 }
 0x636   :  { %v8083_v12 = vpop.eup %8082  ;;  %8102 = vpow2.f32 %v2786_v0  ;;  %v3125_v0 = vadd.f32 %v12338_v22, %v3124_v37 }
 0x637   :  { %v12345_v35 = vpop.eup %8084  ;;  %v12351_v16 = vmul.f32 %v8083_v12, %v12152_v58  ;;  %v3499_v7 = vmul.f32 %v8083_v12, %v12146_v23  ;;  %8104 = vpow2.f32 %v2776_v8  ;;  %v3010_v23 = vmul.f32 1.442695, %v2659_v62 }
 0x638   :  { %v8087_v25 = vpop.eup %8086  ;;  %4213 = vmatpush1.bf16.msra.mxu1 %v4147_v47  ;;  %8106 = vpow2.f32 %v2784_v24  ;;  %v2549_v8 = vsub.f32 %v15242_v6, %v11731_v54  ;;  %v3352_v33 = vsel %vm2131_vm3, %v12345_v35, 0.0  ;;  %v3008_v62 = vmul.f32 1.442695, %v2658_v11  ;;  %v15243_v47 = vld [vmem:[#allocation177_spill] sm:$0xff] }
 0x639   :  { %v12356_v20 = vpop.eup %8088  ;;  %v3651_v18 = vpack.c.bf16 %v3499_v7, %v3497_v60  ;;  %4214 = vmatprep.subr.bf16.mxu1 %v14971_v42  ;;  %8108 = vpow2.f32 %v3006_v2  ;;  %v3611_v24 = vmul.f32 %v8087_v25, %v12122_v50  ;;  %v3610_v12 = vmul.f32 %v8087_v25, %v12136_v39  ;;  %v15244_v50 = vld [vmem:[#allocation18_spill] sm:$0xff] }
 0x63a   :  { %v8091_v58 = vpop.eup %8090  ;;  %8110 = vpow2.f32 %v3004_v38  ;;  %3126 = vadd.xlane.f32.xlu1 %v3125_v0  ;;  %v2548_v60 = vsub.f32 %v15243_v47, %v11731_v54  ;;  %v15245_v54 = vld [vmem:[#allocation112_spill] sm:$0xff] }
 0x63b   :  { %v12367_v52 = vpop.eup %8092  ;;  %6759 = vmatprep.mubr.msk.bf16.mxu1 %vm2131_vm3, %v3651_v18  ;;  %v3609_v5 = vmul.f32 %v8091_v58, %v12156_v28  ;;  %v3608_v37 = vmul.f32 %v8091_v58, %v12159_v27  ;;  %8112 = vpow2.f32 %v3010_v23  ;;  %v2551_v28 = vsub.f32 %v15244_v50, %v11724_v55 }
 0x63c   :  { %v12374_v2 = vpop.eup %8094  ;;  %v2790_v27 = vmul.f32 1.442695, %v2549_v8  ;;  %v3353_v39 = vadd.f32 %v12367_v52, %v3352_v33  ;;  %8114 = vpow2.f32 %v3008_v62  ;;  %v2550_v11 = vsub.f32 %v15245_v54, %v11724_v55  ;;  %v15246_v62 = vld [vmem:[#allocation118_spill] sm:$0xff] }
 0x63d   :  { %v12376_v31 = vpop.eup %8096  ;;  %v3707_v7 = vpack.c.bf16 %v3611_v24, %v3609_v5  ;;  %v3706_v29 = vpack.c.bf16 %v3610_v12, %v3608_v37  ;;  %v3132_v38 = vsel %vm2131_vm3, %v12374_v2, 0.0  ;;  %v2788_v58 = vmul.f32 1.442695, %v2548_v60 }
 0x63e   :  { %v12380_v18 = vpop.eup %8098  ;;  %3354 = vadd.xlane.f32.xlu1 %v3353_v39  ;;  %v2794_v6 = vmul.f32 1.442695, %v2551_v28  ;;  %8116 = vpow2.f32 %v2790_v27  ;;  %v2555_v8 = vsub.f32 %v11543_v43, %v11846_v49  ;;  %v2792_v12 = vmul.f32 1.442695, %v2550_v11  ;;  %v15249_v11 = vld [vmem:[#allocation94_spill] sm:$0xff] }
 0x63f   :  { %v12385_v25 = vpop.eup %8100  ;;  %6776 = vmatprep.mubr.msk.bf16.mxu0 %vm2131_vm3, %v3707_v7  ;;  %v3128_v55 = vsel %vm2131_vm3, %v12380_v18, 0.0  ;;  %8118 = vpow2.f32 %v2788_v58  ;;  %v2554_v47 = vsub.f32 %v15246_v62, %v11846_v49  ;;  %v2557_v7 = vsub.f32 %v11679_v4, %v11983_v3  ;;  %v15248_v4 = vld [vmem:[#allocation171_spill] sm:$0xff] }
 0x640   :  { %v12390_v0 = vpop.eup %8102  ;;  %4470 = vmatmul.mubr.bf16.gmra.mrb[200].mxu0 %v3706_v29  ;;  %v3133_v33 = vadd.f32 %v12385_v25, %v3132_v38  ;;  %8120 = vpow2.f32 %v2794_v6  ;;  %v2802_v43 = vmul.f32 1.442695, %v2555_v8  ;;  %v3348_v49 = vsel %vm2131_vm3, %v12376_v31, 0.0  ;;  %v15247_v38 = vld [vmem:[#allocation58_spill] sm:$0xff] }
 0x641   :  { %v12394_v23 = vpop.eup %8104  ;;  %v3136_v24 = vsel %vm2131_vm3, %v12390_v0, 0.0  ;;  %8122 = vpow2.f32 %v2792_v12  ;;  %v2800_v39 = vmul.f32 1.442695, %v2554_v47  ;;  %v2556_v54 = vsub.f32 %v15247_v38, %v11983_v3  ;;  %v15250_v3 = vld [vmem:[#allocation4_spill] sm:$0xff] }
 0x642   :  { %v12399_v5 = vpop.eup %8106  ;;  %3134 = vadd.xlane.f32.xlu1 %v3133_v33  ;;  %v3129_v50 = vadd.f32 %v12394_v23, %v3128_v55  ;;  %8124 = vpow2.f32 %v2802_v43  ;;  %v2559_v58 = vsub.f32 %v15249_v11, %v15248_v4  ;;  %v2806_v6 = vmul.f32 1.442695, %v2557_v7  ;;  %v15251_v7 = vld [vmem:[#allocation60_spill] sm:$0xff]  ;;  %v15253_v11 = vld [vmem:[#allocation127_spill] sm:$0xff] }
 0x643   :  { %v12403_v37 = vpop.eup %8108  ;;  %v3137_v29 = vadd.f32 %v12399_v5, %v3136_v24  ;;  %v3349_v24 = vadd.f32 %v12356_v20, %v3348_v49  ;;  %8126 = vpow2.f32 %v2800_v39  ;;  %v2558_v62 = vsub.f32 %v15250_v3, %v15248_v4 }
 0x644   :  { %v12409_v60 = vpop.eup %8110  ;;  %v3356_v28 = vsel %vm2131_vm3, %v12403_v37, 0.0  ;;  %v2804_v47 = vmul.f32 1.442695, %v2556_v54  ;;  %v2810_v43 = vmul.f32 1.442695, %v2559_v58  ;;  %8128 = vpow2.f32 %v2806_v6  ;;  %v15252_v54 = vld [vmem:[#allocation31_spill] sm:$0xff] }
 0x645   :  { %v12417_v27 = vpop.eup %8112  ;;  %v3357_v8 = vadd.f32 %v12409_v60, %v3356_v28  ;;  %v2808_v39 = vmul.f32 1.442695, %v2558_v62  ;;  %v2560_v4 = vsub.f32 %v15252_v54, %v12080_v15  ;;  %v15254_v58 = vld [vmem:[#allocation66_spill] sm:$0xff] }
 0x646   :  { %3138 = vadd.xlane.f32.xlu1 %v3137_v29  ;;  %v12426_v33 = vpop.eup %8114  ;;  %v3360_v55 = vsel %vm2131_vm3, %v12417_v27, 0.0  ;;  %v2561_v29 = vsub.f32 %v15251_v7, %v12080_v15  ;;  %8130 = vpow2.f32 %v2804_v47  ;;  %v2563_v6 = vsub.f32 %v15254_v58, %v15253_v11  ;;  %v15255_v62 = vld [vmem:[#allocation14_spill] sm:$0xff] }
 0x647   :  { %8132 = vpow2.f32 %v2810_v43  ;;  %v2562_v47 = vsub.f32 %v15255_v62, %v15253_v11  ;;  %v2812_v15 = vmul.f32 1.442695, %v2560_v4  ;;  %v15259_v4 = vld [vmem:[#allocation117_spill] sm:$0xff] }
 0x648   :  { %v12431_v12 = vpop.eup %8116  ;;  %8134 = vpow2.f32 %v2808_v39  ;;  %v2818_v43 = vmul.f32 1.442695, %v2563_v6  ;;  %v2564_v6 = vsub.f32 %v15259_v4, %v12172_v19 }
 0x649   :  { %3130 = vadd.xlane.f32.xlu0 %v3129_v50  ;;  %v3361_v50 = vadd.f32 %v12426_v33, %v3360_v55  ;;  %v12438_v28 = vpop.eup %8118  ;;  %v3140_v49 = vsel %vm2131_vm3, %v12431_v12, 0.0  ;;  %v2816_v11 = vmul.f32 1.442695, %v2562_v47 }
 0x64a   :  { %3358 = vadd.xlane.f32.xlu1 %v3357_v8  ;;  %v12442_v38 = vpop.eup %8120  ;;  %v2814_v8 = vmul.f32 1.442695, %v2561_v29 }
 0x64b   :  { %v12449_v55 = vpop.eup %8122  ;;  %v3144_v3 = vsel %vm2131_vm3, %v12442_v38, 0.0 }
 0x64c   :  { %v12453_v7 = vpop.eup %8124  ;;  %8136 = vpow2.f32 %v2814_v8 }
 0x64d   :  { %3350 = vadd.xlane.f32.xlu0 %v3349_v24  ;;  %v3141_v24 = vadd.f32 %v12438_v28, %v3140_v49  ;;  %v3145_v49 = vadd.f32 %v12449_v55, %v3144_v3  ;;  %v12460_v54 = vpop.eup %8126  ;;  %v3152_v32 = vsel %vm2131_vm3, %v12453_v7, 0.0  ;;  %8138 = vpow2.f32 %v2812_v15  ;;  %v15261_v3 = vld [vmem:[#allocation122_spill] sm:$0xff] }
 0x64e   :  { %3362 = vadd.xlane.f32.xlu1 %v3361_v50  ;;  %v15256_v50 = vld [vmem:[#allocation57_spill] sm:$0xff]  ;;  %8140 = vpow2.f32 %v2818_v43  ;;  %v2567_v62 = vsub.f32 %v15261_v3, %v12170_v56  ;;  %v3153_v57 = vadd.f32 %v12460_v54, %v3152_v32  ;;  %v15265_v32 = vld [vmem:[#allocation120_spill] sm:$0xff] }
 0x64f   :  { %v2565_v29 = vsub.f32 %v15256_v50, %v12172_v19  ;;  %8142 = vpow2.f32 %v2816_v11  ;;  %v15264_v19 = vld [vmem:[#allocation56_spill] sm:$0xff] }
 0x650   :  { %v2566_v43 = vsub.f32 %v15264_v19, %v12170_v56 }
 0x651   :  { %v2822_v50 = vmul.f32 1.442695, %v2565_v29  ;;  %v2826_v29 = vmul.f32 1.442695, %v2567_v62 }
 0x652   :  { %3142 = vadd.xlane.f32.xlu1 %v3141_v24  ;;  %v12466_v24 = vpop.eup %8128  ;;  %v2824_v19 = vmul.f32 1.442695, %v2566_v43 }
 0x653   :  { %15258 = vst [vmem:[#allocation192_spill] sm:$0xff] %v12466_v24  ;;  %v12475_v41 = vpop.eup %8130  ;;  %8144 = vpow2.f32 %v2822_v50 }
 0x654   :  { %15262 = vst [vmem:[#allocation42_spill] sm:$0xff] %v12475_v41  ;;  %v12479_v47 = vpop.eup %8132 }
 0x655   :  { %v12487_v3 = vpop.xlane.xlu1 %3110  ;;  %v3160_v11 = vsel %vm2131_vm3, %v12479_v47, 0.0 }
 0x656   :  { %3146 = vadd.xlane.f32.xlu1 %v3145_v49  ;;  %v3156_v49 = vsel %vm2131_vm3, %v12466_v24, 0.0  ;;  %v15272_v24 = vld [vmem:[#allocation174_spill] sm:$0xff] }
 0x657   :  { %v12462_v58 = vpop.f32.mrb[176].mxu0  ;;  %v3157_v36 = vadd.f32 %v12475_v41, %v3156_v49 }
 0x658   :  { %15257 = vst [vmem:[#allocation77_spill] sm:$0xff] %v12462_v58  ;;  %v4425_v39 = vpop.f32.mrb[177].mxu0 }
 0x659   :  { %v12470_v8 = vpop.f32.mrb[178].mxu0  ;;  %v2820_v39 = vmul.f32 1.442695, %v2564_v6  ;;  %v15268_v6 = vld [vmem:[#allocation119_spill] sm:$0xff] }
 0x65a   :  { %15260 = vst [vmem:[#allocation191_spill] sm:$0xff] %v12470_v8  ;;  %v4428_v58 = vpop.f32.mrb[179].mxu0  ;;  %3154 = vadd.xlane.f32.xlu1 %v3153_v57  ;;  %v12492_v57 = vpop.eup %8134  ;;  %v2570_v62 = vsub.f32 %v15268_v6, %v12186_v48 }
 0x65b   :  { %v2571_v58 = vsub.f32 %v15265_v32, %v12186_v48  ;;  %v12496_v56 = vpop.eup %8136  ;;  %8146 = vpow2.f32 %v2820_v39  ;;  %v3339_v39 = vpop.xlane.xlu1 %3338 }
 0x65c   :  { %v12481_v15 = vpop.f32.mrb[120].mxu1  ;;  %15267 = vst [vmem:[#allocation133_spill] sm:$0xff] %v12496_v56  ;;  %8148 = vpow2.f32 %v2826_v29  ;;  %v2832_v43 = vmul.f32 1.442695, %v2570_v62  ;;  %v15277_v62 = vld [vmem:[#allocation59_spill] sm:$0xff] }
 0x65d   :  { %15263 = vst [vmem:[#allocation38_spill] sm:$0xff] %v12481_v15  ;;  %v3904_v4 = vpop.f32.mrb[121].mxu1  ;;  %v2834_v32 = vmul.f32 1.442695, %v2571_v58  ;;  %8150 = vpow2.f32 %v2824_v19 }
 0x65e   :  { %v12489_v8 = vpop.f32.mrb[122].mxu1  ;;  %3158 = vadd.xlane.f32.xlu1 %v3157_v36  ;;  %v3164_v36 = vsel %vm2131_vm3, %v12496_v56, 0.0  ;;  %v15281_v56 = vld [vmem:[#allocation109_spill] sm:$0xff] }
 0x65f   :  { %15266 = vst [vmem:[#allocation126_spill] sm:$0xff] %v12489_v8  ;;  %v3907_v15 = vpop.f32.mrb[123].mxu1  ;;  %v12500_v50 = vpop.f32.mrb[180].mxu0  ;;  %8152 = vpow2.f32 %v2834_v32 }
 0x660   :  { %15269 = vst [vmem:[#allocation32_spill] sm:$0xff] %v12500_v50  ;;  %v4433_v4 = vpop.f32.mrb[181].mxu0  ;;  %v3161_v15 = vadd.f32 %v12492_v57, %v3160_v11  ;;  %v12505_v8 = vpop.eup %8138  ;;  %8154 = vrcp.f32 %v3339_v39 }
 0x661   :  { %v12502_v49 = vpop.f32.mrb[182].mxu0  ;;  %15271 = vst [vmem:[#allocation16_spill] sm:$0xff] %v12505_v8  ;;  %v12511_v48 = vpop.eup %8140  ;;  %v3165_v58 = vadd.f32 %v12505_v8, %v3164_v36  ;;  %v15276_v4 = vld [vmem:[#allocation64_spill] sm:$0xff]  ;;  %8156 = vpow2.f32 %v2832_v43  ;;  %v15279_v36 = vld [vmem:[#allocation17_spill] sm:$0xff] }
 0x662   :  { %15270 = vst [vmem:[#allocation138_spill] sm:$0xff] %v12502_v49  ;;  %v4436_v41 = vpop.f32.mrb[183].mxu0  ;;  %15273 = vst [vmem:[#allocation79_spill] sm:$0xff] %v12511_v48  ;;  %3162 = vadd.xlane.f32.xlu1 %v3161_v15  ;;  %v12516_v11 = vpop.eup %8142  ;;  %v2553_v49 = vsub.f32 %v15277_v62, %v15276_v4  ;;  %v2552_v39 = vsub.f32 %v15279_v36, %v15276_v4 }
 0x663   :  { %4156 = vrot.lane.b32.xlu0 %v15272_v24, %s8439_s17  ;;  %v3168_v24 = vsel %vm2131_vm3, %v12511_v48, 0.0  ;;  %v12522_v6 = vpop.eup %8144  ;;  %v2569_v48 = vsub.f32 %v15281_v56, %v12180_v51 }
 0x664   :  { %v12513_v29 = vpop.xlane.xlu0 %3114  ;;  %15275 = vst [vmem:[#allocation137_spill] sm:$0xff] %v12522_v6  ;;  %v3172_v43 = vsel %vm2131_vm3, %v12522_v6, 0.0  ;;  %v2798_v62 = vmul.f32 1.442695, %v2553_v49 }
 0x665   :  { %v12531_v8 = vpop.eup %8146  ;;  %v2830_v56 = vmul.f32 1.442695, %v2569_v48 }
 0x666   :  { %3166 = vadd.xlane.f32.xlu1 %v3165_v58  ;;  %15280 = vst [vmem:[#allocation28_spill] sm:$0xff] %v12531_v8  ;;  %v12537_v58 = vpop.eup %8148  ;;  %v3173_v4 = vadd.f32 %v12531_v8, %v3172_v43 }
 0x667   :  { %v12518_v41 = vpop.f32.mrb[184].mxu0  ;;  %v3176_v6 = vsel %vm2131_vm3, %v12537_v58, 0.0 }
 0x668   :  { %15274 = vst [vmem:[#allocation135_spill] sm:$0xff] %v12518_v41  ;;  %v3335_v15 = vpop.xlane.xlu0 %3334  ;;  %v4441_v19 = vpop.f32.mrb[185].mxu0  ;;  %v3169_v41 = vadd.f32 %v12516_v11, %v3168_v24  ;;  %v15282_v24 = vld [vmem:[#allocation110_spill] sm:$0xff] }
 0x669   :  { %8158 = vrcp.f32 %v3335_v15  ;;  %v12526_v32 = vpop.f32.mrb[186].mxu0  ;;  %v2796_v19 = vmul.f32 1.442695, %v2552_v39  ;;  %v2568_v36 = vsub.f32 %v15282_v24, %v12180_v51 }
 0x66a   :  { %15278 = vst [vmem:[#allocation113_spill] sm:$0xff] %v12526_v32  ;;  %v4444_v50 = vpop.f32.mrb[187].mxu0  ;;  %3170 = vadd.xlane.f32.xlu1 %v3169_v41  ;;  %8160 = vpow2.f32 %v2798_v62  ;;  %v4151_v41 = vpop.permute.xlu1 %4150 }
 0x66b   :  { %v12541_v50 = vpop.eup %8150  ;;  %8162 = vpow2.f32 %v2796_v19 }
 0x66c   :  { %v4149_v15 = vpop.permute.xlu0 %4148  ;;  %v12549_v49 = vpop.eup %8152  ;;  %v3177_v48 = vadd.f32 %v12541_v50, %v3176_v6  ;;  %8164 = vpow2.f32 %v2830_v56 }
 0x66d   :  { %4215 = vmatpush1.bf16.msra.mxu1 %v4149_v15  ;;  %v8155_v43 = vpop.eup %8154  ;;  %v3184_v62 = vsel %vm2131_vm3, %v12549_v49, 0.0 }
 0x66e   :  { %4216 = vmatprep.subr.bf16.mxu1 %v14971_v42  ;;  %3174 = vadd.xlane.f32.xlu1 %v3173_v4  ;;  %v12553_v8 = vpop.eup %8156  ;;  %v3614_v19 = vmul.f32 %v8155_v43, %v12216_v9 }
 0x66f   :  { %v12545_v32 = vpop.f32.mrb[188].mxu0 }
 0x670   :  { %15283 = vst [vmem:[#allocation115_spill] sm:$0xff] %v12545_v32  ;;  %v4449_v39 = vpop.f32.mrb[189].mxu0  ;;  %v2828_v32 = vmul.f32 1.442695, %v2568_v36 }
 0x671   :  { %4217 = vmatpush1.bf16.msra.mxu1 %v4151_v41  ;;  %v12551_v15 = vpop.f32.mrb[190].mxu0  ;;  %v3615_v41 = vmul.f32 %v8155_v43, %v12208_v10 }
 0x672   :  { %15284 = vst [vmem:[#allocation54_spill] sm:$0xff] %v12551_v15  ;;  %v4452_v51 = vpop.f32.mrb[191].mxu0  ;;  %4218 = vmatprep.subr.bf16.mxu1 %v14971_v42  ;;  %3178 = vadd.xlane.f32.xlu1 %v3177_v48  ;;  %8166 = vpow2.f32 %v2828_v32 }
 0x673   :  { %v8159_v24 = vpop.eup %8158  ;;  %v3185_v51 = vadd.f32 %v12553_v8, %v3184_v62 }
 0x674   :  { %v3613_v4 = vmul.f32 %v8159_v24, %v12228_v26  ;;  %v3612_v39 = vmul.f32 %v8159_v24, %v12231_v1  ;;  %v12565_v36 = vpop.eup %8160 }
 0x675   :  { %v12567_v56 = vpop.eup %8162  ;;  %v3148_v10 = vsel %vm2131_vm3, %v12565_v36, 0.0 }
 0x676   :  { %v3709_v6 = vpack.c.bf16 %v3615_v41, %v3613_v4  ;;  %v3708_v15 = vpack.c.bf16 %v3614_v19, %v3612_v39  ;;  %3186 = vadd.xlane.f32.xlu1 %v3185_v51  ;;  %v12569_v26 = vpop.eup %8164  ;;  %v3149_v9 = vadd.f32 %v12567_v56, %v3148_v10 }
 0x677   :  { %v3180_v32 = vsel %vm2131_vm3, %v12569_v26, 0.0 }
 0x678   :  { %6777 = vmatprep.mubr.msk.bf16.mxu0 %vm2131_vm3, %v3709_v6 }
 0x679   :  { %4478 = vmatmul.mubr.bf16.gmra.mrb[204].mxu0 %v3708_v15 }
 0x67c   :  { %v12574_v1 = vpop.eup %8166 }
 0x67d   :  { %v3181_v43 = vadd.f32 %v12574_v1, %v3180_v32 }
 0x682   :  { %3150 = vadd.xlane.f32.xlu0 %v3149_v9 }
 0x686   :  { %3182 = vadd.xlane.f32.xlu0 %v3181_v43 }
 0x68e   :  { %v3119_v15 = vpop.xlane.xlu1 %3118 }
 0x692   :  { %v3347_v62 = vpop.xlane.xlu1 %3346 }
 0x693   :  { %8168 = vrcp.f32 %v3347_v62 }
 0x696   :  { %v4155_v43 = vpop.permute.xlu1 %4154 }
 0x699   :  { %v12579_v48 = vpop.f32.mrb[124].mxu1 }
 0x69a   :  { %v3912_v24 = vpop.f32.mrb[125].mxu1 }
 0x69b   :  { %v12581_v4 = vpop.f32.mrb[126].mxu1 }
 0x69c   :  { %15285 = vst [vmem:[#allocation141_spill] sm:$0xff] %v12581_v4  ;;  %v3915_v41 = vpop.f32.mrb[127].mxu1 }
 0x69d   :  { %v3123_v39 = vpop.xlane.xlu0 %3122  ;;  %v12583_v19 = vpop.f32.mrb[192].mxu0 }
 0x69e   :  { %15286 = vst [vmem:[#allocation80_spill] sm:$0xff] %v12583_v19  ;;  %v4457_v51 = vpop.f32.mrb[193].mxu0  ;;  %v8169_v24 = vpop.eup %8168 }
 0x69f   :  { %v12585_v6 = vpop.f32.mrb[194].mxu0  ;;  %v3619_v51 = vmul.f32 %v8169_v24, %v12269_v30 }
 0x6a0   :  { %15287 = vst [vmem:[#allocation5_spill] sm:$0xff] %v12585_v6  ;;  %v4460_v10 = vpop.f32.mrb[195].mxu0 }
 0x6a1   :  { %v3343_v9 = vpop.xlane.xlu0 %3342  ;;  %v3618_v10 = vmul.f32 %v8169_v24, %v12278_v17 }
 0x6a2   :  { %8170 = vrcp.f32 %v3343_v9 }
 0x6a3   :  { %8172 = vrcp.f32 %v12513_v29 }
 0x6a4   :  { %8174 = vrcp.f32 %v12487_v3 }
 0x6a5   :  { %v4153_v32 = vpop.permute.xlu0 %4152  ;;  %8176 = vrcp.f32 %v3123_v39 }
 0x6a6   :  { %4219 = vmatpush1.bf16.msra.mxu1 %v4153_v32 }
 0x6a7   :  { %4220 = vmatprep.subr.bf16.mxu1 %v14971_v42 }
 0x6aa   :  { %4221 = vmatpush1.bf16.msra.mxu1 %v4155_v43 }
 0x6ab   :  { %4222 = vmatprep.subr.bf16.mxu1 %v14971_v42 }
 0x6ac   :  { %v8171_v41 = vpop.eup %8170 }
 0x6ad   :  { %v3617_v4 = vmul.f32 %v8171_v41, %v12290_v59  ;;  %v3616_v62 = vmul.f32 %v8171_v41, %v12295_v21 }
 0x6af   :  { %v3711_v6 = vpack.c.bf16 %v3619_v51, %v3617_v4  ;;  %v3710_v9 = vpack.c.bf16 %v3618_v10, %v3616_v62 }
 0x6b1   :  { %6778 = vmatprep.mubr.msk.bf16.mxu0 %vm2131_vm3, %v3711_v6  ;;  %v8173_v6 = vpop.eup %8172 }
 0x6b2   :  { %4486 = vmatmul.mubr.bf16.gmra.mrb[208].mxu0 %v3710_v9  ;;  %v8175_v62 = vpop.eup %8174 }
 0x6b3   :  { %v3501_v39 = vmul.f32 %v8175_v62, %v12195_v45 }
 0x6c7   :  { %v3127_v32 = vpop.xlane.xlu1 %3126 }
 0x6cb   :  { %v3355_v19 = vpop.xlane.xlu1 %3354 }
 0x6cc   :  { %8178 = vrcp.f32 %v3355_v19  ;;  %v8177_v19 = vpop.eup %8176 }
 0x6cd   :  { %8180 = vrcp.f32 %v3119_v15 }
 0x6cf   :  { %v3135_v43 = vpop.xlane.xlu1 %3134 }
 0x6d2   :  { %v12596_v42 = vpop.f32.mrb[128].mxu1 }
 0x6d3   :  { %v3920_v59 = vpop.f32.mrb[129].mxu1  ;;  %v3139_v21 = vpop.xlane.xlu1 %3138 }
 0x6d4   :  { %v12598_v30 = vpop.f32.mrb[130].mxu1  ;;  %v3503_v59 = vmul.f32 %v8173_v6, %v12222_v40 }
 0x6d5   :  { %v3923_v41 = vpop.f32.mrb[131].mxu1 }
 0x6d6   :  { %v3131_v17 = vpop.xlane.xlu0 %3130  ;;  %v3653_v15 = vpack.c.bf16 %v3503_v59, %v3501_v39 }
 0x6d7   :  { %v3359_v4 = vpop.xlane.xlu1 %3358 }
 0x6da   :  { %v3351_v24 = vpop.xlane.xlu0 %3350  ;;  %v12600_v51 = vpop.f32.mrb[196].mxu0 }
 0x6db   :  { %8182 = vrcp.f32 %v3351_v24  ;;  %v4465_v29 = vpop.f32.mrb[197].mxu0  ;;  %v3363_v10 = vpop.xlane.xlu1 %3362  ;;  %v15288_v24 = vpack.c.bf16 %v12351_v16, %v12348_v34 }
 0x6dc   :  { %8184 = vrcp.f32 %v3359_v4  ;;  %v12602_v3 = vpop.f32.mrb[198].mxu0  ;;  %v8179_v4 = vpop.eup %8178 }
 0x6dd   :  { %v4468_v9 = vpop.f32.mrb[199].mxu0  ;;  %8186 = vrcp.f32 %v3363_v10  ;;  %v8181_v29 = vpop.eup %8180  ;;  %v3500_v10 = vmul.f32 %v8175_v62, %v12202_v61  ;;  %v3622_v34 = vmul.f32 %v8179_v4, %v12367_v52 }
 0x6de   :  { %v4157_v41 = vpop.permute.xlu0 %4156  ;;  %8188 = vrcp.f32 %v3131_v17  ;;  %v3502_v9 = vmul.f32 %v8173_v6, %v12224_v14  ;;  %v3505_v39 = vmul.f32 %v8181_v29, %v12262_v63 }
 0x6df   :  { %4223 = vmatpush1.bf16.msra.mxu1 %v4157_v41  ;;  %8190 = vrcp.f32 %v3127_v32  ;;  %v3507_v41 = vmul.f32 %v8177_v19, %v12286_v13  ;;  %v3623_v32 = vmul.f32 %v8179_v4, %v12345_v35  ;;  %v3143_v16 = vpop.xlane.xlu1 %3142 }
 0x6e0   :  { %8192 = vrcp.f32 %v3139_v21  ;;  %v3652_v14 = vpack.c.bf16 %v3502_v9, %v3500_v10 }
 0x6e1   :  { %v3655_v61 = vpack.c.bf16 %v3507_v41, %v3505_v39  ;;  %8194 = vrcp.f32 %v3135_v43 }
 0x6e2   :  { %4235 = vmatmul.mubr.bf16.vlgmr.msra.gmra.mrb[132].mxu1 %v15288_v24 }
 0x6e3   :  { %6760 = vmatprep.mubr.msk.bf16.mxu1 %vm2131_vm3, %v3653_v15  ;;  %v3147_v52 = vpop.xlane.xlu1 %3146 }
 0x6e4   :  { %8196 = vrcp.f32 %v3147_v52 }
 0x6e5   :  { %v8183_v40 = vpop.eup %8182  ;;  %8198 = vrcp.f32 %v3143_v16 }
 0x6e6   :  { %v8185_v45 = vpop.eup %8184  ;;  %v3621_v17 = vmul.f32 %v8183_v40, %v12376_v31  ;;  %v3620_v59 = vmul.f32 %v8183_v40, %v12356_v20  ;;  %v3506_v20 = vmul.f32 %v8177_v19, %v12288_v53 }
 0x6e7   :  { %v8187_v15 = vpop.eup %8186  ;;  %v3625_v13 = vmul.f32 %v8185_v45, %v12403_v37  ;;  %v3624_v4 = vmul.f32 %v8185_v45, %v12409_v60 }
 0x6e8   :  { %v3713_v6 = vpack.c.bf16 %v3623_v32, %v3621_v17  ;;  %v3712_v24 = vpack.c.bf16 %v3622_v34, %v3620_v59  ;;  %v3627_v62 = vmul.f32 %v8187_v15, %v12417_v27  ;;  %v8189_v31 = vpop.eup %8188  ;;  %v3626_v37 = vmul.f32 %v8187_v15, %v12426_v33 }
 0x6e9   :  { %v8191_v63 = vpop.eup %8190  ;;  %v3511_v21 = vmul.f32 %v8189_v31, %v12380_v18  ;;  %v3504_v27 = vmul.f32 %v8181_v29, %v12265_v44  ;;  %v3510_v18 = vmul.f32 %v8189_v31, %v12394_v23 }
 0x6ea   :  { %4243 = vmatmul.mubr.bf16.gmra.mrb[136].mxu1 %v3652_v14  ;;  %6779 = vmatprep.mubr.msk.bf16.mxu0 %vm2131_vm3, %v3713_v6  ;;  %v3715_v35 = vpack.c.bf16 %v3627_v62, %v3625_v13  ;;  %v3509_v43 = vmul.f32 %v8191_v63, %v12332_v46  ;;  %v3714_v10 = vpack.c.bf16 %v3626_v37, %v3624_v4  ;;  %v8193_v41 = vpop.eup %8192  ;;  %v3155_v46 = vpop.xlane.xlu1 %3154 }
 0x6eb   :  { %6761 = vmatprep.mubr.msk.bf16.mxu1 %vm2131_vm3, %v3655_v61  ;;  %4494 = vmatmul.mubr.bf16.gmra.mrb[212].mxu0 %v3712_v24  ;;  %v3654_v9 = vpack.c.bf16 %v3506_v20, %v3504_v27  ;;  %v8195_v53 = vpop.eup %8194  ;;  %v3515_v33 = vmul.f32 %v8193_v41, %v12390_v0  ;;  %v3508_v44 = vmul.f32 %v8191_v63, %v12338_v22  ;;  %8200 = vrcp.f32 %v3155_v46 }
 0x6ec   :  { %6780 = vmatprep.mubr.msk.bf16.mxu0 %vm2131_vm3, %v3715_v35  ;;  %v3657_v40 = vpack.c.bf16 %v3511_v21, %v3509_v43  ;;  %v3513_v60 = vmul.f32 %v8195_v53, %v12374_v2  ;;  %v3514_v32 = vmul.f32 %v8193_v41, %v12399_v5  ;;  %v3512_v23 = vmul.f32 %v8195_v53, %v12385_v25  ;;  %v4510_v5 = vld [vmem:[%s14316_s5 + $0x10] sm:$0xff]  ;;  %v4511_v25 = vld [vmem:[%s14316_s5 + $0x18] sm:$0xff] }
 0x6ed   :  { %v3656_v19 = vpack.c.bf16 %v3510_v18, %v3508_v44 }
 0x6ee   :  { %v3659_v29 = vpack.c.bf16 %v3515_v33, %v3513_v60  ;;  %v8197_v45 = vpop.eup %8196  ;;  %v3159_v59 = vpop.xlane.xlu1 %3158  ;;  %v3658_v22 = vpack.c.bf16 %v3514_v32, %v3512_v23  ;;  %v15292_v60 = vld [vmem:[#allocation133_spill] sm:$0xff] }
 0x6ef   :  { %v8199_v17 = vpop.eup %8198  ;;  %v3519_v34 = vmul.f32 %v8197_v45, %v12442_v38  ;;  %v3518_v39 = vmul.f32 %v8197_v45, %v12449_v55 }
 0x6f0   :  { %v3517_v0 = vmul.f32 %v8199_v17, %v12431_v12  ;;  %v3516_v15 = vmul.f32 %v8199_v17, %v12438_v28  ;;  %v7410_v12 = vpack.c.bf16 %v4511_v25, %v4510_v5  ;;  %v15295_v5 = vld [vmem:[#allocation28_spill] sm:$0xff] }
 0x6f2   :  { %4251 = vmatmul.mubr.bf16.gmra.mrb[140].mxu1 %v3654_v9  ;;  %v3661_v16 = vpack.c.bf16 %v3519_v34, %v3517_v0  ;;  %v3163_v2 = vpop.xlane.xlu1 %3162  ;;  %v3660_v14 = vpack.c.bf16 %v3518_v39, %v3516_v15  ;;  %7418 = vmatprep.subr.bf16.mxu1 %v7410_v12  ;;  %v15293_v34 = vld [vmem:[#allocation16_spill] sm:$0xff]  ;;  %v15294_v0 = vld [vmem:[#allocation137_spill] sm:$0xff] }
 0x6f3   :  { %6762 = vmatprep.mubr.msk.bf16.mxu1 %vm2131_vm3, %v3657_v40  ;;  %4502 = vmatmul.mubr.bf16.gmra.mrb[216].mxu0 %v3714_v10  ;;  %8202 = vrcp.f32 %v3163_v2  ;;  %v15289_v10 = vld [vmem:[#allocation192_spill] sm:$0xff] }
 0x6f4   :  { %7411 = vmatprep.subr.bf16.mxu0 %v7410_v12  ;;  %7419 = vmatpush3.bf16.msra.mxu1 %v7410_v12  ;;  %8204 = vrcp.f32 %v3159_v59 }
 0x6f5   :  { %7413 = vmatpush3.bf16.msra.mxu0 %v7410_v12  ;;  %v8201_v31 = vpop.eup %8200 }
 0x6f6   :  { %v3167_v6 = vpop.xlane.xlu1 %3166  ;;  %v3523_v52 = vmul.f32 %v8201_v31, %v12453_v7  ;;  %v3522_v43 = vmul.f32 %v8201_v31, %v12460_v54  ;;  %v15290_v54 = vld [vmem:[#allocation79_spill] sm:$0xff] }
 0x6fa   :  { %4259 = vmatmul.mubr.bf16.gmra.mrb[144].mxu1 %v3656_v19  ;;  %v3171_v28 = vpop.xlane.xlu1 %3170 }
 0x6fb   :  { %6763 = vmatprep.mubr.msk.bf16.mxu1 %vm2131_vm3, %v3659_v29 }
 0x6fd   :  { %v8203_v35 = vpop.eup %8202 }
 0x6fe   :  { %v3175_v61 = vpop.xlane.xlu1 %3174  ;;  %v8205_v63 = vpop.eup %8204  ;;  %v3527_v4 = vmul.f32 %v8203_v35, %v12479_v47  ;;  %v15291_v47 = vld [vmem:[#allocation42_spill] sm:$0xff] }
 0x6ff   :  { %v3525_v41 = vmul.f32 %v8205_v63, %v15289_v10  ;;  %v3524_v44 = vmul.f32 %v8205_v63, %v15291_v47 }
 0x701   :  { %v3665_v53 = vpack.c.bf16 %v3527_v4, %v3525_v41 }
 0x702   :  { %4267 = vmatmul.mubr.bf16.gmra.mrb[148].mxu1 %v3658_v22  ;;  %v3179_v21 = vpop.xlane.xlu1 %3178 }
 0x703   :  { %6764 = vmatprep.mubr.msk.bf16.mxu1 %vm2131_vm3, %v3661_v16 }
 0x706   :  { %v3187_v46 = vpop.xlane.xlu1 %3186 }
 0x70a   :  { %4275 = vmatmul.mubr.bf16.gmra.mrb[152].mxu1 %v3660_v14 }
 0x70f   :  { %v3151_v38 = vpop.xlane.xlu0 %3150 }
 0x710   :  { %8206 = vrcp.f32 %v3151_v38 }
 0x711   :  { %8208 = vrcp.f32 %v3171_v28 }
 0x712   :  { %8210 = vrcp.f32 %v3167_v6 }
 0x713   :  { %v12648_v55 = vpop.f32.mrb[200].mxu0  ;;  %8212 = vrcp.f32 %v3179_v21 }
 0x714   :  { %v4473_v24 = vpop.f32.mrb[201].mxu0  ;;  %8214 = vrcp.f32 %v3175_v61 }
 0x715   :  { %v12650_v13 = vpop.f32.mrb[202].mxu0 }
 0x716   :  { %v4476_v62 = vpop.f32.mrb[203].mxu0 }
 0x71a   :  { %v8207_v20 = vpop.eup %8206 }
 0x71b   :  { %v3521_v37 = vmul.f32 %v8207_v20, %v12565_v36  ;;  %v3520_v27 = vmul.f32 %v8207_v20, %v12567_v56  ;;  %v8209_v18 = vpop.eup %8208  ;;  %v3526_v36 = vmul.f32 %v8203_v35, %v12492_v57  ;;  %v3183_v56 = vpop.xlane.xlu0 %3182 }
 0x71c   :  { %v8211_v7 = vpop.eup %8210  ;;  %v3531_v33 = vmul.f32 %v8209_v18, %v15290_v54  ;;  %8216 = vrcp.f32 %v3183_v56  ;;  %v3530_v59 = vmul.f32 %v8209_v18, %v12516_v11 }
 0x71d   :  { %v3663_v9 = vpack.c.bf16 %v3523_v52, %v3521_v37  ;;  %v3662_v40 = vpack.c.bf16 %v3522_v43, %v3520_v27  ;;  %v3529_v19 = vmul.f32 %v8211_v7, %v15292_v60  ;;  %v3664_v29 = vpack.c.bf16 %v3526_v36, %v3524_v44  ;;  %v8213_v17 = vpop.eup %8212  ;;  %v15296_v60 = vld [vmem:[#allocation62_spill] sm:$0xff] }
 0x71e   :  { %8218 = vrcp.f32 %v3187_v46  ;;  %v8215_v32 = vpop.eup %8214  ;;  %v3535_v57 = vmul.f32 %v8213_v17, %v12537_v58  ;;  %v3528_v23 = vmul.f32 %v8211_v7, %v15293_v34  ;;  %v3534_v14 = vmul.f32 %v8213_v17, %v12541_v50  ;;  %v4134_v50 = vld [vmem:[%s14316_s5] sm:$0xff]  ;;  %v15298_v17 = vld [vmem:[#allocation61_spill] sm:$0xff] }
 0x71f   :  { %6765 = vmatprep.mubr.msk.bf16.mxu1 %vm2131_vm3, %v3663_v9  ;;  %v3667_v45 = vpack.c.bf16 %v3531_v33, %v3529_v19  ;;  %v3533_v22 = vmul.f32 %v8215_v32, %v15294_v0  ;;  %v3532_v25 = vmul.f32 %v8215_v32, %v15295_v5  ;;  %v15300_v34 = vld [vmem:[#allocation30_spill] sm:$0xff]  ;;  %v15301_v0 = vld [vmem:[#allocation55_spill] sm:$0xff] }
 0x720   :  { %4283 = vmatmul.mubr.bf16.gmra.mrb[156].mxu1 %v3662_v40  ;;  %v3666_v16 = vpack.c.bf16 %v3530_v59, %v3528_v23  ;;  %v15305_v5 = vld [vmem:[#allocation34_spill] sm:$0xff] }
 0x721   :  { %6766 = vmatprep.mubr.msk.bf16.mxu1 %vm2131_vm3, %v3665_v53  ;;  %v3669_v2 = vpack.c.bf16 %v3535_v57, %v3533_v22  ;;  %v3668_v58 = vpack.c.bf16 %v3534_v14, %v3532_v25  ;;  %v15299_v57 = vld [vmem:[#allocation26_spill] sm:$0xff]  ;;  %v15304_v14 = vld [vmem:[#allocation69_spill] sm:$0xff] }
 0x726   :  { %v8217_v39 = vpop.eup %8216 }
 0x727   :  { %v3537_v6 = vmul.f32 %v8217_v39, %v12569_v26  ;;  %v3536_v28 = vmul.f32 %v8217_v39, %v12574_v1  ;;  %v4135_v26 = vld [vmem:[%s14316_s5 + $0x8] sm:$0xff] }
 0x728   :  { %4291 = vmatmul.mubr.bf16.gmra.mrb[160].mxu1 %v3664_v29  ;;  %v8219_v15 = vpop.eup %8218  ;;  %v15297_v29 = vld [vmem:[#allocation65_spill] sm:$0xff] }
 0x729   :  { %6767 = vmatprep.mubr.msk.bf16.mxu1 %vm2131_vm3, %v3667_v45  ;;  %v3539_v11 = vmul.f32 %v8219_v15, %v12549_v49  ;;  %v3538_v38 = vmul.f32 %v8219_v15, %v12553_v8  ;;  %v7414_v49 = vpack.c.bf16 %v4135_v26, %v4134_v50  ;;  %v15303_v15 = vld [vmem:[#allocation121_spill] sm:$0xff]  ;;  %v15310_v50 = vld [vmem:[#allocation78_spill] sm:$0xff] }
 0x72a   :  { %v15311_v26 = vld [vmem:[#allocation81_spill] sm:$0xff] }
 0x72b   :  { %v3671_v12 = vpack.c.bf16 %v3539_v11, %v3537_v6  ;;  %v3670_v24 = vpack.c.bf16 %v3538_v38, %v3536_v28  ;;  %7415 = vmatprep.subr.bf16.mxu1 %v7414_v49  ;;  %v15306_v11 = vld [vmem:[#allocation173_spill] sm:$0xff]  ;;  %v15307_v28 = vld [vmem:[#allocation75_spill] sm:$0xff]  ;;  %v15308_v38 = vld [vmem:[#allocation76_spill] sm:$0xff] }
 0x730   :  { %4299 = vmatmul.mubr.bf16.gmra.mrb[164].mxu1 %v3666_v16  ;;  %v15302_v16 = vld [vmem:[#allocation63_spill] sm:$0xff] }
 0x731   :  { %6768 = vmatprep.mubr.msk.bf16.mxu1 %vm2131_vm3, %v3669_v2 }
 0x738   :  { %4307 = vmatmul.mubr.bf16.gmra.mrb[168].mxu1 %v3668_v58 }
 0x739   :  { %6769 = vmatprep.mubr.msk.bf16.mxu1 %vm2131_vm3, %v3671_v12 }
 0x740   :  { %4315 = vmatmul.mubr.bf16.gmra.mrb[172].mxu1 %v3670_v24  ;;  %v15309_v24 = vld [vmem:[#allocation82_spill] sm:$0xff] }
 0x74c   :  { %v12683_v61 = vpop.f32.mrb[204].mxu0 }
 0x74d   :  { %v4481_v62 = vpop.f32.mrb[205].mxu0 }
 0x74e   :  { %v12685_v31 = vpop.f32.mrb[206].mxu0  ;;  %v15313_v62 = vld [vmem:[#allocation126_spill] sm:$0xff] }
 0x74f   :  { %v4484_v1 = vpop.f32.mrb[207].mxu0 }
 0x750   :  { %v15314_v1 = vld [vmem:[#allocation141_spill] sm:$0xff] }
 0x785   :  { %v12687_v35 = vpop.f32.mrb[208].mxu0 }
 0x786   :  { %v4489_v8 = vpop.f32.mrb[209].mxu0 }
 0x787   :  { %v12689_v63 = vpop.f32.mrb[210].mxu0 }
 0x788   :  { %v4492_v20 = vpop.f32.mrb[211].mxu0 }
 0x7b5   :  { %v4236_v52 = vpop.f32.mrb[132].mxu1 }
 0x7b6   :  { %v4238_v21 = vpop.f32.mrb[133].mxu1  ;;  %7090 = vmatprep.mubr.msk.f32.mxu0 %vm748_vm1, %v4236_v52 }
 0x7b7   :  { %v4239_v37 = vpop.f32.mrb[134].mxu1 }
 0x7b8   :  { %v4241_v27 = vpop.f32.mrb[135].mxu1  ;;  %7091 = vmatmul.mubr.msk.f32.vlgmr.msra.gmra.mrb[220].mxu0 %vm748_vm1, %v4239_v37  ;;  %v15315_v37 = vld [vmem:[#allocation123_spill] sm:$0xff] }
 0x7b9   :  { %v15317_v27 = vld [vmem:[#allocation130_spill] sm:$0xff] }
 0x7bd   :  { %v4244_v43 = vpop.f32.mrb[136].mxu1 }
 0x7be   :  { %v4246_v4 = vpop.f32.mrb[137].mxu1  ;;  %v12693_v9 = vpop.f32.mrb[212].mxu0  ;;  %7093 = vmatprep.mubr.msk.f32.mxu0 %vm748_vm1, %v4244_v43 }
 0x7bf   :  { %v4247_v40 = vpop.f32.mrb[138].mxu1  ;;  %v4497_v10 = vpop.f32.mrb[213].mxu0 }
 0x7c0   :  { %v4249_v41 = vpop.f32.mrb[139].mxu1  ;;  %v12696_v53 = vpop.f32.mrb[214].mxu0  ;;  %7094 = vmatmul.mubr.msk.f32.gmra.mrb[222].mxu0 %vm748_vm1, %v4247_v40  ;;  %v15318_v40 = vld [vmem:[#allocation128_spill] sm:$0xff]  ;;  %v15319_v10 = vld [vmem:[#allocation67_spill] sm:$0xff] }
 0x7c1   :  { %v4500_v18 = vpop.f32.mrb[215].mxu0  ;;  %v15320_v41 = vld [vmem:[#allocation68_spill] sm:$0xff] }
 0x7c2   :  { %v15321_v18 = vld [vmem:[#allocation74_spill] sm:$0xff] }
 0x7c5   :  { %v4252_v7 = vpop.f32.mrb[140].mxu1 }
 0x7c6   :  { %v4254_v36 = vpop.f32.mrb[141].mxu1  ;;  %v4503_v56 = vpop.f32.mrb[216].mxu0  ;;  %7096 = vmatprep.mubr.msk.f32.mxu0 %vm748_vm1, %v4252_v7 }
 0x7c7   :  { %v4255_v54 = vpop.f32.mrb[142].mxu1  ;;  %v4505_v33 = vpop.f32.mrb[217].mxu0  ;;  %7153 = vmatprep.mubr.msk.f32.mxu1 %vm748_vm1, %v4503_v56 }
 0x7c8   :  { %v4257_v47 = vpop.f32.mrb[143].mxu1  ;;  %v4506_v44 = vpop.f32.mrb[218].mxu0  ;;  %7097 = vmatmul.mubr.msk.f32.gmra.mrb[224].mxu0 %vm748_vm1, %v4255_v54  ;;  %v15322_v54 = vld [vmem:[#allocation25_spill] sm:$0xff] }
 0x7c9   :  { %v4508_v46 = vpop.f32.mrb[219].mxu0  ;;  %7154 = vmatmul.mubr.msk.f32.vlgmr.msra.gmra.mrb[176].mxu1 %vm748_vm1, %v4506_v44  ;;  %v15323_v47 = vld [vmem:[#allocation70_spill] sm:$0xff]  ;;  %v15324_v44 = vld [vmem:[#allocation73_spill] sm:$0xff] }
 0x7ca   :  { %7417 = vmatpush3.bf16.msra.mxu1 %v7414_v49  ;;  %7160 = vmatprep.mubr.msk.f32.mxu1 %vm748_vm1, %v15296_v60  ;;  %v15312_v49 = vld [vmem:[#allocation38_spill] sm:$0xff]  ;;  %v15325_v46 = vld [vmem:[#allocation33_spill] sm:$0xff] }
 0x7cd   :  { %v4260_v19 = vpop.f32.mrb[144].mxu1  ;;  %7161 = vmatmul.mubr.msk.f32.vlgmr.msra.gmra.mrb[178].mxu1 %vm748_vm1, %v15297_v29 }
 0x7ce   :  { %v4262_v45 = vpop.f32.mrb[145].mxu1  ;;  %7099 = vmatprep.mubr.msk.f32.mxu0 %vm748_vm1, %v4260_v19  ;;  %7163 = vmatprep.mubr.msk.f32.mxu1 %vm748_vm1, %v15298_v17 }
 0x7cf   :  { %v4263_v32 = vpop.f32.mrb[146].mxu1  ;;  %v15326_v45 = vld [vmem:[#allocation186_spill] sm:$0xff] }
 0x7d0   :  { %v4265_v59 = vpop.f32.mrb[147].mxu1  ;;  %7100 = vmatmul.mubr.msk.f32.gmra.mrb[226].mxu0 %vm748_vm1, %v4263_v32  ;;  %v15327_v32 = vld [vmem:[#allocation111_spill] sm:$0xff] }
 0x7d1   :  { %7164 = vmatmul.mubr.msk.f32.gmra.mrb[180].mxu1 %vm748_vm1, %v15299_v57  ;;  %v15328_v59 = vld [vmem:[#allocation125_spill] sm:$0xff] }
 0x7d2   :  { %7166 = vmatprep.mubr.msk.f32.mxu1 %vm748_vm1, %v15300_v34  ;;  %v15329_v57 = vld [vmem:[#allocation189_spill] sm:$0xff] }
 0x7d5   :  { %v4268_v23 = vpop.f32.mrb[148].mxu1  ;;  %7167 = vmatmul.mubr.msk.f32.gmra.mrb[182].mxu1 %vm748_vm1, %v15301_v0 }
 0x7d6   :  { %v4270_v22 = vpop.f32.mrb[149].mxu1  ;;  %7102 = vmatprep.mubr.msk.f32.mxu0 %vm748_vm1, %v4268_v23  ;;  %7169 = vmatprep.mubr.msk.f32.mxu1 %vm748_vm1, %v15302_v16 }
 0x7d7   :  { %v4271_v2 = vpop.f32.mrb[150].mxu1  ;;  %v15330_v22 = vld [vmem:[#allocation129_spill] sm:$0xff] }
 0x7d8   :  { %v4273_v39 = vpop.f32.mrb[151].mxu1  ;;  %7103 = vmatmul.mubr.msk.f32.gmra.mrb[228].mxu0 %vm748_vm1, %v4271_v2  ;;  %v15331_v2 = vld [vmem:[#allocation187_spill] sm:$0xff] }
 0x7d9   :  { %7170 = vmatmul.mubr.msk.f32.gmra.mrb[184].mxu1 %vm748_vm1, %v15303_v15  ;;  %v15332_v39 = vld [vmem:[#allocation77_spill] sm:$0xff]  ;;  %v15333_v15 = vld [vmem:[#allocation116_spill] sm:$0xff] }
 0x7da   :  { %7172 = vmatprep.mubr.msk.f32.mxu1 %vm748_vm1, %v15304_v14  ;;  %v15334_v14 = vld [vmem:[#allocation191_spill] sm:$0xff] }
 0x7dd   :  { %v4276_v6 = vpop.f32.mrb[152].mxu1  ;;  %7173 = vmatmul.mubr.msk.f32.gmra.mrb[186].mxu1 %vm748_vm1, %v15305_v5  ;;  %v15336_v5 = vld [vmem:[#allocation32_spill] sm:$0xff] }
 0x7de   :  { %v4278_v25 = vpop.f32.mrb[153].mxu1  ;;  %7105 = vmatprep.mubr.msk.f32.mxu0 %vm748_vm1, %v4276_v6  ;;  %7175 = vmatprep.mubr.msk.f32.mxu1 %vm748_vm1, %v15306_v11  ;;  %v15335_v6 = vld [vmem:[#allocation100_spill] sm:$0xff]  ;;  %v15338_v11 = vld [vmem:[#allocation138_spill] sm:$0xff] }
 0x7df   :  { %v4279_v58 = vpop.f32.mrb[154].mxu1  ;;  %v15337_v25 = vld [vmem:[#allocation71_spill] sm:$0xff] }
 0x7e0   :  { %v4281_v12 = vpop.f32.mrb[155].mxu1  ;;  %7106 = vmatmul.mubr.msk.f32.gmra.mrb[230].mxu0 %vm748_vm1, %v4279_v58  ;;  %v15339_v58 = vld [vmem:[#allocation132_spill] sm:$0xff] }
 0x7e1   :  { %7176 = vmatmul.mubr.msk.f32.gmra.mrb[188].mxu1 %vm748_vm1, %v15307_v28  ;;  %v15340_v12 = vld [vmem:[#allocation135_spill] sm:$0xff]  ;;  %v15341_v28 = vld [vmem:[#allocation72_spill] sm:$0xff] }
 0x7e2   :  { %7178 = vmatprep.mubr.msk.f32.mxu1 %vm748_vm1, %v15308_v38  ;;  %v15342_v38 = vld [vmem:[#allocation113_spill] sm:$0xff] }
 0x7e5   :  { %7179 = vmatmul.mubr.msk.f32.gmra.mrb[190].mxu1 %vm748_vm1, %v15309_v24  ;;  %v15343_v24 = vld [vmem:[#allocation115_spill] sm:$0xff] }
 0x7e6   :  { %7181 = vmatprep.mubr.msk.f32.mxu1 %vm748_vm1, %v15310_v50  ;;  %v15344_v50 = vld [vmem:[#allocation54_spill] sm:$0xff] }
 0x7e9   :  { %7182 = vmatmul.mubr.msk.f32.gmra.mrb[192].mxu1 %vm748_vm1, %v15311_v26  ;;  %v15345_v26 = vld [vmem:[#allocation80_spill] sm:$0xff] }
 0x7ea   :  { %7184 = vmatprep.mubr.msk.f32.mxu1 %vm748_vm1, %v15312_v49  ;;  %v15346_v49 = vld [vmem:[#allocation5_spill] sm:$0xff] }
 0x7ed   :  { %7185 = vmatmul.mubr.msk.f32.gmra.mrb[194].mxu1 %vm748_vm1, %v15313_v62 }
 0x7ee   :  { %7187 = vmatprep.mubr.msk.f32.mxu1 %vm748_vm1, %v12579_v48  ;;  %v15316_v48 = vld [vmem:[#allocation124_spill] sm:$0xff] }
 0x7f1   :  { %7188 = vmatmul.mubr.msk.f32.gmra.mrb[196].mxu1 %vm748_vm1, %v15314_v1 }
 0x7f2   :  { %7190 = vmatprep.mubr.msk.f32.mxu1 %vm748_vm1, %v12596_v42 }
 0x7f3   :  { %v4284_v8 = vpop.f32.mrb[156].mxu1 }
 0x7f4   :  { %v4286_v20 = vpop.f32.mrb[157].mxu1  ;;  %7108 = vmatprep.mubr.msk.f32.mxu0 %vm748_vm1, %v4284_v8 }
 0x7f5   :  { %v4287_v52 = vpop.f32.mrb[158].mxu1  ;;  %7191 = vmatmul.mubr.msk.f32.gmra.mrb[198].mxu1 %vm748_vm1, %v12598_v30 }
 0x7f6   :  { %v4289_v21 = vpop.f32.mrb[159].mxu1  ;;  %7109 = vmatmul.mubr.msk.f32.gmra.mrb[232].mxu0 %vm748_vm1, %v4287_v52  ;;  %7193 = vmatprep.mubr.msk.f32.mxu1 %vm748_vm1, %v15315_v37 }
 0x7f9   :  { %7194 = vmatmul.mubr.msk.f32.gmra.mrb[200].mxu1 %vm748_vm1, %v15316_v48 }
 0x7fa   :  { %7196 = vmatprep.mubr.msk.f32.mxu1 %vm748_vm1, %v15317_v27 }
 0x7fb   :  { %v4292_v42 = vpop.f32.mrb[160].mxu1 }
 0x7fc   :  { %v4294_v43 = vpop.f32.mrb[161].mxu1  ;;  %7111 = vmatprep.mubr.msk.f32.mxu0 %vm748_vm1, %v4292_v42 }
 0x7fd   :  { %v4295_v4 = vpop.f32.mrb[162].mxu1  ;;  %7197 = vmatmul.mubr.msk.f32.gmra.mrb[202].mxu1 %vm748_vm1, %v15318_v40 }
 0x7fe   :  { %v4297_v30 = vpop.f32.mrb[163].mxu1  ;;  %7112 = vmatmul.mubr.msk.f32.gmra.mrb[234].mxu0 %vm748_vm1, %v4295_v4  ;;  %7199 = vmatprep.mubr.msk.f32.mxu1 %vm748_vm1, %v15319_v10 }
 0x801   :  { %7200 = vmatmul.mubr.msk.f32.gmra.mrb[204].mxu1 %vm748_vm1, %v15320_v41 }
 0x802   :  { %7202 = vmatprep.mubr.msk.f32.mxu1 %vm748_vm1, %v15321_v18 }
 0x803   :  { %v4300_v7 = vpop.f32.mrb[164].mxu1 }
 0x804   :  { %v4302_v36 = vpop.f32.mrb[165].mxu1  ;;  %7114 = vmatprep.mubr.msk.f32.mxu0 %vm748_vm1, %v4300_v7 }
 0x805   :  { %v4303_v56 = vpop.f32.mrb[166].mxu1  ;;  %7203 = vmatmul.mubr.msk.f32.gmra.mrb[206].mxu1 %vm748_vm1, %v15322_v54 }
 0x806   :  { %v4305_v33 = vpop.f32.mrb[167].mxu1  ;;  %7115 = vmatmul.mubr.msk.f32.gmra.mrb[236].mxu0 %vm748_vm1, %v4303_v56  ;;  %7205 = vmatprep.mubr.msk.f32.mxu1 %vm748_vm1, %v15323_v47 }
 0x809   :  { %7206 = vmatmul.mubr.msk.f32.gmra.mrb[208].mxu1 %vm748_vm1, %v15324_v44 }
 0x80a   :  { %7208 = vmatprep.mubr.msk.f32.mxu1 %vm748_vm1, %v15325_v46 }
 0x80b   :  { %v4308_v60 = vpop.f32.mrb[168].mxu1 }
 0x80c   :  { %v4310_v19 = vpop.f32.mrb[169].mxu1  ;;  %7117 = vmatprep.mubr.msk.f32.mxu0 %vm748_vm1, %v4308_v60 }
 0x80d   :  { %v4311_v29 = vpop.f32.mrb[170].mxu1  ;;  %7209 = vmatmul.mubr.msk.f32.gmra.mrb[210].mxu1 %vm748_vm1, %v15326_v45 }
 0x80e   :  { %v4313_v17 = vpop.f32.mrb[171].mxu1  ;;  %7118 = vmatmul.mubr.msk.f32.gmra.mrb[238].mxu0 %vm748_vm1, %v4311_v29  ;;  %7211 = vmatprep.mubr.msk.f32.mxu1 %vm748_vm1, %v15327_v32 }
 0x811   :  { %7212 = vmatmul.mubr.msk.f32.gmra.mrb[212].mxu1 %vm748_vm1, %v15328_v59 }
 0x812   :  { %7214 = vmatprep.mubr.msk.f32.mxu1 %vm748_vm1, %v15329_v57 }
 0x813   :  { %v4316_v34 = vpop.f32.mrb[172].mxu1 }
 0x814   :  { %v4318_v23 = vpop.f32.mrb[173].mxu1  ;;  %7120 = vmatprep.mubr.msk.f32.mxu0 %vm748_vm1, %v4316_v34 }
 0x815   :  { %v4319_v0 = vpop.f32.mrb[174].mxu1  ;;  %7215 = vmatmul.mubr.msk.f32.gmra.mrb[214].mxu1 %vm748_vm1, %v15330_v22 }
 0x816   :  { %v4321_v16 = vpop.f32.mrb[175].mxu1  ;;  %7121 = vmatmul.mubr.msk.f32.gmra.mrb[240].mxu0 %vm748_vm1, %v4319_v0  ;;  %7217 = vmatprep.mubr.msk.f32.mxu1 %vm748_vm1, %v15331_v2 }
 0x817   :  { %7123 = vmatprep.mubr.msk.f32.mxu0 %vm748_vm1, %v15332_v39 }
 0x819   :  { %7218 = vmatmul.mubr.msk.f32.gmra.mrb[216].mxu1 %vm748_vm1, %v15333_v15 }
 0x81a   :  { %7124 = vmatmul.mubr.msk.f32.gmra.mrb[242].mxu0 %vm748_vm1, %v15334_v14  ;;  %7220 = vmatprep.mubr.msk.f32.mxu1 %vm748_vm1, %v15335_v6 }
 0x81b   :  { %7126 = vmatprep.mubr.msk.f32.mxu0 %vm748_vm1, %v15336_v5 }
 0x81d   :  { %7221 = vmatmul.mubr.msk.f32.gmra.mrb[218].mxu1 %vm748_vm1, %v15337_v25 }
 0x81e   :  { %7127 = vmatmul.mubr.msk.f32.gmra.mrb[244].mxu0 %vm748_vm1, %v15338_v11  ;;  %7223 = vmatprep.mubr.msk.f32.mxu1 %vm748_vm1, %v15339_v58 }
 0x81f   :  { %7129 = vmatprep.mubr.msk.f32.mxu0 %vm748_vm1, %v15340_v12 }
 0x821   :  { %7224 = vmatmul.mubr.msk.f32.gmra.mrb[176].mxu1 %vm748_vm1, %v15341_v28 }
 0x822   :  { %7130 = vmatmul.mubr.msk.f32.gmra.mrb[246].mxu0 %vm748_vm1, %v15342_v38 }
 0x823   :  { %7132 = vmatprep.mubr.msk.f32.mxu0 %vm748_vm1, %v15343_v24 }
 0x826   :  { %7133 = vmatmul.mubr.msk.f32.gmra.mrb[248].mxu0 %vm748_vm1, %v15344_v50 }
 0x827   :  { %7135 = vmatprep.mubr.msk.f32.mxu0 %vm748_vm1, %v15345_v26 }
 0x82a   :  { %7136 = vmatmul.mubr.msk.f32.gmra.mrb[250].mxu0 %vm748_vm1, %v15346_v49 }
 0x82b   :  { %7138 = vmatprep.mubr.msk.f32.mxu0 %vm748_vm1, %v12600_v51 }
 0x82e   :  { %7139 = vmatmul.mubr.msk.f32.gmra.mrb[252].mxu0 %vm748_vm1, %v12602_v3 }
 0x82f   :  { %7141 = vmatprep.mubr.msk.f32.mxu0 %vm748_vm1, %v12648_v55 }
 0x832   :  { %7142 = vmatmul.mubr.msk.f32.gmra.mrb[254].mxu0 %vm748_vm1, %v12650_v13 }
 0x833   :  { %7144 = vmatprep.mubr.msk.f32.mxu0 %vm748_vm1, %v12683_v61 }
 0x836   :  { %7145 = vmatmul.mubr.msk.f32.gmra.mrb[0].mxu0 %vm748_vm1, %v12685_v31  ;;  %v12850_v31 = vld [vmem:[%s14317_s6] ss:$0 sm:$0xff] }
 0x837   :  { %7147 = vmatprep.mubr.msk.f32.mxu0 %vm748_vm1, %v12687_v35 }
 0x83a   :  { %7148 = vmatmul.mubr.msk.f32.gmra.mrb[2].mxu0 %vm748_vm1, %v12689_v63 }
 0x83b   :  { %7150 = vmatprep.mubr.msk.f32.mxu0 %vm748_vm1, %v12693_v9 }
 0x83e   :  { %7151 = vmatmul.mubr.msk.f32.gmra.mrb[4].mxu0 %vm748_vm1, %v12696_v53 }
 0x88b   :  { %v7092_v51 = vpop.f32.mrb[220].mxu0 }
 0x88c   :  { %v4710_v3 = vpop.f32.mrb[221].mxu0 }
 0x893   :  { %v7095_v55 = vpop.f32.mrb[222].mxu0 }
 0x894   :  { %v4720_v13 = vpop.f32.mrb[223].mxu0 }
 0x89b   :  { %v7098_v61 = vpop.f32.mrb[224].mxu0 }
 0x89c   :  { %v4730_v62 = vpop.f32.mrb[225].mxu0 }
 0x8a0   :  { %v7162_v1 = vpop.f32.mrb[178].mxu1 }
 0x8a1   :  { %v5133_v35 = vadd.f32 %v7162_v1, %v7092_v51  ;;  %v5127_v63 = vpop.f32.mrb[179].mxu1 }
 0x8a2   :  { %v5128_v8 = vadd.f32 %v5127_v63, %v4710_v3 }
 0x8a3   :  { %v12853_v9 = vadd.f32 %v12850_v31, %v5133_v35  ;;  %v7101_v20 = vpop.f32.mrb[226].mxu0 }
 0x8a4   :  { %v12856_v53 = vadd.f32 %v12850_v31, %v5128_v8  ;;  %v4740_v52 = vpop.f32.mrb[227].mxu0  ;;  %v7165_v21 = vpop.f32.mrb[180].mxu1 }
 0x8a5   :  { %v5398_v37 = vmax.f32 %v12853_v9, 0.0  ;;  %v5143_v48 = vadd.f32 %v7165_v21, %v7095_v55  ;;  %v5137_v27 = vpop.f32.mrb[181].mxu1 }
 0x8a6   :  { %v5397_v42 = vmax.f32 %v12856_v53, 0.0  ;;  %v5138_v43 = vadd.f32 %v5137_v27, %v4720_v13 }
 0x8a7   :  { %v12861_v4 = vadd.f32 %v12850_v31, %v5143_v48  ;;  %v5444_v40 = vsel %vm176_vm0, %v5398_v37, 0.0 }
 0x8a8   :  { %v12867_v30 = vadd.f32 %v12850_v31, %v5138_v43  ;;  %5445 = vadd.xlane.f32.xlu1 %v5444_v40  ;;  %v7168_v10 = vpop.f32.mrb[182].mxu1  ;;  %v5441_v41 = vsel %vm176_vm0, %v5397_v42, 0.0 }
 0x8a9   :  { %v5400_v18 = vmax.f32 %v12861_v4, 0.0  ;;  %v5153_v7 = vadd.f32 %v7168_v10, %v7098_v61  ;;  %v5147_v36 = vpop.f32.mrb[183].mxu1  ;;  %5442 = vadd.xlane.f32.xlu0 %v5441_v41 }
 0x8aa   :  { %v5399_v56 = vmax.f32 %v12867_v30, 0.0  ;;  %v5148_v54 = vadd.f32 %v5147_v36, %v4730_v62 }
 0x8ab   :  { %v12875_v33 = vadd.f32 %v12850_v31, %v5153_v7  ;;  %v7104_v47 = vpop.f32.mrb[228].mxu0  ;;  %v5450_v44 = vsel %vm176_vm0, %v5400_v18, 0.0 }
 0x8ac   :  { %v12881_v46 = vadd.f32 %v12850_v31, %v5148_v54  ;;  %v4750_v60 = vpop.f32.mrb[229].mxu0  ;;  %5451 = vadd.xlane.f32.xlu1 %v5450_v44  ;;  %v7171_v19 = vpop.f32.mrb[184].mxu1  ;;  %v5447_v29 = vsel %vm176_vm0, %v5399_v56, 0.0 }
 0x8ad   :  { %v5402_v45 = vmax.f32 %v12875_v33, 0.0  ;;  %v5163_v17 = vadd.f32 %v7171_v19, %v7101_v20  ;;  %v5157_v32 = vpop.f32.mrb[185].mxu1  ;;  %5448 = vadd.xlane.f32.xlu0 %v5447_v29 }
 0x8ae   :  { %v5401_v59 = vmax.f32 %v12881_v46, 0.0  ;;  %v5158_v57 = vadd.f32 %v5157_v32, %v4740_v52 }
 0x8af   :  { %v12889_v34 = vadd.f32 %v12850_v31, %v5163_v17  ;;  %v5456_v23 = vsel %vm176_vm0, %v5402_v45, 0.0 }
 0x8b0   :  { %v12895_v0 = vadd.f32 %v12850_v31, %v5158_v57  ;;  %5457 = vadd.xlane.f32.xlu1 %v5456_v23  ;;  %v7174_v22 = vpop.f32.mrb[186].mxu1  ;;  %v5453_v16 = vsel %vm176_vm0, %v5401_v59, 0.0 }
 0x8b1   :  { %v5404_v2 = vmax.f32 %v12889_v34, 0.0  ;;  %v5173_v39 = vadd.f32 %v7174_v22, %v7104_v47  ;;  %v5167_v15 = vpop.f32.mrb[187].mxu1  ;;  %5454 = vadd.xlane.f32.xlu0 %v5453_v16 }
 0x8b2   :  { %v5403_v14 = vmax.f32 %v12895_v0, 0.0  ;;  %v5168_v6 = vadd.f32 %v5167_v15, %v4750_v60 }
 0x8b3   :  { %v12903_v5 = vadd.f32 %v12850_v31, %v5173_v39  ;;  %v7107_v25 = vpop.f32.mrb[230].mxu0  ;;  %v5462_v11 = vsel %vm176_vm0, %v5404_v2, 0.0 }
 0x8b4   :  { %v12909_v58 = vadd.f32 %v12850_v31, %v5168_v6  ;;  %v4760_v12 = vpop.f32.mrb[231].mxu0  ;;  %5463 = vadd.xlane.f32.xlu1 %v5462_v11  ;;  %v7177_v28 = vpop.f32.mrb[188].mxu1  ;;  %v5459_v38 = vsel %vm176_vm0, %v5403_v14, 0.0 }
 0x8b5   :  { %v14606_v24 = vmax.f32 %v12903_v5, 0.0  ;;  %v5183_v50 = vadd.f32 %v7177_v28, %v7107_v25  ;;  %v5177_v26 = vpop.f32.mrb[189].mxu1  ;;  %5460 = vadd.xlane.f32.xlu0 %v5459_v38 }
 0x8b6   :  { %v14604_v49 = vmax.f32 %v12909_v58, 0.0  ;;  %v5178_v51 = vadd.f32 %v5177_v26, %v4760_v12 }
 0x8b7   :  { %v12917_v3 = vadd.f32 %v12850_v31, %v5183_v50  ;;  %v5468_v55 = vsel %vm176_vm0, %v14606_v24, 0.0 }
 0x8b8   :  { %v12923_v13 = vadd.f32 %v12850_v31, %v5178_v51  ;;  %5469 = vadd.xlane.f32.xlu1 %v5468_v55  ;;  %v7180_v61 = vpop.f32.mrb[190].mxu1  ;;  %v5465_v62 = vsel %vm176_vm0, %v14604_v49, 0.0 }
 0x8b9   :  { %v14602_v1 = vmax.f32 %v12917_v3, 0.0  ;;  %v5187_v35 = vpop.f32.mrb[191].mxu1  ;;  %5466 = vadd.xlane.f32.xlu0 %v5465_v62 }
 0x8ba   :  { %v14600_v63 = vmax.f32 %v12923_v13, 0.0 }
 0x8bb   :  { %v5474_v8 = vsel %vm176_vm0, %v14602_v1, 0.0 }
 0x8bc   :  { %5475 = vadd.xlane.f32.xlu1 %v5474_v8  ;;  %v7183_v20 = vpop.f32.mrb[192].mxu1  ;;  %v5471_v52 = vsel %vm176_vm0, %v14600_v63, 0.0 }
 0x8bd   :  { %v5197_v21 = vpop.f32.mrb[193].mxu1  ;;  %5472 = vadd.xlane.f32.xlu0 %v5471_v52 }
 0x8c0   :  { %v7186_v48 = vpop.f32.mrb[194].mxu1 }
 0x8c1   :  { %v5207_v27 = vpop.f32.mrb[195].mxu1 }
 0x8c4   :  { %v7189_v43 = vpop.f32.mrb[196].mxu1 }
 0x8c5   :  { %v5217_v40 = vpop.f32.mrb[197].mxu1 }
 0x8c8   :  { %v12936_v10 = vpop.f32.mrb[198].mxu1 }
 0x8c9   :  { %v7110_v41 = vpop.f32.mrb[232].mxu0  ;;  %v12938_v7 = vpop.f32.mrb[199].mxu1 }
 0x8ca   :  { %v5193_v36 = vadd.f32 %v7180_v61, %v7110_v41  ;;  %v4770_v54 = vpop.f32.mrb[233].mxu0 }
 0x8cb   :  { %v5188_v47 = vadd.f32 %v5187_v35, %v4770_v54 }
 0x8cc   :  { %v12941_v44 = vadd.f32 %v12850_v31, %v5193_v36  ;;  %v12943_v60 = vpop.f32.mrb[200].mxu1 }
 0x8cd   :  { %v12946_v19 = vadd.f32 %v12850_v31, %v5188_v47  ;;  %v12948_v29 = vpop.f32.mrb[201].mxu1 }
 0x8ce   :  { %v14599_v17 = vmax.f32 %v12941_v44, 0.0 }
 0x8cf   :  { %v14597_v32 = vmax.f32 %v12946_v19, 0.0 }
 0x8d0   :  { %v12952_v57 = vpop.f32.mrb[202].mxu1  ;;  %v5480_v23 = vsel %vm176_vm0, %v14599_v17, 0.0 }
 0x8d1   :  { %v7113_v22 = vpop.f32.mrb[234].mxu0  ;;  %5481 = vadd.xlane.f32.xlu1 %v5480_v23  ;;  %v12957_v16 = vpop.f32.mrb[203].mxu1  ;;  %v5477_v39 = vsel %vm176_vm0, %v14597_v32, 0.0 }
 0x8d2   :  { %v5203_v15 = vadd.f32 %v7183_v20, %v7113_v22  ;;  %v4780_v6 = vpop.f32.mrb[235].mxu0  ;;  %5478 = vadd.xlane.f32.xlu0 %v5477_v39 }
 0x8d3   :  { %v5198_v25 = vadd.f32 %v5197_v21, %v4780_v6 }
 0x8d4   :  { %v12963_v11 = vadd.f32 %v12850_v31, %v5203_v15  ;;  %v12965_v12 = vpop.f32.mrb[204].mxu1 }
 0x8d5   :  { %v12968_v28 = vadd.f32 %v12850_v31, %v5198_v25  ;;  %v12970_v38 = vpop.f32.mrb[205].mxu1 }
 0x8d6   :  { %v14596_v50 = vmax.f32 %v12963_v11, 0.0 }
 0x8d7   :  { %v14594_v26 = vmax.f32 %v12968_v28, 0.0 }
 0x8d8   :  { %v12974_v51 = vpop.f32.mrb[206].mxu1  ;;  %v5486_v55 = vsel %vm176_vm0, %v14596_v50, 0.0 }
 0x8d9   :  { %v7116_v61 = vpop.f32.mrb[236].mxu0  ;;  %5487 = vadd.xlane.f32.xlu1 %v5486_v55  ;;  %v12979_v62 = vpop.f32.mrb[207].mxu1  ;;  %v5483_v35 = vsel %vm176_vm0, %v14594_v26, 0.0 }
 0x8da   :  { %v5213_v8 = vadd.f32 %v7186_v48, %v7116_v61  ;;  %v4790_v20 = vpop.f32.mrb[237].mxu0  ;;  %5484 = vadd.xlane.f32.xlu0 %v5483_v35 }
 0x8db   :  { %v5208_v52 = vadd.f32 %v5207_v27, %v4790_v20 }
 0x8dc   :  { %v12985_v21 = vadd.f32 %v12850_v31, %v5213_v8  ;;  %v12987_v41 = vpop.f32.mrb[208].mxu1 }
 0x8dd   :  { %v12990_v36 = vadd.f32 %v12850_v31, %v5208_v52  ;;  %v12992_v54 = vpop.f32.mrb[209].mxu1 }
 0x8de   :  { %v14592_v47 = vmax.f32 %v12985_v21, 0.0 }
 0x8df   :  { %v14593_v23 = vmax.f32 %v12990_v36, 0.0 }
 0x8e0   :  { %v12996_v22 = vpop.f32.mrb[210].mxu1  ;;  %v5492_v48 = vsel %vm176_vm0, %v14592_v47, 0.0 }
 0x8e1   :  { %v7119_v27 = vpop.f32.mrb[238].mxu0  ;;  %5493 = vadd.xlane.f32.xlu1 %v5492_v48  ;;  %v13001_v39 = vpop.f32.mrb[211].mxu1  ;;  %v5489_v15 = vsel %vm176_vm0, %v14593_v23, 0.0 }
 0x8e2   :  { %v5223_v6 = vadd.f32 %v7189_v43, %v7119_v27  ;;  %v4800_v25 = vpop.f32.mrb[239].mxu0  ;;  %5490 = vadd.xlane.f32.xlu0 %v5489_v15 }
 0x8e3   :  { %v5218_v55 = vadd.f32 %v5217_v40, %v4800_v25 }
 0x8e4   :  { %v13007_v61 = vadd.f32 %v12850_v31, %v5223_v6  ;;  %v13009_v35 = vpop.f32.mrb[212].mxu1 }
 0x8e5   :  { %v13012_v8 = vadd.f32 %v12850_v31, %v5218_v55  ;;  %v13014_v20 = vpop.f32.mrb[213].mxu1 }
 0x8e6   :  { %v14595_v52 = vmax.f32 %v13007_v61, 0.0 }
 0x8e7   :  { %v14598_v48 = vmax.f32 %v13012_v8, 0.0 }
 0x8e8   :  { %v13018_v47 = vpop.f32.mrb[214].mxu1  ;;  %v5498_v43 = vsel %vm176_vm0, %v14595_v52, 0.0 }
 0x8e9   :  { %v7122_v40 = vpop.f32.mrb[240].mxu0  ;;  %5499 = vadd.xlane.f32.xlu1 %v5498_v43  ;;  %v13023_v27 = vpop.f32.mrb[215].mxu1  ;;  %v5495_v15 = vsel %vm176_vm0, %v14598_v48, 0.0 }
 0x8ea   :  { %v5233_v6 = vadd.f32 %v12936_v10, %v7122_v40  ;;  %v4810_v25 = vpop.f32.mrb[241].mxu0  ;;  %5496 = vadd.xlane.f32.xlu0 %v5495_v15 }
 0x8eb   :  { %v5228_v55 = vadd.f32 %v12938_v7, %v4810_v25 }
 0x8ec   :  { %v13031_v23 = vadd.f32 %v12850_v31, %v5233_v6  ;;  %v13033_v26 = vpop.f32.mrb[216].mxu1 }
 0x8ed   :  { %v13036_v52 = vadd.f32 %v12850_v31, %v5228_v55  ;;  %v7125_v43 = vpop.f32.mrb[242].mxu0  ;;  %v13038_v50 = vpop.f32.mrb[217].mxu1 }
 0x8ee   :  { %v14601_v32 = vmax.f32 %v13031_v23, 0.0  ;;  %v5243_v48 = vadd.f32 %v12943_v60, %v7125_v43  ;;  %v4820_v10 = vpop.f32.mrb[243].mxu0 }
 0x8ef   :  { %v14603_v40 = vmax.f32 %v13036_v52, 0.0  ;;  %v5238_v7 = vadd.f32 %v12948_v29, %v4820_v10 }
 0x8f0   :  { %v13045_v15 = vadd.f32 %v12850_v31, %v5243_v48  ;;  %v13047_v6 = vpop.f32.mrb[218].mxu1  ;;  %v5504_v25 = vsel %vm176_vm0, %v14601_v32, 0.0 }
 0x8f1   :  { %v13053_v55 = vadd.f32 %v12850_v31, %v5238_v7  ;;  %v7128_v17 = vpop.f32.mrb[244].mxu0  ;;  %5505 = vadd.xlane.f32.xlu1 %v5504_v25  ;;  %v13055_v60 = vpop.f32.mrb[219].mxu1  ;;  %v5501_v29 = vsel %vm176_vm0, %v14603_v40, 0.0 }
 0x8f2   :  { %v14605_v48 = vmax.f32 %v13045_v15, 0.0  ;;  %v5253_v43 = vadd.f32 %v12952_v57, %v7128_v17  ;;  %v4830_v10 = vpop.f32.mrb[245].mxu0  ;;  %5502 = vadd.xlane.f32.xlu0 %v5501_v29 }
 0x8f3   :  { %v14607_v63 = vmax.f32 %v13053_v55, 0.0  ;;  %v5248_v32 = vadd.f32 %v12957_v16, %v4830_v10 }
 0x8f4   :  { %v13065_v7 = vadd.f32 %v12850_v31, %v5253_v43  ;;  %v13067_v25 = vpop.f32.mrb[176].mxu1  ;;  %v5510_v1 = vsel %vm176_vm0, %v14605_v48, 0.0 }
 0x8f5   :  { %v13073_v40 = vadd.f32 %v12850_v31, %v5248_v32  ;;  %v7131_v49 = vpop.f32.mrb[246].mxu0  ;;  %5511 = vadd.xlane.f32.xlu1 %v5510_v1  ;;  %v13075_v17 = vpop.f32.mrb[177].mxu1  ;;  %v5507_v57 = vsel %vm176_vm0, %v14607_v63, 0.0 }
 0x8f6   :  { %v14608_v16 = vmax.f32 %v13065_v7, 0.0  ;;  %v5263_v29 = vadd.f32 %v12965_v12, %v7131_v49  ;;  %v4840_v43 = vpop.f32.mrb[247].mxu0  ;;  %5508 = vadd.xlane.f32.xlu0 %v5507_v57 }
 0x8f7   :  { %v14609_v10 = vmax.f32 %v13073_v40, 0.0  ;;  %v5258_v48 = vadd.f32 %v12970_v38, %v4840_v43 }
 0x8f8   :  { %v13085_v32 = vadd.f32 %v12850_v31, %v5263_v29  ;;  %v5516_v1 = vsel %vm176_vm0, %v14608_v16, 0.0 }
 0x8f9   :  { %v13091_v24 = vadd.f32 %v12850_v31, %v5258_v48  ;;  %v7134_v63 = vpop.f32.mrb[248].mxu0  ;;  %5517 = vadd.xlane.f32.xlu1 %v5516_v1  ;;  %v5513_v49 = vsel %vm176_vm0, %v14609_v10, 0.0 }
 0x8fa   :  { %v14610_v12 = vmax.f32 %v13085_v32, 0.0  ;;  %v5273_v38 = vadd.f32 %v12974_v51, %v7134_v63  ;;  %v4850_v57 = vpop.f32.mrb[249].mxu0  ;;  %5514 = vadd.xlane.f32.xlu0 %v5513_v49 }
 0x8fb   :  { %v14611_v29 = vmax.f32 %v13091_v24, 0.0  ;;  %v5268_v43 = vadd.f32 %v12979_v62, %v4850_v57 }
 0x8fc   :  { %v13101_v16 = vadd.f32 %v12850_v31, %v5273_v38  ;;  %v5522_v48 = vsel %vm176_vm0, %v14610_v12, 0.0 }
 0x8fd   :  { %v13107_v1 = vadd.f32 %v12850_v31, %v5268_v43  ;;  %v7137_v10 = vpop.f32.mrb[250].mxu0  ;;  %5523 = vadd.xlane.f32.xlu1 %v5522_v48  ;;  %v5519_v63 = vsel %vm176_vm0, %v14611_v29, 0.0 }
 0x8fe   :  { %v14612_v51 = vmax.f32 %v13101_v16, 0.0  ;;  %v5283_v62 = vadd.f32 %v12987_v41, %v7137_v10  ;;  %v4860_v49 = vpop.f32.mrb[251].mxu0  ;;  %5520 = vadd.xlane.f32.xlu0 %v5519_v63 }
 0x8ff   :  { %v14613_v38 = vmax.f32 %v13107_v1, 0.0  ;;  %v5278_v57 = vadd.f32 %v12992_v54, %v4860_v49 }
 0x900   :  { %v13117_v12 = vadd.f32 %v12850_v31, %v5283_v62  ;;  %v5528_v43 = vsel %vm176_vm0, %v14612_v51, 0.0 }
 0x901   :  { %v13123_v48 = vadd.f32 %v12850_v31, %v5278_v57  ;;  %v7140_v29 = vpop.f32.mrb[252].mxu0  ;;  %5529 = vadd.xlane.f32.xlu1 %v5528_v43  ;;  %v5525_v41 = vsel %vm176_vm0, %v14613_v38, 0.0 }
 0x902   :  { %v14614_v10 = vmax.f32 %v13117_v12, 0.0  ;;  %v5293_v54 = vadd.f32 %v12996_v22, %v7140_v29  ;;  %v4870_v63 = vpop.f32.mrb[253].mxu0  ;;  %5526 = vadd.xlane.f32.xlu0 %v5525_v41 }
 0x903   :  { %v14615_v62 = vmax.f32 %v13123_v48, 0.0  ;;  %v5288_v49 = vadd.f32 %v13001_v39, %v4870_v63 }
 0x904   :  { %v13133_v51 = vadd.f32 %v12850_v31, %v5293_v54  ;;  %v5534_v57 = vsel %vm176_vm0, %v14614_v10, 0.0 }
 0x905   :  { %v13139_v43 = vadd.f32 %v12850_v31, %v5288_v49  ;;  %v7143_v38 = vpop.f32.mrb[254].mxu0  ;;  %5535 = vadd.xlane.f32.xlu1 %v5534_v57  ;;  %v5531_v22 = vsel %vm176_vm0, %v14615_v62, 0.0 }
 0x906   :  { %v14616_v29 = vmax.f32 %v13133_v51, 0.0  ;;  %v5303_v39 = vadd.f32 %v13009_v35, %v7143_v38  ;;  %v4880_v41 = vpop.f32.mrb[255].mxu0  ;;  %5532 = vadd.xlane.f32.xlu0 %v5531_v22 }
 0x907   :  { %v14617_v54 = vmax.f32 %v13139_v43, 0.0  ;;  %v5298_v63 = vadd.f32 %v13014_v20, %v4880_v41 }
 0x908   :  { %v13149_v10 = vadd.f32 %v12850_v31, %v5303_v39  ;;  %v5540_v49 = vsel %vm176_vm0, %v14616_v29, 0.0 }
 0x909   :  { %v13155_v57 = vadd.f32 %v12850_v31, %v5298_v63  ;;  %v7146_v62 = vpop.f32.mrb[0].mxu0  ;;  %5541 = vadd.xlane.f32.xlu1 %v5540_v49  ;;  %v5537_v35 = vsel %vm176_vm0, %v14617_v54, 0.0 }
 0x90a   :  { %v14618_v38 = vmax.f32 %v13149_v10, 0.0  ;;  %v5313_v20 = vadd.f32 %v13018_v47, %v7146_v62  ;;  %v4890_v22 = vpop.f32.mrb[1].mxu0  ;;  %5538 = vadd.xlane.f32.xlu0 %v5537_v35 }
 0x90b   :  { %v14619_v39 = vmax.f32 %v13155_v57, 0.0  ;;  %v5308_v41 = vadd.f32 %v13023_v27, %v4890_v22 }
 0x90c   :  { %v13165_v29 = vadd.f32 %v12850_v31, %v5313_v20  ;;  %v5546_v63 = vsel %vm176_vm0, %v14618_v38, 0.0 }
 0x90d   :  { %v13171_v49 = vadd.f32 %v12850_v31, %v5308_v41  ;;  %v7149_v54 = vpop.f32.mrb[2].mxu0  ;;  %5547 = vadd.xlane.f32.xlu1 %v5546_v63  ;;  %v5543_v47 = vsel %vm176_vm0, %v14619_v39, 0.0 }
 0x90e   :  { %v14626_v62 = vmax.f32 %v13165_v29, 0.0  ;;  %v5323_v27 = vadd.f32 %v13033_v26, %v7149_v54  ;;  %v4900_v35 = vpop.f32.mrb[3].mxu0  ;;  %5544 = vadd.xlane.f32.xlu0 %v5543_v47 }
 0x90f   :  { %v14620_v20 = vmax.f32 %v13171_v49, 0.0  ;;  %v5318_v22 = vadd.f32 %v13038_v50, %v4900_v35 }
 0x910   :  { %v13181_v38 = vadd.f32 %v12850_v31, %v5323_v27  ;;  %v5552_v41 = vsel %vm176_vm0, %v14626_v62, 0.0 }
 0x911   :  { %v13187_v63 = vadd.f32 %v12850_v31, %v5318_v22  ;;  %v7152_v39 = vpop.f32.mrb[4].mxu0  ;;  %5553 = vadd.xlane.f32.xlu1 %v5552_v41  ;;  %v5549_v26 = vsel %vm176_vm0, %v14620_v20, 0.0  ;;  %v13198_v22 = vadd.f32 %v13067_v25, %v12850_v31 }
 0x912   :  { %v14623_v54 = vmax.f32 %v13181_v38, 0.0  ;;  %v5333_v50 = vadd.f32 %v13047_v6, %v7152_v39  ;;  %v4910_v47 = vpop.f32.mrb[5].mxu0  ;;  %5550 = vadd.xlane.f32.xlu0 %v5549_v26  ;;  %v13208_v6 = vadd.f32 %v12850_v31, %v13075_v17 }
 0x913   :  { %v14622_v27 = vmax.f32 %v13187_v63, 0.0  ;;  %v5328_v35 = vadd.f32 %v13055_v60, %v4910_v47 }
 0x914   :  { %v13201_v41 = vadd.f32 %v12850_v31, %v5333_v50  ;;  %v5558_v20 = vsel %vm176_vm0, %v14623_v54, 0.0  ;;  %v14625_v50 = vmax.f32 %v13198_v22, 0.0  ;;  %v14627_v47 = vmax.f32 %v13208_v6, 0.0 }
 0x915   :  { %v13211_v39 = vadd.f32 %v12850_v31, %v5328_v35  ;;  %5559 = vadd.xlane.f32.xlu1 %v5558_v20  ;;  %v5555_v60 = vsel %vm176_vm0, %v14622_v27, 0.0 }
 0x916   :  { %v14621_v25 = vmax.f32 %v13201_v41, 0.0  ;;  %5556 = vadd.xlane.f32.xlu0 %v5555_v60  ;;  %v5570_v20 = vsel %vm176_vm0, %v14625_v50, 0.0  ;;  %v5567_v35 = vsel %vm176_vm0, %v14627_v47, 0.0 }
 0x917   :  { %v14624_v26 = vmax.f32 %v13211_v39, 0.0 }
 0x918   :  { %v5564_v17 = vsel %vm176_vm0, %v14621_v25, 0.0 }
 0x919   :  { %5565 = vadd.xlane.f32.xlu1 %v5564_v17  ;;  %v5561_v31 = vsel %vm176_vm0, %v14624_v26, 0.0 }
 0x91a   :  { %5562 = vadd.xlane.f32.xlu0 %v5561_v31 }
 0x91d   :  { %5571 = vadd.xlane.f32.xlu1 %v5570_v20 }
 0x91e   :  { %5568 = vadd.xlane.f32.xlu0 %v5567_v35 }
 0x935   :  { %v5446_v60 = vpop.xlane.xlu1 %5445 }
 0x936   :  { %v5575_v25 = vmul.f32 0.03125, %v5446_v60  ;;  %v5443_v27 = vpop.xlane.xlu0 %5442 }
 0x937   :  { %v5574_v54 = vmul.f32 0.03125, %v5443_v27 }
 0x938   :  { %v13234_v17 = vsub.f32 %v5398_v37, %v5575_v25 }
 0x939   :  { %v13238_v31 = vsub.f32 %v5397_v42, %v5574_v54  ;;  %v5452_v26 = vpop.xlane.xlu1 %5451 }
 0x93a   :  { %v5577_v50 = vmul.f32 0.03125, %v5452_v26  ;;  %v5449_v20 = vpop.xlane.xlu0 %5448  ;;  %v5663_v62 = vmul.f32 %v13234_v17, %v13234_v17 }
 0x93b   :  { %v5576_v47 = vmul.f32 0.03125, %v5449_v20  ;;  %v5662_v35 = vmul.f32 %v13238_v31, %v13238_v31 }
 0x93c   :  { %v13246_v27 = vsub.f32 %v5400_v18, %v5577_v50  ;;  %v5709_v9 = vsel %vm176_vm0, %v5663_v62, 0.0 }
 0x93d   :  { %v13251_v53 = vsub.f32 %v5399_v56, %v5576_v47  ;;  %v5458_v37 = vpop.xlane.xlu1 %5457  ;;  %5710 = vadd.xlane.f32.xlu1 %v5709_v9  ;;  %v5706_v42 = vsel %vm176_vm0, %v5662_v35, 0.0 }
 0x93e   :  { %v5579_v54 = vmul.f32 0.03125, %v5458_v37  ;;  %5707 = vadd.xlane.f32.xlu0 %v5706_v42  ;;  %v5455_v25 = vpop.xlane.xlu0 %5454  ;;  %v5665_v26 = vmul.f32 %v13246_v27, %v13246_v27 }
 0x93f   :  { %v5578_v60 = vmul.f32 0.03125, %v5455_v25  ;;  %v5664_v4 = vmul.f32 %v13251_v53, %v13251_v53 }
 0x940   :  { %v13260_v18 = vsub.f32 %v5402_v45, %v5579_v54  ;;  %v5715_v30 = vsel %vm176_vm0, %v5665_v26, 0.0 }
 0x941   :  { %v13265_v56 = vsub.f32 %v5401_v59, %v5578_v60  ;;  %v5464_v62 = vpop.xlane.xlu1 %5463  ;;  %5716 = vadd.xlane.f32.xlu1 %v5715_v30  ;;  %v5712_v50 = vsel %vm176_vm0, %v5664_v4, 0.0 }
 0x942   :  { %v5581_v47 = vmul.f32 0.03125, %v5464_v62  ;;  %5713 = vadd.xlane.f32.xlu0 %v5712_v50  ;;  %v5461_v20 = vpop.xlane.xlu0 %5460  ;;  %v5667_v35 = vmul.f32 %v13260_v18, %v13260_v18 }
 0x943   :  { %v5580_v9 = vmul.f32 0.03125, %v5461_v20  ;;  %v5666_v33 = vmul.f32 %v13265_v56, %v13265_v56 }
 0x944   :  { %v13274_v45 = vsub.f32 %v5404_v2, %v5581_v47  ;;  %v5721_v46 = vsel %vm176_vm0, %v5667_v35, 0.0  ;;  %v15347_v2 = vmax.f32 %v12903_v5, 0.0 }
 0x945   :  { %v13279_v59 = vsub.f32 %v5403_v14, %v5580_v9  ;;  %v5470_v37 = vpop.xlane.xlu1 %5469  ;;  %5722 = vadd.xlane.f32.xlu1 %v5721_v46  ;;  %v5718_v42 = vsel %vm176_vm0, %v5666_v33, 0.0  ;;  %v15348_v14 = vmax.f32 %v12909_v58, 0.0  ;;  %v15349_v33 = vmax.f32 %v12917_v3, 0.0 }
 0x946   :  { %v5583_v54 = vmul.f32 0.03125, %v5470_v37  ;;  %5719 = vadd.xlane.f32.xlu0 %v5718_v42  ;;  %v5467_v25 = vpop.xlane.xlu0 %5466  ;;  %v5669_v26 = vmul.f32 %v13274_v45, %v13274_v45  ;;  %v15350_v37 = vmax.f32 %v12923_v13, 0.0 }
 0x947   :  { %v5582_v60 = vmul.f32 0.03125, %v5467_v25  ;;  %v5668_v34 = vmul.f32 %v13279_v59, %v13279_v59 }
 0x948   :  { %v13288_v4 = vsub.f32 %v15347_v2, %v5583_v54  ;;  %v5727_v0 = vsel %vm176_vm0, %v5669_v26, 0.0 }
 0x949   :  { %v13293_v30 = vsub.f32 %v15348_v14, %v5582_v60  ;;  %v5476_v62 = vpop.xlane.xlu1 %5475  ;;  %5728 = vadd.xlane.f32.xlu1 %v5727_v0  ;;  %v5724_v50 = vsel %vm176_vm0, %v5668_v34, 0.0  ;;  %v15351_v14 = vmax.f32 %v12941_v44, 0.0 }
 0x94a   :  { %v5585_v47 = vmul.f32 0.03125, %v5476_v62  ;;  %5725 = vadd.xlane.f32.xlu0 %v5724_v50  ;;  %v5473_v20 = vpop.xlane.xlu0 %5472  ;;  %v5671_v35 = vmul.f32 %v13288_v4, %v13288_v4  ;;  %v15352_v50 = vmax.f32 %v12946_v19, 0.0  ;;  %v15353_v19 = vmax.f32 %v12963_v11, 0.0 }
 0x94b   :  { %v5584_v9 = vmul.f32 0.03125, %v5473_v20  ;;  %v5670_v5 = vmul.f32 %v13293_v30, %v13293_v30 }
 0x94c   :  { %v13302_v46 = vsub.f32 %v15349_v33, %v5585_v47  ;;  %v5733_v58 = vsel %vm176_vm0, %v5671_v35, 0.0 }
 0x94d   :  { %v13307_v42 = vsub.f32 %v15350_v37, %v5584_v9  ;;  %5734 = vadd.xlane.f32.xlu1 %v5733_v58  ;;  %v5730_v54 = vsel %vm176_vm0, %v5670_v5, 0.0 }
 0x94e   :  { %5731 = vadd.xlane.f32.xlu0 %v5730_v54  ;;  %v5673_v25 = vmul.f32 %v13302_v46, %v13302_v46 }
 0x94f   :  { %v5672_v26 = vmul.f32 %v13307_v42, %v13307_v42 }
 0x950   :  { %v5739_v3 = vsel %vm176_vm0, %v5673_v25, 0.0  ;;  %v15354_v25 = vmax.f32 %v12968_v28, 0.0  ;;  %v15355_v28 = vmax.f32 %v12985_v21, 0.0 }
 0x951   :  { %5740 = vadd.xlane.f32.xlu1 %v5739_v3  ;;  %v5736_v60 = vsel %vm176_vm0, %v5672_v26, 0.0 }
 0x952   :  { %5737 = vadd.xlane.f32.xlu0 %v5736_v60 }
 0x95e   :  { %v5482_v34 = vpop.xlane.xlu1 %5481 }
 0x95f   :  { %v5587_v13 = vmul.f32 0.03125, %v5482_v34  ;;  %v5479_v2 = vpop.xlane.xlu0 %5478 }
 0x960   :  { %v5586_v0 = vmul.f32 0.03125, %v5479_v2 }
 0x961   :  { %v13318_v62 = vsub.f32 %v15351_v14, %v5587_v13 }
 0x962   :  { %v13322_v47 = vsub.f32 %v15352_v50, %v5586_v0 }
 0x963   :  { %v5675_v20 = vmul.f32 %v13318_v62, %v13318_v62 }
 0x964   :  { %v5674_v35 = vmul.f32 %v13322_v47, %v13322_v47 }
 0x965   :  { %v5745_v9 = vsel %vm176_vm0, %v5675_v20, 0.0  ;;  %v15356_v20 = vmax.f32 %v12990_v36, 0.0  ;;  %v15357_v36 = vmax.f32 %v13007_v61, 0.0 }
 0x966   :  { %v5488_v5 = vpop.xlane.xlu1 %5487  ;;  %5746 = vadd.xlane.f32.xlu1 %v5745_v9  ;;  %v5742_v33 = vsel %vm176_vm0, %v5674_v35, 0.0 }
 0x967   :  { %v5589_v58 = vmul.f32 0.03125, %v5488_v5  ;;  %5743 = vadd.xlane.f32.xlu0 %v5742_v33  ;;  %v5485_v44 = vpop.xlane.xlu0 %5484 }
 0x968   :  { %v5588_v37 = vmul.f32 0.03125, %v5485_v44 }
 0x969   :  { %v13332_v54 = vsub.f32 %v15353_v19, %v5589_v58 }
 0x96a   :  { %v13336_v26 = vsub.f32 %v15354_v25, %v5588_v37 }
 0x96b   :  { %v5677_v3 = vmul.f32 %v13332_v54, %v13332_v54 }
 0x96c   :  { %v5676_v60 = vmul.f32 %v13336_v26, %v13336_v26 }
 0x96d   :  { %v5751_v34 = vsel %vm176_vm0, %v5677_v3, 0.0  ;;  %v15358_v3 = vmax.f32 %v13012_v8, 0.0  ;;  %v15359_v8 = vmax.f32 %v13031_v23, 0.0 }
 0x96e   :  { %v5494_v13 = vpop.xlane.xlu1 %5493  ;;  %5752 = vadd.xlane.f32.xlu1 %v5751_v34  ;;  %v5748_v2 = vsel %vm176_vm0, %v5676_v60, 0.0 }
 0x96f   :  { %v5591_v0 = vmul.f32 0.03125, %v5494_v13  ;;  %5749 = vadd.xlane.f32.xlu0 %v5748_v2  ;;  %v5491_v11 = vpop.xlane.xlu0 %5490 }
 0x970   :  { %v5590_v14 = vmul.f32 0.03125, %v5491_v11 }
 0x971   :  { %v13346_v50 = vsub.f32 %v15355_v28, %v5591_v0 }
 0x972   :  { %v13350_v35 = vsub.f32 %v15356_v20, %v5590_v14 }
 0x973   :  { %v5679_v9 = vmul.f32 %v13346_v50, %v13346_v50 }
 0x974   :  { %v5678_v5 = vmul.f32 %v13350_v35, %v13350_v35 }
 0x975   :  { %v5757_v33 = vsel %vm176_vm0, %v5679_v9, 0.0  ;;  %v15360_v9 = vmax.f32 %v13036_v52, 0.0  ;;  %v15362_v52 = vmax.f32 %v13053_v55, 0.0 }
 0x976   :  { %v5500_v58 = vpop.xlane.xlu1 %5499  ;;  %5758 = vadd.xlane.f32.xlu1 %v5757_v33  ;;  %v5754_v44 = vsel %vm176_vm0, %v5678_v5, 0.0 }
 0x977   :  { %v5593_v37 = vmul.f32 0.03125, %v5500_v58  ;;  %5755 = vadd.xlane.f32.xlu0 %v5754_v44  ;;  %v5497_v21 = vpop.xlane.xlu0 %5496 }
 0x978   :  { %v5592_v19 = vmul.f32 0.03125, %v5497_v21 }
 0x979   :  { %v13360_v25 = vsub.f32 %v15357_v36, %v5593_v37  ;;  %v15361_v36 = vmax.f32 %v13045_v15, 0.0 }
 0x97a   :  { %v13364_v60 = vsub.f32 %v15358_v3, %v5592_v19 }
 0x97b   :  { %v5681_v34 = vmul.f32 %v13360_v25, %v13360_v25 }
 0x97c   :  { %v5680_v13 = vmul.f32 %v13364_v60, %v13364_v60 }
 0x97d   :  { %v5763_v2 = vsel %vm176_vm0, %v5681_v34, 0.0 }
 0x97e   :  { %v5506_v0 = vpop.xlane.xlu1 %5505  ;;  %5764 = vadd.xlane.f32.xlu1 %v5763_v2  ;;  %v5760_v11 = vsel %vm176_vm0, %v5680_v13, 0.0 }
 0x97f   :  { %v5595_v14 = vmul.f32 0.03125, %v5506_v0  ;;  %5761 = vadd.xlane.f32.xlu0 %v5760_v11  ;;  %v5503_v61 = vpop.xlane.xlu0 %5502 }
 0x980   :  { %v5594_v28 = vmul.f32 0.03125, %v5503_v61 }
 0x981   :  { %v13374_v20 = vsub.f32 %v15359_v8, %v5595_v14 }
 0x982   :  { %v13378_v5 = vsub.f32 %v15360_v9, %v5594_v28  ;;  %v5512_v33 = vpop.xlane.xlu1 %5511  ;;  %v15363_v28 = vmax.f32 %v13065_v7, 0.0  ;;  %v15364_v9 = vmax.f32 %v13073_v40, 0.0 }
 0x983   :  { %v5597_v58 = vmul.f32 0.03125, %v5512_v33  ;;  %v5509_v44 = vpop.xlane.xlu0 %5508  ;;  %v5683_v37 = vmul.f32 %v13374_v20, %v13374_v20 }
 0x984   :  { %v5596_v21 = vmul.f32 0.03125, %v5509_v44  ;;  %v5682_v19 = vmul.f32 %v13378_v5, %v13378_v5 }
 0x985   :  { %v13386_v3 = vsub.f32 %v15361_v36, %v5597_v58  ;;  %v5769_v23 = vsel %vm176_vm0, %v5683_v37, 0.0 }
 0x986   :  { %v13391_v34 = vsub.f32 %v15362_v52, %v5596_v21  ;;  %v5518_v13 = vpop.xlane.xlu1 %5517  ;;  %5770 = vadd.xlane.f32.xlu1 %v5769_v23  ;;  %v5766_v2 = vsel %vm176_vm0, %v5682_v19, 0.0  ;;  %v15365_v23 = vmax.f32 %v13085_v32, 0.0 }
 0x987   :  { %v5599_v0 = vmul.f32 0.03125, %v5518_v13  ;;  %5767 = vadd.xlane.f32.xlu0 %v5766_v2  ;;  %v5515_v11 = vpop.xlane.xlu0 %5514  ;;  %v5685_v14 = vmul.f32 %v13386_v3, %v13386_v3  ;;  %v15366_v13 = vmax.f32 %v13091_v24, 0.0 }
 0x988   :  { %v5598_v61 = vmul.f32 0.03125, %v5515_v11  ;;  %v5684_v15 = vmul.f32 %v13391_v34, %v13391_v34 }
 0x989   :  { %v13400_v8 = vsub.f32 %v15363_v28, %v5599_v0  ;;  %v5775_v55 = vsel %vm176_vm0, %v5685_v14, 0.0 }
 0x98a   :  { %v13405_v33 = vsub.f32 %v15364_v9, %v5598_v61  ;;  %v5524_v58 = vpop.xlane.xlu1 %5523  ;;  %5776 = vadd.xlane.f32.xlu1 %v5775_v55  ;;  %v5772_v44 = vsel %vm176_vm0, %v5684_v15, 0.0  ;;  %v15367_v55 = vmax.f32 %v13101_v16, 0.0 }
 0x98b   :  { %v5601_v37 = vmul.f32 0.03125, %v5524_v58  ;;  %5773 = vadd.xlane.f32.xlu0 %v5772_v44  ;;  %v5521_v21 = vpop.xlane.xlu0 %5520  ;;  %v5687_v19 = vmul.f32 %v13400_v8, %v13400_v8  ;;  %v15368_v58 = vmax.f32 %v13107_v1, 0.0 }
 0x98c   :  { %v5600_v36 = vmul.f32 0.03125, %v5521_v21  ;;  %v5686_v7 = vmul.f32 %v13405_v33, %v13405_v33 }
 0x98d   :  { %v13414_v52 = vsub.f32 %v15365_v23, %v5601_v37  ;;  %v5781_v40 = vsel %vm176_vm0, %v5687_v19, 0.0 }
 0x98e   :  { %v13419_v2 = vsub.f32 %v15366_v13, %v5600_v36  ;;  %v5530_v0 = vpop.xlane.xlu1 %5529  ;;  %5782 = vadd.xlane.f32.xlu1 %v5781_v40  ;;  %v5778_v11 = vsel %vm176_vm0, %v5686_v7, 0.0  ;;  %v15369_v40 = vmax.f32 %v13117_v12, 0.0 }
 0x98f   :  { %v5603_v14 = vmul.f32 0.03125, %v5530_v0  ;;  %5779 = vadd.xlane.f32.xlu0 %v5778_v11  ;;  %v5527_v61 = vpop.xlane.xlu0 %5526  ;;  %v5689_v15 = vmul.f32 %v13414_v52, %v13414_v52  ;;  %v15370_v0 = vmax.f32 %v13123_v48, 0.0 }
 0x990   :  { %v5602_v28 = vmul.f32 0.03125, %v5527_v61  ;;  %v5688_v32 = vmul.f32 %v13419_v2, %v13419_v2 }
 0x991   :  { %v13428_v9 = vsub.f32 %v15367_v55, %v5603_v14  ;;  %v5787_v24 = vsel %vm176_vm0, %v5689_v15, 0.0 }
 0x992   :  { %v13433_v44 = vsub.f32 %v15368_v58, %v5602_v28  ;;  %v5536_v37 = vpop.xlane.xlu1 %5535  ;;  %5788 = vadd.xlane.f32.xlu1 %v5787_v24  ;;  %v5784_v21 = vsel %vm176_vm0, %v5688_v32, 0.0  ;;  %v15371_v24 = vmax.f32 %v13133_v51, 0.0 }
 0x993   :  { %v5605_v19 = vmul.f32 0.03125, %v5536_v37  ;;  %5785 = vadd.xlane.f32.xlu0 %v5784_v21  ;;  %v5533_v36 = vpop.xlane.xlu0 %5532  ;;  %v5691_v7 = vmul.f32 %v13428_v9, %v13428_v9  ;;  %v15372_v37 = vmax.f32 %v13139_v43, 0.0 }
 0x994   :  { %v5604_v23 = vmul.f32 0.03125, %v5533_v36  ;;  %v5690_v16 = vmul.f32 %v13433_v44, %v13433_v44 }
 0x995   :  { %v13442_v13 = vsub.f32 %v15369_v40, %v5605_v19  ;;  %v5793_v1 = vsel %vm176_vm0, %v5691_v7, 0.0 }
 0x996   :  { %v13447_v11 = vsub.f32 %v15370_v0, %v5604_v23  ;;  %v5542_v14 = vpop.xlane.xlu1 %5541  ;;  %5794 = vadd.xlane.f32.xlu1 %v5793_v1  ;;  %v5790_v61 = vsel %vm176_vm0, %v5690_v16, 0.0  ;;  %v15373_v1 = vmax.f32 %v13149_v10, 0.0 }
 0x997   :  { %v5607_v15 = vmul.f32 0.03125, %v5542_v14  ;;  %5791 = vadd.xlane.f32.xlu0 %v5790_v61  ;;  %v5539_v28 = vpop.xlane.xlu0 %5538  ;;  %v5693_v32 = vmul.f32 %v13442_v13, %v13442_v13  ;;  %v15374_v14 = vmax.f32 %v13155_v57, 0.0 }
 0x998   :  { %v5606_v55 = vmul.f32 0.03125, %v5539_v28  ;;  %v5692_v12 = vmul.f32 %v13447_v11, %v13447_v11 }
 0x999   :  { %v13456_v58 = vsub.f32 %v15371_v24, %v5607_v15  ;;  %v5799_v48 = vsel %vm176_vm0, %v5693_v32, 0.0 }
 0x99a   :  { %v13461_v21 = vsub.f32 %v15372_v37, %v5606_v55  ;;  %v5548_v19 = vpop.xlane.xlu1 %5547  ;;  %5800 = vadd.xlane.f32.xlu1 %v5799_v48  ;;  %v5796_v36 = vsel %vm176_vm0, %v5692_v12, 0.0  ;;  %v15375_v48 = vmax.f32 %v13165_v29, 0.0 }
 0x99b   :  { %v5609_v7 = vmul.f32 0.03125, %v5548_v19  ;;  %5797 = vadd.xlane.f32.xlu0 %v5796_v36  ;;  %v5545_v23 = vpop.xlane.xlu0 %5544  ;;  %v5695_v16 = vmul.f32 %v13456_v58, %v13456_v58  ;;  %v15377_v19 = vmax.f32 %v13171_v49, 0.0 }
 0x99c   :  { %v5608_v40 = vmul.f32 0.03125, %v5545_v23  ;;  %v5694_v51 = vmul.f32 %v13461_v21, %v13461_v21 }
 0x99d   :  { %v13470_v0 = vsub.f32 %v15373_v1, %v5609_v7  ;;  %v5805_v43 = vsel %vm176_vm0, %v5695_v16, 0.0 }
 0x99e   :  { %v13475_v61 = vsub.f32 %v15374_v14, %v5608_v40  ;;  %v5554_v15 = vpop.xlane.xlu1 %5553  ;;  %5806 = vadd.xlane.f32.xlu1 %v5805_v43  ;;  %v5802_v28 = vsel %vm176_vm0, %v5694_v51, 0.0  ;;  %v15379_v43 = vmax.f32 %v13181_v38, 0.0 }
 0x99f   :  { %v5611_v32 = vmul.f32 0.03125, %v5554_v15  ;;  %5803 = vadd.xlane.f32.xlu0 %v5802_v28  ;;  %v5551_v55 = vpop.xlane.xlu0 %5550  ;;  %v5697_v12 = vmul.f32 %v13470_v0, %v13470_v0  ;;  %v15381_v15 = vmax.f32 %v13187_v63, 0.0 }
 0x9a0   :  { %v5610_v24 = vmul.f32 0.03125, %v5551_v55  ;;  %v5696_v10 = vmul.f32 %v13475_v61, %v13475_v61 }
 0x9a1   :  { %v13484_v37 = vsub.f32 %v15375_v48, %v5611_v32  ;;  %v5811_v57 = vsel %vm176_vm0, %v5697_v12, 0.0 }
 0x9a2   :  { %v13489_v36 = vsub.f32 %v15377_v19, %v5610_v24  ;;  %v5560_v7 = vpop.xlane.xlu1 %5559  ;;  %5812 = vadd.xlane.f32.xlu1 %v5811_v57  ;;  %v5808_v23 = vsel %vm176_vm0, %v5696_v10, 0.0  ;;  %v15383_v57 = vmax.f32 %v13201_v41, 0.0 }
 0x9a3   :  { %15376 = vst [vmem:[#allocation83_spill] sm:$0xff] %v13484_v37  ;;  %v5613_v16 = vmul.f32 0.03125, %v5560_v7  ;;  %5809 = vadd.xlane.f32.xlu0 %v5808_v23  ;;  %v5557_v40 = vpop.xlane.xlu0 %5556  ;;  %v5699_v51 = vmul.f32 %v13484_v37, %v13484_v37  ;;  %v15385_v7 = vmax.f32 %v13211_v39, 0.0 }
 0x9a4   :  { %15378 = vst [vmem:[#allocation84_spill] sm:$0xff] %v13489_v36  ;;  %v5612_v1 = vmul.f32 0.03125, %v5557_v40  ;;  %v5698_v29 = vmul.f32 %v13489_v36, %v13489_v36 }
 0x9a5   :  { %v13498_v14 = vsub.f32 %v15379_v43, %v5613_v16  ;;  %v5817_v49 = vsel %vm176_vm0, %v5699_v51, 0.0 }
 0x9a6   :  { %v13503_v28 = vsub.f32 %v15381_v15, %v5612_v1  ;;  %v5566_v32 = vpop.xlane.xlu1 %5565  ;;  %5818 = vadd.xlane.f32.xlu1 %v5817_v49  ;;  %v5814_v55 = vsel %vm176_vm0, %v5698_v29, 0.0  ;;  %v15387_v49 = vmax.f32 %v13198_v22, 0.0 }
 0x9a7   :  { %15380 = vst [vmem:[#allocation90_spill] sm:$0xff] %v13498_v14  ;;  %v5615_v12 = vmul.f32 0.03125, %v5566_v32  ;;  %5815 = vadd.xlane.f32.xlu0 %v5814_v55  ;;  %v5563_v24 = vpop.xlane.xlu0 %5562  ;;  %v5701_v10 = vmul.f32 %v13498_v14, %v13498_v14  ;;  %v15389_v32 = vmax.f32 %v13208_v6, 0.0 }
 0x9a8   :  { %15382 = vst [vmem:[#allocation86_spill] sm:$0xff] %v13503_v28  ;;  %v5614_v48 = vmul.f32 0.03125, %v5563_v24  ;;  %v5700_v38 = vmul.f32 %v13503_v28, %v13503_v28 }
 0x9a9   :  { %v13512_v19 = vsub.f32 %v15383_v57, %v5615_v12  ;;  %v5823_v63 = vsel %vm176_vm0, %v5701_v10, 0.0 }
 0x9aa   :  { %v13517_v23 = vsub.f32 %v15385_v7, %v5614_v48  ;;  %5824 = vadd.xlane.f32.xlu1 %v5823_v63  ;;  %v5572_v16 = vpop.xlane.xlu1 %5571  ;;  %v5820_v40 = vsel %vm176_vm0, %v5700_v38, 0.0 }
 0x9ab   :  { %15384 = vst [vmem:[#allocation89_spill] sm:$0xff] %v13512_v19  ;;  %v5617_v51 = vmul.f32 0.03125, %v5572_v16  ;;  %5821 = vadd.xlane.f32.xlu0 %v5820_v40  ;;  %v5569_v1 = vpop.xlane.xlu0 %5568  ;;  %v5703_v29 = vmul.f32 %v13512_v19, %v13512_v19 }
 0x9ac   :  { %15386 = vst [vmem:[#allocation85_spill] sm:$0xff] %v13517_v23  ;;  %v5616_v43 = vmul.f32 0.03125, %v5569_v1  ;;  %v5702_v41 = vmul.f32 %v13517_v23, %v13517_v23 }
 0x9ad   :  { %v13526_v15 = vsub.f32 %v15387_v49, %v5617_v51  ;;  %v5829_v39 = vsel %vm176_vm0, %v5703_v29, 0.0  ;;  %v13543_v29 = vld [vmem:[%s14318_s7] ss:$0 sm:$0xff] }
 0x9ae   :  { %v13531_v55 = vsub.f32 %v15389_v32, %v5616_v43  ;;  %5830 = vadd.xlane.f32.xlu1 %v5829_v39  ;;  %v5826_v12 = vsel %vm176_vm0, %v5702_v41, 0.0  ;;  %v13552_v39 = vmul.f32 %v13543_v29, %v13234_v17 }
 0x9af   :  { %15388 = vst [vmem:[#allocation44_spill] sm:$0xff] %v13526_v15  ;;  %5827 = vadd.xlane.f32.xlu0 %v5826_v12  ;;  %v5705_v24 = vmul.f32 %v13526_v15, %v13526_v15 }
 0x9b0   :  { %15390 = vst [vmem:[#allocation45_spill] sm:$0xff] %v13531_v55  ;;  %v5704_v10 = vmul.f32 %v13531_v55, %v13531_v55 }
 0x9b1   :  { %v5835_v22 = vsel %vm176_vm0, %v5705_v24, 0.0 }
 0x9b2   :  { %5836 = vadd.xlane.f32.xlu1 %v5835_v22  ;;  %v5832_v48 = vsel %vm176_vm0, %v5704_v10, 0.0 }
 0x9b3   :  { %5833 = vadd.xlane.f32.xlu0 %v5832_v48 }
 0x9ca   :  { %v5711_v38 = vpop.xlane.xlu1 %5710 }
 0x9cb   :  { %v5839_v6 = vmul.f32 0.032258064, %v5711_v38  ;;  %v5708_v57 = vpop.xlane.xlu0 %5707 }
 0x9cc   :  { %v5838_v63 = vmul.f32 0.032258064, %v5708_v57 }
 0x9cd   :  { %8220 = vrsqrt.f32 %v5839_v6  ;;  %vm5891_vm4 = vcmp.eq.f32.partialorder %v5839_v6, inf  ;;  %vm5893_vm5 = vcmp.eq.f32.partialorder %v5839_v6, 0.0  ;;  %v5894_v24 = vand.u32 2147483648, %v5839_v6 }
 0x9ce   :  { %8222 = vrsqrt.f32 %v5838_v63  ;;  %v5717_v7 = vpop.xlane.xlu1 %5716  ;;  %vm5884_vm6 = vcmp.eq.f32.partialorder %v5838_v63, inf  ;;  %vm5886_vm7 = vcmp.eq.f32.partialorder %v5838_v63, 0.0  ;;  %v5887_v57 = vand.u32 2147483648, %v5838_v63 }
 0x9cf   :  { %v5841_v16 = vmul.f32 0.032258064, %v5717_v7  ;;  %v5714_v40 = vpop.xlane.xlu0 %5713 }
 0x9d0   :  { %v5840_v51 = vmul.f32 0.032258064, %v5714_v40 }
 0x9d1   :  { %8224 = vrsqrt.f32 %v5841_v16  ;;  %vm5905_vm8 = vcmp.eq.f32.partialorder %v5841_v16, inf  ;;  %vm5907_vm9 = vcmp.eq.f32.partialorder %v5841_v16, 0.0  ;;  %v5908_v40 = vand.u32 2147483648, %v5841_v16 }
 0x9d2   :  { %8226 = vrsqrt.f32 %v5840_v51  ;;  %v5723_v1 = vpop.xlane.xlu1 %5722  ;;  %vm5898_vm10 = vcmp.eq.f32.partialorder %v5840_v51, inf  ;;  %vm5900_vm11 = vcmp.eq.f32.partialorder %v5840_v51, 0.0  ;;  %v5901_v15 = vand.u32 2147483648, %v5840_v51 }
 0x9d3   :  { %v13545_v43 = vmul.f32 0.032258064, %v5723_v1  ;;  %v5720_v41 = vpop.xlane.xlu0 %5719 }
 0x9d4   :  { %v13547_v49 = vmul.f32 0.032258064, %v5720_v41 }
 0x9d5   :  { %8228 = vrsqrt.f32 %v13545_v43  ;;  %vm5919_vm12 = vcmp.eq.f32.partialorder %v13545_v43, inf  ;;  %vm5921_vm13 = vcmp.eq.f32.partialorder %v13545_v43, 0.0 }
 0x9d6   :  { %8230 = vrsqrt.f32 %v13547_v49  ;;  %v5729_v32 = vpop.xlane.xlu1 %5728  ;;  %vm5912_vm14 = vcmp.eq.f32.partialorder %v13547_v49, inf  ;;  %vm5914_vm15 = vcmp.eq.f32.partialorder %v13547_v49, 0.0 }
 0x9d7   :  { %v8221_v12 = vpop.eup %8220  ;;  %v13555_v10 = vmul.f32 0.032258064, %v5729_v32  ;;  %v5726_v22 = vpop.xlane.xlu0 %5725 }
 0x9d8   :  { %v8223_v48 = vpop.eup %8222  ;;  %v5890_v38 = vmul.f32 %v8221_v12, %v5839_v6  ;;  %v13557_v7 = vmul.f32 0.032258064, %v5726_v22 }
 0x9d9   :  { %v5883_v17 = vmul.f32 %v8223_v48, %v5838_v63  ;;  %8232 = vrsqrt.f32 %v13555_v10  ;;  %vm5933_vm1 = vcmp.eq.f32.partialorder %v13555_v10, inf  ;;  %vm5935_vm2 = vcmp.eq.f32.partialorder %v13555_v10, 0.0 }
 0x9da   :  { %v5892_v1 = vsel %vm5891_vm4, %v5839_v6, %v5890_v38  ;;  %8234 = vrsqrt.f32 %v13557_v7  ;;  %v5735_v41 = vpop.xlane.xlu1 %5734  ;;  %vm5926_vm3 = vcmp.eq.f32.partialorder %v13557_v7, inf  ;;  %vm5928_vm4 = vcmp.eq.f32.partialorder %v13557_v7, 0.0 }
 0x9db   :  { %v8225_v32 = vpop.eup %8224  ;;  %v5895_v55 = vsel %vm5893_vm5, %v5894_v24, %v5892_v1  ;;  %v5885_v12 = vsel %vm5884_vm6, %v5838_v63, %v5883_v17  ;;  %v5732_v22 = vpop.xlane.xlu0 %5731  ;;  %v13566_v38 = vmul.f32 0.032258064, %v5735_v41  ;;  %v5922_v24 = vand.u32 2147483648, %v13545_v43 }
 0x9dc   :  { %v8227_v48 = vpop.eup %8226  ;;  %v6191_v23 = vadd.f32 1e-06, %v5895_v55  ;;  %v5888_v19 = vsel %vm5886_vm7, %v5887_v57, %v5885_v12  ;;  %v5904_v28 = vmul.f32 %v8225_v32, %v5841_v16  ;;  %v13569_v37 = vmul.f32 0.032258064, %v5732_v22 }
 0x9dd   :  { %v6190_v14 = vadd.f32 1e-06, %v5888_v19  ;;  %v5897_v36 = vmul.f32 %v8227_v48, %v5840_v51  ;;  %vm5947_vm5 = vcmp.eq.f32.partialorder %v13566_v38, inf  ;;  %vm5949_vm6 = vcmp.eq.f32.partialorder %v13566_v38, 0.0 }
 0x9de   :  { %8236 = vrcp.f32 %v6191_v23  ;;  %v5906_v6 = vsel %vm5905_vm8, %v5841_v16, %v5904_v28  ;;  %v5741_v28 = vpop.xlane.xlu1 %5740  ;;  %vm5940_vm7 = vcmp.eq.f32.partialorder %v13569_v37, inf  ;;  %vm5942_vm8 = vcmp.eq.f32.partialorder %v13569_v37, 0.0 }
 0x9df   :  { %v8229_v17 = vpop.eup %8228  ;;  %8238 = vrcp.f32 %v6190_v14  ;;  %v5909_v55 = vsel %vm5907_vm9, %v5908_v40, %v5906_v6  ;;  %v5899_v63 = vsel %vm5898_vm10, %v5840_v51, %v5897_v36  ;;  %v5915_v14 = vand.u32 2147483648, %v13547_v49  ;;  %v5738_v16 = vpop.xlane.xlu0 %5737 }
 0x9e0   :  { %v8231_v19 = vpop.eup %8230  ;;  %v6193_v57 = vadd.f32 1e-06, %v5909_v55  ;;  %v5902_v1 = vsel %vm5900_vm11, %v5901_v15, %v5899_v63  ;;  %v5918_v23 = vmul.f32 %v8229_v17, %v13545_v43  ;;  %8240 = vrsqrt.f32 %v13566_v38 }
 0x9e1   :  { %v6192_v41 = vadd.f32 1e-06, %v5902_v1  ;;  %v5911_v32 = vmul.f32 %v8231_v19, %v13547_v49  ;;  %8242 = vrsqrt.f32 %v13569_v37  ;;  %v13593_v12 = vmul.f32 0.032258064, %v5741_v28 }
 0x9e2   :  { %8244 = vrcp.f32 %v6193_v57  ;;  %v5920_v36 = vsel %vm5919_vm12, %v13545_v43, %v5918_v23  ;;  %v13598_v55 = vmul.f32 0.032258064, %v5738_v16  ;;  %v5936_v19 = vand.u32 2147483648, %v13555_v10 }
 0x9e3   :  { %v8233_v15 = vpop.eup %8232  ;;  %8246 = vrcp.f32 %v6192_v41  ;;  %v5923_v51 = vsel %vm5921_vm13, %v5922_v24, %v5920_v36  ;;  %v5913_v40 = vsel %vm5912_vm14, %v13547_v49, %v5911_v32  ;;  %v5929_v49 = vand.u32 2147483648, %v13557_v7  ;;  %v13617_v41 = vld [vmem:[%s14319_s8] ss:$0 sm:$0xff] }
 0x9e4   :  { %v8235_v22 = vpop.eup %8234  ;;  %v6195_v48 = vadd.f32 1e-06, %v5923_v51  ;;  %v5916_v6 = vsel %vm5914_vm15, %v5915_v14, %v5913_v40  ;;  %v5932_v17 = vmul.f32 %v8233_v15, %v13555_v10  ;;  %8248 = vrsqrt.f32 %v13593_v12 }
 0x9e5   :  { %v6194_v63 = vadd.f32 1e-06, %v5916_v6  ;;  %v5925_v43 = vmul.f32 %v8235_v22, %v13557_v7  ;;  %v6329_v28 = vmul.f32 %v13543_v29, %v13238_v31  ;;  %v6334_v51 = vmul.f32 %v13543_v29, %v13260_v18 }
 0x9e6   :  { %8250 = vrcp.f32 %v6195_v48  ;;  %v5934_v24 = vsel %vm5933_vm1, %v13555_v10, %v5932_v17  ;;  %v6332_v10 = vmul.f32 %v13543_v29, %v13246_v27  ;;  %v6333_v40 = vmul.f32 %v13543_v29, %v13265_v56 }
 0x9e7   :  { %8252 = vrcp.f32 %v6194_v63  ;;  %v5937_v57 = vsel %vm5935_vm2, %v5936_v19, %v5934_v24  ;;  %v5927_v1 = vsel %vm5926_vm3, %v13557_v7, %v5925_v43  ;;  %v6331_v7 = vmul.f32 %v13543_v29, %v13251_v53 }
 0x9e8   :  { %v8237_v23 = vpop.eup %8236  ;;  %v6197_v32 = vadd.f32 1e-06, %v5937_v57  ;;  %v5930_v14 = vsel %vm5928_vm4, %v5929_v49, %v5927_v1  ;;  %8254 = vrsqrt.f32 %v13598_v55  ;;  %v5950_v18 = vand.u32 2147483648, %v13566_v38 }
 0x9e9   :  { %v8239_v16 = vpop.eup %8238  ;;  %v6374_v36 = vmul.f32 %v8237_v23, %v13552_v39  ;;  %v6196_v15 = vadd.f32 1e-06, %v5930_v14  ;;  %v5943_v43 = vand.u32 2147483648, %v13569_v37  ;;  %v6336_v23 = vmul.f32 %v13543_v29, %v13274_v45 }
 0x9ea   :  { %v8241_v31 = vpop.eup %8240  ;;  %v6373_v22 = vmul.f32 %v8239_v16, %v6329_v28  ;;  %8256 = vrcp.f32 %v6197_v32  ;;  %v6335_v16 = vmul.f32 %v13543_v29, %v13279_v59  ;;  %vm5961_vm9 = vcmp.eq.f32.partialorder %v13593_v12, inf }
 0x9eb   :  { %v8243_v48 = vpop.eup %8242  ;;  %v6425_v6 = vadd.f32 %v13617_v41, %v6374_v36  ;;  %8258 = vrcp.f32 %v6196_v15  ;;  %v5946_v27 = vmul.f32 %v8241_v31, %v13566_v38  ;;  %vm5963_vm10 = vcmp.eq.f32.partialorder %v13593_v12, 0.0 }
 0x9ec   :  { %v8245_v53 = vpop.eup %8244  ;;  %v6424_v39 = vadd.f32 %v13617_v41, %v6373_v22  ;;  %v5939_v17 = vmul.f32 %v8243_v48, %v13569_v37  ;;  %vm5954_vm11 = vcmp.eq.f32.partialorder %v13598_v55, inf  ;;  %vm5956_vm12 = vcmp.eq.f32.partialorder %v13598_v55, 0.0 }
 0x9ed   :  { %v8247_v56 = vpop.eup %8246  ;;  %6469 = vst.msk [vmem:[%s14320_s9 + $0x8] sm:$0xff] %vm176_vm0, %v6425_v6  ;;  %v6376_v63 = vmul.f32 %v8245_v53, %v6332_v10  ;;  %v5948_v19 = vsel %vm5947_vm5, %v13566_v38, %v5946_v27 }
 0x9ee   :  { %6468 = vst.msk [vmem:[%s14320_s9] sm:$0xff] %vm176_vm0, %v6424_v39  ;;  %v6375_v24 = vmul.f32 %v8247_v56, %v6331_v7  ;;  %v5951_v49 = vsel %vm5949_vm6, %v5950_v18, %v5948_v19  ;;  %v5941_v57 = vsel %vm5940_vm7, %v13569_v37, %v5939_v17  ;;  %v8249_v1 = vpop.eup %8248  ;;  %v5964_v37 = vand.u32 2147483648, %v13593_v12 }
 0x9ef   :  { %v6427_v38 = vadd.f32 %v13617_v41, %v6376_v63  ;;  %v6199_v28 = vadd.f32 1e-06, %v5951_v49  ;;  %v5944_v32 = vsel %vm5942_vm8, %v5943_v43, %v5941_v57  ;;  %v5960_v36 = vmul.f32 %v8249_v1, %v13593_v12 }
 0x9f0   :  { %v8251_v14 = vpop.eup %8250  ;;  %v6426_v10 = vadd.f32 %v13617_v41, %v6375_v24  ;;  %v6198_v7 = vadd.f32 1e-06, %v5944_v32  ;;  %v5957_v17 = vand.u32 2147483648, %v13598_v55 }
 0x9f1   :  { %v8253_v15 = vpop.eup %8252  ;;  %6471 = vst.msk [vmem:[%s14320_s9 + $0x18] sm:$0xff] %vm176_vm0, %v6427_v38  ;;  %v6378_v45 = vmul.f32 %v8251_v14, %v6334_v51  ;;  %8260 = vrcp.f32 %v6199_v28  ;;  %v5962_v22 = vsel %vm5961_vm9, %v13593_v12, %v5960_v36  ;;  %v6337_v28 = vmul.f32 %v13543_v29, %v13293_v30 }
 0x9f2   :  { %v8255_v31 = vpop.eup %8254  ;;  %6470 = vst.msk [vmem:[%s14320_s9 + $0x10] sm:$0xff] %vm176_vm0, %v6426_v10  ;;  %v6377_v59 = vmul.f32 %v8253_v15, %v6333_v40  ;;  %8262 = vrcp.f32 %v6198_v7  ;;  %v5965_v51 = vsel %vm5963_vm10, %v5964_v37, %v5962_v22 }
 0x9f3   :  { %v6429_v48 = vadd.f32 %v13617_v41, %v6378_v45  ;;  %v5953_v6 = vmul.f32 %v8255_v31, %v13598_v55  ;;  %v5747_v27 = vpop.xlane.xlu1 %5746  ;;  %v6201_v18 = vadd.f32 1e-06, %v5965_v51 }
 0x9f4   :  { %v8257_v53 = vpop.eup %8256  ;;  %v6428_v39 = vadd.f32 %v13617_v41, %v6377_v59  ;;  %v5851_v40 = vmul.f32 0.032258064, %v5747_v27  ;;  %v5744_v56 = vpop.xlane.xlu0 %5743 }
 0x9f5   :  { %v8259_v63 = vpop.eup %8258  ;;  %6473 = vst.msk [vmem:[%s14320_s9 + $0x28] sm:$0xff] %vm176_vm0, %v6429_v48  ;;  %v6380_v12 = vmul.f32 %v8257_v53, %v6336_v23  ;;  %v5955_v19 = vsel %vm5954_vm11, %v13598_v55, %v5953_v6  ;;  %v5850_v43 = vmul.f32 0.032258064, %v5744_v56  ;;  %8264 = vrcp.f32 %v6201_v18 }
 0x9f6   :  { %6472 = vst.msk [vmem:[%s14320_s9 + $0x20] sm:$0xff] %vm176_vm0, %v6428_v39  ;;  %v6379_v24 = vmul.f32 %v8259_v63, %v6335_v16  ;;  %v5958_v49 = vsel %vm5956_vm12, %v5957_v17, %v5955_v19  ;;  %8266 = vrsqrt.f32 %v5851_v40  ;;  %v6338_v55 = vmul.f32 %v13543_v29, %v13288_v4 }
 0x9f7   :  { %v6431_v57 = vadd.f32 %v13617_v41, %v6380_v12  ;;  %v6200_v1 = vadd.f32 1e-06, %v5958_v49  ;;  %8268 = vrsqrt.f32 %v5850_v43  ;;  %v6340_v4 = vmul.f32 %v13543_v29, %v13302_v46 }
 0x9f8   :  { %v6430_v38 = vadd.f32 %v13617_v41, %v6379_v24  ;;  %v6339_v46 = vmul.f32 %v13543_v29, %v13307_v42  ;;  %vm5975_vm13 = vcmp.eq.f32.partialorder %v5851_v40, inf  ;;  %vm5977_vm14 = vcmp.eq.f32.partialorder %v5851_v40, 0.0 }
 0x9f9   :  { %6475 = vst.msk [vmem:[%s14320_s9 + $0x38] sm:$0xff] %vm176_vm0, %v6431_v57  ;;  %8270 = vrcp.f32 %v6200_v1  ;;  %v5978_v27 = vand.u32 2147483648, %v5851_v40  ;;  %vm5968_vm15 = vcmp.eq.f32.partialorder %v5850_v43, inf  ;;  %v5971_v56 = vand.u32 2147483648, %v5850_v43 }
 0x9fa   :  { %6474 = vst.msk [vmem:[%s14320_s9 + $0x30] sm:$0xff] %vm176_vm0, %v6430_v38  ;;  %vm5970_vm1 = vcmp.eq.f32.partialorder %v5850_v43, 0.0 }
 0x9fb   :  { %v8261_v23 = vpop.eup %8260  ;;  %v5753_v32 = vpop.xlane.xlu1 %5752 }
 0x9fc   :  { %v8263_v14 = vpop.eup %8262  ;;  %v6382_v16 = vmul.f32 %v8261_v23, %v6338_v55  ;;  %v5853_v10 = vmul.f32 0.032258064, %v5753_v32  ;;  %v5750_v7 = vpop.xlane.xlu0 %5749  ;;  %v6342_v55 = vmul.f32 %v13543_v29, %v13318_v62  ;;  %v6341_v23 = vmul.f32 %v13543_v29, %v13322_v47 }
 0x9fd   :  { %v6381_v36 = vmul.f32 %v8263_v14, %v6337_v28  ;;  %v13697_v15 = vmul.f32 0.032258064, %v5750_v7  ;;  %v13735_v28 = vmul.f32 %v13543_v29, %v13332_v54 }
 0x9fe   :  { %v6433_v45 = vadd.f32 %v13617_v41, %v6382_v16  ;;  %8272 = vrsqrt.f32 %v5853_v10  ;;  %vm5989_vm2 = vcmp.eq.f32.partialorder %v5853_v10, inf  ;;  %v5992_v14 = vand.u32 2147483648, %v5853_v10 }
 0x9ff   :  { %v6432_v37 = vadd.f32 %v13617_v41, %v6381_v36  ;;  %8274 = vrsqrt.f32 %v13697_v15  ;;  %v8265_v31 = vpop.eup %8264  ;;  %vm5991_vm3 = vcmp.eq.f32.partialorder %v5853_v10, 0.0  ;;  %vm5982_vm4 = vcmp.eq.f32.partialorder %v13697_v15, inf }
 0xa00   :  { %6477 = vst.msk [vmem:[%s14320_s9 + $0x48] sm:$0xff] %vm176_vm0, %v6433_v45  ;;  %v8267_v30 = vpop.eup %8266  ;;  %v6384_v59 = vmul.f32 %v8265_v31, %v6340_v4  ;;  %v5985_v7 = vand.u32 2147483648, %v13697_v15  ;;  %vm5984_vm5 = vcmp.eq.f32.partialorder %v13697_v15, 0.0 }
 0xa01   :  { %6476 = vst.msk [vmem:[%s14320_s9 + $0x40] sm:$0xff] %vm176_vm0, %v6432_v37  ;;  %v8269_v22 = vpop.eup %8268  ;;  %v5974_v48 = vmul.f32 %v8267_v30, %v5851_v40  ;;  %v13747_v37 = vmul.f32 %v13543_v29, %v13336_v26  ;;  %v13766_v26 = vmul.f32 %v13543_v29, %v13364_v60  ;;  %v13786_v60 = vmul.f32 %v13543_v29, %v13400_v8 }
 0xa02   :  { %v6435_v6 = vadd.f32 %v13617_v41, %v6384_v59  ;;  %v5967_v53 = vmul.f32 %v8269_v22, %v5850_v43  ;;  %v13753_v59 = vmul.f32 %v13543_v29, %v13346_v50  ;;  %v13757_v22 = vmul.f32 %v13543_v29, %v13350_v35 }
 0xa03   :  { %v8271_v51 = vpop.eup %8270  ;;  %v5759_v39 = vpop.xlane.xlu1 %5758  ;;  %v5976_v17 = vsel %vm5975_vm13, %v5851_v40, %v5974_v48  ;;  %v13770_v48 = vmul.f32 %v13543_v29, %v13374_v20  ;;  %v13774_v35 = vmul.f32 %v13543_v29, %v13378_v5  ;;  %v13790_v20 = vmul.f32 %v13543_v29, %v13405_v33 }
 0xa04   :  { %v6383_v18 = vmul.f32 %v8271_v51, %v6339_v46  ;;  %v13715_v63 = vmul.f32 0.032258064, %v5759_v39  ;;  %v5756_v12 = vpop.xlane.xlu0 %5755  ;;  %6479 = vst.msk [vmem:[%s14320_s9 + $0x58] sm:$0xff] %vm176_vm0, %v6435_v6  ;;  %v5979_v42 = vsel %vm5977_vm14, %v5978_v27, %v5976_v17  ;;  %v5969_v19 = vsel %vm5968_vm15, %v5850_v43, %v5967_v53 }
 0xa05   :  { %v13721_v24 = vmul.f32 0.032258064, %v5756_v12  ;;  %v6203_v57 = vadd.f32 1e-06, %v5979_v42  ;;  %v5972_v1 = vsel %vm5970_vm1, %v5971_v56, %v5969_v19  ;;  %v13762_v46 = vmul.f32 %v13543_v29, %v13360_v25 }
 0xa06   :  { %v6434_v49 = vadd.f32 %v13617_v41, %v6383_v18  ;;  %8276 = vrsqrt.f32 %v13715_v63  ;;  %v6202_v40 = vadd.f32 1e-06, %v5972_v1  ;;  %v13778_v51 = vmul.f32 %v13543_v29, %v13386_v3 }
 0xa07   :  { %8278 = vrcp.f32 %v6203_v57  ;;  %v13782_v25 = vmul.f32 %v13543_v29, %v13391_v34  ;;  %v13796_v3 = vmul.f32 %v13543_v29, %v13414_v52  ;;  %v13800_v34 = vmul.f32 %v13543_v29, %v13419_v2 }
 0xa08   :  { %v8273_v38 = vpop.eup %8272  ;;  %6478 = vst.msk [vmem:[%s14320_s9 + $0x50] sm:$0xff] %vm176_vm0, %v6434_v49  ;;  %8280 = vrcp.f32 %v6202_v40  ;;  %vm6003_vm6 = vcmp.eq.f32.partialorder %v13715_v63, inf  ;;  %v6006_v8 = vand.u32 2147483648, %v13715_v63  ;;  %v13806_v33 = vmul.f32 %v13543_v29, %v13428_v9 }
 0xa09   :  { %v8275_v43 = vpop.eup %8274  ;;  %v5988_v32 = vmul.f32 %v8273_v38, %v5853_v10  ;;  %8282 = vrsqrt.f32 %v13721_v24  ;;  %vm6005_vm7 = vcmp.eq.f32.partialorder %v13715_v63, 0.0  ;;  %v13812_v2 = vmul.f32 %v13543_v29, %v13433_v44 }
 0xa0a   :  { %v5981_v62 = vmul.f32 %v8275_v43, %v13697_v15  ;;  %vm5996_vm8 = vcmp.eq.f32.partialorder %v13721_v24, inf  ;;  %v5999_v1 = vand.u32 2147483648, %v13721_v24  ;;  %v13826_v44 = vmul.f32 %v13543_v29, %v13442_v13 }
 0xa0b   :  { %v5990_v16 = vsel %vm5989_vm2, %v5853_v10, %v5988_v32  ;;  %v5765_v36 = vpop.xlane.xlu1 %5764  ;;  %vm5998_vm9 = vcmp.eq.f32.partialorder %v13721_v24, 0.0  ;;  %v13836_v43 = vmul.f32 %v13543_v29, %v13447_v11 }
 0xa0c   :  { %v5993_v47 = vsel %vm5991_vm3, %v5992_v14, %v5990_v16  ;;  %v5983_v45 = vsel %vm5982_vm4, %v13697_v15, %v5981_v62  ;;  %v13743_v54 = vmul.f32 0.032258064, %v5765_v36  ;;  %v5762_v4 = vpop.xlane.xlu0 %5761 }
 0xa0d   :  { %v6205_v31 = vadd.f32 1e-06, %v5993_v47  ;;  %v5986_v30 = vsel %vm5984_vm5, %v5985_v7, %v5983_v45  ;;  %v13749_v10 = vmul.f32 0.032258064, %v5762_v4 }
 0xa0e   :  { %v6204_v15 = vadd.f32 1e-06, %v5986_v30  ;;  %8284 = vrsqrt.f32 %v13743_v54  ;;  %vm6017_vm10 = vcmp.eq.f32.partialorder %v13743_v54, inf  ;;  %vm6019_vm11 = vcmp.eq.f32.partialorder %v13743_v54, 0.0 }
 0xa0f   :  { %8286 = vrcp.f32 %v6205_v31  ;;  %v6020_v7 = vand.u32 2147483648, %v13743_v54  ;;  %vm6010_vm12 = vcmp.eq.f32.partialorder %v13749_v10, inf  ;;  %vm6012_vm13 = vcmp.eq.f32.partialorder %v13749_v10, 0.0 }
 0xa10   :  { %v8277_v50 = vpop.eup %8276  ;;  %8288 = vrcp.f32 %v6204_v15 }
 0xa11   :  { %v6002_v5 = vmul.f32 %v8277_v50, %v13715_v63  ;;  %8290 = vrsqrt.f32 %v13749_v10  ;;  %v8279_v6 = vpop.eup %8278 }
 0xa12   :  { %v8281_v27 = vpop.eup %8280  ;;  %v6386_v53 = vmul.f32 %v8279_v6, %v6342_v55 }
 0xa13   :  { %v6004_v39 = vsel %vm6003_vm6, %v13715_v63, %v6002_v5  ;;  %v5771_v52 = vpop.xlane.xlu1 %5770  ;;  %v8283_v18 = vpop.eup %8282  ;;  %v6385_v17 = vmul.f32 %v8281_v27, %v6341_v23 }
 0xa14   :  { %v6007_v56 = vsel %vm6005_vm7, %v6006_v8, %v6004_v39  ;;  %v13814_v12 = vmul.f32 0.032258064, %v5771_v52  ;;  %v5768_v42 = vpop.xlane.xlu0 %5767  ;;  %v6437_v19 = vadd.f32 %v13617_v41, %v6386_v53  ;;  %v5995_v49 = vmul.f32 %v8283_v18, %v13721_v24 }
 0xa15   :  { %v6207_v9 = vadd.f32 1e-06, %v6007_v56  ;;  %v13818_v57 = vmul.f32 0.032258064, %v5768_v42  ;;  %v6436_v63 = vadd.f32 %v13617_v41, %v6385_v17  ;;  %v13885_v18 = vmul.f32 %v13543_v29, %v13456_v58 }
 0xa16   :  { %8292 = vrsqrt.f32 %v13814_v12  ;;  %6481 = vst.msk [vmem:[%s14320_s9 + $0x68] sm:$0xff] %vm176_vm0, %v6437_v19  ;;  %v5997_v40 = vsel %vm5996_vm8, %v13721_v24, %v5995_v49  ;;  %vm6031_vm14 = vcmp.eq.f32.partialorder %v13814_v12, inf  ;;  %vm6033_vm15 = vcmp.eq.f32.partialorder %v13814_v12, 0.0 }
 0xa17   :  { %8294 = vrcp.f32 %v6207_v9  ;;  %v5777_v38 = vpop.xlane.xlu1 %5776  ;;  %6480 = vst.msk [vmem:[%s14320_s9 + $0x60] sm:$0xff] %vm176_vm0, %v6436_v63  ;;  %v6000_v13 = vsel %vm5998_vm9, %v5999_v1, %v5997_v40  ;;  %v6034_v8 = vand.u32 2147483648, %v13814_v12  ;;  %vm6024_vm1 = vcmp.eq.f32.partialorder %v13818_v57, inf }
 0xa18   :  { %v8285_v55 = vpop.eup %8284  ;;  %8296 = vrsqrt.f32 %v13818_v57  ;;  %v5774_v23 = vpop.xlane.xlu0 %5773  ;;  %v6206_v14 = vadd.f32 1e-06, %v6000_v13  ;;  %v13846_v62 = vmul.f32 0.032258064, %v5777_v38  ;;  %vm6026_vm2 = vcmp.eq.f32.partialorder %v13818_v57, 0.0 }
 0xa19   :  { %v8287_v32 = vpop.eup %8286  ;;  %v6016_v24 = vmul.f32 %v8285_v55, %v13743_v54  ;;  %v13851_v36 = vmul.f32 0.032258064, %v5774_v23 }
 0xa1a   :  { %v8289_v11 = vpop.eup %8288  ;;  %v6388_v16 = vmul.f32 %v8287_v32, %v13735_v28  ;;  %8298 = vrcp.f32 %v6206_v14  ;;  %vm6045_vm3 = vcmp.eq.f32.partialorder %v13846_v62, inf  ;;  %vm6047_vm4 = vcmp.eq.f32.partialorder %v13846_v62, 0.0 }
 0xa1b   :  { %v8291_v47 = vpop.eup %8290  ;;  %v6387_v45 = vmul.f32 %v8289_v11, %v13747_v37  ;;  %v6018_v4 = vsel %vm6017_vm10, %v13743_v54, %v6016_v24  ;;  %v5783_v31 = vpop.xlane.xlu1 %5782  ;;  %8300 = vrsqrt.f32 %v13846_v62  ;;  %v6013_v37 = vand.u32 2147483648, %v13749_v10 }
 0xa1c   :  { %v6439_v30 = vadd.f32 %v13617_v41, %v6388_v16  ;;  %v6021_v28 = vsel %vm6019_vm11, %v6020_v7, %v6018_v4  ;;  %v6009_v15 = vmul.f32 %v8291_v47, %v13749_v10  ;;  %v5780_v50 = vpop.xlane.xlu0 %5779  ;;  %8302 = vrsqrt.f32 %v13851_v36 }
 0xa1d   :  { %v6438_v5 = vadd.f32 %v13617_v41, %v6387_v45  ;;  %v6209_v6 = vadd.f32 1e-06, %v6021_v28  ;;  %v13881_v53 = vmul.f32 0.032258064, %v5783_v31  ;;  %v13887_v56 = vmul.f32 0.032258064, %v5780_v50 }
 0xa1e   :  { %6483 = vst.msk [vmem:[%s14320_s9 + $0x78] sm:$0xff] %vm176_vm0, %v6439_v30  ;;  %v6011_v54 = vsel %vm6010_vm12, %v13749_v10, %v6009_v15  ;;  %v6027_v10 = vand.u32 2147483648, %v13818_v57  ;;  %v6048_v38 = vand.u32 2147483648, %v13846_v62  ;;  %vm6038_vm5 = vcmp.eq.f32.partialorder %v13851_v36, inf }
 0xa1f   :  { %6482 = vst.msk [vmem:[%s14320_s9 + $0x70] sm:$0xff] %vm176_vm0, %v6438_v5  ;;  %8304 = vrcp.f32 %v6209_v6  ;;  %v6014_v27 = vsel %vm6012_vm13, %v6013_v37, %v6011_v54  ;;  %v5789_v39 = vpop.xlane.xlu1 %5788  ;;  %vm6040_vm6 = vcmp.eq.f32.partialorder %v13851_v36, 0.0  ;;  %v6041_v24 = vand.u32 2147483648, %v13851_v36 }
 0xa20   :  { %v8293_v52 = vpop.eup %8292  ;;  %v6208_v17 = vadd.f32 1e-06, %v6014_v27  ;;  %v13889_v42 = vmul.f32 0.032258064, %v5789_v39  ;;  %8306 = vrsqrt.f32 %v13881_v53  ;;  %v5786_v49 = vpop.xlane.xlu0 %5785  ;;  %vm6059_vm7 = vcmp.eq.f32.partialorder %v13881_v53, inf }
 0xa21   :  { %v8295_v19 = vpop.eup %8294  ;;  %v6030_v9 = vmul.f32 %v8293_v52, %v13814_v12  ;;  %v13922_v7 = vmul.f32 0.032258064, %v5786_v49  ;;  %vm6061_vm8 = vcmp.eq.f32.partialorder %v13881_v53, 0.0  ;;  %vm6052_vm9 = vcmp.eq.f32.partialorder %v13887_v56, inf }
 0xa22   :  { %v8297_v63 = vpop.eup %8296  ;;  %v6390_v1 = vmul.f32 %v8295_v19, %v13753_v59  ;;  %8308 = vrcp.f32 %v6208_v17  ;;  %vm6054_vm10 = vcmp.eq.f32.partialorder %v13887_v56, 0.0  ;;  %v6055_v39 = vand.u32 2147483648, %v13887_v56 }
 0xa23   :  { %v6032_v58 = vsel %vm6031_vm14, %v13814_v12, %v6030_v9  ;;  %v6023_v40 = vmul.f32 %v8297_v63, %v13818_v57  ;;  %8310 = vrsqrt.f32 %v13887_v56  ;;  %v5795_v13 = vpop.xlane.xlu1 %5794  ;;  %vm6073_vm11 = vcmp.eq.f32.partialorder %v13889_v42, inf }
 0xa24   :  { %v6441_v55 = vadd.f32 %v13617_v41, %v6390_v1  ;;  %v6035_v59 = vsel %vm6033_vm15, %v6034_v8, %v6032_v58  ;;  %8312 = vrsqrt.f32 %v13889_v42  ;;  %v8299_v23 = vpop.eup %8298  ;;  %v13925_v4 = vmul.f32 0.032258064, %v5795_v13  ;;  %v5792_v31 = vpop.xlane.xlu0 %5791 }
 0xa25   :  { %v6211_v32 = vadd.f32 1e-06, %v6035_v59  ;;  %v6025_v14 = vsel %vm6024_vm1, %v13818_v57, %v6023_v40  ;;  %v8301_v11 = vpop.eup %8300  ;;  %v6389_v12 = vmul.f32 %v8299_v23, %v13757_v22  ;;  %v6062_v22 = vand.u32 2147483648, %v13881_v53 }
 0xa26   :  { %6485 = vst.msk [vmem:[%s14320_s9 + $0x88] sm:$0xff] %vm176_vm0, %v6441_v55  ;;  %v6028_v16 = vsel %vm6026_vm2, %v6027_v10, %v6025_v14  ;;  %v6044_v45 = vmul.f32 %v8301_v11, %v13846_v62  ;;  %v8303_v30 = vpop.eup %8302  ;;  %v13954_v19 = vmul.f32 0.032258064, %v5792_v31  ;;  %vm6075_vm12 = vcmp.eq.f32.partialorder %v13889_v42, 0.0 }
 0xa27   :  { %8314 = vrcp.f32 %v6211_v32  ;;  %v6210_v47 = vadd.f32 1e-06, %v6028_v16  ;;  %v6440_v28 = vadd.f32 %v13617_v41, %v6389_v12  ;;  %v6037_v50 = vmul.f32 %v8303_v30, %v13851_v36  ;;  %v5801_v37 = vpop.xlane.xlu1 %5800 }
 0xa28   :  { %8316 = vrsqrt.f32 %v13922_v7  ;;  %v6046_v15 = vsel %vm6045_vm3, %v13846_v62, %v6044_v45  ;;  %v13957_v63 = vmul.f32 0.032258064, %v5801_v37  ;;  %v5798_v1 = vpop.xlane.xlu0 %5797  ;;  %v6076_v23 = vand.u32 2147483648, %v13889_v42 }
 0xa29   :  { %v8305_v57 = vpop.eup %8304  ;;  %8318 = vrcp.f32 %v6210_v47  ;;  %6484 = vst.msk [vmem:[%s14320_s9 + $0x80] sm:$0xff] %vm176_vm0, %v6440_v28  ;;  %v6049_v6 = vsel %vm6047_vm4, %v6048_v38, %v6046_v15  ;;  %v6039_v27 = vsel %vm6038_vm5, %v13851_v36, %v6037_v50  ;;  %vm6066_vm13 = vcmp.eq.f32.partialorder %v13922_v7, inf }
 0xa2a   :  { %v6392_v5 = vmul.f32 %v8305_v57, %v13762_v46  ;;  %8320 = vrsqrt.f32 %v13925_v4  ;;  %v8307_v54 = vpop.eup %8306  ;;  %v6213_v8 = vadd.f32 1e-06, %v6049_v6  ;;  %v6042_v62 = vsel %vm6040_vm6, %v6041_v24, %v6039_v27 }
 0xa2b   :  { %v6058_v17 = vmul.f32 %v8307_v54, %v13881_v53  ;;  %v6212_v49 = vadd.f32 1e-06, %v6042_v62  ;;  %vm6068_vm14 = vcmp.eq.f32.partialorder %v13922_v7, 0.0  ;;  %v5807_v24 = vpop.xlane.xlu1 %5806  ;;  %v6069_v30 = vand.u32 2147483648, %v13922_v7 }
 0xa2c   :  { %v8309_v52 = vpop.eup %8308  ;;  %v6443_v46 = vadd.f32 %v13617_v41, %v6392_v5  ;;  %8322 = vrcp.f32 %v6213_v8  ;;  %vm6087_vm15 = vcmp.eq.f32.partialorder %v13925_v4, inf  ;;  %v5804_v28 = vpop.xlane.xlu0 %5803  ;;  %v14003_v5 = vmul.f32 0.032258064, %v5807_v24 }
 0xa2d   :  { %v8311_v9 = vpop.eup %8310  ;;  %v6391_v10 = vmul.f32 %v8309_v52, %v13766_v26  ;;  %v6060_v36 = vsel %vm6059_vm7, %v13881_v53, %v6058_v17  ;;  %8324 = vrsqrt.f32 %v13954_v19  ;;  %v6090_v37 = vand.u32 2147483648, %v13925_v4 }
 0xa2e   :  { %v8313_v58 = vpop.eup %8312  ;;  %6487 = vst.msk [vmem:[%s14320_s9 + $0x98] sm:$0xff] %vm176_vm0, %v6443_v46  ;;  %v6051_v40 = vmul.f32 %v8311_v9, %v13887_v56  ;;  %8326 = vrcp.f32 %v6212_v49  ;;  %v6063_v38 = vsel %vm6061_vm8, %v6062_v22, %v6060_v36  ;;  %v14016_v8 = vmul.f32 %v13543_v29, %v13461_v21 }
 0xa2f   :  { %v6442_v26 = vadd.f32 %v13617_v41, %v6391_v10  ;;  %v6072_v55 = vmul.f32 %v8313_v58, %v13889_v42  ;;  %v6215_v59 = vadd.f32 1e-06, %v6063_v38  ;;  %8328 = vrsqrt.f32 %v13957_v63  ;;  %v5813_v52 = vpop.xlane.xlu1 %5812 }
 0xa30   :  { %v6053_v13 = vsel %vm6052_vm9, %v13887_v56, %v6051_v40  ;;  %vm6089_vm1 = vcmp.eq.f32.partialorder %v13925_v4, 0.0  ;;  %vm6080_vm2 = vcmp.eq.f32.partialorder %v13954_v19, inf  ;;  %vm6082_vm3 = vcmp.eq.f32.partialorder %v13954_v19, 0.0 }
 0xa31   :  { %v8315_v32 = vpop.eup %8314  ;;  %6486 = vst.msk [vmem:[%s14320_s9 + $0x90] sm:$0xff] %vm176_vm0, %v6442_v26  ;;  %v6056_v53 = vsel %vm6054_vm10, %v6055_v39, %v6053_v13  ;;  %v6074_v14 = vsel %vm6073_vm11, %v13889_v42, %v6072_v55  ;;  %8330 = vrcp.f32 %v6215_v59  ;;  %vm6101_vm4 = vcmp.eq.f32.partialorder %v13957_v63, inf }
 0xa32   :  { %v8317_v11 = vpop.eup %8316  ;;  %v6394_v12 = vmul.f32 %v8315_v32, %v13770_v48  ;;  %v6214_v16 = vadd.f32 1e-06, %v6056_v53  ;;  %v6077_v47 = vsel %vm6075_vm12, %v6076_v23, %v6074_v14  ;;  %v13997_v48 = vmul.f32 0.032258064, %v5798_v1 }
 0xa33   :  { %v8319_v45 = vpop.eup %8318  ;;  %v6217_v56 = vadd.f32 1e-06, %v6077_v47  ;;  %v6065_v31 = vmul.f32 %v8317_v11, %v13922_v7  ;;  %v6083_v1 = vand.u32 2147483648, %v13954_v19  ;;  %v14038_v40 = vmul.f32 0.032258064, %v5813_v52  ;;  %v5819_v32 = vpop.xlane.xlu1 %5818 }
 0xa34   :  { %v8321_v22 = vpop.eup %8320  ;;  %v6445_v57 = vadd.f32 %v13617_v41, %v6394_v12  ;;  %v6393_v15 = vmul.f32 %v8319_v45, %v13774_v35  ;;  %8332 = vrcp.f32 %v6214_v16  ;;  %v6104_v13 = vand.u32 2147483648, %v13957_v63  ;;  %v14069_v47 = vld [vmem:[%s14318_s7] ss:$0 sm:$0xff] }
 0xa35   :  { %8334 = vrcp.f32 %v6217_v56  ;;  %v6067_v42 = vsel %vm6066_vm13, %v13922_v7, %v6065_v31  ;;  %v6086_v50 = vmul.f32 %v8321_v22, %v13925_v4  ;;  %v14053_v14 = vmul.f32 %v13543_v29, %v13470_v0 }
 0xa36   :  { %6489 = vst.msk [vmem:[%s14320_s9 + $0xa8] sm:$0xff] %vm176_vm0, %v6445_v57  ;;  %v6444_v6 = vadd.f32 %v13617_v41, %v6393_v15  ;;  %v6070_v35 = vsel %vm6068_vm14, %v6069_v30, %v6067_v42  ;;  %8336 = vrsqrt.f32 %v13997_v48  ;;  %v8323_v54 = vpop.eup %8322  ;;  %vm6103_vm5 = vcmp.eq.f32.partialorder %v13957_v63, 0.0 }
 0xa37   :  { %v6216_v27 = vadd.f32 1e-06, %v6070_v35  ;;  %v6088_v39 = vsel %vm6087_vm15, %v13925_v4, %v6086_v50  ;;  %v8325_v46 = vpop.eup %8324  ;;  %v6396_v7 = vmul.f32 %v8323_v54, %v13778_v51  ;;  %8338 = vrsqrt.f32 %v14003_v5  ;;  %v5810_v4 = vpop.xlane.xlu0 %5809 }
 0xa38   :  { %6488 = vst.msk [vmem:[%s14320_s9 + $0xa0] sm:$0xff] %vm176_vm0, %v6444_v6  ;;  %v6091_v62 = vsel %vm6089_vm1, %v6090_v37, %v6088_v39  ;;  %v8327_v21 = vpop.eup %8326  ;;  %v6079_v9 = vmul.f32 %v8325_v46, %v13954_v19  ;;  %v14034_v51 = vmul.f32 0.032258064, %v5804_v28  ;;  %v14049_v23 = vmul.f32 0.032258064, %v5810_v4  ;;  %v5825_v42 = vpop.xlane.xlu1 %5824 }
 0xa39   :  { %8340 = vrcp.f32 %v6216_v27  ;;  %v6219_v17 = vadd.f32 1e-06, %v6091_v62  ;;  %v6447_v10 = vadd.f32 %v13617_v41, %v6396_v7  ;;  %v6395_v49 = vmul.f32 %v8327_v21, %v13782_v25  ;;  %v8329_v58 = vpop.eup %8328 }
 0xa3a   :  { %v6081_v36 = vsel %vm6080_vm2, %v13954_v19, %v6079_v9  ;;  %v6100_v55 = vmul.f32 %v8329_v58, %v13957_v63  ;;  %v14073_v45 = vmul.f32 %v14069_v47, %v13475_v61  ;;  %vm6094_vm6 = vcmp.eq.f32.partialorder %v13997_v48, inf }
 0xa3b   :  { %8342 = vrcp.f32 %v6219_v17  ;;  %v8331_v26 = vpop.eup %8330  ;;  %6491 = vst.msk [vmem:[%s14320_s9 + $0xb8] sm:$0xff] %vm176_vm0, %v6447_v10  ;;  %v6446_v25 = vadd.f32 %v13617_v41, %v6395_v49  ;;  %v6084_v38 = vsel %vm6082_vm3, %v6083_v1, %v6081_v36  ;;  %v5816_v29 = vpop.xlane.xlu0 %5815  ;;  %vm6096_vm7 = vcmp.eq.f32.partialorder %v13997_v48, 0.0 }
 0xa3c   :  { %8344 = vrsqrt.f32 %v14034_v51  ;;  %v6398_v59 = vmul.f32 %v8331_v26, %v13786_v60  ;;  %v6218_v19 = vadd.f32 1e-06, %v6084_v38  ;;  %v6102_v60 = vsel %vm6101_vm4, %v13957_v63, %v6100_v55 }
 0xa3d   :  { %6490 = vst.msk [vmem:[%s14320_s9 + $0xb0] sm:$0xff] %vm176_vm0, %v6446_v25  ;;  %8346 = vrsqrt.f32 %v14038_v40  ;;  %v6105_v0 = vsel %vm6103_vm5, %v6104_v13, %v6102_v60  ;;  %vm6115_vm8 = vcmp.eq.f32.partialorder %v14003_v5, inf  ;;  %vm6117_vm9 = vcmp.eq.f32.partialorder %v14003_v5, 0.0  ;;  %v5831_v25 = vpop.xlane.xlu1 %5830 }
 0xa3e   :  { %v8333_v53 = vpop.eup %8332  ;;  %v6449_v11 = vadd.f32 %v13617_v41, %v6398_v59  ;;  %8348 = vrcp.f32 %v6218_v19  ;;  %v6221_v56 = vadd.f32 1e-06, %v6105_v0  ;;  %v14095_v15 = vmul.f32 0.032258064, %v5819_v32 }
 0xa3f   :  { %v8335_v24 = vpop.eup %8334  ;;  %v6397_v12 = vmul.f32 %v8333_v53, %v13790_v20  ;;  %8350 = vrsqrt.f32 %v14049_v23  ;;  %v6118_v35 = vand.u32 2147483648, %v14003_v5  ;;  %v14105_v37 = vmul.f32 0.032258064, %v5816_v29  ;;  %v5822_v52 = vpop.xlane.xlu0 %5821 }
 0xa40   :  { %v8337_v16 = vpop.eup %8336  ;;  %v6400_v63 = vmul.f32 %v8335_v24, %v13796_v3  ;;  %6493 = vst.msk [vmem:[%s14320_s9 + $0xc8] sm:$0xff] %vm176_vm0, %v6449_v11  ;;  %8352 = vrcp.f32 %v6221_v56  ;;  %v6097_v3 = vand.u32 2147483648, %v13997_v48  ;;  %vm6108_vm10 = vcmp.eq.f32.partialorder %v14034_v51, inf }
 0xa41   :  { %v6448_v20 = vadd.f32 %v13617_v41, %v6397_v12  ;;  %v6093_v31 = vmul.f32 %v8337_v16, %v13997_v48  ;;  %v8339_v61 = vpop.eup %8338  ;;  %8354 = vrsqrt.f32 %v14095_v15  ;;  %v14114_v62 = vmul.f32 0.032258064, %v5825_v42  ;;  %v5837_v56 = vpop.xlane.xlu1 %5836 }
 0xa42   :  { %v6451_v30 = vadd.f32 %v13617_v41, %v6400_v63  ;;  %v6114_v57 = vmul.f32 %v8339_v61, %v14003_v5  ;;  %vm6110_vm11 = vcmp.eq.f32.partialorder %v14034_v51, 0.0  ;;  %vm6129_vm12 = vcmp.eq.f32.partialorder %v14038_v40, inf }
 0xa43   :  { %v8341_v28 = vpop.eup %8340  ;;  %6492 = vst.msk [vmem:[%s14320_s9 + $0xc0] sm:$0xff] %vm176_vm0, %v6448_v20  ;;  %v6095_v22 = vsel %vm6094_vm6, %v13997_v48, %v6093_v31  ;;  %v6132_v26 = vand.u32 2147483648, %v14038_v40  ;;  %vm6131_vm13 = vcmp.eq.f32.partialorder %v14038_v40, 0.0  ;;  %vm6122_vm14 = vcmp.eq.f32.partialorder %v14049_v23, inf  ;;  %v5828_v59 = vpop.xlane.xlu0 %5827 }
 0xa44   :  { %6495 = vst.msk [vmem:[%s14320_s9 + $0xd8] sm:$0xff] %vm176_vm0, %v6451_v30  ;;  %v6399_v50 = vmul.f32 %v8341_v28, %v13800_v34  ;;  %v6098_v6 = vsel %vm6096_vm7, %v6097_v3, %v6095_v22  ;;  %v6116_v39 = vsel %vm6115_vm8, %v14003_v5, %v6114_v57  ;;  %v14125_v5 = vmul.f32 0.032258064, %v5822_v52 }
 0xa45   :  { %v8343_v54 = vpop.eup %8342  ;;  %v6220_v27 = vadd.f32 1e-06, %v6098_v6  ;;  %v6119_v48 = vsel %vm6117_vm9, %v6118_v35, %v6116_v39  ;;  %v6125_v24 = vand.u32 2147483648, %v14049_v23  ;;  %vm6124_vm15 = vcmp.eq.f32.partialorder %v14049_v23, 0.0 }
 0xa46   :  { %v8345_v46 = vpop.eup %8344  ;;  %v6450_v7 = vadd.f32 %v13617_v41, %v6399_v50  ;;  %v6402_v34 = vmul.f32 %v8343_v54, %v13806_v33  ;;  %v6223_v21 = vadd.f32 1e-06, %v6119_v48  ;;  %v6111_v33 = vand.u32 2147483648, %v14034_v51 }
 0xa47   :  { %8356 = vrcp.f32 %v6220_v27  ;;  %v6107_v17 = vmul.f32 %v8345_v46, %v14034_v51  ;;  %v8347_v9 = vpop.eup %8346  ;;  %vm6143_vm1 = vcmp.eq.f32.partialorder %v14095_v15, inf  ;;  %v14154_v11 = vmul.f32 0.032258064, %v5831_v25  ;;  %v5834_v20 = vpop.xlane.xlu0 %5833 }
 0xa48   :  { %6494 = vst.msk [vmem:[%s14320_s9 + $0xd0] sm:$0xff] %vm176_vm0, %v6450_v7  ;;  %v6453_v4 = vadd.f32 %v13617_v41, %v6402_v34  ;;  %8358 = vrsqrt.f32 %v14105_v37  ;;  %v8349_v10 = vpop.eup %8348  ;;  %v6128_v1 = vmul.f32 %v8347_v9, %v14038_v40  ;;  %v14157_v29 = vmul.f32 0.032258064, %v5828_v59 }
 0xa49   :  { %8360 = vrcp.f32 %v6223_v21  ;;  %v6109_v49 = vsel %vm6108_vm10, %v14034_v51, %v6107_v17  ;;  %v6401_v58 = vmul.f32 %v8349_v10, %v13812_v2  ;;  %v8351_v38 = vpop.eup %8350  ;;  %vm6145_vm2 = vcmp.eq.f32.partialorder %v14095_v15, 0.0 }
 0xa4a   :  { %6497 = vst.msk [vmem:[%s14320_s9 + $0xe8] sm:$0xff] %vm176_vm0, %v6453_v4  ;;  %v6112_v36 = vsel %vm6110_vm11, %v6111_v33, %v6109_v49  ;;  %8362 = vrsqrt.f32 %v14114_v62  ;;  %v6130_v51 = vsel %vm6129_vm12, %v14038_v40, %v6128_v1  ;;  %v8353_v19 = vpop.eup %8352  ;;  %v6121_v2 = vmul.f32 %v8351_v38, %v14049_v23 }
 0xa4b   :  { %v6222_v55 = vadd.f32 1e-06, %v6112_v36  ;;  %v6452_v13 = vadd.f32 %v13617_v41, %v6401_v58  ;;  %v6133_v32 = vsel %vm6131_vm13, %v6132_v26, %v6130_v51  ;;  %8364 = vrsqrt.f32 %v14125_v5  ;;  %v8355_v12 = vpop.eup %8354 }
 0xa4c   :  { %v6404_v53 = vmul.f32 %v8353_v19, %v13826_v44  ;;  %v6225_v60 = vadd.f32 1e-06, %v6133_v32  ;;  %v6123_v40 = vsel %vm6122_vm14, %v14049_v23, %v6121_v2  ;;  %v6142_v63 = vmul.f32 %v8355_v12, %v14095_v15 }
 0xa4d   :  { %8366 = vrcp.f32 %v6222_v55  ;;  %6496 = vst.msk [vmem:[%s14320_s9 + $0xe0] sm:$0xff] %vm176_vm0, %v6452_v13  ;;  %v6126_v0 = vsel %vm6124_vm15, %v6125_v24, %v6123_v40  ;;  %vm6136_vm3 = vcmp.eq.f32.partialorder %v14105_v37, inf  ;;  %vm6138_vm4 = vcmp.eq.f32.partialorder %v14105_v37, 0.0 }
 0xa4e   :  { %v6455_v44 = vadd.f32 %v13617_v41, %v6404_v53  ;;  %8368 = vrcp.f32 %v6225_v60  ;;  %v6224_v16 = vadd.f32 1e-06, %v6126_v0  ;;  %v6146_v41 = vand.u32 2147483648, %v14095_v15  ;;  %v15391_v53 = vld [vmem:[#allocation83_spill] sm:$0xff] }
 0xa4f   :  { %8370 = vrsqrt.f32 %v14154_v11  ;;  %v6144_v30 = vsel %vm6143_vm1, %v14095_v15, %v6142_v63  ;;  %v6139_v3 = vand.u32 2147483648, %v14105_v37  ;;  %vm6157_vm5 = vcmp.eq.f32.partialorder %v14114_v62, inf  ;;  %v15392_v63 = vld [vmem:[#allocation84_spill] sm:$0xff] }
 0xa50   :  { %6499 = vst.msk [vmem:[%s14320_s9 + $0xf8] sm:$0xff] %vm176_vm0, %v6455_v44  ;;  %8372 = vrsqrt.f32 %v14157_v29  ;;  %v6147_v22 = vsel %vm6145_vm2, %v6146_v41, %v6144_v30  ;;  %v14179_v42 = vmul.f32 0.032258064, %v5837_v56  ;;  %v14188_v27 = vmul.f32 0.032258064, %v5834_v20  ;;  %v15393_v20 = vld [vmem:[#allocation90_spill] sm:$0xff] }
 0xa51   :  { %v8357_v23 = vpop.eup %8356  ;;  %8374 = vrcp.f32 %v6224_v16  ;;  %v6227_v54 = vadd.f32 1e-06, %v6147_v22  ;;  %vm6159_vm6 = vcmp.eq.f32.partialorder %v14114_v62, 0.0  ;;  %v6160_v7 = vand.u32 2147483648, %v14114_v62 }
 0xa52   :  { %v8359_v31 = vpop.eup %8358  ;;  %v6403_v61 = vmul.f32 %v8357_v23, %v13836_v43  ;;  %v14184_v43 = vld [vmem:[%s14319_s8] ss:$0 sm:$0xff]  ;;  %8376 = vrsqrt.f32 %v14179_v42  ;;  %vm6150_vm7 = vcmp.eq.f32.partialorder %v14125_v5, inf  ;;  %v6153_v4 = vand.u32 2147483648, %v14125_v5 }
 0xa53   :  { %v8361_v28 = vpop.eup %8360  ;;  %v6135_v57 = vmul.f32 %v8359_v31, %v14105_v37  ;;  %8378 = vrcp.f32 %v6227_v54  ;;  %vm6152_vm8 = vcmp.eq.f32.partialorder %v14125_v5, 0.0  ;;  %vm6171_vm9 = vcmp.eq.f32.partialorder %v14154_v11, inf }
 0xa54   :  { %v8363_v50 = vpop.eup %8362  ;;  %v6454_v6 = vadd.f32 %v14184_v43, %v6403_v61  ;;  %v6406_v35 = vmul.f32 %v8361_v28, %v13885_v18  ;;  %8380 = vrsqrt.f32 %v14188_v27  ;;  %vm6173_vm10 = vcmp.eq.f32.partialorder %v14154_v11, 0.0 }
 0xa55   :  { %v6137_v15 = vsel %vm6136_vm3, %v14105_v37, %v6135_v57  ;;  %v6156_v39 = vmul.f32 %v8363_v50, %v14114_v62  ;;  %v8365_v52 = vpop.eup %8364  ;;  %vm6164_vm11 = vcmp.eq.f32.partialorder %v14157_v29, inf  ;;  %v6167_v19 = vand.u32 2147483648, %v14157_v29 }
 0xa56   :  { %6498 = vst.msk [vmem:[%s14320_s9 + $0xf0] sm:$0xff] %vm176_vm0, %v6454_v6  ;;  %v6457_v18 = vadd.f32 %v14184_v43, %v6406_v35  ;;  %v6140_v46 = vsel %vm6138_vm4, %v6139_v3, %v6137_v15  ;;  %v6149_v17 = vmul.f32 %v8365_v52, %v14125_v5  ;;  %vm6166_vm12 = vcmp.eq.f32.partialorder %v14157_v29, 0.0  ;;  %v15394_v6 = vld [vmem:[#allocation86_spill] sm:$0xff] }
 0xa57   :  { %v8367_v34 = vpop.eup %8366  ;;  %v6226_v48 = vadd.f32 1e-06, %v6140_v46  ;;  %v6158_v21 = vsel %vm6157_vm5, %v14114_v62, %v6156_v39  ;;  %v6366_v60 = vmul.f32 %v14069_v47, %v15391_v53  ;;  %vm6185_vm13 = vcmp.eq.f32.partialorder %v14179_v42, inf }
 0xa58   :  { %6501 = vst.msk [vmem:[%s14320_s9 + $0x108] sm:$0xff] %vm176_vm0, %v6457_v18  ;;  %v6405_v37 = vmul.f32 %v8367_v34, %v14016_v8  ;;  %v6161_v9 = vsel %vm6159_vm6, %v6160_v7, %v6158_v21  ;;  %v8369_v33 = vpop.eup %8368  ;;  %v6151_v62 = vsel %vm6150_vm7, %v14125_v5, %v6149_v17  ;;  %v6365_v56 = vmul.f32 %v14069_v47, %v15392_v63  ;;  %v15395_v34 = vld [vmem:[#allocation89_spill] sm:$0xff] }
 0xa59   :  { %8382 = vrcp.f32 %v6226_v48  ;;  %v6229_v10 = vadd.f32 1e-06, %v6161_v9  ;;  %v8371_v49 = vpop.eup %8370  ;;  %v6408_v58 = vmul.f32 %v8369_v33, %v14053_v14  ;;  %v6154_v36 = vsel %vm6152_vm8, %v6153_v4, %v6151_v62  ;;  %v15396_v17 = vld [vmem:[#allocation85_spill] sm:$0xff]  ;;  %v15397_v62 = vld [vmem:[#allocation44_spill] sm:$0xff] }
 0xa5a   :  { %v6456_v1 = vadd.f32 %v14184_v43, %v6405_v37  ;;  %v8373_v8 = vpop.eup %8372  ;;  %v6228_v26 = vadd.f32 1e-06, %v6154_v36  ;;  %v6170_v25 = vmul.f32 %v8371_v49, %v14154_v11  ;;  %v6174_v14 = vand.u32 2147483648, %v14154_v11 }
 0xa5b   :  { %8384 = vrcp.f32 %v6229_v10  ;;  %v8375_v38 = vpop.eup %8374  ;;  %v6459_v5 = vadd.f32 %v14184_v43, %v6408_v58  ;;  %v6163_v55 = vmul.f32 %v8373_v8, %v14157_v29  ;;  %vm6187_vm14 = vcmp.eq.f32.partialorder %v14179_v42, 0.0  ;;  %v15398_v8 = vld [vmem:[#allocation45_spill] sm:$0xff] }
 0xa5c   :  { %6500 = vst.msk [vmem:[%s14320_s9 + $0x100] sm:$0xff] %vm176_vm0, %v6456_v1  ;;  %v6407_v51 = vmul.f32 %v8375_v38, %v14073_v45  ;;  %8386 = vrcp.f32 %v6228_v26  ;;  %v6172_v59 = vsel %vm6171_vm9, %v14154_v11, %v6170_v25  ;;  %v8377_v2 = vpop.eup %8376  ;;  %v6368_v31 = vmul.f32 %v14069_v47, %v15393_v20 }
 0xa5d   :  { %6503 = vst.msk [vmem:[%s14320_s9 + $0x118] sm:$0xff] %vm176_vm0, %v6459_v5  ;;  %v6175_v13 = vsel %vm6173_vm10, %v6174_v14, %v6172_v59  ;;  %v6165_v32 = vsel %vm6164_vm11, %v14157_v29, %v6163_v55  ;;  %v8379_v11 = vpop.eup %8378  ;;  %v6184_v44 = vmul.f32 %v8377_v2, %v14179_v42  ;;  %v6188_v29 = vand.u32 2147483648, %v14179_v42 }
 0xa5e   :  { %v6458_v45 = vadd.f32 %v14184_v43, %v6407_v51  ;;  %v6231_v24 = vadd.f32 1e-06, %v6175_v13  ;;  %v6168_v40 = vsel %vm6166_vm12, %v6167_v19, %v6165_v32  ;;  %v6410_v0 = vmul.f32 %v8379_v11, %v6366_v60  ;;  %v8381_v16 = vpop.eup %8380 }
 0xa5f   :  { %v6230_v12 = vadd.f32 1e-06, %v6168_v40  ;;  %v6186_v23 = vsel %vm6185_vm13, %v14179_v42, %v6184_v44  ;;  %v6177_v3 = vmul.f32 %v8381_v16, %v14188_v27  ;;  %vm6178_vm15 = vcmp.eq.f32.partialorder %v14188_v27, inf }
 0xa60   :  { %6502 = vst.msk [vmem:[%s14320_s9 + $0x110] sm:$0xff] %vm176_vm0, %v6458_v45  ;;  %8388 = vrcp.f32 %v6231_v24  ;;  %v6461_v61 = vadd.f32 %v14184_v43, %v6410_v0  ;;  %v6189_v30 = vsel %vm6187_vm14, %v6188_v29, %v6186_v23  ;;  %v6181_v57 = vand.u32 2147483648, %v14188_v27 }
 0xa61   :  { %8390 = vrcp.f32 %v6230_v12  ;;  %v6233_v22 = vadd.f32 1e-06, %v6189_v30  ;;  %v6367_v35 = vmul.f32 %v14069_v47, %v15394_v6  ;;  %v6179_v42 = vsel %vm6178_vm15, %v14188_v27, %v6177_v3 }
 0xa62   :  { %6505 = vst.msk [vmem:[%s14320_s9 + $0x128] sm:$0xff] %vm176_vm0, %v6461_v61  ;;  %vm6180_vm1 = vcmp.eq.f32.partialorder %v14188_v27, 0.0  ;;  %v6370_v48 = vmul.f32 %v14069_v47, %v15395_v34  ;;  %v6369_v37 = vmul.f32 %v14069_v47, %v15396_v17  ;;  %v6372_v49 = vmul.f32 %v14069_v47, %v15397_v62 }
 0xa63   :  { %v8383_v41 = vpop.eup %8382  ;;  %8392 = vrcp.f32 %v6233_v22  ;;  %v6182_v39 = vsel %vm6180_vm1, %v6181_v57, %v6179_v42  ;;  %v6371_v26 = vmul.f32 %v14069_v47, %v15398_v8 }
 0xa64   :  { %v6409_v28 = vmul.f32 %v8383_v41, %v6365_v56  ;;  %v6232_v18 = vadd.f32 1e-06, %v6182_v39 }
 0xa65   :  { %v8385_v50 = vpop.eup %8384 }
 0xa66   :  { %v6460_v54 = vadd.f32 %v14184_v43, %v6409_v28  ;;  %v6412_v15 = vmul.f32 %v8385_v50, %v6368_v31  ;;  %v8387_v52 = vpop.eup %8386  ;;  %8394 = vrcp.f32 %v6232_v18 }
 0xa67   :  { %v6411_v7 = vmul.f32 %v8387_v52, %v6367_v35 }
 0xa68   :  { %6504 = vst.msk [vmem:[%s14320_s9 + $0x120] sm:$0xff] %vm176_vm0, %v6460_v54  ;;  %v6463_v46 = vadd.f32 %v14184_v43, %v6412_v15 }
 0xa69   :  { %v6462_v27 = vadd.f32 %v14184_v43, %v6411_v7 }
 0xa6a   :  { %6507 = vst.msk [vmem:[%s14320_s9 + $0x138] sm:$0xff] %vm176_vm0, %v6463_v46  ;;  %v8389_v21 = vpop.eup %8388 }
 0xa6b   :  { %v8391_v9 = vpop.eup %8390  ;;  %6506 = vst.msk [vmem:[%s14320_s9 + $0x130] sm:$0xff] %vm176_vm0, %v6462_v27  ;;  %v6414_v4 = vmul.f32 %v8389_v21, %v6370_v48 }
 0xa6c   :  { %v6413_v33 = vmul.f32 %v8391_v9, %v6369_v37 }
 0xa6d   :  { %v6465_v10 = vadd.f32 %v14184_v43, %v6414_v4  ;;  %v8393_v58 = vpop.eup %8392 }
 0xa6e   :  { %v6464_v1 = vadd.f32 %v14184_v43, %v6413_v33  ;;  %v6416_v36 = vmul.f32 %v8393_v58, %v6372_v49 }
 0xa6f   :  { %6509 = vst.msk [vmem:[%s14320_s9 + $0x148] sm:$0xff] %vm176_vm0, %v6465_v10 }
 0xa70   :  { %6508 = vst.msk [vmem:[%s14320_s9 + $0x140] sm:$0xff] %vm176_vm0, %v6464_v1  ;;  %v8395_v25 = vpop.eup %8394  ;;  %v6467_v38 = vadd.f32 %v14184_v43, %v6416_v36 }
 0xa71   :  { %v6415_v5 = vmul.f32 %v8395_v25, %v6371_v26 }
 0xa72   :  { %6511 = vst.msk [vmem:[%s14320_s9 + $0x158] sm:$0xff] %vm176_vm0, %v6467_v38 }
 0xa73   :  { %v6466_v14 = vadd.f32 %v14184_v43, %v6415_v5 }
 0xa75   :  { %6510 = vst.msk [vmem:[%s14320_s9 + $0x150] sm:$0xff] %vm176_vm0, %v6466_v14 }

</bundles_post_ra>
